<compile_context>
chip_gen: v5e
topology: v5e:2x2
jax: 0.10.0
libtpu: 0.0.40
codegen_flags: <defaults>
</compile_context>

<pallas_src>
import functools

import jax
import jax.numpy as jnp
from jax.experimental import pallas as pl
from jax.experimental.pallas import tpu as pltpu


# ----------------------------------------------------------------------------
# Fused kernel: full Mergenet forward for Nb images per grid step.
# ----------------------------------------------------------------------------
def _mergenet_kernel(img1_ref, img2_ref, img3_ref,
                     wcat_ref, bcat_ref, wres_ref, bres_ref,
                     wout_ref, bout_ref, out_ref,
                     p1, p2, p3, pt, *, Nb, H, W, C, n_dense, fout):
    WC = W * C                 # lane width of one interior activation row
    WPC = (W + 2) * C          # lane width of one padded activation row

    # ---- helpers: activations live in (Nb, H+2, (W+2)*C) padded scratch ------
    def zero_border(p):
        # Only the 1-pixel halo needs zeroing; interiors are always overwritten
        # before they are read.  Done every step => safe under megacore.
        zrow = jnp.zeros((Nb, 1, WPC), jnp.float32)
        zcol = jnp.zeros((Nb, H + 2, C), jnp.float32)
        p[:, pl.ds(0, 1), :] = zrow
        p[:, pl.ds(H + 1, 1), :] = zrow
        p[:, :, pl.ds(0, C)] = zcol
        p[:, :, pl.ds((W + 1) * C, C)] = zcol

    def write_interior(p, val):                     # val: (Nb*H, W*C) f32
        p[:, pl.ds(1, H), pl.ds(C, WC)] = val.reshape(Nb, H, WC)

    def read_interior(p):                           # -> (Nb*H, W*C) f32
        return p[:, pl.ds(1, H), pl.ds(C, WC)].reshape(Nb * H, WC)

    def taps(p):
        # 9 shifted, lane-contiguous (Nb*H, W*C) views, cast to bf16 for the MXU.
        return [p[:, pl.ds(ky, H), pl.ds(kx * C, WC)]
                .reshape(Nb * H, WC).astype(jnp.bfloat16)
                for ky in range(3) for kx in range(3)]

    def conv_cat(pA, pB, layer):
        # relu(conv3x3(cat([A, B], channel)) + b).  The concat is never
        # materialized: the packed weight is split per operand (A rows first,
        # matching torch.cat order) and both operands' taps accumulate in f32.
        tA, tB = taps(pA), taps(pB)
        acc = jnp.zeros((Nb * H, WC), jnp.float32)
        for t in range(9):
            acc = acc + jnp.dot(tA[t], wcat_ref[(2 * layer) * 9 + t],
                                preferred_element_type=jnp.float32)
            acc = acc + jnp.dot(tB[t], wcat_ref[(2 * layer + 1) * 9 + t],
                                preferred_element_type=jnp.float32)
        return jnp.maximum(acc + bcat_ref[layer], 0.0)

    def conv_res(p, i, relu):
        tp = taps(p)
        acc = jnp.zeros((Nb * H, WC), jnp.float32)
        for t in range(9):
            acc = acc + jnp.dot(tp[t], wres_ref[9 * i + t],
                                preferred_element_type=jnp.float32)
        acc = acc + bres_ref[i]
        return jnp.maximum(acc, 0.0) if relu else acc

    def conv_out(p):
        tp = taps(p)
        acc = jnp.zeros((Nb * H, W * fout), jnp.float32)
        for t in range(9):
            acc = acc + jnp.dot(tp[t], wout_ref[t],
                                preferred_element_type=jnp.float32)
        return jax.nn.sigmoid(acc + bout_ref[...])

    def res_block(p, first):
        # nDenselayer x make_res:  x = conv2(relu(conv1(x))) + x
        for d in range(n_dense):
            i = first + 2 * d
            write_interior(pt, conv_res(p, i, relu=True))
            write_interior(p, conv_res(pt, i + 1, relu=False) + read_interior(p))

    # ---- body -----------------------------------------------------------------
    for p in (p1, p2, p3, pt):
        zero_border(p)

    p1[:, pl.ds(1, H), pl.ds(C, WC)] = img1_ref[...]     # img1_aligned
    p2[:, pl.ds(1, H), pl.ds(C, WC)] = img2_ref[...]     # img2 (kept for residuals)
    p3[:, pl.ds(1, H), pl.ds(C, WC)] = img3_ref[...]     # img3_aligned

    # img2_1 = res1(relu(conv_in1(cat(img1_aligned, img2)))) + img2
    write_interior(p1, conv_cat(p1, p2, 0))
    res_block(p1, 0)
    write_interior(p1, read_interior(p1) + read_interior(p2))

    # img2_3 = res3(relu(conv_in3(cat(img3_aligned, img2)))) + img2
    write_interior(p3, conv_cat(p3, p2, 1))
    res_block(p3, 2 * n_dense)
    write_interior(p3, read_interior(p3) + read_interior(p2))

    # output = res_stage2(relu(conv_stage2(cat(img2_1, img2_3))))
    write_interior(p2, conv_cat(p1, p3, 2))
    res_block(p2, 4 * n_dense)

    # output = sigmoid(conv_out(output)) -> lane-dense (Nb, H, W*fout) store.
    out_ref[...] = conv_out(p2).reshape(Nb, H, W * fout).astype(out_ref.dtype)


# ----------------------------------------------------------------------------
# Wrapper: weight repacking (block-diag bf16, tiled biases) + one pallas_call.
# ----------------------------------------------------------------------------
def mergenet_forward(params, img1_aligned, img2, img3_aligned):
    w_cat, b_cat, w_res, b_res, w_out, b_out = params
    N, H, W, C = img2.shape
    n_res = w_res.shape[0]
    n_dense = n_res // 6
    fout = w_out.shape[-1]
    Nb = 2 if N % 2 == 0 else 1          # batch-block to fill the matmul M dim
    WC, WCo = W * C, W * fout

    def expand_block_diag(w_taps):
        # (L, 9, cin, cout) -> (L*9, W*cin, W*cout) bf16 block-diag kron(I_W, Wtap)
        L, T, cin, cout = w_taps.shape
        eye = jnp.eye(W, dtype=w_taps.dtype)
        blk = jnp.einsum('xy,ltio->ltxiyo', eye, w_taps)
        return blk.reshape(L * T, W * cin, W * cout).astype(jnp.bfloat16)

    # Split concat-conv weights per operand (torch.cat order: [opA, opB]).
    w_cat4 = w_cat.reshape(3, 9, 2 * C, C)
    w_cat_ab = jnp.stack([w_cat4[:, :, :C, :], w_cat4[:, :, C:, :]], axis=1)
    w_cat_blk = expand_block_diag(w_cat_ab.reshape(6, 9, C, C))      # (54, WC, WC)
    w_res_blk = expand_block_diag(w_res.reshape(n_res, 9, C, C))     # (n_res*9,..)
    w_out_blk = expand_block_diag(w_out.reshape(1, 9, C, fout))      # (9, WC, WCo)

    b_cat_t = jnp.tile(b_cat, (1, 1, W))          # (3, 1, WC), f32
    b_res_t = jnp.tile(b_res, (1, 1, W))          # (n_res, 1, WC)
    b_out_t = jnp.tile(b_out, (1, W))             # (1, WCo)

    # Lane-dense I/O layout: (N, H, W*C) in, (N, H, W*fout) out.
    i1 = img1_aligned.reshape(N, H, WC)
    i2 = img2.reshape(N, H, WC)
    i3 = img3_aligned.reshape(N, H, WC)

    kernel = functools.partial(_mergenet_kernel, Nb=Nb, H=H, W=W, C=C,
                               n_dense=n_dense, fout=fout)
    img_spec = pl.BlockSpec((Nb, H, WC), lambda g: (g, 0, 0))

    def full_spec(arr):
        nd = arr.ndim
        return pl.BlockSpec(arr.shape, lambda g, _nd=nd: (0,) * _nd)

    out = pl.pallas_call(
        kernel,
        out_shape=jax.ShapeDtypeStruct((N, H, WCo), img2.dtype),
        grid=(N // Nb,),
        in_specs=[img_spec, img_spec, img_spec,
                  full_spec(w_cat_blk), full_spec(b_cat_t),
                  full_spec(w_res_blk), full_spec(b_res_t),
                  full_spec(w_out_blk), full_spec(b_out_t)],
        out_specs=pl.BlockSpec((Nb, H, WCo), lambda g: (g, 0, 0)),
        scratch_shapes=[pltpu.VMEM((Nb, H + 2, (W + 2) * C), jnp.float32)
                        for _ in range(4)],
        compiler_params=pltpu.CompilerParams(
            dimension_semantics=("parallel",),
            vmem_limit_bytes=48 * 1024 * 1024),     # <= v7x 64 MiB physical
    )(i1, i2, i3, w_cat_blk, b_cat_t, w_res_blk, b_res_t, w_out_blk, b_out_t)
    return out.reshape(N, H, W, fout)


# ----------------------------------------------------------------------------
# Deterministic parameter construction (canonical packed layout).
#   cat convs : conv_in1, conv_in3, conv_stage2 -> w_cat (3, 9*2C, C)
#   res convs : res1, res3, res_stage2, each [conv1, conv2]*nDense
#                                             -> w_res (6*nDense, 9*C, C)
#   out conv  : conv_out                      -> w_out (9*C, filters_out)
# ----------------------------------------------------------------------------
def make_mergenet_params(key, nfeat, n_dense, filters_out, scale=0.05):
    def conv_p(k, cin, cout):
        kw, kb = jax.random.split(k)
        w = scale * jax.random.normal(kw, (9 * cin, cout), jnp.float32)
        b = scale * jax.random.normal(kb, (1, cout), jnp.float32)
        return w, b

    n_cat, n_res = 3, 3 * n_dense * 2
    keys = jax.random.split(key, n_cat + n_res + 1)
    cat = [conv_p(keys[i], 2 * nfeat, nfeat) for i in range(n_cat)]
    res = [conv_p(keys[n_cat + i], nfeat, nfeat) for i in range(n_res)]
    w_out, b_out = conv_p(keys[-1], nfeat, filters_out)

    w_cat = jnp.stack([w for w, _ in cat])
    b_cat = jnp.stack([b for _, b in cat])
    w_res = jnp.stack([w for w, _ in res])
    b_res = jnp.stack([b for _, b in res])
    return (w_cat, b_cat, w_res, b_res, w_out, b_out)


# ----------------------------------------------------------------------------
# Pure-JAX reference (mirrors the PyTorch module in NHWC, f32 HIGHEST).
# ----------------------------------------------------------------------------
def _conv_ref(x, w, b, act="none"):
    cin, cout = x.shape[-1], w.shape[-1]
    k = w.reshape(3, 3, cin, cout)
    y = jax.lax.conv_general_dilated(
        x, k, window_strides=(1, 1), padding=((1, 1), (1, 1)),
        dimension_numbers=("NHWC", "HWIO", "NHWC"),
        precision=jax.lax.Precision.HIGHEST)
    y = y + b.reshape(1, 1, 1, cout)
    if act == "relu":
        y = jnp.maximum(y, 0.0)
    elif act == "sigmoid":
        y = jax.nn.sigmoid(y)
    return y


def mergenet_reference(params, img1, img2, img3):
    w_cat, b_cat, w_res, b_res, w_out, b_out = params
    n_dense = w_res.shape[0] // 6

    def res_block(x, first):
        for d in range(n_dense):
            i = first + 2 * d
            t = _conv_ref(x, w_res[i], b_res[i], "relu")
            x = _conv_ref(t, w_res[i + 1], b_res[i + 1], "none") + x
        return x

    a = _conv_ref(jnp.concatenate([img1, img2], -1), w_cat[0], b_cat[0], "relu")
    a = res_block(a, 0) + img2
    c = _conv_ref(jnp.concatenate([img3, img2], -1), w_cat[1], b_cat[1], "relu")
    c = res_block(c, 2 * n_dense) + img2
    o = _conv_ref(jnp.concatenate([a, c], -1), w_cat[2], b_cat[2], "relu")
    o = res_block(o, 4 * n_dense)
    return _conv_ref(o, w_out, b_out, "sigmoid")


if __name__ == "__main__":
    # Small shapes: batch=2, nFeat=8 channels, 8x8 spatial, 2 dense layers.
    N, H, W = 2, 8, 8
    nFeat, nDenselayer, filters_out = 8, 2, 3

    root = jax.random.PRNGKey(0)
    kp, k1, k2, k3 = jax.random.split(root, 4)

    params = make_mergenet_params(kp, nFeat, nDenselayer, filters_out)
    img1_aligned = jax.random.normal(k1, (N, H, W, nFeat), jnp.float32)
    img2 = jax.random.normal(k2, (N, H, W, nFeat), jnp.float32)
    img3_aligned = jax.random.normal(k3, (N, H, W, nFeat), jnp.float32)

    out = jax.jit(mergenet_forward)(params, img1_aligned, img2, img3_aligned)
    out = jax.block_until_ready(out)

    ref = mergenet_reference(params, img1_aligned, img2, img3_aligned)

    assert out.shape == (N, H, W, filters_out)
    assert bool(jnp.all(jnp.isfinite(out)))
    assert bool(jnp.all((out >= 0.0) & (out <= 1.0)))          # sigmoid range
    # Kernel uses bf16 MXU operands (f32 accumulate) over 17 chained convs, so
    # compare against the f32/HIGHEST reference with a bf16-appropriate bound.
    max_err = float(jnp.max(jnp.abs(out - ref)))
    assert max_err < 5e-2, f"mismatch vs pure-JAX reference: {max_err}"
    print("KERNEL_OK")
</pallas_src>

<mosaic_0001>
module attributes {stable_mosaic.version = 11 : i64} {
  func.func @_mergenet_kernel(%arg0: i32, %arg1: memref<2x8x64xf32, #tpu.memory_space<vmem>>, %arg2: memref<2x8x64xf32, #tpu.memory_space<vmem>>, %arg3: memref<2x8x64xf32, #tpu.memory_space<vmem>>, %arg4: memref<54x64x64xbf16, #tpu.memory_space<vmem>>, %arg5: memref<3x1x64xf32, #tpu.memory_space<vmem>>, %arg6: memref<108x64x64xbf16, #tpu.memory_space<vmem>>, %arg7: memref<12x1x64xf32, #tpu.memory_space<vmem>>, %arg8: memref<9x64x24xbf16, #tpu.memory_space<vmem>>, %arg9: memref<1x24xf32, #tpu.memory_space<vmem>>, %arg10: memref<2x8x24xf32, #tpu.memory_space<vmem>>, %arg11: memref<2x10x80xf32, #tpu.memory_space<vmem>>, %arg12: memref<2x10x80xf32, #tpu.memory_space<vmem>>, %arg13: memref<2x10x80xf32, #tpu.memory_space<vmem>>, %arg14: memref<2x10x80xf32, #tpu.memory_space<vmem>>) attributes {dimension_semantics = [#tpu.dimension_semantics<parallel>], iteration_bounds = array<i64: 1>, scalar_prefetch = 0 : i64, scratch_operands = 4 : i64, tpu.core_type = #tpu.core_type<tc>, window_params = [{transform_indices = @transform_0, window_bounds = array<i64: 2, 8, 64>}, {transform_indices = @transform_1, window_bounds = array<i64: 2, 8, 64>}, {transform_indices = @transform_2, window_bounds = array<i64: 2, 8, 64>}, {pipeline_mode = #tpu.pipeline_mode<synchronous>, transform_indices = @transform_3, window_bounds = array<i64: 54, 64, 64>}, {pipeline_mode = #tpu.pipeline_mode<synchronous>, transform_indices = @transform_4, window_bounds = array<i64: 3, 1, 64>}, {pipeline_mode = #tpu.pipeline_mode<synchronous>, transform_indices = @transform_5, window_bounds = array<i64: 108, 64, 64>}, {pipeline_mode = #tpu.pipeline_mode<synchronous>, transform_indices = @transform_6, window_bounds = array<i64: 12, 1, 64>}, {pipeline_mode = #tpu.pipeline_mode<synchronous>, transform_indices = @transform_7, window_bounds = array<i64: 9, 64, 24>}, {pipeline_mode = #tpu.pipeline_mode<synchronous>, transform_indices = @transform_8, window_bounds = array<i64: 1, 24>}, {transform_indices = @transform_9, window_bounds = array<i64: 2, 8, 24>}]} {
    %cst = arith.constant 0.000000e+00 : f32
    %0 = vector.broadcast %cst : f32 to vector<2x1x80xf32>
    %cst_0 = arith.constant 0.000000e+00 : f32
    %1 = vector.broadcast %cst_0 : f32 to vector<2x10x8xf32>
    %c0 = arith.constant 0 : index
    %c0_1 = arith.constant 0 : index
    %c0_2 = arith.constant 0 : index
    %2 = vector.load %arg11[%c0, %c0_1, %c0_2] : memref<2x10x80xf32, #tpu.memory_space<vmem>>, vector<2x1x80xf32>
    tpu.vector_store %arg11[%c0, %c0_1, %c0_2], %0 {strides = array<i32>} : memref<2x10x80xf32, #tpu.memory_space<vmem>>, vector<2x1x80xf32>,
    %c0_3 = arith.constant 0 : index
    %c9 = arith.constant 9 : index
    %c0_4 = arith.constant 0 : index
    %3 = vector.load %arg11[%c0_3, %c9, %c0_4] : memref<2x10x80xf32, #tpu.memory_space<vmem>>, vector<2x1x80xf32>
    tpu.vector_store %arg11[%c0_3, %c9, %c0_4], %0 {strides = array<i32>} : memref<2x10x80xf32, #tpu.memory_space<vmem>>, vector<2x1x80xf32>,
    %c0_5 = arith.constant 0 : index
    %c0_6 = arith.constant 0 : index
    %c0_7 = arith.constant 0 : index
    %4 = vector.load %arg11[%c0_5, %c0_6, %c0_7] : memref<2x10x80xf32, #tpu.memory_space<vmem>>, vector<2x10x8xf32>
    tpu.vector_store %arg11[%c0_5, %c0_6, %c0_7], %1 {strides = array<i32>} : memref<2x10x80xf32, #tpu.memory_space<vmem>>, vector<2x10x8xf32>,
    %c0_8 = arith.constant 0 : index
    %c0_9 = arith.constant 0 : index
    %c72 = arith.constant 72 : index
    %5 = vector.load %arg11[%c0_8, %c0_9, %c72] : memref<2x10x80xf32, #tpu.memory_space<vmem>>, vector<2x10x8xf32>
    tpu.vector_store %arg11[%c0_8, %c0_9, %c72], %1 {strides = array<i32>} : memref<2x10x80xf32, #tpu.memory_space<vmem>>, vector<2x10x8xf32>,
    %cst_10 = arith.constant 0.000000e+00 : f32
    %6 = vector.broadcast %cst_10 : f32 to vector<2x1x80xf32>
    %cst_11 = arith.constant 0.000000e+00 : f32
    %7 = vector.broadcast %cst_11 : f32 to vector<2x10x8xf32>
    %c0_12 = arith.constant 0 : index
    %c0_13 = arith.constant 0 : index
    %c0_14 = arith.constant 0 : index
    %8 = vector.load %arg12[%c0_12, %c0_13, %c0_14] : memref<2x10x80xf32, #tpu.memory_space<vmem>>, vector<2x1x80xf32>
    tpu.vector_store %arg12[%c0_12, %c0_13, %c0_14], %6 {strides = array<i32>} : memref<2x10x80xf32, #tpu.memory_space<vmem>>, vector<2x1x80xf32>,
    %c0_15 = arith.constant 0 : index
    %c9_16 = arith.constant 9 : index
    %c0_17 = arith.constant 0 : index
    %9 = vector.load %arg12[%c0_15, %c9_16, %c0_17] : memref<2x10x80xf32, #tpu.memory_space<vmem>>, vector<2x1x80xf32>
    tpu.vector_store %arg12[%c0_15, %c9_16, %c0_17], %6 {strides = array<i32>} : memref<2x10x80xf32, #tpu.memory_space<vmem>>, vector<2x1x80xf32>,
    %c0_18 = arith.constant 0 : index
    %c0_19 = arith.constant 0 : index
    %c0_20 = arith.constant 0 : index
    %10 = vector.load %arg12[%c0_18, %c0_19, %c0_20] : memref<2x10x80xf32, #tpu.memory_space<vmem>>, vector<2x10x8xf32>
    tpu.vector_store %arg12[%c0_18, %c0_19, %c0_20], %7 {strides = array<i32>} : memref<2x10x80xf32, #tpu.memory_space<vmem>>, vector<2x10x8xf32>,
    %c0_21 = arith.constant 0 : index
    %c0_22 = arith.constant 0 : index
    %c72_23 = arith.constant 72 : index
    %11 = vector.load %arg12[%c0_21, %c0_22, %c72_23] : memref<2x10x80xf32, #tpu.memory_space<vmem>>, vector<2x10x8xf32>
    tpu.vector_store %arg12[%c0_21, %c0_22, %c72_23], %7 {strides = array<i32>} : memref<2x10x80xf32, #tpu.memory_space<vmem>>, vector<2x10x8xf32>,
    %cst_24 = arith.constant 0.000000e+00 : f32
    %12 = vector.broadcast %cst_24 : f32 to vector<2x1x80xf32>
    %cst_25 = arith.constant 0.000000e+00 : f32
    %13 = vector.broadcast %cst_25 : f32 to vector<2x10x8xf32>
    %c0_26 = arith.constant 0 : index
    %c0_27 = arith.constant 0 : index
    %c0_28 = arith.constant 0 : index
    %14 = vector.load %arg13[%c0_26, %c0_27, %c0_28] : memref<2x10x80xf32, #tpu.memory_space<vmem>>, vector<2x1x80xf32>
    tpu.vector_store %arg13[%c0_26, %c0_27, %c0_28], %12 {strides = array<i32>} : memref<2x10x80xf32, #tpu.memory_space<vmem>>, vector<2x1x80xf32>,
    %c0_29 = arith.constant 0 : index
    %c9_30 = arith.constant 9 : index
    %c0_31 = arith.constant 0 : index
    %15 = vector.load %arg13[%c0_29, %c9_30, %c0_31] : memref<2x10x80xf32, #tpu.memory_space<vmem>>, vector<2x1x80xf32>
    tpu.vector_store %arg13[%c0_29, %c9_30, %c0_31], %12 {strides = array<i32>} : memref<2x10x80xf32, #tpu.memory_space<vmem>>, vector<2x1x80xf32>,
    %c0_32 = arith.constant 0 : index
    %c0_33 = arith.constant 0 : index
    %c0_34 = arith.constant 0 : index
    %16 = vector.load %arg13[%c0_32, %c0_33, %c0_34] : memref<2x10x80xf32, #tpu.memory_space<vmem>>, vector<2x10x8xf32>
    tpu.vector_store %arg13[%c0_32, %c0_33, %c0_34], %13 {strides = array<i32>} : memref<2x10x80xf32, #tpu.memory_space<vmem>>, vector<2x10x8xf32>,
    %c0_35 = arith.constant 0 : index
    %c0_36 = arith.constant 0 : index
    %c72_37 = arith.constant 72 : index
    %17 = vector.load %arg13[%c0_35, %c0_36, %c72_37] : memref<2x10x80xf32, #tpu.memory_space<vmem>>, vector<2x10x8xf32>
    tpu.vector_store %arg13[%c0_35, %c0_36, %c72_37], %13 {strides = array<i32>} : memref<2x10x80xf32, #tpu.memory_space<vmem>>, vector<2x10x8xf32>,
    %cst_38 = arith.constant 0.000000e+00 : f32
    %18 = vector.broadcast %cst_38 : f32 to vector<2x1x80xf32>
    %cst_39 = arith.constant 0.000000e+00 : f32
    %19 = vector.broadcast %cst_39 : f32 to vector<2x10x8xf32>
    %c0_40 = arith.constant 0 : index
    %c0_41 = arith.constant 0 : index
    %c0_42 = arith.constant 0 : index
    %20 = vector.load %arg14[%c0_40, %c0_41, %c0_42] : memref<2x10x80xf32, #tpu.memory_space<vmem>>, vector<2x1x80xf32>
    tpu.vector_store %arg14[%c0_40, %c0_41, %c0_42], %18 {strides = array<i32>} : memref<2x10x80xf32, #tpu.memory_space<vmem>>, vector<2x1x80xf32>,
    %c0_43 = arith.constant 0 : index
    %c9_44 = arith.constant 9 : index
    %c0_45 = arith.constant 0 : index
    %21 = vector.load %arg14[%c0_43, %c9_44, %c0_45] : memref<2x10x80xf32, #tpu.memory_space<vmem>>, vector<2x1x80xf32>
    tpu.vector_store %arg14[%c0_43, %c9_44, %c0_45], %18 {strides = array<i32>} : memref<2x10x80xf32, #tpu.memory_space<vmem>>, vector<2x1x80xf32>,
    %c0_46 = arith.constant 0 : index
    %c0_47 = arith.constant 0 : index
    %c0_48 = arith.constant 0 : index
    %22 = vector.load %arg14[%c0_46, %c0_47, %c0_48] : memref<2x10x80xf32, #tpu.memory_space<vmem>>, vector<2x10x8xf32>
    tpu.vector_store %arg14[%c0_46, %c0_47, %c0_48], %19 {strides = array<i32>} : memref<2x10x80xf32, #tpu.memory_space<vmem>>, vector<2x10x8xf32>,
    %c0_49 = arith.constant 0 : index
    %c0_50 = arith.constant 0 : index
    %c72_51 = arith.constant 72 : index
    %23 = vector.load %arg14[%c0_49, %c0_50, %c72_51] : memref<2x10x80xf32, #tpu.memory_space<vmem>>, vector<2x10x8xf32>
    tpu.vector_store %arg14[%c0_49, %c0_50, %c72_51], %19 {strides = array<i32>} : memref<2x10x80xf32, #tpu.memory_space<vmem>>, vector<2x10x8xf32>,
    %c0_52 = arith.constant 0 : index
    %c0_53 = arith.constant 0 : index
    %c0_54 = arith.constant 0 : index
    %24 = vector.load %arg1[%c0_52, %c0_53, %c0_54] : memref<2x8x64xf32, #tpu.memory_space<vmem>>, vector<2x8x64xf32>
    %c0_55 = arith.constant 0 : index
    %c1 = arith.constant 1 : index
    %c8 = arith.constant 8 : index
    %25 = vector.load %arg11[%c0_55, %c1, %c8] : memref<2x10x80xf32, #tpu.memory_space<vmem>>, vector<2x8x64xf32>
    tpu.vector_store %arg11[%c0_55, %c1, %c8], %24 {strides = array<i32>} : memref<2x10x80xf32, #tpu.memory_space<vmem>>, vector<2x8x64xf32>,
    %c0_56 = arith.constant 0 : index
    %c0_57 = arith.constant 0 : index
    %c0_58 = arith.constant 0 : index
    %26 = vector.load %arg2[%c0_56, %c0_57, %c0_58] : memref<2x8x64xf32, #tpu.memory_space<vmem>>, vector<2x8x64xf32>
    %c0_59 = arith.constant 0 : index
    %c1_60 = arith.constant 1 : index
    %c8_61 = arith.constant 8 : index
    %27 = vector.load %arg12[%c0_59, %c1_60, %c8_61] : memref<2x10x80xf32, #tpu.memory_space<vmem>>, vector<2x8x64xf32>
    tpu.vector_store %arg12[%c0_59, %c1_60, %c8_61], %26 {strides = array<i32>} : memref<2x10x80xf32, #tpu.memory_space<vmem>>, vector<2x8x64xf32>,
    %c0_62 = arith.constant 0 : index
    %c0_63 = arith.constant 0 : index
    %c0_64 = arith.constant 0 : index
    %28 = vector.load %arg3[%c0_62, %c0_63, %c0_64] : memref<2x8x64xf32, #tpu.memory_space<vmem>>, vector<2x8x64xf32>
    %c0_65 = arith.constant 0 : index
    %c1_66 = arith.constant 1 : index
    %c8_67 = arith.constant 8 : index
    %29 = vector.load %arg13[%c0_65, %c1_66, %c8_67] : memref<2x10x80xf32, #tpu.memory_space<vmem>>, vector<2x8x64xf32>
    tpu.vector_store %arg13[%c0_65, %c1_66, %c8_67], %28 {strides = array<i32>} : memref<2x10x80xf32, #tpu.memory_space<vmem>>, vector<2x8x64xf32>,
    %c0_68 = arith.constant 0 : index
    %c0_69 = arith.constant 0 : index
    %c0_70 = arith.constant 0 : index
    %30 = vector.load %arg11[%c0_68, %c0_69, %c0_70] : memref<2x10x80xf32, #tpu.memory_space<vmem>>, vector<2x8x64xf32>
    %31 = vector.shape_cast %30 : vector<2x8x64xf32> to vector<16x64xf32>
    %32 = arith.truncf %31 : vector<16x64xf32> to vector<16x64xbf16>
    %c0_71 = arith.constant 0 : index
    %c0_72 = arith.constant 0 : index
    %c8_73 = arith.constant 8 : index
    %33 = vector.load %arg11[%c0_71, %c0_72, %c8_73] : memref<2x10x80xf32, #tpu.memory_space<vmem>>, vector<2x8x64xf32>
    %34 = vector.shape_cast %33 : vector<2x8x64xf32> to vector<16x64xf32>
    %35 = arith.truncf %34 : vector<16x64xf32> to vector<16x64xbf16>
    %c0_74 = arith.constant 0 : index
    %c0_75 = arith.constant 0 : index
    %c16 = arith.constant 16 : index
    %36 = vector.load %arg11[%c0_74, %c0_75, %c16] : memref<2x10x80xf32, #tpu.memory_space<vmem>>, vector<2x8x64xf32>
    %37 = vector.shape_cast %36 : vector<2x8x64xf32> to vector<16x64xf32>
    %38 = arith.truncf %37 : vector<16x64xf32> to vector<16x64xbf16>
    %c0_76 = arith.constant 0 : index
    %c1_77 = arith.constant 1 : index
    %c0_78 = arith.constant 0 : index
    %39 = vector.load %arg11[%c0_76, %c1_77, %c0_78] : memref<2x10x80xf32, #tpu.memory_space<vmem>>, vector<2x8x64xf32>
    %40 = vector.shape_cast %39 : vector<2x8x64xf32> to vector<16x64xf32>
    %41 = arith.truncf %40 : vector<16x64xf32> to vector<16x64xbf16>
    %c0_79 = arith.constant 0 : index
    %c1_80 = arith.constant 1 : index
    %c8_81 = arith.constant 8 : index
    %42 = vector.load %arg11[%c0_79, %c1_80, %c8_81] : memref<2x10x80xf32, #tpu.memory_space<vmem>>, vector<2x8x64xf32>
    %43 = vector.shape_cast %42 : vector<2x8x64xf32> to vector<16x64xf32>
    %44 = arith.truncf %43 : vector<16x64xf32> to vector<16x64xbf16>
    %c0_82 = arith.constant 0 : index
    %c1_83 = arith.constant 1 : index
    %c16_84 = arith.constant 16 : index
    %45 = vector.load %arg11[%c0_82, %c1_83, %c16_84] : memref<2x10x80xf32, #tpu.memory_space<vmem>>, vector<2x8x64xf32>
    %46 = vector.shape_cast %45 : vector<2x8x64xf32> to vector<16x64xf32>
    %47 = arith.truncf %46 : vector<16x64xf32> to vector<16x64xbf16>
    %c0_85 = arith.constant 0 : index
    %c2 = arith.constant 2 : index
    %c0_86 = arith.constant 0 : index
    %48 = vector.load %arg11[%c0_85, %c2, %c0_86] : memref<2x10x80xf32, #tpu.memory_space<vmem>>, vector<2x8x64xf32>
    %49 = vector.shape_cast %48 : vector<2x8x64xf32> to vector<16x64xf32>
    %50 = arith.truncf %49 : vector<16x64xf32> to vector<16x64xbf16>
    %c0_87 = arith.constant 0 : index
    %c2_88 = arith.constant 2 : index
    %c8_89 = arith.constant 8 : index
    %51 = vector.load %arg11[%c0_87, %c2_88, %c8_89] : memref<2x10x80xf32, #tpu.memory_space<vmem>>, vector<2x8x64xf32>
    %52 = vector.shape_cast %51 : vector<2x8x64xf32> to vector<16x64xf32>
    %53 = arith.truncf %52 : vector<16x64xf32> to vector<16x64xbf16>
    %c0_90 = arith.constant 0 : index
    %c2_91 = arith.constant 2 : index
    %c16_92 = arith.constant 16 : index
    %54 = vector.load %arg11[%c0_90, %c2_91, %c16_92] : memref<2x10x80xf32, #tpu.memory_space<vmem>>, vector<2x8x64xf32>
    %55 = vector.shape_cast %54 : vector<2x8x64xf32> to vector<16x64xf32>
    %56 = arith.truncf %55 : vector<16x64xf32> to vector<16x64xbf16>
    %c0_93 = arith.constant 0 : index
    %c0_94 = arith.constant 0 : index
    %c0_95 = arith.constant 0 : index
    %57 = vector.load %arg12[%c0_93, %c0_94, %c0_95] : memref<2x10x80xf32, #tpu.memory_space<vmem>>, vector<2x8x64xf32>
    %58 = vector.shape_cast %57 : vector<2x8x64xf32> to vector<16x64xf32>
    %59 = arith.truncf %58 : vector<16x64xf32> to vector<16x64xbf16>
    %c0_96 = arith.constant 0 : index
    %c0_97 = arith.constant 0 : index
    %c8_98 = arith.constant 8 : index
    %60 = vector.load %arg12[%c0_96, %c0_97, %c8_98] : memref<2x10x80xf32, #tpu.memory_space<vmem>>, vector<2x8x64xf32>
    %61 = vector.shape_cast %60 : vector<2x8x64xf32> to vector<16x64xf32>
    %62 = arith.truncf %61 : vector<16x64xf32> to vector<16x64xbf16>
    %c0_99 = arith.constant 0 : index
    %c0_100 = arith.constant 0 : index
    %c16_101 = arith.constant 16 : index
    %63 = vector.load %arg12[%c0_99, %c0_100, %c16_101] : memref<2x10x80xf32, #tpu.memory_space<vmem>>, vector<2x8x64xf32>
    %64 = vector.shape_cast %63 : vector<2x8x64xf32> to vector<16x64xf32>
    %65 = arith.truncf %64 : vector<16x64xf32> to vector<16x64xbf16>
    %c0_102 = arith.constant 0 : index
    %c1_103 = arith.constant 1 : index
    %c0_104 = arith.constant 0 : index
    %66 = vector.load %arg12[%c0_102, %c1_103, %c0_104] : memref<2x10x80xf32, #tpu.memory_space<vmem>>, vector<2x8x64xf32>
    %67 = vector.shape_cast %66 : vector<2x8x64xf32> to vector<16x64xf32>
    %68 = arith.truncf %67 : vector<16x64xf32> to vector<16x64xbf16>
    %c0_105 = arith.constant 0 : index
    %c1_106 = arith.constant 1 : index
    %c8_107 = arith.constant 8 : index
    %69 = vector.load %arg12[%c0_105, %c1_106, %c8_107] : memref<2x10x80xf32, #tpu.memory_space<vmem>>, vector<2x8x64xf32>
    %70 = vector.shape_cast %69 : vector<2x8x64xf32> to vector<16x64xf32>
    %71 = arith.truncf %70 : vector<16x64xf32> to vector<16x64xbf16>
    %c0_108 = arith.constant 0 : index
    %c1_109 = arith.constant 1 : index
    %c16_110 = arith.constant 16 : index
    %72 = vector.load %arg12[%c0_108, %c1_109, %c16_110] : memref<2x10x80xf32, #tpu.memory_space<vmem>>, vector<2x8x64xf32>
    %73 = vector.shape_cast %72 : vector<2x8x64xf32> to vector<16x64xf32>
    %74 = arith.truncf %73 : vector<16x64xf32> to vector<16x64xbf16>
    %c0_111 = arith.constant 0 : index
    %c2_112 = arith.constant 2 : index
    %c0_113 = arith.constant 0 : index
    %75 = vector.load %arg12[%c0_111, %c2_112, %c0_113] : memref<2x10x80xf32, #tpu.memory_space<vmem>>, vector<2x8x64xf32>
    %76 = vector.shape_cast %75 : vector<2x8x64xf32> to vector<16x64xf32>
    %77 = arith.truncf %76 : vector<16x64xf32> to vector<16x64xbf16>
    %c0_114 = arith.constant 0 : index
    %c2_115 = arith.constant 2 : index
    %c8_116 = arith.constant 8 : index
    %78 = vector.load %arg12[%c0_114, %c2_115, %c8_116] : memref<2x10x80xf32, #tpu.memory_space<vmem>>, vector<2x8x64xf32>
    %79 = vector.shape_cast %78 : vector<2x8x64xf32> to vector<16x64xf32>
    %80 = arith.truncf %79 : vector<16x64xf32> to vector<16x64xbf16>
    %c0_117 = arith.constant 0 : index
    %c2_118 = arith.constant 2 : index
    %c16_119 = arith.constant 16 : index
    %81 = vector.load %arg12[%c0_117, %c2_118, %c16_119] : memref<2x10x80xf32, #tpu.memory_space<vmem>>, vector<2x8x64xf32>
    %82 = vector.shape_cast %81 : vector<2x8x64xf32> to vector<16x64xf32>
    %83 = arith.truncf %82 : vector<16x64xf32> to vector<16x64xbf16>
    %cst_120 = arith.constant 0.000000e+00 : f32
    %84 = vector.broadcast %cst_120 : f32 to vector<16x64xf32>
    %c0_121 = arith.constant 0 : index
    %c0_122 = arith.constant 0 : index
    %c0_123 = arith.constant 0 : index
    %85 = vector.load %arg4[%c0_121, %c0_122, %c0_123] : memref<54x64x64xbf16, #tpu.memory_space<vmem>>, vector<1x64x64xbf16>
    %86 = vector.shape_cast %85 : vector<1x64x64xbf16> to vector<64x64xbf16>
    %cst_124 = arith.constant dense<0.000000e+00> : vector<16x64xf32>
    %87 = tpu.matmul %32, %86, %cst_124 {dimension_numbers = #tpu.dot_dimension_numbers<[1], [0], [0], [1], [0, 0, 1, 1], [], []>} : vector<16x64xbf16>, vector<64x64xbf16>, vector<16x64xf32> -> vector<16x64xf32>
    %88 = arith.addf %84, %87 : vector<16x64xf32>
    %c9_125 = arith.constant 9 : index
    %c0_126 = arith.constant 0 : index
    %c0_127 = arith.constant 0 : index
    %89 = vector.load %arg4[%c9_125, %c0_126, %c0_127] : memref<54x64x64xbf16, #tpu.memory_space<vmem>>, vector<1x64x64xbf16>
    %90 = vector.shape_cast %89 : vector<1x64x64xbf16> to vector<64x64xbf16>
    %cst_128 = arith.constant dense<0.000000e+00> : vector<16x64xf32>
    %91 = tpu.matmul %59, %90, %cst_128 {dimension_numbers = #tpu.dot_dimension_numbers<[1], [0], [0], [1], [0, 0, 1, 1], [], []>} : vector<16x64xbf16>, vector<64x64xbf16>, vector<16x64xf32> -> vector<16x64xf32>
    %92 = arith.addf %88, %91 : vector<16x64xf32>
    %c1_129 = arith.constant 1 : index
    %c0_130 = arith.constant 0 : index
    %c0_131 = arith.constant 0 : index
    %93 = vector.load %arg4[%c1_129, %c0_130, %c0_131] : memref<54x64x64xbf16, #tpu.memory_space<vmem>>, vector<1x64x64xbf16>
    %94 = vector.shape_cast %93 : vector<1x64x64xbf16> to vector<64x64xbf16>
    %cst_132 = arith.constant dense<0.000000e+00> : vector<16x64xf32>
    %95 = tpu.matmul %35, %94, %cst_132 {dimension_numbers = #tpu.dot_dimension_numbers<[1], [0], [0], [1], [0, 0, 1, 1], [], []>} : vector<16x64xbf16>, vector<64x64xbf16>, vector<16x64xf32> -> vector<16x64xf32>
    %96 = arith.addf %92, %95 : vector<16x64xf32>
    %c10 = arith.constant 10 : index
    %c0_133 = arith.constant 0 : index
    %c0_134 = arith.constant 0 : index
    %97 = vector.load %arg4[%c10, %c0_133, %c0_134] : memref<54x64x64xbf16, #tpu.memory_space<vmem>>, vector<1x64x64xbf16>
    %98 = vector.shape_cast %97 : vector<1x64x64xbf16> to vector<64x64xbf16>
    %cst_135 = arith.constant dense<0.000000e+00> : vector<16x64xf32>
    %99 = tpu.matmul %62, %98, %cst_135 {dimension_numbers = #tpu.dot_dimension_numbers<[1], [0], [0], [1], [0, 0, 1, 1], [], []>} : vector<16x64xbf16>, vector<64x64xbf16>, vector<16x64xf32> -> vector<16x64xf32>
    %100 = arith.addf %96, %99 : vector<16x64xf32>
    %c2_136 = arith.constant 2 : index
    %c0_137 = arith.constant 0 : index
    %c0_138 = arith.constant 0 : index
    %101 = vector.load %arg4[%c2_136, %c0_137, %c0_138] : memref<54x64x64xbf16, #tpu.memory_space<vmem>>, vector<1x64x64xbf16>
    %102 = vector.shape_cast %101 : vector<1x64x64xbf16> to vector<64x64xbf16>
    %cst_139 = arith.constant dense<0.000000e+00> : vector<16x64xf32>
    %103 = tpu.matmul %38, %102, %cst_139 {dimension_numbers = #tpu.dot_dimension_numbers<[1], [0], [0], [1], [0, 0, 1, 1], [], []>} : vector<16x64xbf16>, vector<64x64xbf16>, vector<16x64xf32> -> vector<16x64xf32>
    %104 = arith.addf %100, %103 : vector<16x64xf32>
    %c11 = arith.constant 11 : index
    %c0_140 = arith.constant 0 : index
    %c0_141 = arith.constant 0 : index
    %105 = vector.load %arg4[%c11, %c0_140, %c0_141] : memref<54x64x64xbf16, #tpu.memory_space<vmem>>, vector<1x64x64xbf16>
    %106 = vector.shape_cast %105 : vector<1x64x64xbf16> to vector<64x64xbf16>
    %cst_142 = arith.constant dense<0.000000e+00> : vector<16x64xf32>
    %107 = tpu.matmul %65, %106, %cst_142 {dimension_numbers = #tpu.dot_dimension_numbers<[1], [0], [0], [1], [0, 0, 1, 1], [], []>} : vector<16x64xbf16>, vector<64x64xbf16>, vector<16x64xf32> -> vector<16x64xf32>
    %108 = arith.addf %104, %107 : vector<16x64xf32>
    %c3 = arith.constant 3 : index
    %c0_143 = arith.constant 0 : index
    %c0_144 = arith.constant 0 : index
    %109 = vector.load %arg4[%c3, %c0_143, %c0_144] : memref<54x64x64xbf16, #tpu.memory_space<vmem>>, vector<1x64x64xbf16>
    %110 = vector.shape_cast %109 : vector<1x64x64xbf16> to vector<64x64xbf16>
    %cst_145 = arith.constant dense<0.000000e+00> : vector<16x64xf32>
    %111 = tpu.matmul %41, %110, %cst_145 {dimension_numbers = #tpu.dot_dimension_numbers<[1], [0], [0], [1], [0, 0, 1, 1], [], []>} : vector<16x64xbf16>, vector<64x64xbf16>, vector<16x64xf32> -> vector<16x64xf32>
    %112 = arith.addf %108, %111 : vector<16x64xf32>
    %c12 = arith.constant 12 : index
    %c0_146 = arith.constant 0 : index
    %c0_147 = arith.constant 0 : index
    %113 = vector.load %arg4[%c12, %c0_146, %c0_147] : memref<54x64x64xbf16, #tpu.memory_space<vmem>>, vector<1x64x64xbf16>
    %114 = vector.shape_cast %113 : vector<1x64x64xbf16> to vector<64x64xbf16>
    %cst_148 = arith.constant dense<0.000000e+00> : vector<16x64xf32>
    %115 = tpu.matmul %68, %114, %cst_148 {dimension_numbers = #tpu.dot_dimension_numbers<[1], [0], [0], [1], [0, 0, 1, 1], [], []>} : vector<16x64xbf16>, vector<64x64xbf16>, vector<16x64xf32> -> vector<16x64xf32>
    %116 = arith.addf %112, %115 : vector<16x64xf32>
    %c4 = arith.constant 4 : index
    %c0_149 = arith.constant 0 : index
    %c0_150 = arith.constant 0 : index
    %117 = vector.load %arg4[%c4, %c0_149, %c0_150] : memref<54x64x64xbf16, #tpu.memory_space<vmem>>, vector<1x64x64xbf16>
    %118 = vector.shape_cast %117 : vector<1x64x64xbf16> to vector<64x64xbf16>
    %cst_151 = arith.constant dense<0.000000e+00> : vector<16x64xf32>
    %119 = tpu.matmul %44, %118, %cst_151 {dimension_numbers = #tpu.dot_dimension_numbers<[1], [0], [0], [1], [0, 0, 1, 1], [], []>} : vector<16x64xbf16>, vector<64x64xbf16>, vector<16x64xf32> -> vector<16x64xf32>
    %120 = arith.addf %116, %119 : vector<16x64xf32>
    %c13 = arith.constant 13 : index
    %c0_152 = arith.constant 0 : index
    %c0_153 = arith.constant 0 : index
    %121 = vector.load %arg4[%c13, %c0_152, %c0_153] : memref<54x64x64xbf16, #tpu.memory_space<vmem>>, vector<1x64x64xbf16>
    %122 = vector.shape_cast %121 : vector<1x64x64xbf16> to vector<64x64xbf16>
    %cst_154 = arith.constant dense<0.000000e+00> : vector<16x64xf32>
    %123 = tpu.matmul %71, %122, %cst_154 {dimension_numbers = #tpu.dot_dimension_numbers<[1], [0], [0], [1], [0, 0, 1, 1], [], []>} : vector<16x64xbf16>, vector<64x64xbf16>, vector<16x64xf32> -> vector<16x64xf32>
    %124 = arith.addf %120, %123 : vector<16x64xf32>
    %c5 = arith.constant 5 : index
    %c0_155 = arith.constant 0 : index
    %c0_156 = arith.constant 0 : index
    %125 = vector.load %arg4[%c5, %c0_155, %c0_156] : memref<54x64x64xbf16, #tpu.memory_space<vmem>>, vector<1x64x64xbf16>
    %126 = vector.shape_cast %125 : vector<1x64x64xbf16> to vector<64x64xbf16>
    %cst_157 = arith.constant dense<0.000000e+00> : vector<16x64xf32>
    %127 = tpu.matmul %47, %126, %cst_157 {dimension_numbers = #tpu.dot_dimension_numbers<[1], [0], [0], [1], [0, 0, 1, 1], [], []>} : vector<16x64xbf16>, vector<64x64xbf16>, vector<16x64xf32> -> vector<16x64xf32>
    %128 = arith.addf %124, %127 : vector<16x64xf32>
    %c14 = arith.constant 14 : index
    %c0_158 = arith.constant 0 : index
    %c0_159 = arith.constant 0 : index
    %129 = vector.load %arg4[%c14, %c0_158, %c0_159] : memref<54x64x64xbf16, #tpu.memory_space<vmem>>, vector<1x64x64xbf16>
    %130 = vector.shape_cast %129 : vector<1x64x64xbf16> to vector<64x64xbf16>
    %cst_160 = arith.constant dense<0.000000e+00> : vector<16x64xf32>
    %131 = tpu.matmul %74, %130, %cst_160 {dimension_numbers = #tpu.dot_dimension_numbers<[1], [0], [0], [1], [0, 0, 1, 1], [], []>} : vector<16x64xbf16>, vector<64x64xbf16>, vector<16x64xf32> -> vector<16x64xf32>
    %132 = arith.addf %128, %131 : vector<16x64xf32>
    %c6 = arith.constant 6 : index
    %c0_161 = arith.constant 0 : index
    %c0_162 = arith.constant 0 : index
    %133 = vector.load %arg4[%c6, %c0_161, %c0_162] : memref<54x64x64xbf16, #tpu.memory_space<vmem>>, vector<1x64x64xbf16>
    %134 = vector.shape_cast %133 : vector<1x64x64xbf16> to vector<64x64xbf16>
    %cst_163 = arith.constant dense<0.000000e+00> : vector<16x64xf32>
    %135 = tpu.matmul %50, %134, %cst_163 {dimension_numbers = #tpu.dot_dimension_numbers<[1], [0], [0], [1], [0, 0, 1, 1], [], []>} : vector<16x64xbf16>, vector<64x64xbf16>, vector<16x64xf32> -> vector<16x64xf32>
    %136 = arith.addf %132, %135 : vector<16x64xf32>
    %c15 = arith.constant 15 : index
    %c0_164 = arith.constant 0 : index
    %c0_165 = arith.constant 0 : index
    %137 = vector.load %arg4[%c15, %c0_164, %c0_165] : memref<54x64x64xbf16, #tpu.memory_space<vmem>>, vector<1x64x64xbf16>
    %138 = vector.shape_cast %137 : vector<1x64x64xbf16> to vector<64x64xbf16>
    %cst_166 = arith.constant dense<0.000000e+00> : vector<16x64xf32>
    %139 = tpu.matmul %77, %138, %cst_166 {dimension_numbers = #tpu.dot_dimension_numbers<[1], [0], [0], [1], [0, 0, 1, 1], [], []>} : vector<16x64xbf16>, vector<64x64xbf16>, vector<16x64xf32> -> vector<16x64xf32>
    %140 = arith.addf %136, %139 : vector<16x64xf32>
    %c7 = arith.constant 7 : index
    %c0_167 = arith.constant 0 : index
    %c0_168 = arith.constant 0 : index
    %141 = vector.load %arg4[%c7, %c0_167, %c0_168] : memref<54x64x64xbf16, #tpu.memory_space<vmem>>, vector<1x64x64xbf16>
    %142 = vector.shape_cast %141 : vector<1x64x64xbf16> to vector<64x64xbf16>
    %cst_169 = arith.constant dense<0.000000e+00> : vector<16x64xf32>
    %143 = tpu.matmul %53, %142, %cst_169 {dimension_numbers = #tpu.dot_dimension_numbers<[1], [0], [0], [1], [0, 0, 1, 1], [], []>} : vector<16x64xbf16>, vector<64x64xbf16>, vector<16x64xf32> -> vector<16x64xf32>
    %144 = arith.addf %140, %143 : vector<16x64xf32>
    %c16_170 = arith.constant 16 : index
    %c0_171 = arith.constant 0 : index
    %c0_172 = arith.constant 0 : index
    %145 = vector.load %arg4[%c16_170, %c0_171, %c0_172] : memref<54x64x64xbf16, #tpu.memory_space<vmem>>, vector<1x64x64xbf16>
    %146 = vector.shape_cast %145 : vector<1x64x64xbf16> to vector<64x64xbf16>
    %cst_173 = arith.constant dense<0.000000e+00> : vector<16x64xf32>
    %147 = tpu.matmul %80, %146, %cst_173 {dimension_numbers = #tpu.dot_dimension_numbers<[1], [0], [0], [1], [0, 0, 1, 1], [], []>} : vector<16x64xbf16>, vector<64x64xbf16>, vector<16x64xf32> -> vector<16x64xf32>
    %148 = arith.addf %144, %147 : vector<16x64xf32>
    %c8_174 = arith.constant 8 : index
    %c0_175 = arith.constant 0 : index
    %c0_176 = arith.constant 0 : index
    %149 = vector.load %arg4[%c8_174, %c0_175, %c0_176] : memref<54x64x64xbf16, #tpu.memory_space<vmem>>, vector<1x64x64xbf16>
    %150 = vector.shape_cast %149 : vector<1x64x64xbf16> to vector<64x64xbf16>
    %cst_177 = arith.constant dense<0.000000e+00> : vector<16x64xf32>
    %151 = tpu.matmul %56, %150, %cst_177 {dimension_numbers = #tpu.dot_dimension_numbers<[1], [0], [0], [1], [0, 0, 1, 1], [], []>} : vector<16x64xbf16>, vector<64x64xbf16>, vector<16x64xf32> -> vector<16x64xf32>
    %152 = arith.addf %148, %151 : vector<16x64xf32>
    %c17 = arith.constant 17 : index
    %c0_178 = arith.constant 0 : index
    %c0_179 = arith.constant 0 : index
    %153 = vector.load %arg4[%c17, %c0_178, %c0_179] : memref<54x64x64xbf16, #tpu.memory_space<vmem>>, vector<1x64x64xbf16>
    %154 = vector.shape_cast %153 : vector<1x64x64xbf16> to vector<64x64xbf16>
    %cst_180 = arith.constant dense<0.000000e+00> : vector<16x64xf32>
    %155 = tpu.matmul %83, %154, %cst_180 {dimension_numbers = #tpu.dot_dimension_numbers<[1], [0], [0], [1], [0, 0, 1, 1], [], []>} : vector<16x64xbf16>, vector<64x64xbf16>, vector<16x64xf32> -> vector<16x64xf32>
    %156 = arith.addf %152, %155 : vector<16x64xf32>
    %c0_181 = arith.constant 0 : index
    %c0_182 = arith.constant 0 : index
    %c0_183 = arith.constant 0 : index
    %157 = vector.load %arg5[%c0_181, %c0_182, %c0_183] : memref<3x1x64xf32, #tpu.memory_space<vmem>>, vector<1x1x64xf32>
    %158 = vector.shape_cast %157 : vector<1x1x64xf32> to vector<1x64xf32>
    %159 = vector.broadcast %158 : vector<1x64xf32> to vector<16x64xf32>
    %160 = arith.addf %156, %159 : vector<16x64xf32>
    %cst_184 = arith.constant 0.000000e+00 : f32
    %161 = vector.broadcast %cst_184 : f32 to vector<16x64xf32>
    %162 = arith.maximumf %160, %161 : vector<16x64xf32>
    %163 = vector.shape_cast %162 : vector<16x64xf32> to vector<2x8x64xf32>
    %c0_185 = arith.constant 0 : index
    %c1_186 = arith.constant 1 : index
    %c8_187 = arith.constant 8 : index
    %164 = vector.load %arg11[%c0_185, %c1_186, %c8_187] : memref<2x10x80xf32, #tpu.memory_space<vmem>>, vector<2x8x64xf32>
    tpu.vector_store %arg11[%c0_185, %c1_186, %c8_187], %163 {strides = array<i32>} : memref<2x10x80xf32, #tpu.memory_space<vmem>>, vector<2x8x64xf32>,
    %c0_188 = arith.constant 0 : index
    %c0_189 = arith.constant 0 : index
    %c0_190 = arith.constant 0 : index
    %165 = vector.load %arg11[%c0_188, %c0_189, %c0_190] : memref<2x10x80xf32, #tpu.memory_space<vmem>>, vector<2x8x64xf32>
    %166 = vector.shape_cast %165 : vector<2x8x64xf32> to vector<16x64xf32>
    %167 = arith.truncf %166 : vector<16x64xf32> to vector<16x64xbf16>
    %c0_191 = arith.constant 0 : index
    %c0_192 = arith.constant 0 : index
    %c8_193 = arith.constant 8 : index
    %168 = vector.load %arg11[%c0_191, %c0_192, %c8_193] : memref<2x10x80xf32, #tpu.memory_space<vmem>>, vector<2x8x64xf32>
    %169 = vector.shape_cast %168 : vector<2x8x64xf32> to vector<16x64xf32>
    %170 = arith.truncf %169 : vector<16x64xf32> to vector<16x64xbf16>
    %c0_194 = arith.constant 0 : index
    %c0_195 = arith.constant 0 : index
    %c16_196 = arith.constant 16 : index
    %171 = vector.load %arg11[%c0_194, %c0_195, %c16_196] : memref<2x10x80xf32, #tpu.memory_space<vmem>>, vector<2x8x64xf32>
    %172 = vector.shape_cast %171 : vector<2x8x64xf32> to vector<16x64xf32>
    %173 = arith.truncf %172 : vector<16x64xf32> to vector<16x64xbf16>
    %c0_197 = arith.constant 0 : index
    %c1_198 = arith.constant 1 : index
    %c0_199 = arith.constant 0 : index
    %174 = vector.load %arg11[%c0_197, %c1_198, %c0_199] : memref<2x10x80xf32, #tpu.memory_space<vmem>>, vector<2x8x64xf32>
    %175 = vector.shape_cast %174 : vector<2x8x64xf32> to vector<16x64xf32>
    %176 = arith.truncf %175 : vector<16x64xf32> to vector<16x64xbf16>
    %c0_200 = arith.constant 0 : index
    %c1_201 = arith.constant 1 : index
    %c8_202 = arith.constant 8 : index
    %177 = vector.load %arg11[%c0_200, %c1_201, %c8_202] : memref<2x10x80xf32, #tpu.memory_space<vmem>>, vector<2x8x64xf32>
    %178 = vector.shape_cast %177 : vector<2x8x64xf32> to vector<16x64xf32>
    %179 = arith.truncf %178 : vector<16x64xf32> to vector<16x64xbf16>
    %c0_203 = arith.constant 0 : index
    %c1_204 = arith.constant 1 : index
    %c16_205 = arith.constant 16 : index
    %180 = vector.load %arg11[%c0_203, %c1_204, %c16_205] : memref<2x10x80xf32, #tpu.memory_space<vmem>>, vector<2x8x64xf32>
    %181 = vector.shape_cast %180 : vector<2x8x64xf32> to vector<16x64xf32>
    %182 = arith.truncf %181 : vector<16x64xf32> to vector<16x64xbf16>
    %c0_206 = arith.constant 0 : index
    %c2_207 = arith.constant 2 : index
    %c0_208 = arith.constant 0 : index
    %183 = vector.load %arg11[%c0_206, %c2_207, %c0_208] : memref<2x10x80xf32, #tpu.memory_space<vmem>>, vector<2x8x64xf32>
    %184 = vector.shape_cast %183 : vector<2x8x64xf32> to vector<16x64xf32>
    %185 = arith.truncf %184 : vector<16x64xf32> to vector<16x64xbf16>
    %c0_209 = arith.constant 0 : index
    %c2_210 = arith.constant 2 : index
    %c8_211 = arith.constant 8 : index
    %186 = vector.load %arg11[%c0_209, %c2_210, %c8_211] : memref<2x10x80xf32, #tpu.memory_space<vmem>>, vector<2x8x64xf32>
    %187 = vector.shape_cast %186 : vector<2x8x64xf32> to vector<16x64xf32>
    %188 = arith.truncf %187 : vector<16x64xf32> to vector<16x64xbf16>
    %c0_212 = arith.constant 0 : index
    %c2_213 = arith.constant 2 : index
    %c16_214 = arith.constant 16 : index
    %189 = vector.load %arg11[%c0_212, %c2_213, %c16_214] : memref<2x10x80xf32, #tpu.memory_space<vmem>>, vector<2x8x64xf32>
    %190 = vector.shape_cast %189 : vector<2x8x64xf32> to vector<16x64xf32>
    %191 = arith.truncf %190 : vector<16x64xf32> to vector<16x64xbf16>
    %cst_215 = arith.constant 0.000000e+00 : f32
    %192 = vector.broadcast %cst_215 : f32 to vector<16x64xf32>
    %c0_216 = arith.constant 0 : index
    %c0_217 = arith.constant 0 : index
    %c0_218 = arith.constant 0 : index
    %193 = vector.load %arg6[%c0_216, %c0_217, %c0_218] : memref<108x64x64xbf16, #tpu.memory_space<vmem>>, vector<1x64x64xbf16>
    %194 = vector.shape_cast %193 : vector<1x64x64xbf16> to vector<64x64xbf16>
    %cst_219 = arith.constant dense<0.000000e+00> : vector<16x64xf32>
    %195 = tpu.matmul %167, %194, %cst_219 {dimension_numbers = #tpu.dot_dimension_numbers<[1], [0], [0], [1], [0, 0, 1, 1], [], []>} : vector<16x64xbf16>, vector<64x64xbf16>, vector<16x64xf32> -> vector<16x64xf32>
    %196 = arith.addf %192, %195 : vector<16x64xf32>
    %c1_220 = arith.constant 1 : index
    %c0_221 = arith.constant 0 : index
    %c0_222 = arith.constant 0 : index
    %197 = vector.load %arg6[%c1_220, %c0_221, %c0_222] : memref<108x64x64xbf16, #tpu.memory_space<vmem>>, vector<1x64x64xbf16>
    %198 = vector.shape_cast %197 : vector<1x64x64xbf16> to vector<64x64xbf16>
    %cst_223 = arith.constant dense<0.000000e+00> : vector<16x64xf32>
    %199 = tpu.matmul %170, %198, %cst_223 {dimension_numbers = #tpu.dot_dimension_numbers<[1], [0], [0], [1], [0, 0, 1, 1], [], []>} : vector<16x64xbf16>, vector<64x64xbf16>, vector<16x64xf32> -> vector<16x64xf32>
    %200 = arith.addf %196, %199 : vector<16x64xf32>
    %c2_224 = arith.constant 2 : index
    %c0_225 = arith.constant 0 : index
    %c0_226 = arith.constant 0 : index
    %201 = vector.load %arg6[%c2_224, %c0_225, %c0_226] : memref<108x64x64xbf16, #tpu.memory_space<vmem>>, vector<1x64x64xbf16>
    %202 = vector.shape_cast %201 : vector<1x64x64xbf16> to vector<64x64xbf16>
    %cst_227 = arith.constant dense<0.000000e+00> : vector<16x64xf32>
    %203 = tpu.matmul %173, %202, %cst_227 {dimension_numbers = #tpu.dot_dimension_numbers<[1], [0], [0], [1], [0, 0, 1, 1], [], []>} : vector<16x64xbf16>, vector<64x64xbf16>, vector<16x64xf32> -> vector<16x64xf32>
    %204 = arith.addf %200, %203 : vector<16x64xf32>
    %c3_228 = arith.constant 3 : index
    %c0_229 = arith.constant 0 : index
    %c0_230 = arith.constant 0 : index
    %205 = vector.load %arg6[%c3_228, %c0_229, %c0_230] : memref<108x64x64xbf16, #tpu.memory_space<vmem>>, vector<1x64x64xbf16>
    %206 = vector.shape_cast %205 : vector<1x64x64xbf16> to vector<64x64xbf16>
    %cst_231 = arith.constant dense<0.000000e+00> : vector<16x64xf32>
    %207 = tpu.matmul %176, %206, %cst_231 {dimension_numbers = #tpu.dot_dimension_numbers<[1], [0], [0], [1], [0, 0, 1, 1], [], []>} : vector<16x64xbf16>, vector<64x64xbf16>, vector<16x64xf32> -> vector<16x64xf32>
    %208 = arith.addf %204, %207 : vector<16x64xf32>
    %c4_232 = arith.constant 4 : index
    %c0_233 = arith.constant 0 : index
    %c0_234 = arith.constant 0 : index
    %209 = vector.load %arg6[%c4_232, %c0_233, %c0_234] : memref<108x64x64xbf16, #tpu.memory_space<vmem>>, vector<1x64x64xbf16>
    %210 = vector.shape_cast %209 : vector<1x64x64xbf16> to vector<64x64xbf16>
    %cst_235 = arith.constant dense<0.000000e+00> : vector<16x64xf32>
    %211 = tpu.matmul %179, %210, %cst_235 {dimension_numbers = #tpu.dot_dimension_numbers<[1], [0], [0], [1], [0, 0, 1, 1], [], []>} : vector<16x64xbf16>, vector<64x64xbf16>, vector<16x64xf32> -> vector<16x64xf32>
    %212 = arith.addf %208, %211 : vector<16x64xf32>
    %c5_236 = arith.constant 5 : index
    %c0_237 = arith.constant 0 : index
    %c0_238 = arith.constant 0 : index
    %213 = vector.load %arg6[%c5_236, %c0_237, %c0_238] : memref<108x64x64xbf16, #tpu.memory_space<vmem>>, vector<1x64x64xbf16>
    %214 = vector.shape_cast %213 : vector<1x64x64xbf16> to vector<64x64xbf16>
    %cst_239 = arith.constant dense<0.000000e+00> : vector<16x64xf32>
    %215 = tpu.matmul %182, %214, %cst_239 {dimension_numbers = #tpu.dot_dimension_numbers<[1], [0], [0], [1], [0, 0, 1, 1], [], []>} : vector<16x64xbf16>, vector<64x64xbf16>, vector<16x64xf32> -> vector<16x64xf32>
    %216 = arith.addf %212, %215 : vector<16x64xf32>
    %c6_240 = arith.constant 6 : index
    %c0_241 = arith.constant 0 : index
    %c0_242 = arith.constant 0 : index
    %217 = vector.load %arg6[%c6_240, %c0_241, %c0_242] : memref<108x64x64xbf16, #tpu.memory_space<vmem>>, vector<1x64x64xbf16>
    %218 = vector.shape_cast %217 : vector<1x64x64xbf16> to vector<64x64xbf16>
    %cst_243 = arith.constant dense<0.000000e+00> : vector<16x64xf32>
    %219 = tpu.matmul %185, %218, %cst_243 {dimension_numbers = #tpu.dot_dimension_numbers<[1], [0], [0], [1], [0, 0, 1, 1], [], []>} : vector<16x64xbf16>, vector<64x64xbf16>, vector<16x64xf32> -> vector<16x64xf32>
    %220 = arith.addf %216, %219 : vector<16x64xf32>
    %c7_244 = arith.constant 7 : index
    %c0_245 = arith.constant 0 : index
    %c0_246 = arith.constant 0 : index
    %221 = vector.load %arg6[%c7_244, %c0_245, %c0_246] : memref<108x64x64xbf16, #tpu.memory_space<vmem>>, vector<1x64x64xbf16>
    %222 = vector.shape_cast %221 : vector<1x64x64xbf16> to vector<64x64xbf16>
    %cst_247 = arith.constant dense<0.000000e+00> : vector<16x64xf32>
    %223 = tpu.matmul %188, %222, %cst_247 {dimension_numbers = #tpu.dot_dimension_numbers<[1], [0], [0], [1], [0, 0, 1, 1], [], []>} : vector<16x64xbf16>, vector<64x64xbf16>, vector<16x64xf32> -> vector<16x64xf32>
    %224 = arith.addf %220, %223 : vector<16x64xf32>
    %c8_248 = arith.constant 8 : index
    %c0_249 = arith.constant 0 : index
    %c0_250 = arith.constant 0 : index
    %225 = vector.load %arg6[%c8_248, %c0_249, %c0_250] : memref<108x64x64xbf16, #tpu.memory_space<vmem>>, vector<1x64x64xbf16>
    %226 = vector.shape_cast %225 : vector<1x64x64xbf16> to vector<64x64xbf16>
    %cst_251 = arith.constant dense<0.000000e+00> : vector<16x64xf32>
    %227 = tpu.matmul %191, %226, %cst_251 {dimension_numbers = #tpu.dot_dimension_numbers<[1], [0], [0], [1], [0, 0, 1, 1], [], []>} : vector<16x64xbf16>, vector<64x64xbf16>, vector<16x64xf32> -> vector<16x64xf32>
    %228 = arith.addf %224, %227 : vector<16x64xf32>
    %c0_252 = arith.constant 0 : index
    %c0_253 = arith.constant 0 : index
    %c0_254 = arith.constant 0 : index
    %229 = vector.load %arg7[%c0_252, %c0_253, %c0_254] : memref<12x1x64xf32, #tpu.memory_space<vmem>>, vector<1x1x64xf32>
    %230 = vector.shape_cast %229 : vector<1x1x64xf32> to vector<1x64xf32>
    %231 = vector.broadcast %230 : vector<1x64xf32> to vector<16x64xf32>
    %232 = arith.addf %228, %231 : vector<16x64xf32>
    %cst_255 = arith.constant 0.000000e+00 : f32
    %233 = vector.broadcast %cst_255 : f32 to vector<16x64xf32>
    %234 = arith.maximumf %232, %233 : vector<16x64xf32>
    %235 = vector.shape_cast %234 : vector<16x64xf32> to vector<2x8x64xf32>
    %c0_256 = arith.constant 0 : index
    %c1_257 = arith.constant 1 : index
    %c8_258 = arith.constant 8 : index
    %236 = vector.load %arg14[%c0_256, %c1_257, %c8_258] : memref<2x10x80xf32, #tpu.memory_space<vmem>>, vector<2x8x64xf32>
    tpu.vector_store %arg14[%c0_256, %c1_257, %c8_258], %235 {strides = array<i32>} : memref<2x10x80xf32, #tpu.memory_space<vmem>>, vector<2x8x64xf32>,
    %c0_259 = arith.constant 0 : index
    %c0_260 = arith.constant 0 : index
    %c0_261 = arith.constant 0 : index
    %237 = vector.load %arg14[%c0_259, %c0_260, %c0_261] : memref<2x10x80xf32, #tpu.memory_space<vmem>>, vector<2x8x64xf32>
    %238 = vector.shape_cast %237 : vector<2x8x64xf32> to vector<16x64xf32>
    %239 = arith.truncf %238 : vector<16x64xf32> to vector<16x64xbf16>
    %c0_262 = arith.constant 0 : index
    %c0_263 = arith.constant 0 : index
    %c8_264 = arith.constant 8 : index
    %240 = vector.load %arg14[%c0_262, %c0_263, %c8_264] : memref<2x10x80xf32, #tpu.memory_space<vmem>>, vector<2x8x64xf32>
    %241 = vector.shape_cast %240 : vector<2x8x64xf32> to vector<16x64xf32>
    %242 = arith.truncf %241 : vector<16x64xf32> to vector<16x64xbf16>
    %c0_265 = arith.constant 0 : index
    %c0_266 = arith.constant 0 : index
    %c16_267 = arith.constant 16 : index
    %243 = vector.load %arg14[%c0_265, %c0_266, %c16_267] : memref<2x10x80xf32, #tpu.memory_space<vmem>>, vector<2x8x64xf32>
    %244 = vector.shape_cast %243 : vector<2x8x64xf32> to vector<16x64xf32>
    %245 = arith.truncf %244 : vector<16x64xf32> to vector<16x64xbf16>
    %c0_268 = arith.constant 0 : index
    %c1_269 = arith.constant 1 : index
    %c0_270 = arith.constant 0 : index
    %246 = vector.load %arg14[%c0_268, %c1_269, %c0_270] : memref<2x10x80xf32, #tpu.memory_space<vmem>>, vector<2x8x64xf32>
    %247 = vector.shape_cast %246 : vector<2x8x64xf32> to vector<16x64xf32>
    %248 = arith.truncf %247 : vector<16x64xf32> to vector<16x64xbf16>
    %c0_271 = arith.constant 0 : index
    %c1_272 = arith.constant 1 : index
    %c8_273 = arith.constant 8 : index
    %249 = vector.load %arg14[%c0_271, %c1_272, %c8_273] : memref<2x10x80xf32, #tpu.memory_space<vmem>>, vector<2x8x64xf32>
    %250 = vector.shape_cast %249 : vector<2x8x64xf32> to vector<16x64xf32>
    %251 = arith.truncf %250 : vector<16x64xf32> to vector<16x64xbf16>
    %c0_274 = arith.constant 0 : index
    %c1_275 = arith.constant 1 : index
    %c16_276 = arith.constant 16 : index
    %252 = vector.load %arg14[%c0_274, %c1_275, %c16_276] : memref<2x10x80xf32, #tpu.memory_space<vmem>>, vector<2x8x64xf32>
    %253 = vector.shape_cast %252 : vector<2x8x64xf32> to vector<16x64xf32>
    %254 = arith.truncf %253 : vector<16x64xf32> to vector<16x64xbf16>
    %c0_277 = arith.constant 0 : index
    %c2_278 = arith.constant 2 : index
    %c0_279 = arith.constant 0 : index
    %255 = vector.load %arg14[%c0_277, %c2_278, %c0_279] : memref<2x10x80xf32, #tpu.memory_space<vmem>>, vector<2x8x64xf32>
    %256 = vector.shape_cast %255 : vector<2x8x64xf32> to vector<16x64xf32>
    %257 = arith.truncf %256 : vector<16x64xf32> to vector<16x64xbf16>
    %c0_280 = arith.constant 0 : index
    %c2_281 = arith.constant 2 : index
    %c8_282 = arith.constant 8 : index
    %258 = vector.load %arg14[%c0_280, %c2_281, %c8_282] : memref<2x10x80xf32, #tpu.memory_space<vmem>>, vector<2x8x64xf32>
    %259 = vector.shape_cast %258 : vector<2x8x64xf32> to vector<16x64xf32>
    %260 = arith.truncf %259 : vector<16x64xf32> to vector<16x64xbf16>
    %c0_283 = arith.constant 0 : index
    %c2_284 = arith.constant 2 : index
    %c16_285 = arith.constant 16 : index
    %261 = vector.load %arg14[%c0_283, %c2_284, %c16_285] : memref<2x10x80xf32, #tpu.memory_space<vmem>>, vector<2x8x64xf32>
    %262 = vector.shape_cast %261 : vector<2x8x64xf32> to vector<16x64xf32>
    %263 = arith.truncf %262 : vector<16x64xf32> to vector<16x64xbf16>
    %cst_286 = arith.constant 0.000000e+00 : f32
    %264 = vector.broadcast %cst_286 : f32 to vector<16x64xf32>
    %c9_287 = arith.constant 9 : index
    %c0_288 = arith.constant 0 : index
    %c0_289 = arith.constant 0 : index
    %265 = vector.load %arg6[%c9_287, %c0_288, %c0_289] : memref<108x64x64xbf16, #tpu.memory_space<vmem>>, vector<1x64x64xbf16>
    %266 = vector.shape_cast %265 : vector<1x64x64xbf16> to vector<64x64xbf16>
    %cst_290 = arith.constant dense<0.000000e+00> : vector<16x64xf32>
    %267 = tpu.matmul %239, %266, %cst_290 {dimension_numbers = #tpu.dot_dimension_numbers<[1], [0], [0], [1], [0, 0, 1, 1], [], []>} : vector<16x64xbf16>, vector<64x64xbf16>, vector<16x64xf32> -> vector<16x64xf32>
    %268 = arith.addf %264, %267 : vector<16x64xf32>
    %c10_291 = arith.constant 10 : index
    %c0_292 = arith.constant 0 : index
    %c0_293 = arith.constant 0 : index
    %269 = vector.load %arg6[%c10_291, %c0_292, %c0_293] : memref<108x64x64xbf16, #tpu.memory_space<vmem>>, vector<1x64x64xbf16>
    %270 = vector.shape_cast %269 : vector<1x64x64xbf16> to vector<64x64xbf16>
    %cst_294 = arith.constant dense<0.000000e+00> : vector<16x64xf32>
    %271 = tpu.matmul %242, %270, %cst_294 {dimension_numbers = #tpu.dot_dimension_numbers<[1], [0], [0], [1], [0, 0, 1, 1], [], []>} : vector<16x64xbf16>, vector<64x64xbf16>, vector<16x64xf32> -> vector<16x64xf32>
    %272 = arith.addf %268, %271 : vector<16x64xf32>
    %c11_295 = arith.constant 11 : index
    %c0_296 = arith.constant 0 : index
    %c0_297 = arith.constant 0 : index
    %273 = vector.load %arg6[%c11_295, %c0_296, %c0_297] : memref<108x64x64xbf16, #tpu.memory_space<vmem>>, vector<1x64x64xbf16>
    %274 = vector.shape_cast %273 : vector<1x64x64xbf16> to vector<64x64xbf16>
    %cst_298 = arith.constant dense<0.000000e+00> : vector<16x64xf32>
    %275 = tpu.matmul %245, %274, %cst_298 {dimension_numbers = #tpu.dot_dimension_numbers<[1], [0], [0], [1], [0, 0, 1, 1], [], []>} : vector<16x64xbf16>, vector<64x64xbf16>, vector<16x64xf32> -> vector<16x64xf32>
    %276 = arith.addf %272, %275 : vector<16x64xf32>
    %c12_299 = arith.constant 12 : index
    %c0_300 = arith.constant 0 : index
    %c0_301 = arith.constant 0 : index
    %277 = vector.load %arg6[%c12_299, %c0_300, %c0_301] : memref<108x64x64xbf16, #tpu.memory_space<vmem>>, vector<1x64x64xbf16>
    %278 = vector.shape_cast %277 : vector<1x64x64xbf16> to vector<64x64xbf16>
    %cst_302 = arith.constant dense<0.000000e+00> : vector<16x64xf32>
    %279 = tpu.matmul %248, %278, %cst_302 {dimension_numbers = #tpu.dot_dimension_numbers<[1], [0], [0], [1], [0, 0, 1, 1], [], []>} : vector<16x64xbf16>, vector<64x64xbf16>, vector<16x64xf32> -> vector<16x64xf32>
    %280 = arith.addf %276, %279 : vector<16x64xf32>
    %c13_303 = arith.constant 13 : index
    %c0_304 = arith.constant 0 : index
    %c0_305 = arith.constant 0 : index
    %281 = vector.load %arg6[%c13_303, %c0_304, %c0_305] : memref<108x64x64xbf16, #tpu.memory_space<vmem>>, vector<1x64x64xbf16>
    %282 = vector.shape_cast %281 : vector<1x64x64xbf16> to vector<64x64xbf16>
    %cst_306 = arith.constant dense<0.000000e+00> : vector<16x64xf32>
    %283 = tpu.matmul %251, %282, %cst_306 {dimension_numbers = #tpu.dot_dimension_numbers<[1], [0], [0], [1], [0, 0, 1, 1], [], []>} : vector<16x64xbf16>, vector<64x64xbf16>, vector<16x64xf32> -> vector<16x64xf32>
    %284 = arith.addf %280, %283 : vector<16x64xf32>
    %c14_307 = arith.constant 14 : index
    %c0_308 = arith.constant 0 : index
    %c0_309 = arith.constant 0 : index
    %285 = vector.load %arg6[%c14_307, %c0_308, %c0_309] : memref<108x64x64xbf16, #tpu.memory_space<vmem>>, vector<1x64x64xbf16>
    %286 = vector.shape_cast %285 : vector<1x64x64xbf16> to vector<64x64xbf16>
    %cst_310 = arith.constant dense<0.000000e+00> : vector<16x64xf32>
    %287 = tpu.matmul %254, %286, %cst_310 {dimension_numbers = #tpu.dot_dimension_numbers<[1], [0], [0], [1], [0, 0, 1, 1], [], []>} : vector<16x64xbf16>, vector<64x64xbf16>, vector<16x64xf32> -> vector<16x64xf32>
    %288 = arith.addf %284, %287 : vector<16x64xf32>
    %c15_311 = arith.constant 15 : index
    %c0_312 = arith.constant 0 : index
    %c0_313 = arith.constant 0 : index
    %289 = vector.load %arg6[%c15_311, %c0_312, %c0_313] : memref<108x64x64xbf16, #tpu.memory_space<vmem>>, vector<1x64x64xbf16>
    %290 = vector.shape_cast %289 : vector<1x64x64xbf16> to vector<64x64xbf16>
    %cst_314 = arith.constant dense<0.000000e+00> : vector<16x64xf32>
    %291 = tpu.matmul %257, %290, %cst_314 {dimension_numbers = #tpu.dot_dimension_numbers<[1], [0], [0], [1], [0, 0, 1, 1], [], []>} : vector<16x64xbf16>, vector<64x64xbf16>, vector<16x64xf32> -> vector<16x64xf32>
    %292 = arith.addf %288, %291 : vector<16x64xf32>
    %c16_315 = arith.constant 16 : index
    %c0_316 = arith.constant 0 : index
    %c0_317 = arith.constant 0 : index
    %293 = vector.load %arg6[%c16_315, %c0_316, %c0_317] : memref<108x64x64xbf16, #tpu.memory_space<vmem>>, vector<1x64x64xbf16>
    %294 = vector.shape_cast %293 : vector<1x64x64xbf16> to vector<64x64xbf16>
    %cst_318 = arith.constant dense<0.000000e+00> : vector<16x64xf32>
    %295 = tpu.matmul %260, %294, %cst_318 {dimension_numbers = #tpu.dot_dimension_numbers<[1], [0], [0], [1], [0, 0, 1, 1], [], []>} : vector<16x64xbf16>, vector<64x64xbf16>, vector<16x64xf32> -> vector<16x64xf32>
    %296 = arith.addf %292, %295 : vector<16x64xf32>
    %c17_319 = arith.constant 17 : index
    %c0_320 = arith.constant 0 : index
    %c0_321 = arith.constant 0 : index
    %297 = vector.load %arg6[%c17_319, %c0_320, %c0_321] : memref<108x64x64xbf16, #tpu.memory_space<vmem>>, vector<1x64x64xbf16>
    %298 = vector.shape_cast %297 : vector<1x64x64xbf16> to vector<64x64xbf16>
    %cst_322 = arith.constant dense<0.000000e+00> : vector<16x64xf32>
    %299 = tpu.matmul %263, %298, %cst_322 {dimension_numbers = #tpu.dot_dimension_numbers<[1], [0], [0], [1], [0, 0, 1, 1], [], []>} : vector<16x64xbf16>, vector<64x64xbf16>, vector<16x64xf32> -> vector<16x64xf32>
    %300 = arith.addf %296, %299 : vector<16x64xf32>
    %c1_323 = arith.constant 1 : index
    %c0_324 = arith.constant 0 : index
    %c0_325 = arith.constant 0 : index
    %301 = vector.load %arg7[%c1_323, %c0_324, %c0_325] : memref<12x1x64xf32, #tpu.memory_space<vmem>>, vector<1x1x64xf32>
    %302 = vector.shape_cast %301 : vector<1x1x64xf32> to vector<1x64xf32>
    %303 = vector.broadcast %302 : vector<1x64xf32> to vector<16x64xf32>
    %304 = arith.addf %300, %303 : vector<16x64xf32>
    %c0_326 = arith.constant 0 : index
    %c1_327 = arith.constant 1 : index
    %c8_328 = arith.constant 8 : index
    %305 = vector.load %arg11[%c0_326, %c1_327, %c8_328] : memref<2x10x80xf32, #tpu.memory_space<vmem>>, vector<2x8x64xf32>
    %306 = vector.shape_cast %305 : vector<2x8x64xf32> to vector<16x64xf32>
    %307 = arith.addf %304, %306 : vector<16x64xf32>
    %308 = vector.shape_cast %307 : vector<16x64xf32> to vector<2x8x64xf32>
    %c0_329 = arith.constant 0 : index
    %c1_330 = arith.constant 1 : index
    %c8_331 = arith.constant 8 : index
    %309 = vector.load %arg11[%c0_329, %c1_330, %c8_331] : memref<2x10x80xf32, #tpu.memory_space<vmem>>, vector<2x8x64xf32>
    tpu.vector_store %arg11[%c0_329, %c1_330, %c8_331], %308 {strides = array<i32>} : memref<2x10x80xf32, #tpu.memory_space<vmem>>, vector<2x8x64xf32>,
    %c0_332 = arith.constant 0 : index
    %c0_333 = arith.constant 0 : index
    %c0_334 = arith.constant 0 : index
    %310 = vector.load %arg11[%c0_332, %c0_333, %c0_334] : memref<2x10x80xf32, #tpu.memory_space<vmem>>, vector<2x8x64xf32>
    %311 = vector.shape_cast %310 : vector<2x8x64xf32> to vector<16x64xf32>
    %312 = arith.truncf %311 : vector<16x64xf32> to vector<16x64xbf16>
    %c0_335 = arith.constant 0 : index
    %c0_336 = arith.constant 0 : index
    %c8_337 = arith.constant 8 : index
    %313 = vector.load %arg11[%c0_335, %c0_336, %c8_337] : memref<2x10x80xf32, #tpu.memory_space<vmem>>, vector<2x8x64xf32>
    %314 = vector.shape_cast %313 : vector<2x8x64xf32> to vector<16x64xf32>
    %315 = arith.truncf %314 : vector<16x64xf32> to vector<16x64xbf16>
    %c0_338 = arith.constant 0 : index
    %c0_339 = arith.constant 0 : index
    %c16_340 = arith.constant 16 : index
    %316 = vector.load %arg11[%c0_338, %c0_339, %c16_340] : memref<2x10x80xf32, #tpu.memory_space<vmem>>, vector<2x8x64xf32>
    %317 = vector.shape_cast %316 : vector<2x8x64xf32> to vector<16x64xf32>
    %318 = arith.truncf %317 : vector<16x64xf32> to vector<16x64xbf16>
    %c0_341 = arith.constant 0 : index
    %c1_342 = arith.constant 1 : index
    %c0_343 = arith.constant 0 : index
    %319 = vector.load %arg11[%c0_341, %c1_342, %c0_343] : memref<2x10x80xf32, #tpu.memory_space<vmem>>, vector<2x8x64xf32>
    %320 = vector.shape_cast %319 : vector<2x8x64xf32> to vector<16x64xf32>
    %321 = arith.truncf %320 : vector<16x64xf32> to vector<16x64xbf16>
    %c0_344 = arith.constant 0 : index
    %c1_345 = arith.constant 1 : index
    %c8_346 = arith.constant 8 : index
    %322 = vector.load %arg11[%c0_344, %c1_345, %c8_346] : memref<2x10x80xf32, #tpu.memory_space<vmem>>, vector<2x8x64xf32>
    %323 = vector.shape_cast %322 : vector<2x8x64xf32> to vector<16x64xf32>
    %324 = arith.truncf %323 : vector<16x64xf32> to vector<16x64xbf16>
    %c0_347 = arith.constant 0 : index
    %c1_348 = arith.constant 1 : index
    %c16_349 = arith.constant 16 : index
    %325 = vector.load %arg11[%c0_347, %c1_348, %c16_349] : memref<2x10x80xf32, #tpu.memory_space<vmem>>, vector<2x8x64xf32>
    %326 = vector.shape_cast %325 : vector<2x8x64xf32> to vector<16x64xf32>
    %327 = arith.truncf %326 : vector<16x64xf32> to vector<16x64xbf16>
    %c0_350 = arith.constant 0 : index
    %c2_351 = arith.constant 2 : index
    %c0_352 = arith.constant 0 : index
    %328 = vector.load %arg11[%c0_350, %c2_351, %c0_352] : memref<2x10x80xf32, #tpu.memory_space<vmem>>, vector<2x8x64xf32>
    %329 = vector.shape_cast %328 : vector<2x8x64xf32> to vector<16x64xf32>
    %330 = arith.truncf %329 : vector<16x64xf32> to vector<16x64xbf16>
    %c0_353 = arith.constant 0 : index
    %c2_354 = arith.constant 2 : index
    %c8_355 = arith.constant 8 : index
    %331 = vector.load %arg11[%c0_353, %c2_354, %c8_355] : memref<2x10x80xf32, #tpu.memory_space<vmem>>, vector<2x8x64xf32>
    %332 = vector.shape_cast %331 : vector<2x8x64xf32> to vector<16x64xf32>
    %333 = arith.truncf %332 : vector<16x64xf32> to vector<16x64xbf16>
    %c0_356 = arith.constant 0 : index
    %c2_357 = arith.constant 2 : index
    %c16_358 = arith.constant 16 : index
    %334 = vector.load %arg11[%c0_356, %c2_357, %c16_358] : memref<2x10x80xf32, #tpu.memory_space<vmem>>, vector<2x8x64xf32>
    %335 = vector.shape_cast %334 : vector<2x8x64xf32> to vector<16x64xf32>
    %336 = arith.truncf %335 : vector<16x64xf32> to vector<16x64xbf16>
    %cst_359 = arith.constant 0.000000e+00 : f32
    %337 = vector.broadcast %cst_359 : f32 to vector<16x64xf32>
    %c18 = arith.constant 18 : index
    %c0_360 = arith.constant 0 : index
    %c0_361 = arith.constant 0 : index
    %338 = vector.load %arg6[%c18, %c0_360, %c0_361] : memref<108x64x64xbf16, #tpu.memory_space<vmem>>, vector<1x64x64xbf16>
    %339 = vector.shape_cast %338 : vector<1x64x64xbf16> to vector<64x64xbf16>
    %cst_362 = arith.constant dense<0.000000e+00> : vector<16x64xf32>
    %340 = tpu.matmul %312, %339, %cst_362 {dimension_numbers = #tpu.dot_dimension_numbers<[1], [0], [0], [1], [0, 0, 1, 1], [], []>} : vector<16x64xbf16>, vector<64x64xbf16>, vector<16x64xf32> -> vector<16x64xf32>
    %341 = arith.addf %337, %340 : vector<16x64xf32>
    %c19 = arith.constant 19 : index
    %c0_363 = arith.constant 0 : index
    %c0_364 = arith.constant 0 : index
    %342 = vector.load %arg6[%c19, %c0_363, %c0_364] : memref<108x64x64xbf16, #tpu.memory_space<vmem>>, vector<1x64x64xbf16>
    %343 = vector.shape_cast %342 : vector<1x64x64xbf16> to vector<64x64xbf16>
    %cst_365 = arith.constant dense<0.000000e+00> : vector<16x64xf32>
    %344 = tpu.matmul %315, %343, %cst_365 {dimension_numbers = #tpu.dot_dimension_numbers<[1], [0], [0], [1], [0, 0, 1, 1], [], []>} : vector<16x64xbf16>, vector<64x64xbf16>, vector<16x64xf32> -> vector<16x64xf32>
    %345 = arith.addf %341, %344 : vector<16x64xf32>
    %c20 = arith.constant 20 : index
    %c0_366 = arith.constant 0 : index
    %c0_367 = arith.constant 0 : index
    %346 = vector.load %arg6[%c20, %c0_366, %c0_367] : memref<108x64x64xbf16, #tpu.memory_space<vmem>>, vector<1x64x64xbf16>
    %347 = vector.shape_cast %346 : vector<1x64x64xbf16> to vector<64x64xbf16>
    %cst_368 = arith.constant dense<0.000000e+00> : vector<16x64xf32>
    %348 = tpu.matmul %318, %347, %cst_368 {dimension_numbers = #tpu.dot_dimension_numbers<[1], [0], [0], [1], [0, 0, 1, 1], [], []>} : vector<16x64xbf16>, vector<64x64xbf16>, vector<16x64xf32> -> vector<16x64xf32>
    %349 = arith.addf %345, %348 : vector<16x64xf32>
    %c21 = arith.constant 21 : index
    %c0_369 = arith.constant 0 : index
    %c0_370 = arith.constant 0 : index
    %350 = vector.load %arg6[%c21, %c0_369, %c0_370] : memref<108x64x64xbf16, #tpu.memory_space<vmem>>, vector<1x64x64xbf16>
    %351 = vector.shape_cast %350 : vector<1x64x64xbf16> to vector<64x64xbf16>
    %cst_371 = arith.constant dense<0.000000e+00> : vector<16x64xf32>
    %352 = tpu.matmul %321, %351, %cst_371 {dimension_numbers = #tpu.dot_dimension_numbers<[1], [0], [0], [1], [0, 0, 1, 1], [], []>} : vector<16x64xbf16>, vector<64x64xbf16>, vector<16x64xf32> -> vector<16x64xf32>
    %353 = arith.addf %349, %352 : vector<16x64xf32>
    %c22 = arith.constant 22 : index
    %c0_372 = arith.constant 0 : index
    %c0_373 = arith.constant 0 : index
    %354 = vector.load %arg6[%c22, %c0_372, %c0_373] : memref<108x64x64xbf16, #tpu.memory_space<vmem>>, vector<1x64x64xbf16>
    %355 = vector.shape_cast %354 : vector<1x64x64xbf16> to vector<64x64xbf16>
    %cst_374 = arith.constant dense<0.000000e+00> : vector<16x64xf32>
    %356 = tpu.matmul %324, %355, %cst_374 {dimension_numbers = #tpu.dot_dimension_numbers<[1], [0], [0], [1], [0, 0, 1, 1], [], []>} : vector<16x64xbf16>, vector<64x64xbf16>, vector<16x64xf32> -> vector<16x64xf32>
    %357 = arith.addf %353, %356 : vector<16x64xf32>
    %c23 = arith.constant 23 : index
    %c0_375 = arith.constant 0 : index
    %c0_376 = arith.constant 0 : index
    %358 = vector.load %arg6[%c23, %c0_375, %c0_376] : memref<108x64x64xbf16, #tpu.memory_space<vmem>>, vector<1x64x64xbf16>
    %359 = vector.shape_cast %358 : vector<1x64x64xbf16> to vector<64x64xbf16>
    %cst_377 = arith.constant dense<0.000000e+00> : vector<16x64xf32>
    %360 = tpu.matmul %327, %359, %cst_377 {dimension_numbers = #tpu.dot_dimension_numbers<[1], [0], [0], [1], [0, 0, 1, 1], [], []>} : vector<16x64xbf16>, vector<64x64xbf16>, vector<16x64xf32> -> vector<16x64xf32>
    %361 = arith.addf %357, %360 : vector<16x64xf32>
    %c24 = arith.constant 24 : index
    %c0_378 = arith.constant 0 : index
    %c0_379 = arith.constant 0 : index
    %362 = vector.load %arg6[%c24, %c0_378, %c0_379] : memref<108x64x64xbf16, #tpu.memory_space<vmem>>, vector<1x64x64xbf16>
    %363 = vector.shape_cast %362 : vector<1x64x64xbf16> to vector<64x64xbf16>
    %cst_380 = arith.constant dense<0.000000e+00> : vector<16x64xf32>
    %364 = tpu.matmul %330, %363, %cst_380 {dimension_numbers = #tpu.dot_dimension_numbers<[1], [0], [0], [1], [0, 0, 1, 1], [], []>} : vector<16x64xbf16>, vector<64x64xbf16>, vector<16x64xf32> -> vector<16x64xf32>
    %365 = arith.addf %361, %364 : vector<16x64xf32>
    %c25 = arith.constant 25 : index
    %c0_381 = arith.constant 0 : index
    %c0_382 = arith.constant 0 : index
    %366 = vector.load %arg6[%c25, %c0_381, %c0_382] : memref<108x64x64xbf16, #tpu.memory_space<vmem>>, vector<1x64x64xbf16>
    %367 = vector.shape_cast %366 : vector<1x64x64xbf16> to vector<64x64xbf16>
    %cst_383 = arith.constant dense<0.000000e+00> : vector<16x64xf32>
    %368 = tpu.matmul %333, %367, %cst_383 {dimension_numbers = #tpu.dot_dimension_numbers<[1], [0], [0], [1], [0, 0, 1, 1], [], []>} : vector<16x64xbf16>, vector<64x64xbf16>, vector<16x64xf32> -> vector<16x64xf32>
    %369 = arith.addf %365, %368 : vector<16x64xf32>
    %c26 = arith.constant 26 : index
    %c0_384 = arith.constant 0 : index
    %c0_385 = arith.constant 0 : index
    %370 = vector.load %arg6[%c26, %c0_384, %c0_385] : memref<108x64x64xbf16, #tpu.memory_space<vmem>>, vector<1x64x64xbf16>
    %371 = vector.shape_cast %370 : vector<1x64x64xbf16> to vector<64x64xbf16>
    %cst_386 = arith.constant dense<0.000000e+00> : vector<16x64xf32>
    %372 = tpu.matmul %336, %371, %cst_386 {dimension_numbers = #tpu.dot_dimension_numbers<[1], [0], [0], [1], [0, 0, 1, 1], [], []>} : vector<16x64xbf16>, vector<64x64xbf16>, vector<16x64xf32> -> vector<16x64xf32>
    %373 = arith.addf %369, %372 : vector<16x64xf32>
    %c2_387 = arith.constant 2 : index
    %c0_388 = arith.constant 0 : index
    %c0_389 = arith.constant 0 : index
    %374 = vector.load %arg7[%c2_387, %c0_388, %c0_389] : memref<12x1x64xf32, #tpu.memory_space<vmem>>, vector<1x1x64xf32>
    %375 = vector.shape_cast %374 : vector<1x1x64xf32> to vector<1x64xf32>
    %376 = vector.broadcast %375 : vector<1x64xf32> to vector<16x64xf32>
    %377 = arith.addf %373, %376 : vector<16x64xf32>
    %cst_390 = arith.constant 0.000000e+00 : f32
    %378 = vector.broadcast %cst_390 : f32 to vector<16x64xf32>
    %379 = arith.maximumf %377, %378 : vector<16x64xf32>
    %380 = vector.shape_cast %379 : vector<16x64xf32> to vector<2x8x64xf32>
    %c0_391 = arith.constant 0 : index
    %c1_392 = arith.constant 1 : index
    %c8_393 = arith.constant 8 : index
    %381 = vector.load %arg14[%c0_391, %c1_392, %c8_393] : memref<2x10x80xf32, #tpu.memory_space<vmem>>, vector<2x8x64xf32>
    tpu.vector_store %arg14[%c0_391, %c1_392, %c8_393], %380 {strides = array<i32>} : memref<2x10x80xf32, #tpu.memory_space<vmem>>, vector<2x8x64xf32>,
    %c0_394 = arith.constant 0 : index
    %c0_395 = arith.constant 0 : index
    %c0_396 = arith.constant 0 : index
    %382 = vector.load %arg14[%c0_394, %c0_395, %c0_396] : memref<2x10x80xf32, #tpu.memory_space<vmem>>, vector<2x8x64xf32>
    %383 = vector.shape_cast %382 : vector<2x8x64xf32> to vector<16x64xf32>
    %384 = arith.truncf %383 : vector<16x64xf32> to vector<16x64xbf16>
    %c0_397 = arith.constant 0 : index
    %c0_398 = arith.constant 0 : index
    %c8_399 = arith.constant 8 : index
    %385 = vector.load %arg14[%c0_397, %c0_398, %c8_399] : memref<2x10x80xf32, #tpu.memory_space<vmem>>, vector<2x8x64xf32>
    %386 = vector.shape_cast %385 : vector<2x8x64xf32> to vector<16x64xf32>
    %387 = arith.truncf %386 : vector<16x64xf32> to vector<16x64xbf16>
    %c0_400 = arith.constant 0 : index
    %c0_401 = arith.constant 0 : index
    %c16_402 = arith.constant 16 : index
    %388 = vector.load %arg14[%c0_400, %c0_401, %c16_402] : memref<2x10x80xf32, #tpu.memory_space<vmem>>, vector<2x8x64xf32>
    %389 = vector.shape_cast %388 : vector<2x8x64xf32> to vector<16x64xf32>
    %390 = arith.truncf %389 : vector<16x64xf32> to vector<16x64xbf16>
    %c0_403 = arith.constant 0 : index
    %c1_404 = arith.constant 1 : index
    %c0_405 = arith.constant 0 : index
    %391 = vector.load %arg14[%c0_403, %c1_404, %c0_405] : memref<2x10x80xf32, #tpu.memory_space<vmem>>, vector<2x8x64xf32>
    %392 = vector.shape_cast %391 : vector<2x8x64xf32> to vector<16x64xf32>
    %393 = arith.truncf %392 : vector<16x64xf32> to vector<16x64xbf16>
    %c0_406 = arith.constant 0 : index
    %c1_407 = arith.constant 1 : index
    %c8_408 = arith.constant 8 : index
    %394 = vector.load %arg14[%c0_406, %c1_407, %c8_408] : memref<2x10x80xf32, #tpu.memory_space<vmem>>, vector<2x8x64xf32>
    %395 = vector.shape_cast %394 : vector<2x8x64xf32> to vector<16x64xf32>
    %396 = arith.truncf %395 : vector<16x64xf32> to vector<16x64xbf16>
    %c0_409 = arith.constant 0 : index
    %c1_410 = arith.constant 1 : index
    %c16_411 = arith.constant 16 : index
    %397 = vector.load %arg14[%c0_409, %c1_410, %c16_411] : memref<2x10x80xf32, #tpu.memory_space<vmem>>, vector<2x8x64xf32>
    %398 = vector.shape_cast %397 : vector<2x8x64xf32> to vector<16x64xf32>
    %399 = arith.truncf %398 : vector<16x64xf32> to vector<16x64xbf16>
    %c0_412 = arith.constant 0 : index
    %c2_413 = arith.constant 2 : index
    %c0_414 = arith.constant 0 : index
    %400 = vector.load %arg14[%c0_412, %c2_413, %c0_414] : memref<2x10x80xf32, #tpu.memory_space<vmem>>, vector<2x8x64xf32>
    %401 = vector.shape_cast %400 : vector<2x8x64xf32> to vector<16x64xf32>
    %402 = arith.truncf %401 : vector<16x64xf32> to vector<16x64xbf16>
    %c0_415 = arith.constant 0 : index
    %c2_416 = arith.constant 2 : index
    %c8_417 = arith.constant 8 : index
    %403 = vector.load %arg14[%c0_415, %c2_416, %c8_417] : memref<2x10x80xf32, #tpu.memory_space<vmem>>, vector<2x8x64xf32>
    %404 = vector.shape_cast %403 : vector<2x8x64xf32> to vector<16x64xf32>
    %405 = arith.truncf %404 : vector<16x64xf32> to vector<16x64xbf16>
    %c0_418 = arith.constant 0 : index
    %c2_419 = arith.constant 2 : index
    %c16_420 = arith.constant 16 : index
    %406 = vector.load %arg14[%c0_418, %c2_419, %c16_420] : memref<2x10x80xf32, #tpu.memory_space<vmem>>, vector<2x8x64xf32>
    %407 = vector.shape_cast %406 : vector<2x8x64xf32> to vector<16x64xf32>
    %408 = arith.truncf %407 : vector<16x64xf32> to vector<16x64xbf16>
    %cst_421 = arith.constant 0.000000e+00 : f32
    %409 = vector.broadcast %cst_421 : f32 to vector<16x64xf32>
    %c27 = arith.constant 27 : index
    %c0_422 = arith.constant 0 : index
    %c0_423 = arith.constant 0 : index
    %410 = vector.load %arg6[%c27, %c0_422, %c0_423] : memref<108x64x64xbf16, #tpu.memory_space<vmem>>, vector<1x64x64xbf16>
    %411 = vector.shape_cast %410 : vector<1x64x64xbf16> to vector<64x64xbf16>
    %cst_424 = arith.constant dense<0.000000e+00> : vector<16x64xf32>
    %412 = tpu.matmul %384, %411, %cst_424 {dimension_numbers = #tpu.dot_dimension_numbers<[1], [0], [0], [1], [0, 0, 1, 1], [], []>} : vector<16x64xbf16>, vector<64x64xbf16>, vector<16x64xf32> -> vector<16x64xf32>
    %413 = arith.addf %409, %412 : vector<16x64xf32>
    %c28 = arith.constant 28 : index
    %c0_425 = arith.constant 0 : index
    %c0_426 = arith.constant 0 : index
    %414 = vector.load %arg6[%c28, %c0_425, %c0_426] : memref<108x64x64xbf16, #tpu.memory_space<vmem>>, vector<1x64x64xbf16>
    %415 = vector.shape_cast %414 : vector<1x64x64xbf16> to vector<64x64xbf16>
    %cst_427 = arith.constant dense<0.000000e+00> : vector<16x64xf32>
    %416 = tpu.matmul %387, %415, %cst_427 {dimension_numbers = #tpu.dot_dimension_numbers<[1], [0], [0], [1], [0, 0, 1, 1], [], []>} : vector<16x64xbf16>, vector<64x64xbf16>, vector<16x64xf32> -> vector<16x64xf32>
    %417 = arith.addf %413, %416 : vector<16x64xf32>
    %c29 = arith.constant 29 : index
    %c0_428 = arith.constant 0 : index
    %c0_429 = arith.constant 0 : index
    %418 = vector.load %arg6[%c29, %c0_428, %c0_429] : memref<108x64x64xbf16, #tpu.memory_space<vmem>>, vector<1x64x64xbf16>
    %419 = vector.shape_cast %418 : vector<1x64x64xbf16> to vector<64x64xbf16>
    %cst_430 = arith.constant dense<0.000000e+00> : vector<16x64xf32>
    %420 = tpu.matmul %390, %419, %cst_430 {dimension_numbers = #tpu.dot_dimension_numbers<[1], [0], [0], [1], [0, 0, 1, 1], [], []>} : vector<16x64xbf16>, vector<64x64xbf16>, vector<16x64xf32> -> vector<16x64xf32>
    %421 = arith.addf %417, %420 : vector<16x64xf32>
    %c30 = arith.constant 30 : index
    %c0_431 = arith.constant 0 : index
    %c0_432 = arith.constant 0 : index
    %422 = vector.load %arg6[%c30, %c0_431, %c0_432] : memref<108x64x64xbf16, #tpu.memory_space<vmem>>, vector<1x64x64xbf16>
    %423 = vector.shape_cast %422 : vector<1x64x64xbf16> to vector<64x64xbf16>
    %cst_433 = arith.constant dense<0.000000e+00> : vector<16x64xf32>
    %424 = tpu.matmul %393, %423, %cst_433 {dimension_numbers = #tpu.dot_dimension_numbers<[1], [0], [0], [1], [0, 0, 1, 1], [], []>} : vector<16x64xbf16>, vector<64x64xbf16>, vector<16x64xf32> -> vector<16x64xf32>
    %425 = arith.addf %421, %424 : vector<16x64xf32>
    %c31 = arith.constant 31 : index
    %c0_434 = arith.constant 0 : index
    %c0_435 = arith.constant 0 : index
    %426 = vector.load %arg6[%c31, %c0_434, %c0_435] : memref<108x64x64xbf16, #tpu.memory_space<vmem>>, vector<1x64x64xbf16>
    %427 = vector.shape_cast %426 : vector<1x64x64xbf16> to vector<64x64xbf16>
    %cst_436 = arith.constant dense<0.000000e+00> : vector<16x64xf32>
    %428 = tpu.matmul %396, %427, %cst_436 {dimension_numbers = #tpu.dot_dimension_numbers<[1], [0], [0], [1], [0, 0, 1, 1], [], []>} : vector<16x64xbf16>, vector<64x64xbf16>, vector<16x64xf32> -> vector<16x64xf32>
    %429 = arith.addf %425, %428 : vector<16x64xf32>
    %c32 = arith.constant 32 : index
    %c0_437 = arith.constant 0 : index
    %c0_438 = arith.constant 0 : index
    %430 = vector.load %arg6[%c32, %c0_437, %c0_438] : memref<108x64x64xbf16, #tpu.memory_space<vmem>>, vector<1x64x64xbf16>
    %431 = vector.shape_cast %430 : vector<1x64x64xbf16> to vector<64x64xbf16>
    %cst_439 = arith.constant dense<0.000000e+00> : vector<16x64xf32>
    %432 = tpu.matmul %399, %431, %cst_439 {dimension_numbers = #tpu.dot_dimension_numbers<[1], [0], [0], [1], [0, 0, 1, 1], [], []>} : vector<16x64xbf16>, vector<64x64xbf16>, vector<16x64xf32> -> vector<16x64xf32>
    %433 = arith.addf %429, %432 : vector<16x64xf32>
    %c33 = arith.constant 33 : index
    %c0_440 = arith.constant 0 : index
    %c0_441 = arith.constant 0 : index
    %434 = vector.load %arg6[%c33, %c0_440, %c0_441] : memref<108x64x64xbf16, #tpu.memory_space<vmem>>, vector<1x64x64xbf16>
    %435 = vector.shape_cast %434 : vector<1x64x64xbf16> to vector<64x64xbf16>
    %cst_442 = arith.constant dense<0.000000e+00> : vector<16x64xf32>
    %436 = tpu.matmul %402, %435, %cst_442 {dimension_numbers = #tpu.dot_dimension_numbers<[1], [0], [0], [1], [0, 0, 1, 1], [], []>} : vector<16x64xbf16>, vector<64x64xbf16>, vector<16x64xf32> -> vector<16x64xf32>
    %437 = arith.addf %433, %436 : vector<16x64xf32>
    %c34 = arith.constant 34 : index
    %c0_443 = arith.constant 0 : index
    %c0_444 = arith.constant 0 : index
    %438 = vector.load %arg6[%c34, %c0_443, %c0_444] : memref<108x64x64xbf16, #tpu.memory_space<vmem>>, vector<1x64x64xbf16>
    %439 = vector.shape_cast %438 : vector<1x64x64xbf16> to vector<64x64xbf16>
    %cst_445 = arith.constant dense<0.000000e+00> : vector<16x64xf32>
    %440 = tpu.matmul %405, %439, %cst_445 {dimension_numbers = #tpu.dot_dimension_numbers<[1], [0], [0], [1], [0, 0, 1, 1], [], []>} : vector<16x64xbf16>, vector<64x64xbf16>, vector<16x64xf32> -> vector<16x64xf32>
    %441 = arith.addf %437, %440 : vector<16x64xf32>
    %c35 = arith.constant 35 : index
    %c0_446 = arith.constant 0 : index
    %c0_447 = arith.constant 0 : index
    %442 = vector.load %arg6[%c35, %c0_446, %c0_447] : memref<108x64x64xbf16, #tpu.memory_space<vmem>>, vector<1x64x64xbf16>
    %443 = vector.shape_cast %442 : vector<1x64x64xbf16> to vector<64x64xbf16>
    %cst_448 = arith.constant dense<0.000000e+00> : vector<16x64xf32>
    %444 = tpu.matmul %408, %443, %cst_448 {dimension_numbers = #tpu.dot_dimension_numbers<[1], [0], [0], [1], [0, 0, 1, 1], [], []>} : vector<16x64xbf16>, vector<64x64xbf16>, vector<16x64xf32> -> vector<16x64xf32>
    %445 = arith.addf %441, %444 : vector<16x64xf32>
    %c3_449 = arith.constant 3 : index
    %c0_450 = arith.constant 0 : index
    %c0_451 = arith.constant 0 : index
    %446 = vector.load %arg7[%c3_449, %c0_450, %c0_451] : memref<12x1x64xf32, #tpu.memory_space<vmem>>, vector<1x1x64xf32>
    %447 = vector.shape_cast %446 : vector<1x1x64xf32> to vector<1x64xf32>
    %448 = vector.broadcast %447 : vector<1x64xf32> to vector<16x64xf32>
    %449 = arith.addf %445, %448 : vector<16x64xf32>
    %c0_452 = arith.constant 0 : index
    %c1_453 = arith.constant 1 : index
    %c8_454 = arith.constant 8 : index
    %450 = vector.load %arg11[%c0_452, %c1_453, %c8_454] : memref<2x10x80xf32, #tpu.memory_space<vmem>>, vector<2x8x64xf32>
    %451 = vector.shape_cast %450 : vector<2x8x64xf32> to vector<16x64xf32>
    %452 = arith.addf %449, %451 : vector<16x64xf32>
    %453 = vector.shape_cast %452 : vector<16x64xf32> to vector<2x8x64xf32>
    %c0_455 = arith.constant 0 : index
    %c1_456 = arith.constant 1 : index
    %c8_457 = arith.constant 8 : index
    %454 = vector.load %arg11[%c0_455, %c1_456, %c8_457] : memref<2x10x80xf32, #tpu.memory_space<vmem>>, vector<2x8x64xf32>
    tpu.vector_store %arg11[%c0_455, %c1_456, %c8_457], %453 {strides = array<i32>} : memref<2x10x80xf32, #tpu.memory_space<vmem>>, vector<2x8x64xf32>,
    %c0_458 = arith.constant 0 : index
    %c1_459 = arith.constant 1 : index
    %c8_460 = arith.constant 8 : index
    %455 = vector.load %arg11[%c0_458, %c1_459, %c8_460] : memref<2x10x80xf32, #tpu.memory_space<vmem>>, vector<2x8x64xf32>
    %456 = vector.shape_cast %455 : vector<2x8x64xf32> to vector<16x64xf32>
    %c0_461 = arith.constant 0 : index
    %c1_462 = arith.constant 1 : index
    %c8_463 = arith.constant 8 : index
    %457 = vector.load %arg12[%c0_461, %c1_462, %c8_463] : memref<2x10x80xf32, #tpu.memory_space<vmem>>, vector<2x8x64xf32>
    %458 = vector.shape_cast %457 : vector<2x8x64xf32> to vector<16x64xf32>
    %459 = arith.addf %456, %458 : vector<16x64xf32>
    %460 = vector.shape_cast %459 : vector<16x64xf32> to vector<2x8x64xf32>
    %c0_464 = arith.constant 0 : index
    %c1_465 = arith.constant 1 : index
    %c8_466 = arith.constant 8 : index
    %461 = vector.load %arg11[%c0_464, %c1_465, %c8_466] : memref<2x10x80xf32, #tpu.memory_space<vmem>>, vector<2x8x64xf32>
    tpu.vector_store %arg11[%c0_464, %c1_465, %c8_466], %460 {strides = array<i32>} : memref<2x10x80xf32, #tpu.memory_space<vmem>>, vector<2x8x64xf32>,
    %c0_467 = arith.constant 0 : index
    %c0_468 = arith.constant 0 : index
    %c0_469 = arith.constant 0 : index
    %462 = vector.load %arg13[%c0_467, %c0_468, %c0_469] : memref<2x10x80xf32, #tpu.memory_space<vmem>>, vector<2x8x64xf32>
    %463 = vector.shape_cast %462 : vector<2x8x64xf32> to vector<16x64xf32>
    %464 = arith.truncf %463 : vector<16x64xf32> to vector<16x64xbf16>
    %c0_470 = arith.constant 0 : index
    %c0_471 = arith.constant 0 : index
    %c8_472 = arith.constant 8 : index
    %465 = vector.load %arg13[%c0_470, %c0_471, %c8_472] : memref<2x10x80xf32, #tpu.memory_space<vmem>>, vector<2x8x64xf32>
    %466 = vector.shape_cast %465 : vector<2x8x64xf32> to vector<16x64xf32>
    %467 = arith.truncf %466 : vector<16x64xf32> to vector<16x64xbf16>
    %c0_473 = arith.constant 0 : index
    %c0_474 = arith.constant 0 : index
    %c16_475 = arith.constant 16 : index
    %468 = vector.load %arg13[%c0_473, %c0_474, %c16_475] : memref<2x10x80xf32, #tpu.memory_space<vmem>>, vector<2x8x64xf32>
    %469 = vector.shape_cast %468 : vector<2x8x64xf32> to vector<16x64xf32>
    %470 = arith.truncf %469 : vector<16x64xf32> to vector<16x64xbf16>
    %c0_476 = arith.constant 0 : index
    %c1_477 = arith.constant 1 : index
    %c0_478 = arith.constant 0 : index
    %471 = vector.load %arg13[%c0_476, %c1_477, %c0_478] : memref<2x10x80xf32, #tpu.memory_space<vmem>>, vector<2x8x64xf32>
    %472 = vector.shape_cast %471 : vector<2x8x64xf32> to vector<16x64xf32>
    %473 = arith.truncf %472 : vector<16x64xf32> to vector<16x64xbf16>
    %c0_479 = arith.constant 0 : index
    %c1_480 = arith.constant 1 : index
    %c8_481 = arith.constant 8 : index
    %474 = vector.load %arg13[%c0_479, %c1_480, %c8_481] : memref<2x10x80xf32, #tpu.memory_space<vmem>>, vector<2x8x64xf32>
    %475 = vector.shape_cast %474 : vector<2x8x64xf32> to vector<16x64xf32>
    %476 = arith.truncf %475 : vector<16x64xf32> to vector<16x64xbf16>
    %c0_482 = arith.constant 0 : index
    %c1_483 = arith.constant 1 : index
    %c16_484 = arith.constant 16 : index
    %477 = vector.load %arg13[%c0_482, %c1_483, %c16_484] : memref<2x10x80xf32, #tpu.memory_space<vmem>>, vector<2x8x64xf32>
    %478 = vector.shape_cast %477 : vector<2x8x64xf32> to vector<16x64xf32>
    %479 = arith.truncf %478 : vector<16x64xf32> to vector<16x64xbf16>
    %c0_485 = arith.constant 0 : index
    %c2_486 = arith.constant 2 : index
    %c0_487 = arith.constant 0 : index
    %480 = vector.load %arg13[%c0_485, %c2_486, %c0_487] : memref<2x10x80xf32, #tpu.memory_space<vmem>>, vector<2x8x64xf32>
    %481 = vector.shape_cast %480 : vector<2x8x64xf32> to vector<16x64xf32>
    %482 = arith.truncf %481 : vector<16x64xf32> to vector<16x64xbf16>
    %c0_488 = arith.constant 0 : index
    %c2_489 = arith.constant 2 : index
    %c8_490 = arith.constant 8 : index
    %483 = vector.load %arg13[%c0_488, %c2_489, %c8_490] : memref<2x10x80xf32, #tpu.memory_space<vmem>>, vector<2x8x64xf32>
    %484 = vector.shape_cast %483 : vector<2x8x64xf32> to vector<16x64xf32>
    %485 = arith.truncf %484 : vector<16x64xf32> to vector<16x64xbf16>
    %c0_491 = arith.constant 0 : index
    %c2_492 = arith.constant 2 : index
    %c16_493 = arith.constant 16 : index
    %486 = vector.load %arg13[%c0_491, %c2_492, %c16_493] : memref<2x10x80xf32, #tpu.memory_space<vmem>>, vector<2x8x64xf32>
    %487 = vector.shape_cast %486 : vector<2x8x64xf32> to vector<16x64xf32>
    %488 = arith.truncf %487 : vector<16x64xf32> to vector<16x64xbf16>
    %c0_494 = arith.constant 0 : index
    %c0_495 = arith.constant 0 : index
    %c0_496 = arith.constant 0 : index
    %489 = vector.load %arg12[%c0_494, %c0_495, %c0_496] : memref<2x10x80xf32, #tpu.memory_space<vmem>>, vector<2x8x64xf32>
    %490 = vector.shape_cast %489 : vector<2x8x64xf32> to vector<16x64xf32>
    %491 = arith.truncf %490 : vector<16x64xf32> to vector<16x64xbf16>
    %c0_497 = arith.constant 0 : index
    %c0_498 = arith.constant 0 : index
    %c8_499 = arith.constant 8 : index
    %492 = vector.load %arg12[%c0_497, %c0_498, %c8_499] : memref<2x10x80xf32, #tpu.memory_space<vmem>>, vector<2x8x64xf32>
    %493 = vector.shape_cast %492 : vector<2x8x64xf32> to vector<16x64xf32>
    %494 = arith.truncf %493 : vector<16x64xf32> to vector<16x64xbf16>
    %c0_500 = arith.constant 0 : index
    %c0_501 = arith.constant 0 : index
    %c16_502 = arith.constant 16 : index
    %495 = vector.load %arg12[%c0_500, %c0_501, %c16_502] : memref<2x10x80xf32, #tpu.memory_space<vmem>>, vector<2x8x64xf32>
    %496 = vector.shape_cast %495 : vector<2x8x64xf32> to vector<16x64xf32>
    %497 = arith.truncf %496 : vector<16x64xf32> to vector<16x64xbf16>
    %c0_503 = arith.constant 0 : index
    %c1_504 = arith.constant 1 : index
    %c0_505 = arith.constant 0 : index
    %498 = vector.load %arg12[%c0_503, %c1_504, %c0_505] : memref<2x10x80xf32, #tpu.memory_space<vmem>>, vector<2x8x64xf32>
    %499 = vector.shape_cast %498 : vector<2x8x64xf32> to vector<16x64xf32>
    %500 = arith.truncf %499 : vector<16x64xf32> to vector<16x64xbf16>
    %c0_506 = arith.constant 0 : index
    %c1_507 = arith.constant 1 : index
    %c8_508 = arith.constant 8 : index
    %501 = vector.load %arg12[%c0_506, %c1_507, %c8_508] : memref<2x10x80xf32, #tpu.memory_space<vmem>>, vector<2x8x64xf32>
    %502 = vector.shape_cast %501 : vector<2x8x64xf32> to vector<16x64xf32>
    %503 = arith.truncf %502 : vector<16x64xf32> to vector<16x64xbf16>
    %c0_509 = arith.constant 0 : index
    %c1_510 = arith.constant 1 : index
    %c16_511 = arith.constant 16 : index
    %504 = vector.load %arg12[%c0_509, %c1_510, %c16_511] : memref<2x10x80xf32, #tpu.memory_space<vmem>>, vector<2x8x64xf32>
    %505 = vector.shape_cast %504 : vector<2x8x64xf32> to vector<16x64xf32>
    %506 = arith.truncf %505 : vector<16x64xf32> to vector<16x64xbf16>
    %c0_512 = arith.constant 0 : index
    %c2_513 = arith.constant 2 : index
    %c0_514 = arith.constant 0 : index
    %507 = vector.load %arg12[%c0_512, %c2_513, %c0_514] : memref<2x10x80xf32, #tpu.memory_space<vmem>>, vector<2x8x64xf32>
    %508 = vector.shape_cast %507 : vector<2x8x64xf32> to vector<16x64xf32>
    %509 = arith.truncf %508 : vector<16x64xf32> to vector<16x64xbf16>
    %c0_515 = arith.constant 0 : index
    %c2_516 = arith.constant 2 : index
    %c8_517 = arith.constant 8 : index
    %510 = vector.load %arg12[%c0_515, %c2_516, %c8_517] : memref<2x10x80xf32, #tpu.memory_space<vmem>>, vector<2x8x64xf32>
    %511 = vector.shape_cast %510 : vector<2x8x64xf32> to vector<16x64xf32>
    %512 = arith.truncf %511 : vector<16x64xf32> to vector<16x64xbf16>
    %c0_518 = arith.constant 0 : index
    %c2_519 = arith.constant 2 : index
    %c16_520 = arith.constant 16 : index
    %513 = vector.load %arg12[%c0_518, %c2_519, %c16_520] : memref<2x10x80xf32, #tpu.memory_space<vmem>>, vector<2x8x64xf32>
    %514 = vector.shape_cast %513 : vector<2x8x64xf32> to vector<16x64xf32>
    %515 = arith.truncf %514 : vector<16x64xf32> to vector<16x64xbf16>
    %cst_521 = arith.constant 0.000000e+00 : f32
    %516 = vector.broadcast %cst_521 : f32 to vector<16x64xf32>
    %c18_522 = arith.constant 18 : index
    %c0_523 = arith.constant 0 : index
    %c0_524 = arith.constant 0 : index
    %517 = vector.load %arg4[%c18_522, %c0_523, %c0_524] : memref<54x64x64xbf16, #tpu.memory_space<vmem>>, vector<1x64x64xbf16>
    %518 = vector.shape_cast %517 : vector<1x64x64xbf16> to vector<64x64xbf16>
    %cst_525 = arith.constant dense<0.000000e+00> : vector<16x64xf32>
    %519 = tpu.matmul %464, %518, %cst_525 {dimension_numbers = #tpu.dot_dimension_numbers<[1], [0], [0], [1], [0, 0, 1, 1], [], []>} : vector<16x64xbf16>, vector<64x64xbf16>, vector<16x64xf32> -> vector<16x64xf32>
    %520 = arith.addf %516, %519 : vector<16x64xf32>
    %c27_526 = arith.constant 27 : index
    %c0_527 = arith.constant 0 : index
    %c0_528 = arith.constant 0 : index
    %521 = vector.load %arg4[%c27_526, %c0_527, %c0_528] : memref<54x64x64xbf16, #tpu.memory_space<vmem>>, vector<1x64x64xbf16>
    %522 = vector.shape_cast %521 : vector<1x64x64xbf16> to vector<64x64xbf16>
    %cst_529 = arith.constant dense<0.000000e+00> : vector<16x64xf32>
    %523 = tpu.matmul %491, %522, %cst_529 {dimension_numbers = #tpu.dot_dimension_numbers<[1], [0], [0], [1], [0, 0, 1, 1], [], []>} : vector<16x64xbf16>, vector<64x64xbf16>, vector<16x64xf32> -> vector<16x64xf32>
    %524 = arith.addf %520, %523 : vector<16x64xf32>
    %c19_530 = arith.constant 19 : index
    %c0_531 = arith.constant 0 : index
    %c0_532 = arith.constant 0 : index
    %525 = vector.load %arg4[%c19_530, %c0_531, %c0_532] : memref<54x64x64xbf16, #tpu.memory_space<vmem>>, vector<1x64x64xbf16>
    %526 = vector.shape_cast %525 : vector<1x64x64xbf16> to vector<64x64xbf16>
    %cst_533 = arith.constant dense<0.000000e+00> : vector<16x64xf32>
    %527 = tpu.matmul %467, %526, %cst_533 {dimension_numbers = #tpu.dot_dimension_numbers<[1], [0], [0], [1], [0, 0, 1, 1], [], []>} : vector<16x64xbf16>, vector<64x64xbf16>, vector<16x64xf32> -> vector<16x64xf32>
    %528 = arith.addf %524, %527 : vector<16x64xf32>
    %c28_534 = arith.constant 28 : index
    %c0_535 = arith.constant 0 : index
    %c0_536 = arith.constant 0 : index
    %529 = vector.load %arg4[%c28_534, %c0_535, %c0_536] : memref<54x64x64xbf16, #tpu.memory_space<vmem>>, vector<1x64x64xbf16>
    %530 = vector.shape_cast %529 : vector<1x64x64xbf16> to vector<64x64xbf16>
    %cst_537 = arith.constant dense<0.000000e+00> : vector<16x64xf32>
    %531 = tpu.matmul %494, %530, %cst_537 {dimension_numbers = #tpu.dot_dimension_numbers<[1], [0], [0], [1], [0, 0, 1, 1], [], []>} : vector<16x64xbf16>, vector<64x64xbf16>, vector<16x64xf32> -> vector<16x64xf32>
    %532 = arith.addf %528, %531 : vector<16x64xf32>
    %c20_538 = arith.constant 20 : index
    %c0_539 = arith.constant 0 : index
    %c0_540 = arith.constant 0 : index
    %533 = vector.load %arg4[%c20_538, %c0_539, %c0_540] : memref<54x64x64xbf16, #tpu.memory_space<vmem>>, vector<1x64x64xbf16>
    %534 = vector.shape_cast %533 : vector<1x64x64xbf16> to vector<64x64xbf16>
    %cst_541 = arith.constant dense<0.000000e+00> : vector<16x64xf32>
    %535 = tpu.matmul %470, %534, %cst_541 {dimension_numbers = #tpu.dot_dimension_numbers<[1], [0], [0], [1], [0, 0, 1, 1], [], []>} : vector<16x64xbf16>, vector<64x64xbf16>, vector<16x64xf32> -> vector<16x64xf32>
    %536 = arith.addf %532, %535 : vector<16x64xf32>
    %c29_542 = arith.constant 29 : index
    %c0_543 = arith.constant 0 : index
    %c0_544 = arith.constant 0 : index
    %537 = vector.load %arg4[%c29_542, %c0_543, %c0_544] : memref<54x64x64xbf16, #tpu.memory_space<vmem>>, vector<1x64x64xbf16>
    %538 = vector.shape_cast %537 : vector<1x64x64xbf16> to vector<64x64xbf16>
    %cst_545 = arith.constant dense<0.000000e+00> : vector<16x64xf32>
    %539 = tpu.matmul %497, %538, %cst_545 {dimension_numbers = #tpu.dot_dimension_numbers<[1], [0], [0], [1], [0, 0, 1, 1], [], []>} : vector<16x64xbf16>, vector<64x64xbf16>, vector<16x64xf32> -> vector<16x64xf32>
    %540 = arith.addf %536, %539 : vector<16x64xf32>
    %c21_546 = arith.constant 21 : index
    %c0_547 = arith.constant 0 : index
    %c0_548 = arith.constant 0 : index
    %541 = vector.load %arg4[%c21_546, %c0_547, %c0_548] : memref<54x64x64xbf16, #tpu.memory_space<vmem>>, vector<1x64x64xbf16>
    %542 = vector.shape_cast %541 : vector<1x64x64xbf16> to vector<64x64xbf16>
    %cst_549 = arith.constant dense<0.000000e+00> : vector<16x64xf32>
    %543 = tpu.matmul %473, %542, %cst_549 {dimension_numbers = #tpu.dot_dimension_numbers<[1], [0], [0], [1], [0, 0, 1, 1], [], []>} : vector<16x64xbf16>, vector<64x64xbf16>, vector<16x64xf32> -> vector<16x64xf32>
    %544 = arith.addf %540, %543 : vector<16x64xf32>
    %c30_550 = arith.constant 30 : index
    %c0_551 = arith.constant 0 : index
    %c0_552 = arith.constant 0 : index
    %545 = vector.load %arg4[%c30_550, %c0_551, %c0_552] : memref<54x64x64xbf16, #tpu.memory_space<vmem>>, vector<1x64x64xbf16>
    %546 = vector.shape_cast %545 : vector<1x64x64xbf16> to vector<64x64xbf16>
    %cst_553 = arith.constant dense<0.000000e+00> : vector<16x64xf32>
    %547 = tpu.matmul %500, %546, %cst_553 {dimension_numbers = #tpu.dot_dimension_numbers<[1], [0], [0], [1], [0, 0, 1, 1], [], []>} : vector<16x64xbf16>, vector<64x64xbf16>, vector<16x64xf32> -> vector<16x64xf32>
    %548 = arith.addf %544, %547 : vector<16x64xf32>
    %c22_554 = arith.constant 22 : index
    %c0_555 = arith.constant 0 : index
    %c0_556 = arith.constant 0 : index
    %549 = vector.load %arg4[%c22_554, %c0_555, %c0_556] : memref<54x64x64xbf16, #tpu.memory_space<vmem>>, vector<1x64x64xbf16>
    %550 = vector.shape_cast %549 : vector<1x64x64xbf16> to vector<64x64xbf16>
    %cst_557 = arith.constant dense<0.000000e+00> : vector<16x64xf32>
    %551 = tpu.matmul %476, %550, %cst_557 {dimension_numbers = #tpu.dot_dimension_numbers<[1], [0], [0], [1], [0, 0, 1, 1], [], []>} : vector<16x64xbf16>, vector<64x64xbf16>, vector<16x64xf32> -> vector<16x64xf32>
    %552 = arith.addf %548, %551 : vector<16x64xf32>
    %c31_558 = arith.constant 31 : index
    %c0_559 = arith.constant 0 : index
    %c0_560 = arith.constant 0 : index
    %553 = vector.load %arg4[%c31_558, %c0_559, %c0_560] : memref<54x64x64xbf16, #tpu.memory_space<vmem>>, vector<1x64x64xbf16>
    %554 = vector.shape_cast %553 : vector<1x64x64xbf16> to vector<64x64xbf16>
    %cst_561 = arith.constant dense<0.000000e+00> : vector<16x64xf32>
    %555 = tpu.matmul %503, %554, %cst_561 {dimension_numbers = #tpu.dot_dimension_numbers<[1], [0], [0], [1], [0, 0, 1, 1], [], []>} : vector<16x64xbf16>, vector<64x64xbf16>, vector<16x64xf32> -> vector<16x64xf32>
    %556 = arith.addf %552, %555 : vector<16x64xf32>
    %c23_562 = arith.constant 23 : index
    %c0_563 = arith.constant 0 : index
    %c0_564 = arith.constant 0 : index
    %557 = vector.load %arg4[%c23_562, %c0_563, %c0_564] : memref<54x64x64xbf16, #tpu.memory_space<vmem>>, vector<1x64x64xbf16>
    %558 = vector.shape_cast %557 : vector<1x64x64xbf16> to vector<64x64xbf16>
    %cst_565 = arith.constant dense<0.000000e+00> : vector<16x64xf32>
    %559 = tpu.matmul %479, %558, %cst_565 {dimension_numbers = #tpu.dot_dimension_numbers<[1], [0], [0], [1], [0, 0, 1, 1], [], []>} : vector<16x64xbf16>, vector<64x64xbf16>, vector<16x64xf32> -> vector<16x64xf32>
    %560 = arith.addf %556, %559 : vector<16x64xf32>
    %c32_566 = arith.constant 32 : index
    %c0_567 = arith.constant 0 : index
    %c0_568 = arith.constant 0 : index
    %561 = vector.load %arg4[%c32_566, %c0_567, %c0_568] : memref<54x64x64xbf16, #tpu.memory_space<vmem>>, vector<1x64x64xbf16>
    %562 = vector.shape_cast %561 : vector<1x64x64xbf16> to vector<64x64xbf16>
    %cst_569 = arith.constant dense<0.000000e+00> : vector<16x64xf32>
    %563 = tpu.matmul %506, %562, %cst_569 {dimension_numbers = #tpu.dot_dimension_numbers<[1], [0], [0], [1], [0, 0, 1, 1], [], []>} : vector<16x64xbf16>, vector<64x64xbf16>, vector<16x64xf32> -> vector<16x64xf32>
    %564 = arith.addf %560, %563 : vector<16x64xf32>
    %c24_570 = arith.constant 24 : index
    %c0_571 = arith.constant 0 : index
    %c0_572 = arith.constant 0 : index
    %565 = vector.load %arg4[%c24_570, %c0_571, %c0_572] : memref<54x64x64xbf16, #tpu.memory_space<vmem>>, vector<1x64x64xbf16>
    %566 = vector.shape_cast %565 : vector<1x64x64xbf16> to vector<64x64xbf16>
    %cst_573 = arith.constant dense<0.000000e+00> : vector<16x64xf32>
    %567 = tpu.matmul %482, %566, %cst_573 {dimension_numbers = #tpu.dot_dimension_numbers<[1], [0], [0], [1], [0, 0, 1, 1], [], []>} : vector<16x64xbf16>, vector<64x64xbf16>, vector<16x64xf32> -> vector<16x64xf32>
    %568 = arith.addf %564, %567 : vector<16x64xf32>
    %c33_574 = arith.constant 33 : index
    %c0_575 = arith.constant 0 : index
    %c0_576 = arith.constant 0 : index
    %569 = vector.load %arg4[%c33_574, %c0_575, %c0_576] : memref<54x64x64xbf16, #tpu.memory_space<vmem>>, vector<1x64x64xbf16>
    %570 = vector.shape_cast %569 : vector<1x64x64xbf16> to vector<64x64xbf16>
    %cst_577 = arith.constant dense<0.000000e+00> : vector<16x64xf32>
    %571 = tpu.matmul %509, %570, %cst_577 {dimension_numbers = #tpu.dot_dimension_numbers<[1], [0], [0], [1], [0, 0, 1, 1], [], []>} : vector<16x64xbf16>, vector<64x64xbf16>, vector<16x64xf32> -> vector<16x64xf32>
    %572 = arith.addf %568, %571 : vector<16x64xf32>
    %c25_578 = arith.constant 25 : index
    %c0_579 = arith.constant 0 : index
    %c0_580 = arith.constant 0 : index
    %573 = vector.load %arg4[%c25_578, %c0_579, %c0_580] : memref<54x64x64xbf16, #tpu.memory_space<vmem>>, vector<1x64x64xbf16>
    %574 = vector.shape_cast %573 : vector<1x64x64xbf16> to vector<64x64xbf16>
    %cst_581 = arith.constant dense<0.000000e+00> : vector<16x64xf32>
    %575 = tpu.matmul %485, %574, %cst_581 {dimension_numbers = #tpu.dot_dimension_numbers<[1], [0], [0], [1], [0, 0, 1, 1], [], []>} : vector<16x64xbf16>, vector<64x64xbf16>, vector<16x64xf32> -> vector<16x64xf32>
    %576 = arith.addf %572, %575 : vector<16x64xf32>
    %c34_582 = arith.constant 34 : index
    %c0_583 = arith.constant 0 : index
    %c0_584 = arith.constant 0 : index
    %577 = vector.load %arg4[%c34_582, %c0_583, %c0_584] : memref<54x64x64xbf16, #tpu.memory_space<vmem>>, vector<1x64x64xbf16>
    %578 = vector.shape_cast %577 : vector<1x64x64xbf16> to vector<64x64xbf16>
    %cst_585 = arith.constant dense<0.000000e+00> : vector<16x64xf32>
    %579 = tpu.matmul %512, %578, %cst_585 {dimension_numbers = #tpu.dot_dimension_numbers<[1], [0], [0], [1], [0, 0, 1, 1], [], []>} : vector<16x64xbf16>, vector<64x64xbf16>, vector<16x64xf32> -> vector<16x64xf32>
    %580 = arith.addf %576, %579 : vector<16x64xf32>
    %c26_586 = arith.constant 26 : index
    %c0_587 = arith.constant 0 : index
    %c0_588 = arith.constant 0 : index
    %581 = vector.load %arg4[%c26_586, %c0_587, %c0_588] : memref<54x64x64xbf16, #tpu.memory_space<vmem>>, vector<1x64x64xbf16>
    %582 = vector.shape_cast %581 : vector<1x64x64xbf16> to vector<64x64xbf16>
    %cst_589 = arith.constant dense<0.000000e+00> : vector<16x64xf32>
    %583 = tpu.matmul %488, %582, %cst_589 {dimension_numbers = #tpu.dot_dimension_numbers<[1], [0], [0], [1], [0, 0, 1, 1], [], []>} : vector<16x64xbf16>, vector<64x64xbf16>, vector<16x64xf32> -> vector<16x64xf32>
    %584 = arith.addf %580, %583 : vector<16x64xf32>
    %c35_590 = arith.constant 35 : index
    %c0_591 = arith.constant 0 : index
    %c0_592 = arith.constant 0 : index
    %585 = vector.load %arg4[%c35_590, %c0_591, %c0_592] : memref<54x64x64xbf16, #tpu.memory_space<vmem>>, vector<1x64x64xbf16>
    %586 = vector.shape_cast %585 : vector<1x64x64xbf16> to vector<64x64xbf16>
    %cst_593 = arith.constant dense<0.000000e+00> : vector<16x64xf32>
    %587 = tpu.matmul %515, %586, %cst_593 {dimension_numbers = #tpu.dot_dimension_numbers<[1], [0], [0], [1], [0, 0, 1, 1], [], []>} : vector<16x64xbf16>, vector<64x64xbf16>, vector<16x64xf32> -> vector<16x64xf32>
    %588 = arith.addf %584, %587 : vector<16x64xf32>
    %c1_594 = arith.constant 1 : index
    %c0_595 = arith.constant 0 : index
    %c0_596 = arith.constant 0 : index
    %589 = vector.load %arg5[%c1_594, %c0_595, %c0_596] : memref<3x1x64xf32, #tpu.memory_space<vmem>>, vector<1x1x64xf32>
    %590 = vector.shape_cast %589 : vector<1x1x64xf32> to vector<1x64xf32>
    %591 = vector.broadcast %590 : vector<1x64xf32> to vector<16x64xf32>
    %592 = arith.addf %588, %591 : vector<16x64xf32>
    %cst_597 = arith.constant 0.000000e+00 : f32
    %593 = vector.broadcast %cst_597 : f32 to vector<16x64xf32>
    %594 = arith.maximumf %592, %593 : vector<16x64xf32>
    %595 = vector.shape_cast %594 : vector<16x64xf32> to vector<2x8x64xf32>
    %c0_598 = arith.constant 0 : index
    %c1_599 = arith.constant 1 : index
    %c8_600 = arith.constant 8 : index
    %596 = vector.load %arg13[%c0_598, %c1_599, %c8_600] : memref<2x10x80xf32, #tpu.memory_space<vmem>>, vector<2x8x64xf32>
    tpu.vector_store %arg13[%c0_598, %c1_599, %c8_600], %595 {strides = array<i32>} : memref<2x10x80xf32, #tpu.memory_space<vmem>>, vector<2x8x64xf32>,
    %c0_601 = arith.constant 0 : index
    %c0_602 = arith.constant 0 : index
    %c0_603 = arith.constant 0 : index
    %597 = vector.load %arg13[%c0_601, %c0_602, %c0_603] : memref<2x10x80xf32, #tpu.memory_space<vmem>>, vector<2x8x64xf32>
    %598 = vector.shape_cast %597 : vector<2x8x64xf32> to vector<16x64xf32>
    %599 = arith.truncf %598 : vector<16x64xf32> to vector<16x64xbf16>
    %c0_604 = arith.constant 0 : index
    %c0_605 = arith.constant 0 : index
    %c8_606 = arith.constant 8 : index
    %600 = vector.load %arg13[%c0_604, %c0_605, %c8_606] : memref<2x10x80xf32, #tpu.memory_space<vmem>>, vector<2x8x64xf32>
    %601 = vector.shape_cast %600 : vector<2x8x64xf32> to vector<16x64xf32>
    %602 = arith.truncf %601 : vector<16x64xf32> to vector<16x64xbf16>
    %c0_607 = arith.constant 0 : index
    %c0_608 = arith.constant 0 : index
    %c16_609 = arith.constant 16 : index
    %603 = vector.load %arg13[%c0_607, %c0_608, %c16_609] : memref<2x10x80xf32, #tpu.memory_space<vmem>>, vector<2x8x64xf32>
    %604 = vector.shape_cast %603 : vector<2x8x64xf32> to vector<16x64xf32>
    %605 = arith.truncf %604 : vector<16x64xf32> to vector<16x64xbf16>
    %c0_610 = arith.constant 0 : index
    %c1_611 = arith.constant 1 : index
    %c0_612 = arith.constant 0 : index
    %606 = vector.load %arg13[%c0_610, %c1_611, %c0_612] : memref<2x10x80xf32, #tpu.memory_space<vmem>>, vector<2x8x64xf32>
    %607 = vector.shape_cast %606 : vector<2x8x64xf32> to vector<16x64xf32>
    %608 = arith.truncf %607 : vector<16x64xf32> to vector<16x64xbf16>
    %c0_613 = arith.constant 0 : index
    %c1_614 = arith.constant 1 : index
    %c8_615 = arith.constant 8 : index
    %609 = vector.load %arg13[%c0_613, %c1_614, %c8_615] : memref<2x10x80xf32, #tpu.memory_space<vmem>>, vector<2x8x64xf32>
    %610 = vector.shape_cast %609 : vector<2x8x64xf32> to vector<16x64xf32>
    %611 = arith.truncf %610 : vector<16x64xf32> to vector<16x64xbf16>
    %c0_616 = arith.constant 0 : index
    %c1_617 = arith.constant 1 : index
    %c16_618 = arith.constant 16 : index
    %612 = vector.load %arg13[%c0_616, %c1_617, %c16_618] : memref<2x10x80xf32, #tpu.memory_space<vmem>>, vector<2x8x64xf32>
    %613 = vector.shape_cast %612 : vector<2x8x64xf32> to vector<16x64xf32>
    %614 = arith.truncf %613 : vector<16x64xf32> to vector<16x64xbf16>
    %c0_619 = arith.constant 0 : index
    %c2_620 = arith.constant 2 : index
    %c0_621 = arith.constant 0 : index
    %615 = vector.load %arg13[%c0_619, %c2_620, %c0_621] : memref<2x10x80xf32, #tpu.memory_space<vmem>>, vector<2x8x64xf32>
    %616 = vector.shape_cast %615 : vector<2x8x64xf32> to vector<16x64xf32>
    %617 = arith.truncf %616 : vector<16x64xf32> to vector<16x64xbf16>
    %c0_622 = arith.constant 0 : index
    %c2_623 = arith.constant 2 : index
    %c8_624 = arith.constant 8 : index
    %618 = vector.load %arg13[%c0_622, %c2_623, %c8_624] : memref<2x10x80xf32, #tpu.memory_space<vmem>>, vector<2x8x64xf32>
    %619 = vector.shape_cast %618 : vector<2x8x64xf32> to vector<16x64xf32>
    %620 = arith.truncf %619 : vector<16x64xf32> to vector<16x64xbf16>
    %c0_625 = arith.constant 0 : index
    %c2_626 = arith.constant 2 : index
    %c16_627 = arith.constant 16 : index
    %621 = vector.load %arg13[%c0_625, %c2_626, %c16_627] : memref<2x10x80xf32, #tpu.memory_space<vmem>>, vector<2x8x64xf32>
    %622 = vector.shape_cast %621 : vector<2x8x64xf32> to vector<16x64xf32>
    %623 = arith.truncf %622 : vector<16x64xf32> to vector<16x64xbf16>
    %cst_628 = arith.constant 0.000000e+00 : f32
    %624 = vector.broadcast %cst_628 : f32 to vector<16x64xf32>
    %c36 = arith.constant 36 : index
    %c0_629 = arith.constant 0 : index
    %c0_630 = arith.constant 0 : index
    %625 = vector.load %arg6[%c36, %c0_629, %c0_630] : memref<108x64x64xbf16, #tpu.memory_space<vmem>>, vector<1x64x64xbf16>
    %626 = vector.shape_cast %625 : vector<1x64x64xbf16> to vector<64x64xbf16>
    %cst_631 = arith.constant dense<0.000000e+00> : vector<16x64xf32>
    %627 = tpu.matmul %599, %626, %cst_631 {dimension_numbers = #tpu.dot_dimension_numbers<[1], [0], [0], [1], [0, 0, 1, 1], [], []>} : vector<16x64xbf16>, vector<64x64xbf16>, vector<16x64xf32> -> vector<16x64xf32>
    %628 = arith.addf %624, %627 : vector<16x64xf32>
    %c37 = arith.constant 37 : index
    %c0_632 = arith.constant 0 : index
    %c0_633 = arith.constant 0 : index
    %629 = vector.load %arg6[%c37, %c0_632, %c0_633] : memref<108x64x64xbf16, #tpu.memory_space<vmem>>, vector<1x64x64xbf16>
    %630 = vector.shape_cast %629 : vector<1x64x64xbf16> to vector<64x64xbf16>
    %cst_634 = arith.constant dense<0.000000e+00> : vector<16x64xf32>
    %631 = tpu.matmul %602, %630, %cst_634 {dimension_numbers = #tpu.dot_dimension_numbers<[1], [0], [0], [1], [0, 0, 1, 1], [], []>} : vector<16x64xbf16>, vector<64x64xbf16>, vector<16x64xf32> -> vector<16x64xf32>
    %632 = arith.addf %628, %631 : vector<16x64xf32>
    %c38 = arith.constant 38 : index
    %c0_635 = arith.constant 0 : index
    %c0_636 = arith.constant 0 : index
    %633 = vector.load %arg6[%c38, %c0_635, %c0_636] : memref<108x64x64xbf16, #tpu.memory_space<vmem>>, vector<1x64x64xbf16>
    %634 = vector.shape_cast %633 : vector<1x64x64xbf16> to vector<64x64xbf16>
    %cst_637 = arith.constant dense<0.000000e+00> : vector<16x64xf32>
    %635 = tpu.matmul %605, %634, %cst_637 {dimension_numbers = #tpu.dot_dimension_numbers<[1], [0], [0], [1], [0, 0, 1, 1], [], []>} : vector<16x64xbf16>, vector<64x64xbf16>, vector<16x64xf32> -> vector<16x64xf32>
    %636 = arith.addf %632, %635 : vector<16x64xf32>
    %c39 = arith.constant 39 : index
    %c0_638 = arith.constant 0 : index
    %c0_639 = arith.constant 0 : index
    %637 = vector.load %arg6[%c39, %c0_638, %c0_639] : memref<108x64x64xbf16, #tpu.memory_space<vmem>>, vector<1x64x64xbf16>
    %638 = vector.shape_cast %637 : vector<1x64x64xbf16> to vector<64x64xbf16>
    %cst_640 = arith.constant dense<0.000000e+00> : vector<16x64xf32>
    %639 = tpu.matmul %608, %638, %cst_640 {dimension_numbers = #tpu.dot_dimension_numbers<[1], [0], [0], [1], [0, 0, 1, 1], [], []>} : vector<16x64xbf16>, vector<64x64xbf16>, vector<16x64xf32> -> vector<16x64xf32>
    %640 = arith.addf %636, %639 : vector<16x64xf32>
    %c40 = arith.constant 40 : index
    %c0_641 = arith.constant 0 : index
    %c0_642 = arith.constant 0 : index
    %641 = vector.load %arg6[%c40, %c0_641, %c0_642] : memref<108x64x64xbf16, #tpu.memory_space<vmem>>, vector<1x64x64xbf16>
    %642 = vector.shape_cast %641 : vector<1x64x64xbf16> to vector<64x64xbf16>
    %cst_643 = arith.constant dense<0.000000e+00> : vector<16x64xf32>
    %643 = tpu.matmul %611, %642, %cst_643 {dimension_numbers = #tpu.dot_dimension_numbers<[1], [0], [0], [1], [0, 0, 1, 1], [], []>} : vector<16x64xbf16>, vector<64x64xbf16>, vector<16x64xf32> -> vector<16x64xf32>
    %644 = arith.addf %640, %643 : vector<16x64xf32>
    %c41 = arith.constant 41 : index
    %c0_644 = arith.constant 0 : index
    %c0_645 = arith.constant 0 : index
    %645 = vector.load %arg6[%c41, %c0_644, %c0_645] : memref<108x64x64xbf16, #tpu.memory_space<vmem>>, vector<1x64x64xbf16>
    %646 = vector.shape_cast %645 : vector<1x64x64xbf16> to vector<64x64xbf16>
    %cst_646 = arith.constant dense<0.000000e+00> : vector<16x64xf32>
    %647 = tpu.matmul %614, %646, %cst_646 {dimension_numbers = #tpu.dot_dimension_numbers<[1], [0], [0], [1], [0, 0, 1, 1], [], []>} : vector<16x64xbf16>, vector<64x64xbf16>, vector<16x64xf32> -> vector<16x64xf32>
    %648 = arith.addf %644, %647 : vector<16x64xf32>
    %c42 = arith.constant 42 : index
    %c0_647 = arith.constant 0 : index
    %c0_648 = arith.constant 0 : index
    %649 = vector.load %arg6[%c42, %c0_647, %c0_648] : memref<108x64x64xbf16, #tpu.memory_space<vmem>>, vector<1x64x64xbf16>
    %650 = vector.shape_cast %649 : vector<1x64x64xbf16> to vector<64x64xbf16>
    %cst_649 = arith.constant dense<0.000000e+00> : vector<16x64xf32>
    %651 = tpu.matmul %617, %650, %cst_649 {dimension_numbers = #tpu.dot_dimension_numbers<[1], [0], [0], [1], [0, 0, 1, 1], [], []>} : vector<16x64xbf16>, vector<64x64xbf16>, vector<16x64xf32> -> vector<16x64xf32>
    %652 = arith.addf %648, %651 : vector<16x64xf32>
    %c43 = arith.constant 43 : index
    %c0_650 = arith.constant 0 : index
    %c0_651 = arith.constant 0 : index
    %653 = vector.load %arg6[%c43, %c0_650, %c0_651] : memref<108x64x64xbf16, #tpu.memory_space<vmem>>, vector<1x64x64xbf16>
    %654 = vector.shape_cast %653 : vector<1x64x64xbf16> to vector<64x64xbf16>
    %cst_652 = arith.constant dense<0.000000e+00> : vector<16x64xf32>
    %655 = tpu.matmul %620, %654, %cst_652 {dimension_numbers = #tpu.dot_dimension_numbers<[1], [0], [0], [1], [0, 0, 1, 1], [], []>} : vector<16x64xbf16>, vector<64x64xbf16>, vector<16x64xf32> -> vector<16x64xf32>
    %656 = arith.addf %652, %655 : vector<16x64xf32>
    %c44 = arith.constant 44 : index
    %c0_653 = arith.constant 0 : index
    %c0_654 = arith.constant 0 : index
    %657 = vector.load %arg6[%c44, %c0_653, %c0_654] : memref<108x64x64xbf16, #tpu.memory_space<vmem>>, vector<1x64x64xbf16>
    %658 = vector.shape_cast %657 : vector<1x64x64xbf16> to vector<64x64xbf16>
    %cst_655 = arith.constant dense<0.000000e+00> : vector<16x64xf32>
    %659 = tpu.matmul %623, %658, %cst_655 {dimension_numbers = #tpu.dot_dimension_numbers<[1], [0], [0], [1], [0, 0, 1, 1], [], []>} : vector<16x64xbf16>, vector<64x64xbf16>, vector<16x64xf32> -> vector<16x64xf32>
    %660 = arith.addf %656, %659 : vector<16x64xf32>
    %c4_656 = arith.constant 4 : index
    %c0_657 = arith.constant 0 : index
    %c0_658 = arith.constant 0 : index
    %661 = vector.load %arg7[%c4_656, %c0_657, %c0_658] : memref<12x1x64xf32, #tpu.memory_space<vmem>>, vector<1x1x64xf32>
    %662 = vector.shape_cast %661 : vector<1x1x64xf32> to vector<1x64xf32>
    %663 = vector.broadcast %662 : vector<1x64xf32> to vector<16x64xf32>
    %664 = arith.addf %660, %663 : vector<16x64xf32>
    %cst_659 = arith.constant 0.000000e+00 : f32
    %665 = vector.broadcast %cst_659 : f32 to vector<16x64xf32>
    %666 = arith.maximumf %664, %665 : vector<16x64xf32>
    %667 = vector.shape_cast %666 : vector<16x64xf32> to vector<2x8x64xf32>
    %c0_660 = arith.constant 0 : index
    %c1_661 = arith.constant 1 : index
    %c8_662 = arith.constant 8 : index
    %668 = vector.load %arg14[%c0_660, %c1_661, %c8_662] : memref<2x10x80xf32, #tpu.memory_space<vmem>>, vector<2x8x64xf32>
    tpu.vector_store %arg14[%c0_660, %c1_661, %c8_662], %667 {strides = array<i32>} : memref<2x10x80xf32, #tpu.memory_space<vmem>>, vector<2x8x64xf32>,
    %c0_663 = arith.constant 0 : index
    %c0_664 = arith.constant 0 : index
    %c0_665 = arith.constant 0 : index
    %669 = vector.load %arg14[%c0_663, %c0_664, %c0_665] : memref<2x10x80xf32, #tpu.memory_space<vmem>>, vector<2x8x64xf32>
    %670 = vector.shape_cast %669 : vector<2x8x64xf32> to vector<16x64xf32>
    %671 = arith.truncf %670 : vector<16x64xf32> to vector<16x64xbf16>
    %c0_666 = arith.constant 0 : index
    %c0_667 = arith.constant 0 : index
    %c8_668 = arith.constant 8 : index
    %672 = vector.load %arg14[%c0_666, %c0_667, %c8_668] : memref<2x10x80xf32, #tpu.memory_space<vmem>>, vector<2x8x64xf32>
    %673 = vector.shape_cast %672 : vector<2x8x64xf32> to vector<16x64xf32>
    %674 = arith.truncf %673 : vector<16x64xf32> to vector<16x64xbf16>
    %c0_669 = arith.constant 0 : index
    %c0_670 = arith.constant 0 : index
    %c16_671 = arith.constant 16 : index
    %675 = vector.load %arg14[%c0_669, %c0_670, %c16_671] : memref<2x10x80xf32, #tpu.memory_space<vmem>>, vector<2x8x64xf32>
    %676 = vector.shape_cast %675 : vector<2x8x64xf32> to vector<16x64xf32>
    %677 = arith.truncf %676 : vector<16x64xf32> to vector<16x64xbf16>
    %c0_672 = arith.constant 0 : index
    %c1_673 = arith.constant 1 : index
    %c0_674 = arith.constant 0 : index
    %678 = vector.load %arg14[%c0_672, %c1_673, %c0_674] : memref<2x10x80xf32, #tpu.memory_space<vmem>>, vector<2x8x64xf32>
    %679 = vector.shape_cast %678 : vector<2x8x64xf32> to vector<16x64xf32>
    %680 = arith.truncf %679 : vector<16x64xf32> to vector<16x64xbf16>
    %c0_675 = arith.constant 0 : index
    %c1_676 = arith.constant 1 : index
    %c8_677 = arith.constant 8 : index
    %681 = vector.load %arg14[%c0_675, %c1_676, %c8_677] : memref<2x10x80xf32, #tpu.memory_space<vmem>>, vector<2x8x64xf32>
    %682 = vector.shape_cast %681 : vector<2x8x64xf32> to vector<16x64xf32>
    %683 = arith.truncf %682 : vector<16x64xf32> to vector<16x64xbf16>
    %c0_678 = arith.constant 0 : index
    %c1_679 = arith.constant 1 : index
    %c16_680 = arith.constant 16 : index
    %684 = vector.load %arg14[%c0_678, %c1_679, %c16_680] : memref<2x10x80xf32, #tpu.memory_space<vmem>>, vector<2x8x64xf32>
    %685 = vector.shape_cast %684 : vector<2x8x64xf32> to vector<16x64xf32>
    %686 = arith.truncf %685 : vector<16x64xf32> to vector<16x64xbf16>
    %c0_681 = arith.constant 0 : index
    %c2_682 = arith.constant 2 : index
    %c0_683 = arith.constant 0 : index
    %687 = vector.load %arg14[%c0_681, %c2_682, %c0_683] : memref<2x10x80xf32, #tpu.memory_space<vmem>>, vector<2x8x64xf32>
    %688 = vector.shape_cast %687 : vector<2x8x64xf32> to vector<16x64xf32>
    %689 = arith.truncf %688 : vector<16x64xf32> to vector<16x64xbf16>
    %c0_684 = arith.constant 0 : index
    %c2_685 = arith.constant 2 : index
    %c8_686 = arith.constant 8 : index
    %690 = vector.load %arg14[%c0_684, %c2_685, %c8_686] : memref<2x10x80xf32, #tpu.memory_space<vmem>>, vector<2x8x64xf32>
    %691 = vector.shape_cast %690 : vector<2x8x64xf32> to vector<16x64xf32>
    %692 = arith.truncf %691 : vector<16x64xf32> to vector<16x64xbf16>
    %c0_687 = arith.constant 0 : index
    %c2_688 = arith.constant 2 : index
    %c16_689 = arith.constant 16 : index
    %693 = vector.load %arg14[%c0_687, %c2_688, %c16_689] : memref<2x10x80xf32, #tpu.memory_space<vmem>>, vector<2x8x64xf32>
    %694 = vector.shape_cast %693 : vector<2x8x64xf32> to vector<16x64xf32>
    %695 = arith.truncf %694 : vector<16x64xf32> to vector<16x64xbf16>
    %cst_690 = arith.constant 0.000000e+00 : f32
    %696 = vector.broadcast %cst_690 : f32 to vector<16x64xf32>
    %c45 = arith.constant 45 : index
    %c0_691 = arith.constant 0 : index
    %c0_692 = arith.constant 0 : index
    %697 = vector.load %arg6[%c45, %c0_691, %c0_692] : memref<108x64x64xbf16, #tpu.memory_space<vmem>>, vector<1x64x64xbf16>
    %698 = vector.shape_cast %697 : vector<1x64x64xbf16> to vector<64x64xbf16>
    %cst_693 = arith.constant dense<0.000000e+00> : vector<16x64xf32>
    %699 = tpu.matmul %671, %698, %cst_693 {dimension_numbers = #tpu.dot_dimension_numbers<[1], [0], [0], [1], [0, 0, 1, 1], [], []>} : vector<16x64xbf16>, vector<64x64xbf16>, vector<16x64xf32> -> vector<16x64xf32>
    %700 = arith.addf %696, %699 : vector<16x64xf32>
    %c46 = arith.constant 46 : index
    %c0_694 = arith.constant 0 : index
    %c0_695 = arith.constant 0 : index
    %701 = vector.load %arg6[%c46, %c0_694, %c0_695] : memref<108x64x64xbf16, #tpu.memory_space<vmem>>, vector<1x64x64xbf16>
    %702 = vector.shape_cast %701 : vector<1x64x64xbf16> to vector<64x64xbf16>
    %cst_696 = arith.constant dense<0.000000e+00> : vector<16x64xf32>
    %703 = tpu.matmul %674, %702, %cst_696 {dimension_numbers = #tpu.dot_dimension_numbers<[1], [0], [0], [1], [0, 0, 1, 1], [], []>} : vector<16x64xbf16>, vector<64x64xbf16>, vector<16x64xf32> -> vector<16x64xf32>
    %704 = arith.addf %700, %703 : vector<16x64xf32>
    %c47 = arith.constant 47 : index
    %c0_697 = arith.constant 0 : index
    %c0_698 = arith.constant 0 : index
    %705 = vector.load %arg6[%c47, %c0_697, %c0_698] : memref<108x64x64xbf16, #tpu.memory_space<vmem>>, vector<1x64x64xbf16>
    %706 = vector.shape_cast %705 : vector<1x64x64xbf16> to vector<64x64xbf16>
    %cst_699 = arith.constant dense<0.000000e+00> : vector<16x64xf32>
    %707 = tpu.matmul %677, %706, %cst_699 {dimension_numbers = #tpu.dot_dimension_numbers<[1], [0], [0], [1], [0, 0, 1, 1], [], []>} : vector<16x64xbf16>, vector<64x64xbf16>, vector<16x64xf32> -> vector<16x64xf32>
    %708 = arith.addf %704, %707 : vector<16x64xf32>
    %c48 = arith.constant 48 : index
    %c0_700 = arith.constant 0 : index
    %c0_701 = arith.constant 0 : index
    %709 = vector.load %arg6[%c48, %c0_700, %c0_701] : memref<108x64x64xbf16, #tpu.memory_space<vmem>>, vector<1x64x64xbf16>
    %710 = vector.shape_cast %709 : vector<1x64x64xbf16> to vector<64x64xbf16>
    %cst_702 = arith.constant dense<0.000000e+00> : vector<16x64xf32>
    %711 = tpu.matmul %680, %710, %cst_702 {dimension_numbers = #tpu.dot_dimension_numbers<[1], [0], [0], [1], [0, 0, 1, 1], [], []>} : vector<16x64xbf16>, vector<64x64xbf16>, vector<16x64xf32> -> vector<16x64xf32>
    %712 = arith.addf %708, %711 : vector<16x64xf32>
    %c49 = arith.constant 49 : index
    %c0_703 = arith.constant 0 : index
    %c0_704 = arith.constant 0 : index
    %713 = vector.load %arg6[%c49, %c0_703, %c0_704] : memref<108x64x64xbf16, #tpu.memory_space<vmem>>, vector<1x64x64xbf16>
    %714 = vector.shape_cast %713 : vector<1x64x64xbf16> to vector<64x64xbf16>
    %cst_705 = arith.constant dense<0.000000e+00> : vector<16x64xf32>
    %715 = tpu.matmul %683, %714, %cst_705 {dimension_numbers = #tpu.dot_dimension_numbers<[1], [0], [0], [1], [0, 0, 1, 1], [], []>} : vector<16x64xbf16>, vector<64x64xbf16>, vector<16x64xf32> -> vector<16x64xf32>
    %716 = arith.addf %712, %715 : vector<16x64xf32>
    %c50 = arith.constant 50 : index
    %c0_706 = arith.constant 0 : index
    %c0_707 = arith.constant 0 : index
    %717 = vector.load %arg6[%c50, %c0_706, %c0_707] : memref<108x64x64xbf16, #tpu.memory_space<vmem>>, vector<1x64x64xbf16>
    %718 = vector.shape_cast %717 : vector<1x64x64xbf16> to vector<64x64xbf16>
    %cst_708 = arith.constant dense<0.000000e+00> : vector<16x64xf32>
    %719 = tpu.matmul %686, %718, %cst_708 {dimension_numbers = #tpu.dot_dimension_numbers<[1], [0], [0], [1], [0, 0, 1, 1], [], []>} : vector<16x64xbf16>, vector<64x64xbf16>, vector<16x64xf32> -> vector<16x64xf32>
    %720 = arith.addf %716, %719 : vector<16x64xf32>
    %c51 = arith.constant 51 : index
    %c0_709 = arith.constant 0 : index
    %c0_710 = arith.constant 0 : index
    %721 = vector.load %arg6[%c51, %c0_709, %c0_710] : memref<108x64x64xbf16, #tpu.memory_space<vmem>>, vector<1x64x64xbf16>
    %722 = vector.shape_cast %721 : vector<1x64x64xbf16> to vector<64x64xbf16>
    %cst_711 = arith.constant dense<0.000000e+00> : vector<16x64xf32>
    %723 = tpu.matmul %689, %722, %cst_711 {dimension_numbers = #tpu.dot_dimension_numbers<[1], [0], [0], [1], [0, 0, 1, 1], [], []>} : vector<16x64xbf16>, vector<64x64xbf16>, vector<16x64xf32> -> vector<16x64xf32>
    %724 = arith.addf %720, %723 : vector<16x64xf32>
    %c52 = arith.constant 52 : index
    %c0_712 = arith.constant 0 : index
    %c0_713 = arith.constant 0 : index
    %725 = vector.load %arg6[%c52, %c0_712, %c0_713] : memref<108x64x64xbf16, #tpu.memory_space<vmem>>, vector<1x64x64xbf16>
    %726 = vector.shape_cast %725 : vector<1x64x64xbf16> to vector<64x64xbf16>
    %cst_714 = arith.constant dense<0.000000e+00> : vector<16x64xf32>
    %727 = tpu.matmul %692, %726, %cst_714 {dimension_numbers = #tpu.dot_dimension_numbers<[1], [0], [0], [1], [0, 0, 1, 1], [], []>} : vector<16x64xbf16>, vector<64x64xbf16>, vector<16x64xf32> -> vector<16x64xf32>
    %728 = arith.addf %724, %727 : vector<16x64xf32>
    %c53 = arith.constant 53 : index
    %c0_715 = arith.constant 0 : index
    %c0_716 = arith.constant 0 : index
    %729 = vector.load %arg6[%c53, %c0_715, %c0_716] : memref<108x64x64xbf16, #tpu.memory_space<vmem>>, vector<1x64x64xbf16>
    %730 = vector.shape_cast %729 : vector<1x64x64xbf16> to vector<64x64xbf16>
    %cst_717 = arith.constant dense<0.000000e+00> : vector<16x64xf32>
    %731 = tpu.matmul %695, %730, %cst_717 {dimension_numbers = #tpu.dot_dimension_numbers<[1], [0], [0], [1], [0, 0, 1, 1], [], []>} : vector<16x64xbf16>, vector<64x64xbf16>, vector<16x64xf32> -> vector<16x64xf32>
    %732 = arith.addf %728, %731 : vector<16x64xf32>
    %c5_718 = arith.constant 5 : index
    %c0_719 = arith.constant 0 : index
    %c0_720 = arith.constant 0 : index
    %733 = vector.load %arg7[%c5_718, %c0_719, %c0_720] : memref<12x1x64xf32, #tpu.memory_space<vmem>>, vector<1x1x64xf32>
    %734 = vector.shape_cast %733 : vector<1x1x64xf32> to vector<1x64xf32>
    %735 = vector.broadcast %734 : vector<1x64xf32> to vector<16x64xf32>
    %736 = arith.addf %732, %735 : vector<16x64xf32>
    %c0_721 = arith.constant 0 : index
    %c1_722 = arith.constant 1 : index
    %c8_723 = arith.constant 8 : index
    %737 = vector.load %arg13[%c0_721, %c1_722, %c8_723] : memref<2x10x80xf32, #tpu.memory_space<vmem>>, vector<2x8x64xf32>
    %738 = vector.shape_cast %737 : vector<2x8x64xf32> to vector<16x64xf32>
    %739 = arith.addf %736, %738 : vector<16x64xf32>
    %740 = vector.shape_cast %739 : vector<16x64xf32> to vector<2x8x64xf32>
    %c0_724 = arith.constant 0 : index
    %c1_725 = arith.constant 1 : index
    %c8_726 = arith.constant 8 : index
    %741 = vector.load %arg13[%c0_724, %c1_725, %c8_726] : memref<2x10x80xf32, #tpu.memory_space<vmem>>, vector<2x8x64xf32>
    tpu.vector_store %arg13[%c0_724, %c1_725, %c8_726], %740 {strides = array<i32>} : memref<2x10x80xf32, #tpu.memory_space<vmem>>, vector<2x8x64xf32>,
    %c0_727 = arith.constant 0 : index
    %c0_728 = arith.constant 0 : index
    %c0_729 = arith.constant 0 : index
    %742 = vector.load %arg13[%c0_727, %c0_728, %c0_729] : memref<2x10x80xf32, #tpu.memory_space<vmem>>, vector<2x8x64xf32>
    %743 = vector.shape_cast %742 : vector<2x8x64xf32> to vector<16x64xf32>
    %744 = arith.truncf %743 : vector<16x64xf32> to vector<16x64xbf16>
    %c0_730 = arith.constant 0 : index
    %c0_731 = arith.constant 0 : index
    %c8_732 = arith.constant 8 : index
    %745 = vector.load %arg13[%c0_730, %c0_731, %c8_732] : memref<2x10x80xf32, #tpu.memory_space<vmem>>, vector<2x8x64xf32>
    %746 = vector.shape_cast %745 : vector<2x8x64xf32> to vector<16x64xf32>
    %747 = arith.truncf %746 : vector<16x64xf32> to vector<16x64xbf16>
    %c0_733 = arith.constant 0 : index
    %c0_734 = arith.constant 0 : index
    %c16_735 = arith.constant 16 : index
    %748 = vector.load %arg13[%c0_733, %c0_734, %c16_735] : memref<2x10x80xf32, #tpu.memory_space<vmem>>, vector<2x8x64xf32>
    %749 = vector.shape_cast %748 : vector<2x8x64xf32> to vector<16x64xf32>
    %750 = arith.truncf %749 : vector<16x64xf32> to vector<16x64xbf16>
    %c0_736 = arith.constant 0 : index
    %c1_737 = arith.constant 1 : index
    %c0_738 = arith.constant 0 : index
    %751 = vector.load %arg13[%c0_736, %c1_737, %c0_738] : memref<2x10x80xf32, #tpu.memory_space<vmem>>, vector<2x8x64xf32>
    %752 = vector.shape_cast %751 : vector<2x8x64xf32> to vector<16x64xf32>
    %753 = arith.truncf %752 : vector<16x64xf32> to vector<16x64xbf16>
    %c0_739 = arith.constant 0 : index
    %c1_740 = arith.constant 1 : index
    %c8_741 = arith.constant 8 : index
    %754 = vector.load %arg13[%c0_739, %c1_740, %c8_741] : memref<2x10x80xf32, #tpu.memory_space<vmem>>, vector<2x8x64xf32>
    %755 = vector.shape_cast %754 : vector<2x8x64xf32> to vector<16x64xf32>
    %756 = arith.truncf %755 : vector<16x64xf32> to vector<16x64xbf16>
    %c0_742 = arith.constant 0 : index
    %c1_743 = arith.constant 1 : index
    %c16_744 = arith.constant 16 : index
    %757 = vector.load %arg13[%c0_742, %c1_743, %c16_744] : memref<2x10x80xf32, #tpu.memory_space<vmem>>, vector<2x8x64xf32>
    %758 = vector.shape_cast %757 : vector<2x8x64xf32> to vector<16x64xf32>
    %759 = arith.truncf %758 : vector<16x64xf32> to vector<16x64xbf16>
    %c0_745 = arith.constant 0 : index
    %c2_746 = arith.constant 2 : index
    %c0_747 = arith.constant 0 : index
    %760 = vector.load %arg13[%c0_745, %c2_746, %c0_747] : memref<2x10x80xf32, #tpu.memory_space<vmem>>, vector<2x8x64xf32>
    %761 = vector.shape_cast %760 : vector<2x8x64xf32> to vector<16x64xf32>
    %762 = arith.truncf %761 : vector<16x64xf32> to vector<16x64xbf16>
    %c0_748 = arith.constant 0 : index
    %c2_749 = arith.constant 2 : index
    %c8_750 = arith.constant 8 : index
    %763 = vector.load %arg13[%c0_748, %c2_749, %c8_750] : memref<2x10x80xf32, #tpu.memory_space<vmem>>, vector<2x8x64xf32>
    %764 = vector.shape_cast %763 : vector<2x8x64xf32> to vector<16x64xf32>
    %765 = arith.truncf %764 : vector<16x64xf32> to vector<16x64xbf16>
    %c0_751 = arith.constant 0 : index
    %c2_752 = arith.constant 2 : index
    %c16_753 = arith.constant 16 : index
    %766 = vector.load %arg13[%c0_751, %c2_752, %c16_753] : memref<2x10x80xf32, #tpu.memory_space<vmem>>, vector<2x8x64xf32>
    %767 = vector.shape_cast %766 : vector<2x8x64xf32> to vector<16x64xf32>
    %768 = arith.truncf %767 : vector<16x64xf32> to vector<16x64xbf16>
    %cst_754 = arith.constant 0.000000e+00 : f32
    %769 = vector.broadcast %cst_754 : f32 to vector<16x64xf32>
    %c54 = arith.constant 54 : index
    %c0_755 = arith.constant 0 : index
    %c0_756 = arith.constant 0 : index
    %770 = vector.load %arg6[%c54, %c0_755, %c0_756] : memref<108x64x64xbf16, #tpu.memory_space<vmem>>, vector<1x64x64xbf16>
    %771 = vector.shape_cast %770 : vector<1x64x64xbf16> to vector<64x64xbf16>
    %cst_757 = arith.constant dense<0.000000e+00> : vector<16x64xf32>
    %772 = tpu.matmul %744, %771, %cst_757 {dimension_numbers = #tpu.dot_dimension_numbers<[1], [0], [0], [1], [0, 0, 1, 1], [], []>} : vector<16x64xbf16>, vector<64x64xbf16>, vector<16x64xf32> -> vector<16x64xf32>
    %773 = arith.addf %769, %772 : vector<16x64xf32>
    %c55 = arith.constant 55 : index
    %c0_758 = arith.constant 0 : index
    %c0_759 = arith.constant 0 : index
    %774 = vector.load %arg6[%c55, %c0_758, %c0_759] : memref<108x64x64xbf16, #tpu.memory_space<vmem>>, vector<1x64x64xbf16>
    %775 = vector.shape_cast %774 : vector<1x64x64xbf16> to vector<64x64xbf16>
    %cst_760 = arith.constant dense<0.000000e+00> : vector<16x64xf32>
    %776 = tpu.matmul %747, %775, %cst_760 {dimension_numbers = #tpu.dot_dimension_numbers<[1], [0], [0], [1], [0, 0, 1, 1], [], []>} : vector<16x64xbf16>, vector<64x64xbf16>, vector<16x64xf32> -> vector<16x64xf32>
    %777 = arith.addf %773, %776 : vector<16x64xf32>
    %c56 = arith.constant 56 : index
    %c0_761 = arith.constant 0 : index
    %c0_762 = arith.constant 0 : index
    %778 = vector.load %arg6[%c56, %c0_761, %c0_762] : memref<108x64x64xbf16, #tpu.memory_space<vmem>>, vector<1x64x64xbf16>
    %779 = vector.shape_cast %778 : vector<1x64x64xbf16> to vector<64x64xbf16>
    %cst_763 = arith.constant dense<0.000000e+00> : vector<16x64xf32>
    %780 = tpu.matmul %750, %779, %cst_763 {dimension_numbers = #tpu.dot_dimension_numbers<[1], [0], [0], [1], [0, 0, 1, 1], [], []>} : vector<16x64xbf16>, vector<64x64xbf16>, vector<16x64xf32> -> vector<16x64xf32>
    %781 = arith.addf %777, %780 : vector<16x64xf32>
    %c57 = arith.constant 57 : index
    %c0_764 = arith.constant 0 : index
    %c0_765 = arith.constant 0 : index
    %782 = vector.load %arg6[%c57, %c0_764, %c0_765] : memref<108x64x64xbf16, #tpu.memory_space<vmem>>, vector<1x64x64xbf16>
    %783 = vector.shape_cast %782 : vector<1x64x64xbf16> to vector<64x64xbf16>
    %cst_766 = arith.constant dense<0.000000e+00> : vector<16x64xf32>
    %784 = tpu.matmul %753, %783, %cst_766 {dimension_numbers = #tpu.dot_dimension_numbers<[1], [0], [0], [1], [0, 0, 1, 1], [], []>} : vector<16x64xbf16>, vector<64x64xbf16>, vector<16x64xf32> -> vector<16x64xf32>
    %785 = arith.addf %781, %784 : vector<16x64xf32>
    %c58 = arith.constant 58 : index
    %c0_767 = arith.constant 0 : index
    %c0_768 = arith.constant 0 : index
    %786 = vector.load %arg6[%c58, %c0_767, %c0_768] : memref<108x64x64xbf16, #tpu.memory_space<vmem>>, vector<1x64x64xbf16>
    %787 = vector.shape_cast %786 : vector<1x64x64xbf16> to vector<64x64xbf16>
    %cst_769 = arith.constant dense<0.000000e+00> : vector<16x64xf32>
    %788 = tpu.matmul %756, %787, %cst_769 {dimension_numbers = #tpu.dot_dimension_numbers<[1], [0], [0], [1], [0, 0, 1, 1], [], []>} : vector<16x64xbf16>, vector<64x64xbf16>, vector<16x64xf32> -> vector<16x64xf32>
    %789 = arith.addf %785, %788 : vector<16x64xf32>
    %c59 = arith.constant 59 : index
    %c0_770 = arith.constant 0 : index
    %c0_771 = arith.constant 0 : index
    %790 = vector.load %arg6[%c59, %c0_770, %c0_771] : memref<108x64x64xbf16, #tpu.memory_space<vmem>>, vector<1x64x64xbf16>
    %791 = vector.shape_cast %790 : vector<1x64x64xbf16> to vector<64x64xbf16>
    %cst_772 = arith.constant dense<0.000000e+00> : vector<16x64xf32>
    %792 = tpu.matmul %759, %791, %cst_772 {dimension_numbers = #tpu.dot_dimension_numbers<[1], [0], [0], [1], [0, 0, 1, 1], [], []>} : vector<16x64xbf16>, vector<64x64xbf16>, vector<16x64xf32> -> vector<16x64xf32>
    %793 = arith.addf %789, %792 : vector<16x64xf32>
    %c60 = arith.constant 60 : index
    %c0_773 = arith.constant 0 : index
    %c0_774 = arith.constant 0 : index
    %794 = vector.load %arg6[%c60, %c0_773, %c0_774] : memref<108x64x64xbf16, #tpu.memory_space<vmem>>, vector<1x64x64xbf16>
    %795 = vector.shape_cast %794 : vector<1x64x64xbf16> to vector<64x64xbf16>
    %cst_775 = arith.constant dense<0.000000e+00> : vector<16x64xf32>
    %796 = tpu.matmul %762, %795, %cst_775 {dimension_numbers = #tpu.dot_dimension_numbers<[1], [0], [0], [1], [0, 0, 1, 1], [], []>} : vector<16x64xbf16>, vector<64x64xbf16>, vector<16x64xf32> -> vector<16x64xf32>
    %797 = arith.addf %793, %796 : vector<16x64xf32>
    %c61 = arith.constant 61 : index
    %c0_776 = arith.constant 0 : index
    %c0_777 = arith.constant 0 : index
    %798 = vector.load %arg6[%c61, %c0_776, %c0_777] : memref<108x64x64xbf16, #tpu.memory_space<vmem>>, vector<1x64x64xbf16>
    %799 = vector.shape_cast %798 : vector<1x64x64xbf16> to vector<64x64xbf16>
    %cst_778 = arith.constant dense<0.000000e+00> : vector<16x64xf32>
    %800 = tpu.matmul %765, %799, %cst_778 {dimension_numbers = #tpu.dot_dimension_numbers<[1], [0], [0], [1], [0, 0, 1, 1], [], []>} : vector<16x64xbf16>, vector<64x64xbf16>, vector<16x64xf32> -> vector<16x64xf32>
    %801 = arith.addf %797, %800 : vector<16x64xf32>
    %c62 = arith.constant 62 : index
    %c0_779 = arith.constant 0 : index
    %c0_780 = arith.constant 0 : index
    %802 = vector.load %arg6[%c62, %c0_779, %c0_780] : memref<108x64x64xbf16, #tpu.memory_space<vmem>>, vector<1x64x64xbf16>
    %803 = vector.shape_cast %802 : vector<1x64x64xbf16> to vector<64x64xbf16>
    %cst_781 = arith.constant dense<0.000000e+00> : vector<16x64xf32>
    %804 = tpu.matmul %768, %803, %cst_781 {dimension_numbers = #tpu.dot_dimension_numbers<[1], [0], [0], [1], [0, 0, 1, 1], [], []>} : vector<16x64xbf16>, vector<64x64xbf16>, vector<16x64xf32> -> vector<16x64xf32>
    %805 = arith.addf %801, %804 : vector<16x64xf32>
    %c6_782 = arith.constant 6 : index
    %c0_783 = arith.constant 0 : index
    %c0_784 = arith.constant 0 : index
    %806 = vector.load %arg7[%c6_782, %c0_783, %c0_784] : memref<12x1x64xf32, #tpu.memory_space<vmem>>, vector<1x1x64xf32>
    %807 = vector.shape_cast %806 : vector<1x1x64xf32> to vector<1x64xf32>
    %808 = vector.broadcast %807 : vector<1x64xf32> to vector<16x64xf32>
    %809 = arith.addf %805, %808 : vector<16x64xf32>
    %cst_785 = arith.constant 0.000000e+00 : f32
    %810 = vector.broadcast %cst_785 : f32 to vector<16x64xf32>
    %811 = arith.maximumf %809, %810 : vector<16x64xf32>
    %812 = vector.shape_cast %811 : vector<16x64xf32> to vector<2x8x64xf32>
    %c0_786 = arith.constant 0 : index
    %c1_787 = arith.constant 1 : index
    %c8_788 = arith.constant 8 : index
    %813 = vector.load %arg14[%c0_786, %c1_787, %c8_788] : memref<2x10x80xf32, #tpu.memory_space<vmem>>, vector<2x8x64xf32>
    tpu.vector_store %arg14[%c0_786, %c1_787, %c8_788], %812 {strides = array<i32>} : memref<2x10x80xf32, #tpu.memory_space<vmem>>, vector<2x8x64xf32>,
    %c0_789 = arith.constant 0 : index
    %c0_790 = arith.constant 0 : index
    %c0_791 = arith.constant 0 : index
    %814 = vector.load %arg14[%c0_789, %c0_790, %c0_791] : memref<2x10x80xf32, #tpu.memory_space<vmem>>, vector<2x8x64xf32>
    %815 = vector.shape_cast %814 : vector<2x8x64xf32> to vector<16x64xf32>
    %816 = arith.truncf %815 : vector<16x64xf32> to vector<16x64xbf16>
    %c0_792 = arith.constant 0 : index
    %c0_793 = arith.constant 0 : index
    %c8_794 = arith.constant 8 : index
    %817 = vector.load %arg14[%c0_792, %c0_793, %c8_794] : memref<2x10x80xf32, #tpu.memory_space<vmem>>, vector<2x8x64xf32>
    %818 = vector.shape_cast %817 : vector<2x8x64xf32> to vector<16x64xf32>
    %819 = arith.truncf %818 : vector<16x64xf32> to vector<16x64xbf16>
    %c0_795 = arith.constant 0 : index
    %c0_796 = arith.constant 0 : index
    %c16_797 = arith.constant 16 : index
    %820 = vector.load %arg14[%c0_795, %c0_796, %c16_797] : memref<2x10x80xf32, #tpu.memory_space<vmem>>, vector<2x8x64xf32>
    %821 = vector.shape_cast %820 : vector<2x8x64xf32> to vector<16x64xf32>
    %822 = arith.truncf %821 : vector<16x64xf32> to vector<16x64xbf16>
    %c0_798 = arith.constant 0 : index
    %c1_799 = arith.constant 1 : index
    %c0_800 = arith.constant 0 : index
    %823 = vector.load %arg14[%c0_798, %c1_799, %c0_800] : memref<2x10x80xf32, #tpu.memory_space<vmem>>, vector<2x8x64xf32>
    %824 = vector.shape_cast %823 : vector<2x8x64xf32> to vector<16x64xf32>
    %825 = arith.truncf %824 : vector<16x64xf32> to vector<16x64xbf16>
    %c0_801 = arith.constant 0 : index
    %c1_802 = arith.constant 1 : index
    %c8_803 = arith.constant 8 : index
    %826 = vector.load %arg14[%c0_801, %c1_802, %c8_803] : memref<2x10x80xf32, #tpu.memory_space<vmem>>, vector<2x8x64xf32>
    %827 = vector.shape_cast %826 : vector<2x8x64xf32> to vector<16x64xf32>
    %828 = arith.truncf %827 : vector<16x64xf32> to vector<16x64xbf16>
    %c0_804 = arith.constant 0 : index
    %c1_805 = arith.constant 1 : index
    %c16_806 = arith.constant 16 : index
    %829 = vector.load %arg14[%c0_804, %c1_805, %c16_806] : memref<2x10x80xf32, #tpu.memory_space<vmem>>, vector<2x8x64xf32>
    %830 = vector.shape_cast %829 : vector<2x8x64xf32> to vector<16x64xf32>
    %831 = arith.truncf %830 : vector<16x64xf32> to vector<16x64xbf16>
    %c0_807 = arith.constant 0 : index
    %c2_808 = arith.constant 2 : index
    %c0_809 = arith.constant 0 : index
    %832 = vector.load %arg14[%c0_807, %c2_808, %c0_809] : memref<2x10x80xf32, #tpu.memory_space<vmem>>, vector<2x8x64xf32>
    %833 = vector.shape_cast %832 : vector<2x8x64xf32> to vector<16x64xf32>
    %834 = arith.truncf %833 : vector<16x64xf32> to vector<16x64xbf16>
    %c0_810 = arith.constant 0 : index
    %c2_811 = arith.constant 2 : index
    %c8_812 = arith.constant 8 : index
    %835 = vector.load %arg14[%c0_810, %c2_811, %c8_812] : memref<2x10x80xf32, #tpu.memory_space<vmem>>, vector<2x8x64xf32>
    %836 = vector.shape_cast %835 : vector<2x8x64xf32> to vector<16x64xf32>
    %837 = arith.truncf %836 : vector<16x64xf32> to vector<16x64xbf16>
    %c0_813 = arith.constant 0 : index
    %c2_814 = arith.constant 2 : index
    %c16_815 = arith.constant 16 : index
    %838 = vector.load %arg14[%c0_813, %c2_814, %c16_815] : memref<2x10x80xf32, #tpu.memory_space<vmem>>, vector<2x8x64xf32>
    %839 = vector.shape_cast %838 : vector<2x8x64xf32> to vector<16x64xf32>
    %840 = arith.truncf %839 : vector<16x64xf32> to vector<16x64xbf16>
    %cst_816 = arith.constant 0.000000e+00 : f32
    %841 = vector.broadcast %cst_816 : f32 to vector<16x64xf32>
    %c63 = arith.constant 63 : index
    %c0_817 = arith.constant 0 : index
    %c0_818 = arith.constant 0 : index
    %842 = vector.load %arg6[%c63, %c0_817, %c0_818] : memref<108x64x64xbf16, #tpu.memory_space<vmem>>, vector<1x64x64xbf16>
    %843 = vector.shape_cast %842 : vector<1x64x64xbf16> to vector<64x64xbf16>
    %cst_819 = arith.constant dense<0.000000e+00> : vector<16x64xf32>
    %844 = tpu.matmul %816, %843, %cst_819 {dimension_numbers = #tpu.dot_dimension_numbers<[1], [0], [0], [1], [0, 0, 1, 1], [], []>} : vector<16x64xbf16>, vector<64x64xbf16>, vector<16x64xf32> -> vector<16x64xf32>
    %845 = arith.addf %841, %844 : vector<16x64xf32>
    %c64 = arith.constant 64 : index
    %c0_820 = arith.constant 0 : index
    %c0_821 = arith.constant 0 : index
    %846 = vector.load %arg6[%c64, %c0_820, %c0_821] : memref<108x64x64xbf16, #tpu.memory_space<vmem>>, vector<1x64x64xbf16>
    %847 = vector.shape_cast %846 : vector<1x64x64xbf16> to vector<64x64xbf16>
    %cst_822 = arith.constant dense<0.000000e+00> : vector<16x64xf32>
    %848 = tpu.matmul %819, %847, %cst_822 {dimension_numbers = #tpu.dot_dimension_numbers<[1], [0], [0], [1], [0, 0, 1, 1], [], []>} : vector<16x64xbf16>, vector<64x64xbf16>, vector<16x64xf32> -> vector<16x64xf32>
    %849 = arith.addf %845, %848 : vector<16x64xf32>
    %c65 = arith.constant 65 : index
    %c0_823 = arith.constant 0 : index
    %c0_824 = arith.constant 0 : index
    %850 = vector.load %arg6[%c65, %c0_823, %c0_824] : memref<108x64x64xbf16, #tpu.memory_space<vmem>>, vector<1x64x64xbf16>
    %851 = vector.shape_cast %850 : vector<1x64x64xbf16> to vector<64x64xbf16>
    %cst_825 = arith.constant dense<0.000000e+00> : vector<16x64xf32>
    %852 = tpu.matmul %822, %851, %cst_825 {dimension_numbers = #tpu.dot_dimension_numbers<[1], [0], [0], [1], [0, 0, 1, 1], [], []>} : vector<16x64xbf16>, vector<64x64xbf16>, vector<16x64xf32> -> vector<16x64xf32>
    %853 = arith.addf %849, %852 : vector<16x64xf32>
    %c66 = arith.constant 66 : index
    %c0_826 = arith.constant 0 : index
    %c0_827 = arith.constant 0 : index
    %854 = vector.load %arg6[%c66, %c0_826, %c0_827] : memref<108x64x64xbf16, #tpu.memory_space<vmem>>, vector<1x64x64xbf16>
    %855 = vector.shape_cast %854 : vector<1x64x64xbf16> to vector<64x64xbf16>
    %cst_828 = arith.constant dense<0.000000e+00> : vector<16x64xf32>
    %856 = tpu.matmul %825, %855, %cst_828 {dimension_numbers = #tpu.dot_dimension_numbers<[1], [0], [0], [1], [0, 0, 1, 1], [], []>} : vector<16x64xbf16>, vector<64x64xbf16>, vector<16x64xf32> -> vector<16x64xf32>
    %857 = arith.addf %853, %856 : vector<16x64xf32>
    %c67 = arith.constant 67 : index
    %c0_829 = arith.constant 0 : index
    %c0_830 = arith.constant 0 : index
    %858 = vector.load %arg6[%c67, %c0_829, %c0_830] : memref<108x64x64xbf16, #tpu.memory_space<vmem>>, vector<1x64x64xbf16>
    %859 = vector.shape_cast %858 : vector<1x64x64xbf16> to vector<64x64xbf16>
    %cst_831 = arith.constant dense<0.000000e+00> : vector<16x64xf32>
    %860 = tpu.matmul %828, %859, %cst_831 {dimension_numbers = #tpu.dot_dimension_numbers<[1], [0], [0], [1], [0, 0, 1, 1], [], []>} : vector<16x64xbf16>, vector<64x64xbf16>, vector<16x64xf32> -> vector<16x64xf32>
    %861 = arith.addf %857, %860 : vector<16x64xf32>
    %c68 = arith.constant 68 : index
    %c0_832 = arith.constant 0 : index
    %c0_833 = arith.constant 0 : index
    %862 = vector.load %arg6[%c68, %c0_832, %c0_833] : memref<108x64x64xbf16, #tpu.memory_space<vmem>>, vector<1x64x64xbf16>
    %863 = vector.shape_cast %862 : vector<1x64x64xbf16> to vector<64x64xbf16>
    %cst_834 = arith.constant dense<0.000000e+00> : vector<16x64xf32>
    %864 = tpu.matmul %831, %863, %cst_834 {dimension_numbers = #tpu.dot_dimension_numbers<[1], [0], [0], [1], [0, 0, 1, 1], [], []>} : vector<16x64xbf16>, vector<64x64xbf16>, vector<16x64xf32> -> vector<16x64xf32>
    %865 = arith.addf %861, %864 : vector<16x64xf32>
    %c69 = arith.constant 69 : index
    %c0_835 = arith.constant 0 : index
    %c0_836 = arith.constant 0 : index
    %866 = vector.load %arg6[%c69, %c0_835, %c0_836] : memref<108x64x64xbf16, #tpu.memory_space<vmem>>, vector<1x64x64xbf16>
    %867 = vector.shape_cast %866 : vector<1x64x64xbf16> to vector<64x64xbf16>
    %cst_837 = arith.constant dense<0.000000e+00> : vector<16x64xf32>
    %868 = tpu.matmul %834, %867, %cst_837 {dimension_numbers = #tpu.dot_dimension_numbers<[1], [0], [0], [1], [0, 0, 1, 1], [], []>} : vector<16x64xbf16>, vector<64x64xbf16>, vector<16x64xf32> -> vector<16x64xf32>
    %869 = arith.addf %865, %868 : vector<16x64xf32>
    %c70 = arith.constant 70 : index
    %c0_838 = arith.constant 0 : index
    %c0_839 = arith.constant 0 : index
    %870 = vector.load %arg6[%c70, %c0_838, %c0_839] : memref<108x64x64xbf16, #tpu.memory_space<vmem>>, vector<1x64x64xbf16>
    %871 = vector.shape_cast %870 : vector<1x64x64xbf16> to vector<64x64xbf16>
    %cst_840 = arith.constant dense<0.000000e+00> : vector<16x64xf32>
    %872 = tpu.matmul %837, %871, %cst_840 {dimension_numbers = #tpu.dot_dimension_numbers<[1], [0], [0], [1], [0, 0, 1, 1], [], []>} : vector<16x64xbf16>, vector<64x64xbf16>, vector<16x64xf32> -> vector<16x64xf32>
    %873 = arith.addf %869, %872 : vector<16x64xf32>
    %c71 = arith.constant 71 : index
    %c0_841 = arith.constant 0 : index
    %c0_842 = arith.constant 0 : index
    %874 = vector.load %arg6[%c71, %c0_841, %c0_842] : memref<108x64x64xbf16, #tpu.memory_space<vmem>>, vector<1x64x64xbf16>
    %875 = vector.shape_cast %874 : vector<1x64x64xbf16> to vector<64x64xbf16>
    %cst_843 = arith.constant dense<0.000000e+00> : vector<16x64xf32>
    %876 = tpu.matmul %840, %875, %cst_843 {dimension_numbers = #tpu.dot_dimension_numbers<[1], [0], [0], [1], [0, 0, 1, 1], [], []>} : vector<16x64xbf16>, vector<64x64xbf16>, vector<16x64xf32> -> vector<16x64xf32>
    %877 = arith.addf %873, %876 : vector<16x64xf32>
    %c7_844 = arith.constant 7 : index
    %c0_845 = arith.constant 0 : index
    %c0_846 = arith.constant 0 : index
    %878 = vector.load %arg7[%c7_844, %c0_845, %c0_846] : memref<12x1x64xf32, #tpu.memory_space<vmem>>, vector<1x1x64xf32>
    %879 = vector.shape_cast %878 : vector<1x1x64xf32> to vector<1x64xf32>
    %880 = vector.broadcast %879 : vector<1x64xf32> to vector<16x64xf32>
    %881 = arith.addf %877, %880 : vector<16x64xf32>
    %c0_847 = arith.constant 0 : index
    %c1_848 = arith.constant 1 : index
    %c8_849 = arith.constant 8 : index
    %882 = vector.load %arg13[%c0_847, %c1_848, %c8_849] : memref<2x10x80xf32, #tpu.memory_space<vmem>>, vector<2x8x64xf32>
    %883 = vector.shape_cast %882 : vector<2x8x64xf32> to vector<16x64xf32>
    %884 = arith.addf %881, %883 : vector<16x64xf32>
    %885 = vector.shape_cast %884 : vector<16x64xf32> to vector<2x8x64xf32>
    %c0_850 = arith.constant 0 : index
    %c1_851 = arith.constant 1 : index
    %c8_852 = arith.constant 8 : index
    %886 = vector.load %arg13[%c0_850, %c1_851, %c8_852] : memref<2x10x80xf32, #tpu.memory_space<vmem>>, vector<2x8x64xf32>
    tpu.vector_store %arg13[%c0_850, %c1_851, %c8_852], %885 {strides = array<i32>} : memref<2x10x80xf32, #tpu.memory_space<vmem>>, vector<2x8x64xf32>,
    %c0_853 = arith.constant 0 : index
    %c1_854 = arith.constant 1 : index
    %c8_855 = arith.constant 8 : index
    %887 = vector.load %arg13[%c0_853, %c1_854, %c8_855] : memref<2x10x80xf32, #tpu.memory_space<vmem>>, vector<2x8x64xf32>
    %888 = vector.shape_cast %887 : vector<2x8x64xf32> to vector<16x64xf32>
    %c0_856 = arith.constant 0 : index
    %c1_857 = arith.constant 1 : index
    %c8_858 = arith.constant 8 : index
    %889 = vector.load %arg12[%c0_856, %c1_857, %c8_858] : memref<2x10x80xf32, #tpu.memory_space<vmem>>, vector<2x8x64xf32>
    %890 = vector.shape_cast %889 : vector<2x8x64xf32> to vector<16x64xf32>
    %891 = arith.addf %888, %890 : vector<16x64xf32>
    %892 = vector.shape_cast %891 : vector<16x64xf32> to vector<2x8x64xf32>
    %c0_859 = arith.constant 0 : index
    %c1_860 = arith.constant 1 : index
    %c8_861 = arith.constant 8 : index
    %893 = vector.load %arg13[%c0_859, %c1_860, %c8_861] : memref<2x10x80xf32, #tpu.memory_space<vmem>>, vector<2x8x64xf32>
    tpu.vector_store %arg13[%c0_859, %c1_860, %c8_861], %892 {strides = array<i32>} : memref<2x10x80xf32, #tpu.memory_space<vmem>>, vector<2x8x64xf32>,
    %c0_862 = arith.constant 0 : index
    %c0_863 = arith.constant 0 : index
    %c0_864 = arith.constant 0 : index
    %894 = vector.load %arg11[%c0_862, %c0_863, %c0_864] : memref<2x10x80xf32, #tpu.memory_space<vmem>>, vector<2x8x64xf32>
    %895 = vector.shape_cast %894 : vector<2x8x64xf32> to vector<16x64xf32>
    %896 = arith.truncf %895 : vector<16x64xf32> to vector<16x64xbf16>
    %c0_865 = arith.constant 0 : index
    %c0_866 = arith.constant 0 : index
    %c8_867 = arith.constant 8 : index
    %897 = vector.load %arg11[%c0_865, %c0_866, %c8_867] : memref<2x10x80xf32, #tpu.memory_space<vmem>>, vector<2x8x64xf32>
    %898 = vector.shape_cast %897 : vector<2x8x64xf32> to vector<16x64xf32>
    %899 = arith.truncf %898 : vector<16x64xf32> to vector<16x64xbf16>
    %c0_868 = arith.constant 0 : index
    %c0_869 = arith.constant 0 : index
    %c16_870 = arith.constant 16 : index
    %900 = vector.load %arg11[%c0_868, %c0_869, %c16_870] : memref<2x10x80xf32, #tpu.memory_space<vmem>>, vector<2x8x64xf32>
    %901 = vector.shape_cast %900 : vector<2x8x64xf32> to vector<16x64xf32>
    %902 = arith.truncf %901 : vector<16x64xf32> to vector<16x64xbf16>
    %c0_871 = arith.constant 0 : index
    %c1_872 = arith.constant 1 : index
    %c0_873 = arith.constant 0 : index
    %903 = vector.load %arg11[%c0_871, %c1_872, %c0_873] : memref<2x10x80xf32, #tpu.memory_space<vmem>>, vector<2x8x64xf32>
    %904 = vector.shape_cast %903 : vector<2x8x64xf32> to vector<16x64xf32>
    %905 = arith.truncf %904 : vector<16x64xf32> to vector<16x64xbf16>
    %c0_874 = arith.constant 0 : index
    %c1_875 = arith.constant 1 : index
    %c8_876 = arith.constant 8 : index
    %906 = vector.load %arg11[%c0_874, %c1_875, %c8_876] : memref<2x10x80xf32, #tpu.memory_space<vmem>>, vector<2x8x64xf32>
    %907 = vector.shape_cast %906 : vector<2x8x64xf32> to vector<16x64xf32>
    %908 = arith.truncf %907 : vector<16x64xf32> to vector<16x64xbf16>
    %c0_877 = arith.constant 0 : index
    %c1_878 = arith.constant 1 : index
    %c16_879 = arith.constant 16 : index
    %909 = vector.load %arg11[%c0_877, %c1_878, %c16_879] : memref<2x10x80xf32, #tpu.memory_space<vmem>>, vector<2x8x64xf32>
    %910 = vector.shape_cast %909 : vector<2x8x64xf32> to vector<16x64xf32>
    %911 = arith.truncf %910 : vector<16x64xf32> to vector<16x64xbf16>
    %c0_880 = arith.constant 0 : index
    %c2_881 = arith.constant 2 : index
    %c0_882 = arith.constant 0 : index
    %912 = vector.load %arg11[%c0_880, %c2_881, %c0_882] : memref<2x10x80xf32, #tpu.memory_space<vmem>>, vector<2x8x64xf32>
    %913 = vector.shape_cast %912 : vector<2x8x64xf32> to vector<16x64xf32>
    %914 = arith.truncf %913 : vector<16x64xf32> to vector<16x64xbf16>
    %c0_883 = arith.constant 0 : index
    %c2_884 = arith.constant 2 : index
    %c8_885 = arith.constant 8 : index
    %915 = vector.load %arg11[%c0_883, %c2_884, %c8_885] : memref<2x10x80xf32, #tpu.memory_space<vmem>>, vector<2x8x64xf32>
    %916 = vector.shape_cast %915 : vector<2x8x64xf32> to vector<16x64xf32>
    %917 = arith.truncf %916 : vector<16x64xf32> to vector<16x64xbf16>
    %c0_886 = arith.constant 0 : index
    %c2_887 = arith.constant 2 : index
    %c16_888 = arith.constant 16 : index
    %918 = vector.load %arg11[%c0_886, %c2_887, %c16_888] : memref<2x10x80xf32, #tpu.memory_space<vmem>>, vector<2x8x64xf32>
    %919 = vector.shape_cast %918 : vector<2x8x64xf32> to vector<16x64xf32>
    %920 = arith.truncf %919 : vector<16x64xf32> to vector<16x64xbf16>
    %c0_889 = arith.constant 0 : index
    %c0_890 = arith.constant 0 : index
    %c0_891 = arith.constant 0 : index
    %921 = vector.load %arg13[%c0_889, %c0_890, %c0_891] : memref<2x10x80xf32, #tpu.memory_space<vmem>>, vector<2x8x64xf32>
    %922 = vector.shape_cast %921 : vector<2x8x64xf32> to vector<16x64xf32>
    %923 = arith.truncf %922 : vector<16x64xf32> to vector<16x64xbf16>
    %c0_892 = arith.constant 0 : index
    %c0_893 = arith.constant 0 : index
    %c8_894 = arith.constant 8 : index
    %924 = vector.load %arg13[%c0_892, %c0_893, %c8_894] : memref<2x10x80xf32, #tpu.memory_space<vmem>>, vector<2x8x64xf32>
    %925 = vector.shape_cast %924 : vector<2x8x64xf32> to vector<16x64xf32>
    %926 = arith.truncf %925 : vector<16x64xf32> to vector<16x64xbf16>
    %c0_895 = arith.constant 0 : index
    %c0_896 = arith.constant 0 : index
    %c16_897 = arith.constant 16 : index
    %927 = vector.load %arg13[%c0_895, %c0_896, %c16_897] : memref<2x10x80xf32, #tpu.memory_space<vmem>>, vector<2x8x64xf32>
    %928 = vector.shape_cast %927 : vector<2x8x64xf32> to vector<16x64xf32>
    %929 = arith.truncf %928 : vector<16x64xf32> to vector<16x64xbf16>
    %c0_898 = arith.constant 0 : index
    %c1_899 = arith.constant 1 : index
    %c0_900 = arith.constant 0 : index
    %930 = vector.load %arg13[%c0_898, %c1_899, %c0_900] : memref<2x10x80xf32, #tpu.memory_space<vmem>>, vector<2x8x64xf32>
    %931 = vector.shape_cast %930 : vector<2x8x64xf32> to vector<16x64xf32>
    %932 = arith.truncf %931 : vector<16x64xf32> to vector<16x64xbf16>
    %c0_901 = arith.constant 0 : index
    %c1_902 = arith.constant 1 : index
    %c8_903 = arith.constant 8 : index
    %933 = vector.load %arg13[%c0_901, %c1_902, %c8_903] : memref<2x10x80xf32, #tpu.memory_space<vmem>>, vector<2x8x64xf32>
    %934 = vector.shape_cast %933 : vector<2x8x64xf32> to vector<16x64xf32>
    %935 = arith.truncf %934 : vector<16x64xf32> to vector<16x64xbf16>
    %c0_904 = arith.constant 0 : index
    %c1_905 = arith.constant 1 : index
    %c16_906 = arith.constant 16 : index
    %936 = vector.load %arg13[%c0_904, %c1_905, %c16_906] : memref<2x10x80xf32, #tpu.memory_space<vmem>>, vector<2x8x64xf32>
    %937 = vector.shape_cast %936 : vector<2x8x64xf32> to vector<16x64xf32>
    %938 = arith.truncf %937 : vector<16x64xf32> to vector<16x64xbf16>
    %c0_907 = arith.constant 0 : index
    %c2_908 = arith.constant 2 : index
    %c0_909 = arith.constant 0 : index
    %939 = vector.load %arg13[%c0_907, %c2_908, %c0_909] : memref<2x10x80xf32, #tpu.memory_space<vmem>>, vector<2x8x64xf32>
    %940 = vector.shape_cast %939 : vector<2x8x64xf32> to vector<16x64xf32>
    %941 = arith.truncf %940 : vector<16x64xf32> to vector<16x64xbf16>
    %c0_910 = arith.constant 0 : index
    %c2_911 = arith.constant 2 : index
    %c8_912 = arith.constant 8 : index
    %942 = vector.load %arg13[%c0_910, %c2_911, %c8_912] : memref<2x10x80xf32, #tpu.memory_space<vmem>>, vector<2x8x64xf32>
    %943 = vector.shape_cast %942 : vector<2x8x64xf32> to vector<16x64xf32>
    %944 = arith.truncf %943 : vector<16x64xf32> to vector<16x64xbf16>
    %c0_913 = arith.constant 0 : index
    %c2_914 = arith.constant 2 : index
    %c16_915 = arith.constant 16 : index
    %945 = vector.load %arg13[%c0_913, %c2_914, %c16_915] : memref<2x10x80xf32, #tpu.memory_space<vmem>>, vector<2x8x64xf32>
    %946 = vector.shape_cast %945 : vector<2x8x64xf32> to vector<16x64xf32>
    %947 = arith.truncf %946 : vector<16x64xf32> to vector<16x64xbf16>
    %cst_916 = arith.constant 0.000000e+00 : f32
    %948 = vector.broadcast %cst_916 : f32 to vector<16x64xf32>
    %c36_917 = arith.constant 36 : index
    %c0_918 = arith.constant 0 : index
    %c0_919 = arith.constant 0 : index
    %949 = vector.load %arg4[%c36_917, %c0_918, %c0_919] : memref<54x64x64xbf16, #tpu.memory_space<vmem>>, vector<1x64x64xbf16>
    %950 = vector.shape_cast %949 : vector<1x64x64xbf16> to vector<64x64xbf16>
    %cst_920 = arith.constant dense<0.000000e+00> : vector<16x64xf32>
    %951 = tpu.matmul %896, %950, %cst_920 {dimension_numbers = #tpu.dot_dimension_numbers<[1], [0], [0], [1], [0, 0, 1, 1], [], []>} : vector<16x64xbf16>, vector<64x64xbf16>, vector<16x64xf32> -> vector<16x64xf32>
    %952 = arith.addf %948, %951 : vector<16x64xf32>
    %c45_921 = arith.constant 45 : index
    %c0_922 = arith.constant 0 : index
    %c0_923 = arith.constant 0 : index
    %953 = vector.load %arg4[%c45_921, %c0_922, %c0_923] : memref<54x64x64xbf16, #tpu.memory_space<vmem>>, vector<1x64x64xbf16>
    %954 = vector.shape_cast %953 : vector<1x64x64xbf16> to vector<64x64xbf16>
    %cst_924 = arith.constant dense<0.000000e+00> : vector<16x64xf32>
    %955 = tpu.matmul %923, %954, %cst_924 {dimension_numbers = #tpu.dot_dimension_numbers<[1], [0], [0], [1], [0, 0, 1, 1], [], []>} : vector<16x64xbf16>, vector<64x64xbf16>, vector<16x64xf32> -> vector<16x64xf32>
    %956 = arith.addf %952, %955 : vector<16x64xf32>
    %c37_925 = arith.constant 37 : index
    %c0_926 = arith.constant 0 : index
    %c0_927 = arith.constant 0 : index
    %957 = vector.load %arg4[%c37_925, %c0_926, %c0_927] : memref<54x64x64xbf16, #tpu.memory_space<vmem>>, vector<1x64x64xbf16>
    %958 = vector.shape_cast %957 : vector<1x64x64xbf16> to vector<64x64xbf16>
    %cst_928 = arith.constant dense<0.000000e+00> : vector<16x64xf32>
    %959 = tpu.matmul %899, %958, %cst_928 {dimension_numbers = #tpu.dot_dimension_numbers<[1], [0], [0], [1], [0, 0, 1, 1], [], []>} : vector<16x64xbf16>, vector<64x64xbf16>, vector<16x64xf32> -> vector<16x64xf32>
    %960 = arith.addf %956, %959 : vector<16x64xf32>
    %c46_929 = arith.constant 46 : index
    %c0_930 = arith.constant 0 : index
    %c0_931 = arith.constant 0 : index
    %961 = vector.load %arg4[%c46_929, %c0_930, %c0_931] : memref<54x64x64xbf16, #tpu.memory_space<vmem>>, vector<1x64x64xbf16>
    %962 = vector.shape_cast %961 : vector<1x64x64xbf16> to vector<64x64xbf16>
    %cst_932 = arith.constant dense<0.000000e+00> : vector<16x64xf32>
    %963 = tpu.matmul %926, %962, %cst_932 {dimension_numbers = #tpu.dot_dimension_numbers<[1], [0], [0], [1], [0, 0, 1, 1], [], []>} : vector<16x64xbf16>, vector<64x64xbf16>, vector<16x64xf32> -> vector<16x64xf32>
    %964 = arith.addf %960, %963 : vector<16x64xf32>
    %c38_933 = arith.constant 38 : index
    %c0_934 = arith.constant 0 : index
    %c0_935 = arith.constant 0 : index
    %965 = vector.load %arg4[%c38_933, %c0_934, %c0_935] : memref<54x64x64xbf16, #tpu.memory_space<vmem>>, vector<1x64x64xbf16>
    %966 = vector.shape_cast %965 : vector<1x64x64xbf16> to vector<64x64xbf16>
    %cst_936 = arith.constant dense<0.000000e+00> : vector<16x64xf32>
    %967 = tpu.matmul %902, %966, %cst_936 {dimension_numbers = #tpu.dot_dimension_numbers<[1], [0], [0], [1], [0, 0, 1, 1], [], []>} : vector<16x64xbf16>, vector<64x64xbf16>, vector<16x64xf32> -> vector<16x64xf32>
    %968 = arith.addf %964, %967 : vector<16x64xf32>
    %c47_937 = arith.constant 47 : index
    %c0_938 = arith.constant 0 : index
    %c0_939 = arith.constant 0 : index
    %969 = vector.load %arg4[%c47_937, %c0_938, %c0_939] : memref<54x64x64xbf16, #tpu.memory_space<vmem>>, vector<1x64x64xbf16>
    %970 = vector.shape_cast %969 : vector<1x64x64xbf16> to vector<64x64xbf16>
    %cst_940 = arith.constant dense<0.000000e+00> : vector<16x64xf32>
    %971 = tpu.matmul %929, %970, %cst_940 {dimension_numbers = #tpu.dot_dimension_numbers<[1], [0], [0], [1], [0, 0, 1, 1], [], []>} : vector<16x64xbf16>, vector<64x64xbf16>, vector<16x64xf32> -> vector<16x64xf32>
    %972 = arith.addf %968, %971 : vector<16x64xf32>
    %c39_941 = arith.constant 39 : index
    %c0_942 = arith.constant 0 : index
    %c0_943 = arith.constant 0 : index
    %973 = vector.load %arg4[%c39_941, %c0_942, %c0_943] : memref<54x64x64xbf16, #tpu.memory_space<vmem>>, vector<1x64x64xbf16>
    %974 = vector.shape_cast %973 : vector<1x64x64xbf16> to vector<64x64xbf16>
    %cst_944 = arith.constant dense<0.000000e+00> : vector<16x64xf32>
    %975 = tpu.matmul %905, %974, %cst_944 {dimension_numbers = #tpu.dot_dimension_numbers<[1], [0], [0], [1], [0, 0, 1, 1], [], []>} : vector<16x64xbf16>, vector<64x64xbf16>, vector<16x64xf32> -> vector<16x64xf32>
    %976 = arith.addf %972, %975 : vector<16x64xf32>
    %c48_945 = arith.constant 48 : index
    %c0_946 = arith.constant 0 : index
    %c0_947 = arith.constant 0 : index
    %977 = vector.load %arg4[%c48_945, %c0_946, %c0_947] : memref<54x64x64xbf16, #tpu.memory_space<vmem>>, vector<1x64x64xbf16>
    %978 = vector.shape_cast %977 : vector<1x64x64xbf16> to vector<64x64xbf16>
    %cst_948 = arith.constant dense<0.000000e+00> : vector<16x64xf32>
    %979 = tpu.matmul %932, %978, %cst_948 {dimension_numbers = #tpu.dot_dimension_numbers<[1], [0], [0], [1], [0, 0, 1, 1], [], []>} : vector<16x64xbf16>, vector<64x64xbf16>, vector<16x64xf32> -> vector<16x64xf32>
    %980 = arith.addf %976, %979 : vector<16x64xf32>
    %c40_949 = arith.constant 40 : index
    %c0_950 = arith.constant 0 : index
    %c0_951 = arith.constant 0 : index
    %981 = vector.load %arg4[%c40_949, %c0_950, %c0_951] : memref<54x64x64xbf16, #tpu.memory_space<vmem>>, vector<1x64x64xbf16>
    %982 = vector.shape_cast %981 : vector<1x64x64xbf16> to vector<64x64xbf16>
    %cst_952 = arith.constant dense<0.000000e+00> : vector<16x64xf32>
    %983 = tpu.matmul %908, %982, %cst_952 {dimension_numbers = #tpu.dot_dimension_numbers<[1], [0], [0], [1], [0, 0, 1, 1], [], []>} : vector<16x64xbf16>, vector<64x64xbf16>, vector<16x64xf32> -> vector<16x64xf32>
    %984 = arith.addf %980, %983 : vector<16x64xf32>
    %c49_953 = arith.constant 49 : index
    %c0_954 = arith.constant 0 : index
    %c0_955 = arith.constant 0 : index
    %985 = vector.load %arg4[%c49_953, %c0_954, %c0_955] : memref<54x64x64xbf16, #tpu.memory_space<vmem>>, vector<1x64x64xbf16>
    %986 = vector.shape_cast %985 : vector<1x64x64xbf16> to vector<64x64xbf16>
    %cst_956 = arith.constant dense<0.000000e+00> : vector<16x64xf32>
    %987 = tpu.matmul %935, %986, %cst_956 {dimension_numbers = #tpu.dot_dimension_numbers<[1], [0], [0], [1], [0, 0, 1, 1], [], []>} : vector<16x64xbf16>, vector<64x64xbf16>, vector<16x64xf32> -> vector<16x64xf32>
    %988 = arith.addf %984, %987 : vector<16x64xf32>
    %c41_957 = arith.constant 41 : index
    %c0_958 = arith.constant 0 : index
    %c0_959 = arith.constant 0 : index
    %989 = vector.load %arg4[%c41_957, %c0_958, %c0_959] : memref<54x64x64xbf16, #tpu.memory_space<vmem>>, vector<1x64x64xbf16>
    %990 = vector.shape_cast %989 : vector<1x64x64xbf16> to vector<64x64xbf16>
    %cst_960 = arith.constant dense<0.000000e+00> : vector<16x64xf32>
    %991 = tpu.matmul %911, %990, %cst_960 {dimension_numbers = #tpu.dot_dimension_numbers<[1], [0], [0], [1], [0, 0, 1, 1], [], []>} : vector<16x64xbf16>, vector<64x64xbf16>, vector<16x64xf32> -> vector<16x64xf32>
    %992 = arith.addf %988, %991 : vector<16x64xf32>
    %c50_961 = arith.constant 50 : index
    %c0_962 = arith.constant 0 : index
    %c0_963 = arith.constant 0 : index
    %993 = vector.load %arg4[%c50_961, %c0_962, %c0_963] : memref<54x64x64xbf16, #tpu.memory_space<vmem>>, vector<1x64x64xbf16>
    %994 = vector.shape_cast %993 : vector<1x64x64xbf16> to vector<64x64xbf16>
    %cst_964 = arith.constant dense<0.000000e+00> : vector<16x64xf32>
    %995 = tpu.matmul %938, %994, %cst_964 {dimension_numbers = #tpu.dot_dimension_numbers<[1], [0], [0], [1], [0, 0, 1, 1], [], []>} : vector<16x64xbf16>, vector<64x64xbf16>, vector<16x64xf32> -> vector<16x64xf32>
    %996 = arith.addf %992, %995 : vector<16x64xf32>
    %c42_965 = arith.constant 42 : index
    %c0_966 = arith.constant 0 : index
    %c0_967 = arith.constant 0 : index
    %997 = vector.load %arg4[%c42_965, %c0_966, %c0_967] : memref<54x64x64xbf16, #tpu.memory_space<vmem>>, vector<1x64x64xbf16>
    %998 = vector.shape_cast %997 : vector<1x64x64xbf16> to vector<64x64xbf16>
    %cst_968 = arith.constant dense<0.000000e+00> : vector<16x64xf32>
    %999 = tpu.matmul %914, %998, %cst_968 {dimension_numbers = #tpu.dot_dimension_numbers<[1], [0], [0], [1], [0, 0, 1, 1], [], []>} : vector<16x64xbf16>, vector<64x64xbf16>, vector<16x64xf32> -> vector<16x64xf32>
    %1000 = arith.addf %996, %999 : vector<16x64xf32>
    %c51_969 = arith.constant 51 : index
    %c0_970 = arith.constant 0 : index
    %c0_971 = arith.constant 0 : index
    %1001 = vector.load %arg4[%c51_969, %c0_970, %c0_971] : memref<54x64x64xbf16, #tpu.memory_space<vmem>>, vector<1x64x64xbf16>
    %1002 = vector.shape_cast %1001 : vector<1x64x64xbf16> to vector<64x64xbf16>
    %cst_972 = arith.constant dense<0.000000e+00> : vector<16x64xf32>
    %1003 = tpu.matmul %941, %1002, %cst_972 {dimension_numbers = #tpu.dot_dimension_numbers<[1], [0], [0], [1], [0, 0, 1, 1], [], []>} : vector<16x64xbf16>, vector<64x64xbf16>, vector<16x64xf32> -> vector<16x64xf32>
    %1004 = arith.addf %1000, %1003 : vector<16x64xf32>
    %c43_973 = arith.constant 43 : index
    %c0_974 = arith.constant 0 : index
    %c0_975 = arith.constant 0 : index
    %1005 = vector.load %arg4[%c43_973, %c0_974, %c0_975] : memref<54x64x64xbf16, #tpu.memory_space<vmem>>, vector<1x64x64xbf16>
    %1006 = vector.shape_cast %1005 : vector<1x64x64xbf16> to vector<64x64xbf16>
    %cst_976 = arith.constant dense<0.000000e+00> : vector<16x64xf32>
    %1007 = tpu.matmul %917, %1006, %cst_976 {dimension_numbers = #tpu.dot_dimension_numbers<[1], [0], [0], [1], [0, 0, 1, 1], [], []>} : vector<16x64xbf16>, vector<64x64xbf16>, vector<16x64xf32> -> vector<16x64xf32>
    %1008 = arith.addf %1004, %1007 : vector<16x64xf32>
    %c52_977 = arith.constant 52 : index
    %c0_978 = arith.constant 0 : index
    %c0_979 = arith.constant 0 : index
    %1009 = vector.load %arg4[%c52_977, %c0_978, %c0_979] : memref<54x64x64xbf16, #tpu.memory_space<vmem>>, vector<1x64x64xbf16>
    %1010 = vector.shape_cast %1009 : vector<1x64x64xbf16> to vector<64x64xbf16>
    %cst_980 = arith.constant dense<0.000000e+00> : vector<16x64xf32>
    %1011 = tpu.matmul %944, %1010, %cst_980 {dimension_numbers = #tpu.dot_dimension_numbers<[1], [0], [0], [1], [0, 0, 1, 1], [], []>} : vector<16x64xbf16>, vector<64x64xbf16>, vector<16x64xf32> -> vector<16x64xf32>
    %1012 = arith.addf %1008, %1011 : vector<16x64xf32>
    %c44_981 = arith.constant 44 : index
    %c0_982 = arith.constant 0 : index
    %c0_983 = arith.constant 0 : index
    %1013 = vector.load %arg4[%c44_981, %c0_982, %c0_983] : memref<54x64x64xbf16, #tpu.memory_space<vmem>>, vector<1x64x64xbf16>
    %1014 = vector.shape_cast %1013 : vector<1x64x64xbf16> to vector<64x64xbf16>
    %cst_984 = arith.constant dense<0.000000e+00> : vector<16x64xf32>
    %1015 = tpu.matmul %920, %1014, %cst_984 {dimension_numbers = #tpu.dot_dimension_numbers<[1], [0], [0], [1], [0, 0, 1, 1], [], []>} : vector<16x64xbf16>, vector<64x64xbf16>, vector<16x64xf32> -> vector<16x64xf32>
    %1016 = arith.addf %1012, %1015 : vector<16x64xf32>
    %c53_985 = arith.constant 53 : index
    %c0_986 = arith.constant 0 : index
    %c0_987 = arith.constant 0 : index
    %1017 = vector.load %arg4[%c53_985, %c0_986, %c0_987] : memref<54x64x64xbf16, #tpu.memory_space<vmem>>, vector<1x64x64xbf16>
    %1018 = vector.shape_cast %1017 : vector<1x64x64xbf16> to vector<64x64xbf16>
    %cst_988 = arith.constant dense<0.000000e+00> : vector<16x64xf32>
    %1019 = tpu.matmul %947, %1018, %cst_988 {dimension_numbers = #tpu.dot_dimension_numbers<[1], [0], [0], [1], [0, 0, 1, 1], [], []>} : vector<16x64xbf16>, vector<64x64xbf16>, vector<16x64xf32> -> vector<16x64xf32>
    %1020 = arith.addf %1016, %1019 : vector<16x64xf32>
    %c2_989 = arith.constant 2 : index
    %c0_990 = arith.constant 0 : index
    %c0_991 = arith.constant 0 : index
    %1021 = vector.load %arg5[%c2_989, %c0_990, %c0_991] : memref<3x1x64xf32, #tpu.memory_space<vmem>>, vector<1x1x64xf32>
    %1022 = vector.shape_cast %1021 : vector<1x1x64xf32> to vector<1x64xf32>
    %1023 = vector.broadcast %1022 : vector<1x64xf32> to vector<16x64xf32>
    %1024 = arith.addf %1020, %1023 : vector<16x64xf32>
    %cst_992 = arith.constant 0.000000e+00 : f32
    %1025 = vector.broadcast %cst_992 : f32 to vector<16x64xf32>
    %1026 = arith.maximumf %1024, %1025 : vector<16x64xf32>
    %1027 = vector.shape_cast %1026 : vector<16x64xf32> to vector<2x8x64xf32>
    %c0_993 = arith.constant 0 : index
    %c1_994 = arith.constant 1 : index
    %c8_995 = arith.constant 8 : index
    %1028 = vector.load %arg12[%c0_993, %c1_994, %c8_995] : memref<2x10x80xf32, #tpu.memory_space<vmem>>, vector<2x8x64xf32>
    tpu.vector_store %arg12[%c0_993, %c1_994, %c8_995], %1027 {strides = array<i32>} : memref<2x10x80xf32, #tpu.memory_space<vmem>>, vector<2x8x64xf32>,
    %c0_996 = arith.constant 0 : index
    %c0_997 = arith.constant 0 : index
    %c0_998 = arith.constant 0 : index
    %1029 = vector.load %arg12[%c0_996, %c0_997, %c0_998] : memref<2x10x80xf32, #tpu.memory_space<vmem>>, vector<2x8x64xf32>
    %1030 = vector.shape_cast %1029 : vector<2x8x64xf32> to vector<16x64xf32>
    %1031 = arith.truncf %1030 : vector<16x64xf32> to vector<16x64xbf16>
    %c0_999 = arith.constant 0 : index
    %c0_1000 = arith.constant 0 : index
    %c8_1001 = arith.constant 8 : index
    %1032 = vector.load %arg12[%c0_999, %c0_1000, %c8_1001] : memref<2x10x80xf32, #tpu.memory_space<vmem>>, vector<2x8x64xf32>
    %1033 = vector.shape_cast %1032 : vector<2x8x64xf32> to vector<16x64xf32>
    %1034 = arith.truncf %1033 : vector<16x64xf32> to vector<16x64xbf16>
    %c0_1002 = arith.constant 0 : index
    %c0_1003 = arith.constant 0 : index
    %c16_1004 = arith.constant 16 : index
    %1035 = vector.load %arg12[%c0_1002, %c0_1003, %c16_1004] : memref<2x10x80xf32, #tpu.memory_space<vmem>>, vector<2x8x64xf32>
    %1036 = vector.shape_cast %1035 : vector<2x8x64xf32> to vector<16x64xf32>
    %1037 = arith.truncf %1036 : vector<16x64xf32> to vector<16x64xbf16>
    %c0_1005 = arith.constant 0 : index
    %c1_1006 = arith.constant 1 : index
    %c0_1007 = arith.constant 0 : index
    %1038 = vector.load %arg12[%c0_1005, %c1_1006, %c0_1007] : memref<2x10x80xf32, #tpu.memory_space<vmem>>, vector<2x8x64xf32>
    %1039 = vector.shape_cast %1038 : vector<2x8x64xf32> to vector<16x64xf32>
    %1040 = arith.truncf %1039 : vector<16x64xf32> to vector<16x64xbf16>
    %c0_1008 = arith.constant 0 : index
    %c1_1009 = arith.constant 1 : index
    %c8_1010 = arith.constant 8 : index
    %1041 = vector.load %arg12[%c0_1008, %c1_1009, %c8_1010] : memref<2x10x80xf32, #tpu.memory_space<vmem>>, vector<2x8x64xf32>
    %1042 = vector.shape_cast %1041 : vector<2x8x64xf32> to vector<16x64xf32>
    %1043 = arith.truncf %1042 : vector<16x64xf32> to vector<16x64xbf16>
    %c0_1011 = arith.constant 0 : index
    %c1_1012 = arith.constant 1 : index
    %c16_1013 = arith.constant 16 : index
    %1044 = vector.load %arg12[%c0_1011, %c1_1012, %c16_1013] : memref<2x10x80xf32, #tpu.memory_space<vmem>>, vector<2x8x64xf32>
    %1045 = vector.shape_cast %1044 : vector<2x8x64xf32> to vector<16x64xf32>
    %1046 = arith.truncf %1045 : vector<16x64xf32> to vector<16x64xbf16>
    %c0_1014 = arith.constant 0 : index
    %c2_1015 = arith.constant 2 : index
    %c0_1016 = arith.constant 0 : index
    %1047 = vector.load %arg12[%c0_1014, %c2_1015, %c0_1016] : memref<2x10x80xf32, #tpu.memory_space<vmem>>, vector<2x8x64xf32>
    %1048 = vector.shape_cast %1047 : vector<2x8x64xf32> to vector<16x64xf32>
    %1049 = arith.truncf %1048 : vector<16x64xf32> to vector<16x64xbf16>
    %c0_1017 = arith.constant 0 : index
    %c2_1018 = arith.constant 2 : index
    %c8_1019 = arith.constant 8 : index
    %1050 = vector.load %arg12[%c0_1017, %c2_1018, %c8_1019] : memref<2x10x80xf32, #tpu.memory_space<vmem>>, vector<2x8x64xf32>
    %1051 = vector.shape_cast %1050 : vector<2x8x64xf32> to vector<16x64xf32>
    %1052 = arith.truncf %1051 : vector<16x64xf32> to vector<16x64xbf16>
    %c0_1020 = arith.constant 0 : index
    %c2_1021 = arith.constant 2 : index
    %c16_1022 = arith.constant 16 : index
    %1053 = vector.load %arg12[%c0_1020, %c2_1021, %c16_1022] : memref<2x10x80xf32, #tpu.memory_space<vmem>>, vector<2x8x64xf32>
    %1054 = vector.shape_cast %1053 : vector<2x8x64xf32> to vector<16x64xf32>
    %1055 = arith.truncf %1054 : vector<16x64xf32> to vector<16x64xbf16>
    %cst_1023 = arith.constant 0.000000e+00 : f32
    %1056 = vector.broadcast %cst_1023 : f32 to vector<16x64xf32>
    %c72_1024 = arith.constant 72 : index
    %c0_1025 = arith.constant 0 : index
    %c0_1026 = arith.constant 0 : index
    %1057 = vector.load %arg6[%c72_1024, %c0_1025, %c0_1026] : memref<108x64x64xbf16, #tpu.memory_space<vmem>>, vector<1x64x64xbf16>
    %1058 = vector.shape_cast %1057 : vector<1x64x64xbf16> to vector<64x64xbf16>
    %cst_1027 = arith.constant dense<0.000000e+00> : vector<16x64xf32>
    %1059 = tpu.matmul %1031, %1058, %cst_1027 {dimension_numbers = #tpu.dot_dimension_numbers<[1], [0], [0], [1], [0, 0, 1, 1], [], []>} : vector<16x64xbf16>, vector<64x64xbf16>, vector<16x64xf32> -> vector<16x64xf32>
    %1060 = arith.addf %1056, %1059 : vector<16x64xf32>
    %c73 = arith.constant 73 : index
    %c0_1028 = arith.constant 0 : index
    %c0_1029 = arith.constant 0 : index
    %1061 = vector.load %arg6[%c73, %c0_1028, %c0_1029] : memref<108x64x64xbf16, #tpu.memory_space<vmem>>, vector<1x64x64xbf16>
    %1062 = vector.shape_cast %1061 : vector<1x64x64xbf16> to vector<64x64xbf16>
    %cst_1030 = arith.constant dense<0.000000e+00> : vector<16x64xf32>
    %1063 = tpu.matmul %1034, %1062, %cst_1030 {dimension_numbers = #tpu.dot_dimension_numbers<[1], [0], [0], [1], [0, 0, 1, 1], [], []>} : vector<16x64xbf16>, vector<64x64xbf16>, vector<16x64xf32> -> vector<16x64xf32>
    %1064 = arith.addf %1060, %1063 : vector<16x64xf32>
    %c74 = arith.constant 74 : index
    %c0_1031 = arith.constant 0 : index
    %c0_1032 = arith.constant 0 : index
    %1065 = vector.load %arg6[%c74, %c0_1031, %c0_1032] : memref<108x64x64xbf16, #tpu.memory_space<vmem>>, vector<1x64x64xbf16>
    %1066 = vector.shape_cast %1065 : vector<1x64x64xbf16> to vector<64x64xbf16>
    %cst_1033 = arith.constant dense<0.000000e+00> : vector<16x64xf32>
    %1067 = tpu.matmul %1037, %1066, %cst_1033 {dimension_numbers = #tpu.dot_dimension_numbers<[1], [0], [0], [1], [0, 0, 1, 1], [], []>} : vector<16x64xbf16>, vector<64x64xbf16>, vector<16x64xf32> -> vector<16x64xf32>
    %1068 = arith.addf %1064, %1067 : vector<16x64xf32>
    %c75 = arith.constant 75 : index
    %c0_1034 = arith.constant 0 : index
    %c0_1035 = arith.constant 0 : index
    %1069 = vector.load %arg6[%c75, %c0_1034, %c0_1035] : memref<108x64x64xbf16, #tpu.memory_space<vmem>>, vector<1x64x64xbf16>
    %1070 = vector.shape_cast %1069 : vector<1x64x64xbf16> to vector<64x64xbf16>
    %cst_1036 = arith.constant dense<0.000000e+00> : vector<16x64xf32>
    %1071 = tpu.matmul %1040, %1070, %cst_1036 {dimension_numbers = #tpu.dot_dimension_numbers<[1], [0], [0], [1], [0, 0, 1, 1], [], []>} : vector<16x64xbf16>, vector<64x64xbf16>, vector<16x64xf32> -> vector<16x64xf32>
    %1072 = arith.addf %1068, %1071 : vector<16x64xf32>
    %c76 = arith.constant 76 : index
    %c0_1037 = arith.constant 0 : index
    %c0_1038 = arith.constant 0 : index
    %1073 = vector.load %arg6[%c76, %c0_1037, %c0_1038] : memref<108x64x64xbf16, #tpu.memory_space<vmem>>, vector<1x64x64xbf16>
    %1074 = vector.shape_cast %1073 : vector<1x64x64xbf16> to vector<64x64xbf16>
    %cst_1039 = arith.constant dense<0.000000e+00> : vector<16x64xf32>
    %1075 = tpu.matmul %1043, %1074, %cst_1039 {dimension_numbers = #tpu.dot_dimension_numbers<[1], [0], [0], [1], [0, 0, 1, 1], [], []>} : vector<16x64xbf16>, vector<64x64xbf16>, vector<16x64xf32> -> vector<16x64xf32>
    %1076 = arith.addf %1072, %1075 : vector<16x64xf32>
    %c77 = arith.constant 77 : index
    %c0_1040 = arith.constant 0 : index
    %c0_1041 = arith.constant 0 : index
    %1077 = vector.load %arg6[%c77, %c0_1040, %c0_1041] : memref<108x64x64xbf16, #tpu.memory_space<vmem>>, vector<1x64x64xbf16>
    %1078 = vector.shape_cast %1077 : vector<1x64x64xbf16> to vector<64x64xbf16>
    %cst_1042 = arith.constant dense<0.000000e+00> : vector<16x64xf32>
    %1079 = tpu.matmul %1046, %1078, %cst_1042 {dimension_numbers = #tpu.dot_dimension_numbers<[1], [0], [0], [1], [0, 0, 1, 1], [], []>} : vector<16x64xbf16>, vector<64x64xbf16>, vector<16x64xf32> -> vector<16x64xf32>
    %1080 = arith.addf %1076, %1079 : vector<16x64xf32>
    %c78 = arith.constant 78 : index
    %c0_1043 = arith.constant 0 : index
    %c0_1044 = arith.constant 0 : index
    %1081 = vector.load %arg6[%c78, %c0_1043, %c0_1044] : memref<108x64x64xbf16, #tpu.memory_space<vmem>>, vector<1x64x64xbf16>
    %1082 = vector.shape_cast %1081 : vector<1x64x64xbf16> to vector<64x64xbf16>
    %cst_1045 = arith.constant dense<0.000000e+00> : vector<16x64xf32>
    %1083 = tpu.matmul %1049, %1082, %cst_1045 {dimension_numbers = #tpu.dot_dimension_numbers<[1], [0], [0], [1], [0, 0, 1, 1], [], []>} : vector<16x64xbf16>, vector<64x64xbf16>, vector<16x64xf32> -> vector<16x64xf32>
    %1084 = arith.addf %1080, %1083 : vector<16x64xf32>
    %c79 = arith.constant 79 : index
    %c0_1046 = arith.constant 0 : index
    %c0_1047 = arith.constant 0 : index
    %1085 = vector.load %arg6[%c79, %c0_1046, %c0_1047] : memref<108x64x64xbf16, #tpu.memory_space<vmem>>, vector<1x64x64xbf16>
    %1086 = vector.shape_cast %1085 : vector<1x64x64xbf16> to vector<64x64xbf16>
    %cst_1048 = arith.constant dense<0.000000e+00> : vector<16x64xf32>
    %1087 = tpu.matmul %1052, %1086, %cst_1048 {dimension_numbers = #tpu.dot_dimension_numbers<[1], [0], [0], [1], [0, 0, 1, 1], [], []>} : vector<16x64xbf16>, vector<64x64xbf16>, vector<16x64xf32> -> vector<16x64xf32>
    %1088 = arith.addf %1084, %1087 : vector<16x64xf32>
    %c80 = arith.constant 80 : index
    %c0_1049 = arith.constant 0 : index
    %c0_1050 = arith.constant 0 : index
    %1089 = vector.load %arg6[%c80, %c0_1049, %c0_1050] : memref<108x64x64xbf16, #tpu.memory_space<vmem>>, vector<1x64x64xbf16>
    %1090 = vector.shape_cast %1089 : vector<1x64x64xbf16> to vector<64x64xbf16>
    %cst_1051 = arith.constant dense<0.000000e+00> : vector<16x64xf32>
    %1091 = tpu.matmul %1055, %1090, %cst_1051 {dimension_numbers = #tpu.dot_dimension_numbers<[1], [0], [0], [1], [0, 0, 1, 1], [], []>} : vector<16x64xbf16>, vector<64x64xbf16>, vector<16x64xf32> -> vector<16x64xf32>
    %1092 = arith.addf %1088, %1091 : vector<16x64xf32>
    %c8_1052 = arith.constant 8 : index
    %c0_1053 = arith.constant 0 : index
    %c0_1054 = arith.constant 0 : index
    %1093 = vector.load %arg7[%c8_1052, %c0_1053, %c0_1054] : memref<12x1x64xf32, #tpu.memory_space<vmem>>, vector<1x1x64xf32>
    %1094 = vector.shape_cast %1093 : vector<1x1x64xf32> to vector<1x64xf32>
    %1095 = vector.broadcast %1094 : vector<1x64xf32> to vector<16x64xf32>
    %1096 = arith.addf %1092, %1095 : vector<16x64xf32>
    %cst_1055 = arith.constant 0.000000e+00 : f32
    %1097 = vector.broadcast %cst_1055 : f32 to vector<16x64xf32>
    %1098 = arith.maximumf %1096, %1097 : vector<16x64xf32>
    %1099 = vector.shape_cast %1098 : vector<16x64xf32> to vector<2x8x64xf32>
    %c0_1056 = arith.constant 0 : index
    %c1_1057 = arith.constant 1 : index
    %c8_1058 = arith.constant 8 : index
    %1100 = vector.load %arg14[%c0_1056, %c1_1057, %c8_1058] : memref<2x10x80xf32, #tpu.memory_space<vmem>>, vector<2x8x64xf32>
    tpu.vector_store %arg14[%c0_1056, %c1_1057, %c8_1058], %1099 {strides = array<i32>} : memref<2x10x80xf32, #tpu.memory_space<vmem>>, vector<2x8x64xf32>,
    %c0_1059 = arith.constant 0 : index
    %c0_1060 = arith.constant 0 : index
    %c0_1061 = arith.constant 0 : index
    %1101 = vector.load %arg14[%c0_1059, %c0_1060, %c0_1061] : memref<2x10x80xf32, #tpu.memory_space<vmem>>, vector<2x8x64xf32>
    %1102 = vector.shape_cast %1101 : vector<2x8x64xf32> to vector<16x64xf32>
    %1103 = arith.truncf %1102 : vector<16x64xf32> to vector<16x64xbf16>
    %c0_1062 = arith.constant 0 : index
    %c0_1063 = arith.constant 0 : index
    %c8_1064 = arith.constant 8 : index
    %1104 = vector.load %arg14[%c0_1062, %c0_1063, %c8_1064] : memref<2x10x80xf32, #tpu.memory_space<vmem>>, vector<2x8x64xf32>
    %1105 = vector.shape_cast %1104 : vector<2x8x64xf32> to vector<16x64xf32>
    %1106 = arith.truncf %1105 : vector<16x64xf32> to vector<16x64xbf16>
    %c0_1065 = arith.constant 0 : index
    %c0_1066 = arith.constant 0 : index
    %c16_1067 = arith.constant 16 : index
    %1107 = vector.load %arg14[%c0_1065, %c0_1066, %c16_1067] : memref<2x10x80xf32, #tpu.memory_space<vmem>>, vector<2x8x64xf32>
    %1108 = vector.shape_cast %1107 : vector<2x8x64xf32> to vector<16x64xf32>
    %1109 = arith.truncf %1108 : vector<16x64xf32> to vector<16x64xbf16>
    %c0_1068 = arith.constant 0 : index
    %c1_1069 = arith.constant 1 : index
    %c0_1070 = arith.constant 0 : index
    %1110 = vector.load %arg14[%c0_1068, %c1_1069, %c0_1070] : memref<2x10x80xf32, #tpu.memory_space<vmem>>, vector<2x8x64xf32>
    %1111 = vector.shape_cast %1110 : vector<2x8x64xf32> to vector<16x64xf32>
    %1112 = arith.truncf %1111 : vector<16x64xf32> to vector<16x64xbf16>
    %c0_1071 = arith.constant 0 : index
    %c1_1072 = arith.constant 1 : index
    %c8_1073 = arith.constant 8 : index
    %1113 = vector.load %arg14[%c0_1071, %c1_1072, %c8_1073] : memref<2x10x80xf32, #tpu.memory_space<vmem>>, vector<2x8x64xf32>
    %1114 = vector.shape_cast %1113 : vector<2x8x64xf32> to vector<16x64xf32>
    %1115 = arith.truncf %1114 : vector<16x64xf32> to vector<16x64xbf16>
    %c0_1074 = arith.constant 0 : index
    %c1_1075 = arith.constant 1 : index
    %c16_1076 = arith.constant 16 : index
    %1116 = vector.load %arg14[%c0_1074, %c1_1075, %c16_1076] : memref<2x10x80xf32, #tpu.memory_space<vmem>>, vector<2x8x64xf32>
    %1117 = vector.shape_cast %1116 : vector<2x8x64xf32> to vector<16x64xf32>
    %1118 = arith.truncf %1117 : vector<16x64xf32> to vector<16x64xbf16>
    %c0_1077 = arith.constant 0 : index
    %c2_1078 = arith.constant 2 : index
    %c0_1079 = arith.constant 0 : index
    %1119 = vector.load %arg14[%c0_1077, %c2_1078, %c0_1079] : memref<2x10x80xf32, #tpu.memory_space<vmem>>, vector<2x8x64xf32>
    %1120 = vector.shape_cast %1119 : vector<2x8x64xf32> to vector<16x64xf32>
    %1121 = arith.truncf %1120 : vector<16x64xf32> to vector<16x64xbf16>
    %c0_1080 = arith.constant 0 : index
    %c2_1081 = arith.constant 2 : index
    %c8_1082 = arith.constant 8 : index
    %1122 = vector.load %arg14[%c0_1080, %c2_1081, %c8_1082] : memref<2x10x80xf32, #tpu.memory_space<vmem>>, vector<2x8x64xf32>
    %1123 = vector.shape_cast %1122 : vector<2x8x64xf32> to vector<16x64xf32>
    %1124 = arith.truncf %1123 : vector<16x64xf32> to vector<16x64xbf16>
    %c0_1083 = arith.constant 0 : index
    %c2_1084 = arith.constant 2 : index
    %c16_1085 = arith.constant 16 : index
    %1125 = vector.load %arg14[%c0_1083, %c2_1084, %c16_1085] : memref<2x10x80xf32, #tpu.memory_space<vmem>>, vector<2x8x64xf32>
    %1126 = vector.shape_cast %1125 : vector<2x8x64xf32> to vector<16x64xf32>
    %1127 = arith.truncf %1126 : vector<16x64xf32> to vector<16x64xbf16>
    %cst_1086 = arith.constant 0.000000e+00 : f32
    %1128 = vector.broadcast %cst_1086 : f32 to vector<16x64xf32>
    %c81 = arith.constant 81 : index
    %c0_1087 = arith.constant 0 : index
    %c0_1088 = arith.constant 0 : index
    %1129 = vector.load %arg6[%c81, %c0_1087, %c0_1088] : memref<108x64x64xbf16, #tpu.memory_space<vmem>>, vector<1x64x64xbf16>
    %1130 = vector.shape_cast %1129 : vector<1x64x64xbf16> to vector<64x64xbf16>
    %cst_1089 = arith.constant dense<0.000000e+00> : vector<16x64xf32>
    %1131 = tpu.matmul %1103, %1130, %cst_1089 {dimension_numbers = #tpu.dot_dimension_numbers<[1], [0], [0], [1], [0, 0, 1, 1], [], []>} : vector<16x64xbf16>, vector<64x64xbf16>, vector<16x64xf32> -> vector<16x64xf32>
    %1132 = arith.addf %1128, %1131 : vector<16x64xf32>
    %c82 = arith.constant 82 : index
    %c0_1090 = arith.constant 0 : index
    %c0_1091 = arith.constant 0 : index
    %1133 = vector.load %arg6[%c82, %c0_1090, %c0_1091] : memref<108x64x64xbf16, #tpu.memory_space<vmem>>, vector<1x64x64xbf16>
    %1134 = vector.shape_cast %1133 : vector<1x64x64xbf16> to vector<64x64xbf16>
    %cst_1092 = arith.constant dense<0.000000e+00> : vector<16x64xf32>
    %1135 = tpu.matmul %1106, %1134, %cst_1092 {dimension_numbers = #tpu.dot_dimension_numbers<[1], [0], [0], [1], [0, 0, 1, 1], [], []>} : vector<16x64xbf16>, vector<64x64xbf16>, vector<16x64xf32> -> vector<16x64xf32>
    %1136 = arith.addf %1132, %1135 : vector<16x64xf32>
    %c83 = arith.constant 83 : index
    %c0_1093 = arith.constant 0 : index
    %c0_1094 = arith.constant 0 : index
    %1137 = vector.load %arg6[%c83, %c0_1093, %c0_1094] : memref<108x64x64xbf16, #tpu.memory_space<vmem>>, vector<1x64x64xbf16>
    %1138 = vector.shape_cast %1137 : vector<1x64x64xbf16> to vector<64x64xbf16>
    %cst_1095 = arith.constant dense<0.000000e+00> : vector<16x64xf32>
    %1139 = tpu.matmul %1109, %1138, %cst_1095 {dimension_numbers = #tpu.dot_dimension_numbers<[1], [0], [0], [1], [0, 0, 1, 1], [], []>} : vector<16x64xbf16>, vector<64x64xbf16>, vector<16x64xf32> -> vector<16x64xf32>
    %1140 = arith.addf %1136, %1139 : vector<16x64xf32>
    %c84 = arith.constant 84 : index
    %c0_1096 = arith.constant 0 : index
    %c0_1097 = arith.constant 0 : index
    %1141 = vector.load %arg6[%c84, %c0_1096, %c0_1097] : memref<108x64x64xbf16, #tpu.memory_space<vmem>>, vector<1x64x64xbf16>
    %1142 = vector.shape_cast %1141 : vector<1x64x64xbf16> to vector<64x64xbf16>
    %cst_1098 = arith.constant dense<0.000000e+00> : vector<16x64xf32>
    %1143 = tpu.matmul %1112, %1142, %cst_1098 {dimension_numbers = #tpu.dot_dimension_numbers<[1], [0], [0], [1], [0, 0, 1, 1], [], []>} : vector<16x64xbf16>, vector<64x64xbf16>, vector<16x64xf32> -> vector<16x64xf32>
    %1144 = arith.addf %1140, %1143 : vector<16x64xf32>
    %c85 = arith.constant 85 : index
    %c0_1099 = arith.constant 0 : index
    %c0_1100 = arith.constant 0 : index
    %1145 = vector.load %arg6[%c85, %c0_1099, %c0_1100] : memref<108x64x64xbf16, #tpu.memory_space<vmem>>, vector<1x64x64xbf16>
    %1146 = vector.shape_cast %1145 : vector<1x64x64xbf16> to vector<64x64xbf16>
    %cst_1101 = arith.constant dense<0.000000e+00> : vector<16x64xf32>
    %1147 = tpu.matmul %1115, %1146, %cst_1101 {dimension_numbers = #tpu.dot_dimension_numbers<[1], [0], [0], [1], [0, 0, 1, 1], [], []>} : vector<16x64xbf16>, vector<64x64xbf16>, vector<16x64xf32> -> vector<16x64xf32>
    %1148 = arith.addf %1144, %1147 : vector<16x64xf32>
    %c86 = arith.constant 86 : index
    %c0_1102 = arith.constant 0 : index
    %c0_1103 = arith.constant 0 : index
    %1149 = vector.load %arg6[%c86, %c0_1102, %c0_1103] : memref<108x64x64xbf16, #tpu.memory_space<vmem>>, vector<1x64x64xbf16>
    %1150 = vector.shape_cast %1149 : vector<1x64x64xbf16> to vector<64x64xbf16>
    %cst_1104 = arith.constant dense<0.000000e+00> : vector<16x64xf32>
    %1151 = tpu.matmul %1118, %1150, %cst_1104 {dimension_numbers = #tpu.dot_dimension_numbers<[1], [0], [0], [1], [0, 0, 1, 1], [], []>} : vector<16x64xbf16>, vector<64x64xbf16>, vector<16x64xf32> -> vector<16x64xf32>
    %1152 = arith.addf %1148, %1151 : vector<16x64xf32>
    %c87 = arith.constant 87 : index
    %c0_1105 = arith.constant 0 : index
    %c0_1106 = arith.constant 0 : index
    %1153 = vector.load %arg6[%c87, %c0_1105, %c0_1106] : memref<108x64x64xbf16, #tpu.memory_space<vmem>>, vector<1x64x64xbf16>
    %1154 = vector.shape_cast %1153 : vector<1x64x64xbf16> to vector<64x64xbf16>
    %cst_1107 = arith.constant dense<0.000000e+00> : vector<16x64xf32>
    %1155 = tpu.matmul %1121, %1154, %cst_1107 {dimension_numbers = #tpu.dot_dimension_numbers<[1], [0], [0], [1], [0, 0, 1, 1], [], []>} : vector<16x64xbf16>, vector<64x64xbf16>, vector<16x64xf32> -> vector<16x64xf32>
    %1156 = arith.addf %1152, %1155 : vector<16x64xf32>
    %c88 = arith.constant 88 : index
    %c0_1108 = arith.constant 0 : index
    %c0_1109 = arith.constant 0 : index
    %1157 = vector.load %arg6[%c88, %c0_1108, %c0_1109] : memref<108x64x64xbf16, #tpu.memory_space<vmem>>, vector<1x64x64xbf16>
    %1158 = vector.shape_cast %1157 : vector<1x64x64xbf16> to vector<64x64xbf16>
    %cst_1110 = arith.constant dense<0.000000e+00> : vector<16x64xf32>
    %1159 = tpu.matmul %1124, %1158, %cst_1110 {dimension_numbers = #tpu.dot_dimension_numbers<[1], [0], [0], [1], [0, 0, 1, 1], [], []>} : vector<16x64xbf16>, vector<64x64xbf16>, vector<16x64xf32> -> vector<16x64xf32>
    %1160 = arith.addf %1156, %1159 : vector<16x64xf32>
    %c89 = arith.constant 89 : index
    %c0_1111 = arith.constant 0 : index
    %c0_1112 = arith.constant 0 : index
    %1161 = vector.load %arg6[%c89, %c0_1111, %c0_1112] : memref<108x64x64xbf16, #tpu.memory_space<vmem>>, vector<1x64x64xbf16>
    %1162 = vector.shape_cast %1161 : vector<1x64x64xbf16> to vector<64x64xbf16>
    %cst_1113 = arith.constant dense<0.000000e+00> : vector<16x64xf32>
    %1163 = tpu.matmul %1127, %1162, %cst_1113 {dimension_numbers = #tpu.dot_dimension_numbers<[1], [0], [0], [1], [0, 0, 1, 1], [], []>} : vector<16x64xbf16>, vector<64x64xbf16>, vector<16x64xf32> -> vector<16x64xf32>
    %1164 = arith.addf %1160, %1163 : vector<16x64xf32>
    %c9_1114 = arith.constant 9 : index
    %c0_1115 = arith.constant 0 : index
    %c0_1116 = arith.constant 0 : index
    %1165 = vector.load %arg7[%c9_1114, %c0_1115, %c0_1116] : memref<12x1x64xf32, #tpu.memory_space<vmem>>, vector<1x1x64xf32>
    %1166 = vector.shape_cast %1165 : vector<1x1x64xf32> to vector<1x64xf32>
    %1167 = vector.broadcast %1166 : vector<1x64xf32> to vector<16x64xf32>
    %1168 = arith.addf %1164, %1167 : vector<16x64xf32>
    %c0_1117 = arith.constant 0 : index
    %c1_1118 = arith.constant 1 : index
    %c8_1119 = arith.constant 8 : index
    %1169 = vector.load %arg12[%c0_1117, %c1_1118, %c8_1119] : memref<2x10x80xf32, #tpu.memory_space<vmem>>, vector<2x8x64xf32>
    %1170 = vector.shape_cast %1169 : vector<2x8x64xf32> to vector<16x64xf32>
    %1171 = arith.addf %1168, %1170 : vector<16x64xf32>
    %1172 = vector.shape_cast %1171 : vector<16x64xf32> to vector<2x8x64xf32>
    %c0_1120 = arith.constant 0 : index
    %c1_1121 = arith.constant 1 : index
    %c8_1122 = arith.constant 8 : index
    %1173 = vector.load %arg12[%c0_1120, %c1_1121, %c8_1122] : memref<2x10x80xf32, #tpu.memory_space<vmem>>, vector<2x8x64xf32>
    tpu.vector_store %arg12[%c0_1120, %c1_1121, %c8_1122], %1172 {strides = array<i32>} : memref<2x10x80xf32, #tpu.memory_space<vmem>>, vector<2x8x64xf32>,
    %c0_1123 = arith.constant 0 : index
    %c0_1124 = arith.constant 0 : index
    %c0_1125 = arith.constant 0 : index
    %1174 = vector.load %arg12[%c0_1123, %c0_1124, %c0_1125] : memref<2x10x80xf32, #tpu.memory_space<vmem>>, vector<2x8x64xf32>
    %1175 = vector.shape_cast %1174 : vector<2x8x64xf32> to vector<16x64xf32>
    %1176 = arith.truncf %1175 : vector<16x64xf32> to vector<16x64xbf16>
    %c0_1126 = arith.constant 0 : index
    %c0_1127 = arith.constant 0 : index
    %c8_1128 = arith.constant 8 : index
    %1177 = vector.load %arg12[%c0_1126, %c0_1127, %c8_1128] : memref<2x10x80xf32, #tpu.memory_space<vmem>>, vector<2x8x64xf32>
    %1178 = vector.shape_cast %1177 : vector<2x8x64xf32> to vector<16x64xf32>
    %1179 = arith.truncf %1178 : vector<16x64xf32> to vector<16x64xbf16>
    %c0_1129 = arith.constant 0 : index
    %c0_1130 = arith.constant 0 : index
    %c16_1131 = arith.constant 16 : index
    %1180 = vector.load %arg12[%c0_1129, %c0_1130, %c16_1131] : memref<2x10x80xf32, #tpu.memory_space<vmem>>, vector<2x8x64xf32>
    %1181 = vector.shape_cast %1180 : vector<2x8x64xf32> to vector<16x64xf32>
    %1182 = arith.truncf %1181 : vector<16x64xf32> to vector<16x64xbf16>
    %c0_1132 = arith.constant 0 : index
    %c1_1133 = arith.constant 1 : index
    %c0_1134 = arith.constant 0 : index
    %1183 = vector.load %arg12[%c0_1132, %c1_1133, %c0_1134] : memref<2x10x80xf32, #tpu.memory_space<vmem>>, vector<2x8x64xf32>
    %1184 = vector.shape_cast %1183 : vector<2x8x64xf32> to vector<16x64xf32>
    %1185 = arith.truncf %1184 : vector<16x64xf32> to vector<16x64xbf16>
    %c0_1135 = arith.constant 0 : index
    %c1_1136 = arith.constant 1 : index
    %c8_1137 = arith.constant 8 : index
    %1186 = vector.load %arg12[%c0_1135, %c1_1136, %c8_1137] : memref<2x10x80xf32, #tpu.memory_space<vmem>>, vector<2x8x64xf32>
    %1187 = vector.shape_cast %1186 : vector<2x8x64xf32> to vector<16x64xf32>
    %1188 = arith.truncf %1187 : vector<16x64xf32> to vector<16x64xbf16>
    %c0_1138 = arith.constant 0 : index
    %c1_1139 = arith.constant 1 : index
    %c16_1140 = arith.constant 16 : index
    %1189 = vector.load %arg12[%c0_1138, %c1_1139, %c16_1140] : memref<2x10x80xf32, #tpu.memory_space<vmem>>, vector<2x8x64xf32>
    %1190 = vector.shape_cast %1189 : vector<2x8x64xf32> to vector<16x64xf32>
    %1191 = arith.truncf %1190 : vector<16x64xf32> to vector<16x64xbf16>
    %c0_1141 = arith.constant 0 : index
    %c2_1142 = arith.constant 2 : index
    %c0_1143 = arith.constant 0 : index
    %1192 = vector.load %arg12[%c0_1141, %c2_1142, %c0_1143] : memref<2x10x80xf32, #tpu.memory_space<vmem>>, vector<2x8x64xf32>
    %1193 = vector.shape_cast %1192 : vector<2x8x64xf32> to vector<16x64xf32>
    %1194 = arith.truncf %1193 : vector<16x64xf32> to vector<16x64xbf16>
    %c0_1144 = arith.constant 0 : index
    %c2_1145 = arith.constant 2 : index
    %c8_1146 = arith.constant 8 : index
    %1195 = vector.load %arg12[%c0_1144, %c2_1145, %c8_1146] : memref<2x10x80xf32, #tpu.memory_space<vmem>>, vector<2x8x64xf32>
    %1196 = vector.shape_cast %1195 : vector<2x8x64xf32> to vector<16x64xf32>
    %1197 = arith.truncf %1196 : vector<16x64xf32> to vector<16x64xbf16>
    %c0_1147 = arith.constant 0 : index
    %c2_1148 = arith.constant 2 : index
    %c16_1149 = arith.constant 16 : index
    %1198 = vector.load %arg12[%c0_1147, %c2_1148, %c16_1149] : memref<2x10x80xf32, #tpu.memory_space<vmem>>, vector<2x8x64xf32>
    %1199 = vector.shape_cast %1198 : vector<2x8x64xf32> to vector<16x64xf32>
    %1200 = arith.truncf %1199 : vector<16x64xf32> to vector<16x64xbf16>
    %cst_1150 = arith.constant 0.000000e+00 : f32
    %1201 = vector.broadcast %cst_1150 : f32 to vector<16x64xf32>
    %c90 = arith.constant 90 : index
    %c0_1151 = arith.constant 0 : index
    %c0_1152 = arith.constant 0 : index
    %1202 = vector.load %arg6[%c90, %c0_1151, %c0_1152] : memref<108x64x64xbf16, #tpu.memory_space<vmem>>, vector<1x64x64xbf16>
    %1203 = vector.shape_cast %1202 : vector<1x64x64xbf16> to vector<64x64xbf16>
    %cst_1153 = arith.constant dense<0.000000e+00> : vector<16x64xf32>
    %1204 = tpu.matmul %1176, %1203, %cst_1153 {dimension_numbers = #tpu.dot_dimension_numbers<[1], [0], [0], [1], [0, 0, 1, 1], [], []>} : vector<16x64xbf16>, vector<64x64xbf16>, vector<16x64xf32> -> vector<16x64xf32>
    %1205 = arith.addf %1201, %1204 : vector<16x64xf32>
    %c91 = arith.constant 91 : index
    %c0_1154 = arith.constant 0 : index
    %c0_1155 = arith.constant 0 : index
    %1206 = vector.load %arg6[%c91, %c0_1154, %c0_1155] : memref<108x64x64xbf16, #tpu.memory_space<vmem>>, vector<1x64x64xbf16>
    %1207 = vector.shape_cast %1206 : vector<1x64x64xbf16> to vector<64x64xbf16>
    %cst_1156 = arith.constant dense<0.000000e+00> : vector<16x64xf32>
    %1208 = tpu.matmul %1179, %1207, %cst_1156 {dimension_numbers = #tpu.dot_dimension_numbers<[1], [0], [0], [1], [0, 0, 1, 1], [], []>} : vector<16x64xbf16>, vector<64x64xbf16>, vector<16x64xf32> -> vector<16x64xf32>
    %1209 = arith.addf %1205, %1208 : vector<16x64xf32>
    %c92 = arith.constant 92 : index
    %c0_1157 = arith.constant 0 : index
    %c0_1158 = arith.constant 0 : index
    %1210 = vector.load %arg6[%c92, %c0_1157, %c0_1158] : memref<108x64x64xbf16, #tpu.memory_space<vmem>>, vector<1x64x64xbf16>
    %1211 = vector.shape_cast %1210 : vector<1x64x64xbf16> to vector<64x64xbf16>
    %cst_1159 = arith.constant dense<0.000000e+00> : vector<16x64xf32>
    %1212 = tpu.matmul %1182, %1211, %cst_1159 {dimension_numbers = #tpu.dot_dimension_numbers<[1], [0], [0], [1], [0, 0, 1, 1], [], []>} : vector<16x64xbf16>, vector<64x64xbf16>, vector<16x64xf32> -> vector<16x64xf32>
    %1213 = arith.addf %1209, %1212 : vector<16x64xf32>
    %c93 = arith.constant 93 : index
    %c0_1160 = arith.constant 0 : index
    %c0_1161 = arith.constant 0 : index
    %1214 = vector.load %arg6[%c93, %c0_1160, %c0_1161] : memref<108x64x64xbf16, #tpu.memory_space<vmem>>, vector<1x64x64xbf16>
    %1215 = vector.shape_cast %1214 : vector<1x64x64xbf16> to vector<64x64xbf16>
    %cst_1162 = arith.constant dense<0.000000e+00> : vector<16x64xf32>
    %1216 = tpu.matmul %1185, %1215, %cst_1162 {dimension_numbers = #tpu.dot_dimension_numbers<[1], [0], [0], [1], [0, 0, 1, 1], [], []>} : vector<16x64xbf16>, vector<64x64xbf16>, vector<16x64xf32> -> vector<16x64xf32>
    %1217 = arith.addf %1213, %1216 : vector<16x64xf32>
    %c94 = arith.constant 94 : index
    %c0_1163 = arith.constant 0 : index
    %c0_1164 = arith.constant 0 : index
    %1218 = vector.load %arg6[%c94, %c0_1163, %c0_1164] : memref<108x64x64xbf16, #tpu.memory_space<vmem>>, vector<1x64x64xbf16>
    %1219 = vector.shape_cast %1218 : vector<1x64x64xbf16> to vector<64x64xbf16>
    %cst_1165 = arith.constant dense<0.000000e+00> : vector<16x64xf32>
    %1220 = tpu.matmul %1188, %1219, %cst_1165 {dimension_numbers = #tpu.dot_dimension_numbers<[1], [0], [0], [1], [0, 0, 1, 1], [], []>} : vector<16x64xbf16>, vector<64x64xbf16>, vector<16x64xf32> -> vector<16x64xf32>
    %1221 = arith.addf %1217, %1220 : vector<16x64xf32>
    %c95 = arith.constant 95 : index
    %c0_1166 = arith.constant 0 : index
    %c0_1167 = arith.constant 0 : index
    %1222 = vector.load %arg6[%c95, %c0_1166, %c0_1167] : memref<108x64x64xbf16, #tpu.memory_space<vmem>>, vector<1x64x64xbf16>
    %1223 = vector.shape_cast %1222 : vector<1x64x64xbf16> to vector<64x64xbf16>
    %cst_1168 = arith.constant dense<0.000000e+00> : vector<16x64xf32>
    %1224 = tpu.matmul %1191, %1223, %cst_1168 {dimension_numbers = #tpu.dot_dimension_numbers<[1], [0], [0], [1], [0, 0, 1, 1], [], []>} : vector<16x64xbf16>, vector<64x64xbf16>, vector<16x64xf32> -> vector<16x64xf32>
    %1225 = arith.addf %1221, %1224 : vector<16x64xf32>
    %c96 = arith.constant 96 : index
    %c0_1169 = arith.constant 0 : index
    %c0_1170 = arith.constant 0 : index
    %1226 = vector.load %arg6[%c96, %c0_1169, %c0_1170] : memref<108x64x64xbf16, #tpu.memory_space<vmem>>, vector<1x64x64xbf16>
    %1227 = vector.shape_cast %1226 : vector<1x64x64xbf16> to vector<64x64xbf16>
    %cst_1171 = arith.constant dense<0.000000e+00> : vector<16x64xf32>
    %1228 = tpu.matmul %1194, %1227, %cst_1171 {dimension_numbers = #tpu.dot_dimension_numbers<[1], [0], [0], [1], [0, 0, 1, 1], [], []>} : vector<16x64xbf16>, vector<64x64xbf16>, vector<16x64xf32> -> vector<16x64xf32>
    %1229 = arith.addf %1225, %1228 : vector<16x64xf32>
    %c97 = arith.constant 97 : index
    %c0_1172 = arith.constant 0 : index
    %c0_1173 = arith.constant 0 : index
    %1230 = vector.load %arg6[%c97, %c0_1172, %c0_1173] : memref<108x64x64xbf16, #tpu.memory_space<vmem>>, vector<1x64x64xbf16>
    %1231 = vector.shape_cast %1230 : vector<1x64x64xbf16> to vector<64x64xbf16>
    %cst_1174 = arith.constant dense<0.000000e+00> : vector<16x64xf32>
    %1232 = tpu.matmul %1197, %1231, %cst_1174 {dimension_numbers = #tpu.dot_dimension_numbers<[1], [0], [0], [1], [0, 0, 1, 1], [], []>} : vector<16x64xbf16>, vector<64x64xbf16>, vector<16x64xf32> -> vector<16x64xf32>
    %1233 = arith.addf %1229, %1232 : vector<16x64xf32>
    %c98 = arith.constant 98 : index
    %c0_1175 = arith.constant 0 : index
    %c0_1176 = arith.constant 0 : index
    %1234 = vector.load %arg6[%c98, %c0_1175, %c0_1176] : memref<108x64x64xbf16, #tpu.memory_space<vmem>>, vector<1x64x64xbf16>
    %1235 = vector.shape_cast %1234 : vector<1x64x64xbf16> to vector<64x64xbf16>
    %cst_1177 = arith.constant dense<0.000000e+00> : vector<16x64xf32>
    %1236 = tpu.matmul %1200, %1235, %cst_1177 {dimension_numbers = #tpu.dot_dimension_numbers<[1], [0], [0], [1], [0, 0, 1, 1], [], []>} : vector<16x64xbf16>, vector<64x64xbf16>, vector<16x64xf32> -> vector<16x64xf32>
    %1237 = arith.addf %1233, %1236 : vector<16x64xf32>
    %c10_1178 = arith.constant 10 : index
    %c0_1179 = arith.constant 0 : index
    %c0_1180 = arith.constant 0 : index
    %1238 = vector.load %arg7[%c10_1178, %c0_1179, %c0_1180] : memref<12x1x64xf32, #tpu.memory_space<vmem>>, vector<1x1x64xf32>
    %1239 = vector.shape_cast %1238 : vector<1x1x64xf32> to vector<1x64xf32>
    %1240 = vector.broadcast %1239 : vector<1x64xf32> to vector<16x64xf32>
    %1241 = arith.addf %1237, %1240 : vector<16x64xf32>
    %cst_1181 = arith.constant 0.000000e+00 : f32
    %1242 = vector.broadcast %cst_1181 : f32 to vector<16x64xf32>
    %1243 = arith.maximumf %1241, %1242 : vector<16x64xf32>
    %1244 = vector.shape_cast %1243 : vector<16x64xf32> to vector<2x8x64xf32>
    %c0_1182 = arith.constant 0 : index
    %c1_1183 = arith.constant 1 : index
    %c8_1184 = arith.constant 8 : index
    %1245 = vector.load %arg14[%c0_1182, %c1_1183, %c8_1184] : memref<2x10x80xf32, #tpu.memory_space<vmem>>, vector<2x8x64xf32>
    tpu.vector_store %arg14[%c0_1182, %c1_1183, %c8_1184], %1244 {strides = array<i32>} : memref<2x10x80xf32, #tpu.memory_space<vmem>>, vector<2x8x64xf32>,
    %c0_1185 = arith.constant 0 : index
    %c0_1186 = arith.constant 0 : index
    %c0_1187 = arith.constant 0 : index
    %1246 = vector.load %arg14[%c0_1185, %c0_1186, %c0_1187] : memref<2x10x80xf32, #tpu.memory_space<vmem>>, vector<2x8x64xf32>
    %1247 = vector.shape_cast %1246 : vector<2x8x64xf32> to vector<16x64xf32>
    %1248 = arith.truncf %1247 : vector<16x64xf32> to vector<16x64xbf16>
    %c0_1188 = arith.constant 0 : index
    %c0_1189 = arith.constant 0 : index
    %c8_1190 = arith.constant 8 : index
    %1249 = vector.load %arg14[%c0_1188, %c0_1189, %c8_1190] : memref<2x10x80xf32, #tpu.memory_space<vmem>>, vector<2x8x64xf32>
    %1250 = vector.shape_cast %1249 : vector<2x8x64xf32> to vector<16x64xf32>
    %1251 = arith.truncf %1250 : vector<16x64xf32> to vector<16x64xbf16>
    %c0_1191 = arith.constant 0 : index
    %c0_1192 = arith.constant 0 : index
    %c16_1193 = arith.constant 16 : index
    %1252 = vector.load %arg14[%c0_1191, %c0_1192, %c16_1193] : memref<2x10x80xf32, #tpu.memory_space<vmem>>, vector<2x8x64xf32>
    %1253 = vector.shape_cast %1252 : vector<2x8x64xf32> to vector<16x64xf32>
    %1254 = arith.truncf %1253 : vector<16x64xf32> to vector<16x64xbf16>
    %c0_1194 = arith.constant 0 : index
    %c1_1195 = arith.constant 1 : index
    %c0_1196 = arith.constant 0 : index
    %1255 = vector.load %arg14[%c0_1194, %c1_1195, %c0_1196] : memref<2x10x80xf32, #tpu.memory_space<vmem>>, vector<2x8x64xf32>
    %1256 = vector.shape_cast %1255 : vector<2x8x64xf32> to vector<16x64xf32>
    %1257 = arith.truncf %1256 : vector<16x64xf32> to vector<16x64xbf16>
    %c0_1197 = arith.constant 0 : index
    %c1_1198 = arith.constant 1 : index
    %c8_1199 = arith.constant 8 : index
    %1258 = vector.load %arg14[%c0_1197, %c1_1198, %c8_1199] : memref<2x10x80xf32, #tpu.memory_space<vmem>>, vector<2x8x64xf32>
    %1259 = vector.shape_cast %1258 : vector<2x8x64xf32> to vector<16x64xf32>
    %1260 = arith.truncf %1259 : vector<16x64xf32> to vector<16x64xbf16>
    %c0_1200 = arith.constant 0 : index
    %c1_1201 = arith.constant 1 : index
    %c16_1202 = arith.constant 16 : index
    %1261 = vector.load %arg14[%c0_1200, %c1_1201, %c16_1202] : memref<2x10x80xf32, #tpu.memory_space<vmem>>, vector<2x8x64xf32>
    %1262 = vector.shape_cast %1261 : vector<2x8x64xf32> to vector<16x64xf32>
    %1263 = arith.truncf %1262 : vector<16x64xf32> to vector<16x64xbf16>
    %c0_1203 = arith.constant 0 : index
    %c2_1204 = arith.constant 2 : index
    %c0_1205 = arith.constant 0 : index
    %1264 = vector.load %arg14[%c0_1203, %c2_1204, %c0_1205] : memref<2x10x80xf32, #tpu.memory_space<vmem>>, vector<2x8x64xf32>
    %1265 = vector.shape_cast %1264 : vector<2x8x64xf32> to vector<16x64xf32>
    %1266 = arith.truncf %1265 : vector<16x64xf32> to vector<16x64xbf16>
    %c0_1206 = arith.constant 0 : index
    %c2_1207 = arith.constant 2 : index
    %c8_1208 = arith.constant 8 : index
    %1267 = vector.load %arg14[%c0_1206, %c2_1207, %c8_1208] : memref<2x10x80xf32, #tpu.memory_space<vmem>>, vector<2x8x64xf32>
    %1268 = vector.shape_cast %1267 : vector<2x8x64xf32> to vector<16x64xf32>
    %1269 = arith.truncf %1268 : vector<16x64xf32> to vector<16x64xbf16>
    %c0_1209 = arith.constant 0 : index
    %c2_1210 = arith.constant 2 : index
    %c16_1211 = arith.constant 16 : index
    %1270 = vector.load %arg14[%c0_1209, %c2_1210, %c16_1211] : memref<2x10x80xf32, #tpu.memory_space<vmem>>, vector<2x8x64xf32>
    %1271 = vector.shape_cast %1270 : vector<2x8x64xf32> to vector<16x64xf32>
    %1272 = arith.truncf %1271 : vector<16x64xf32> to vector<16x64xbf16>
    %cst_1212 = arith.constant 0.000000e+00 : f32
    %1273 = vector.broadcast %cst_1212 : f32 to vector<16x64xf32>
    %c99 = arith.constant 99 : index
    %c0_1213 = arith.constant 0 : index
    %c0_1214 = arith.constant 0 : index
    %1274 = vector.load %arg6[%c99, %c0_1213, %c0_1214] : memref<108x64x64xbf16, #tpu.memory_space<vmem>>, vector<1x64x64xbf16>
    %1275 = vector.shape_cast %1274 : vector<1x64x64xbf16> to vector<64x64xbf16>
    %cst_1215 = arith.constant dense<0.000000e+00> : vector<16x64xf32>
    %1276 = tpu.matmul %1248, %1275, %cst_1215 {dimension_numbers = #tpu.dot_dimension_numbers<[1], [0], [0], [1], [0, 0, 1, 1], [], []>} : vector<16x64xbf16>, vector<64x64xbf16>, vector<16x64xf32> -> vector<16x64xf32>
    %1277 = arith.addf %1273, %1276 : vector<16x64xf32>
    %c100 = arith.constant 100 : index
    %c0_1216 = arith.constant 0 : index
    %c0_1217 = arith.constant 0 : index
    %1278 = vector.load %arg6[%c100, %c0_1216, %c0_1217] : memref<108x64x64xbf16, #tpu.memory_space<vmem>>, vector<1x64x64xbf16>
    %1279 = vector.shape_cast %1278 : vector<1x64x64xbf16> to vector<64x64xbf16>
    %cst_1218 = arith.constant dense<0.000000e+00> : vector<16x64xf32>
    %1280 = tpu.matmul %1251, %1279, %cst_1218 {dimension_numbers = #tpu.dot_dimension_numbers<[1], [0], [0], [1], [0, 0, 1, 1], [], []>} : vector<16x64xbf16>, vector<64x64xbf16>, vector<16x64xf32> -> vector<16x64xf32>
    %1281 = arith.addf %1277, %1280 : vector<16x64xf32>
    %c101 = arith.constant 101 : index
    %c0_1219 = arith.constant 0 : index
    %c0_1220 = arith.constant 0 : index
    %1282 = vector.load %arg6[%c101, %c0_1219, %c0_1220] : memref<108x64x64xbf16, #tpu.memory_space<vmem>>, vector<1x64x64xbf16>
    %1283 = vector.shape_cast %1282 : vector<1x64x64xbf16> to vector<64x64xbf16>
    %cst_1221 = arith.constant dense<0.000000e+00> : vector<16x64xf32>
    %1284 = tpu.matmul %1254, %1283, %cst_1221 {dimension_numbers = #tpu.dot_dimension_numbers<[1], [0], [0], [1], [0, 0, 1, 1], [], []>} : vector<16x64xbf16>, vector<64x64xbf16>, vector<16x64xf32> -> vector<16x64xf32>
    %1285 = arith.addf %1281, %1284 : vector<16x64xf32>
    %c102 = arith.constant 102 : index
    %c0_1222 = arith.constant 0 : index
    %c0_1223 = arith.constant 0 : index
    %1286 = vector.load %arg6[%c102, %c0_1222, %c0_1223] : memref<108x64x64xbf16, #tpu.memory_space<vmem>>, vector<1x64x64xbf16>
    %1287 = vector.shape_cast %1286 : vector<1x64x64xbf16> to vector<64x64xbf16>
    %cst_1224 = arith.constant dense<0.000000e+00> : vector<16x64xf32>
    %1288 = tpu.matmul %1257, %1287, %cst_1224 {dimension_numbers = #tpu.dot_dimension_numbers<[1], [0], [0], [1], [0, 0, 1, 1], [], []>} : vector<16x64xbf16>, vector<64x64xbf16>, vector<16x64xf32> -> vector<16x64xf32>
    %1289 = arith.addf %1285, %1288 : vector<16x64xf32>
    %c103 = arith.constant 103 : index
    %c0_1225 = arith.constant 0 : index
    %c0_1226 = arith.constant 0 : index
    %1290 = vector.load %arg6[%c103, %c0_1225, %c0_1226] : memref<108x64x64xbf16, #tpu.memory_space<vmem>>, vector<1x64x64xbf16>
    %1291 = vector.shape_cast %1290 : vector<1x64x64xbf16> to vector<64x64xbf16>
    %cst_1227 = arith.constant dense<0.000000e+00> : vector<16x64xf32>
    %1292 = tpu.matmul %1260, %1291, %cst_1227 {dimension_numbers = #tpu.dot_dimension_numbers<[1], [0], [0], [1], [0, 0, 1, 1], [], []>} : vector<16x64xbf16>, vector<64x64xbf16>, vector<16x64xf32> -> vector<16x64xf32>
    %1293 = arith.addf %1289, %1292 : vector<16x64xf32>
    %c104 = arith.constant 104 : index
    %c0_1228 = arith.constant 0 : index
    %c0_1229 = arith.constant 0 : index
    %1294 = vector.load %arg6[%c104, %c0_1228, %c0_1229] : memref<108x64x64xbf16, #tpu.memory_space<vmem>>, vector<1x64x64xbf16>
    %1295 = vector.shape_cast %1294 : vector<1x64x64xbf16> to vector<64x64xbf16>
    %cst_1230 = arith.constant dense<0.000000e+00> : vector<16x64xf32>
    %1296 = tpu.matmul %1263, %1295, %cst_1230 {dimension_numbers = #tpu.dot_dimension_numbers<[1], [0], [0], [1], [0, 0, 1, 1], [], []>} : vector<16x64xbf16>, vector<64x64xbf16>, vector<16x64xf32> -> vector<16x64xf32>
    %1297 = arith.addf %1293, %1296 : vector<16x64xf32>
    %c105 = arith.constant 105 : index
    %c0_1231 = arith.constant 0 : index
    %c0_1232 = arith.constant 0 : index
    %1298 = vector.load %arg6[%c105, %c0_1231, %c0_1232] : memref<108x64x64xbf16, #tpu.memory_space<vmem>>, vector<1x64x64xbf16>
    %1299 = vector.shape_cast %1298 : vector<1x64x64xbf16> to vector<64x64xbf16>
    %cst_1233 = arith.constant dense<0.000000e+00> : vector<16x64xf32>
    %1300 = tpu.matmul %1266, %1299, %cst_1233 {dimension_numbers = #tpu.dot_dimension_numbers<[1], [0], [0], [1], [0, 0, 1, 1], [], []>} : vector<16x64xbf16>, vector<64x64xbf16>, vector<16x64xf32> -> vector<16x64xf32>
    %1301 = arith.addf %1297, %1300 : vector<16x64xf32>
    %c106 = arith.constant 106 : index
    %c0_1234 = arith.constant 0 : index
    %c0_1235 = arith.constant 0 : index
    %1302 = vector.load %arg6[%c106, %c0_1234, %c0_1235] : memref<108x64x64xbf16, #tpu.memory_space<vmem>>, vector<1x64x64xbf16>
    %1303 = vector.shape_cast %1302 : vector<1x64x64xbf16> to vector<64x64xbf16>
    %cst_1236 = arith.constant dense<0.000000e+00> : vector<16x64xf32>
    %1304 = tpu.matmul %1269, %1303, %cst_1236 {dimension_numbers = #tpu.dot_dimension_numbers<[1], [0], [0], [1], [0, 0, 1, 1], [], []>} : vector<16x64xbf16>, vector<64x64xbf16>, vector<16x64xf32> -> vector<16x64xf32>
    %1305 = arith.addf %1301, %1304 : vector<16x64xf32>
    %c107 = arith.constant 107 : index
    %c0_1237 = arith.constant 0 : index
    %c0_1238 = arith.constant 0 : index
    %1306 = vector.load %arg6[%c107, %c0_1237, %c0_1238] : memref<108x64x64xbf16, #tpu.memory_space<vmem>>, vector<1x64x64xbf16>
    %1307 = vector.shape_cast %1306 : vector<1x64x64xbf16> to vector<64x64xbf16>
    %cst_1239 = arith.constant dense<0.000000e+00> : vector<16x64xf32>
    %1308 = tpu.matmul %1272, %1307, %cst_1239 {dimension_numbers = #tpu.dot_dimension_numbers<[1], [0], [0], [1], [0, 0, 1, 1], [], []>} : vector<16x64xbf16>, vector<64x64xbf16>, vector<16x64xf32> -> vector<16x64xf32>
    %1309 = arith.addf %1305, %1308 : vector<16x64xf32>
    %c11_1240 = arith.constant 11 : index
    %c0_1241 = arith.constant 0 : index
    %c0_1242 = arith.constant 0 : index
    %1310 = vector.load %arg7[%c11_1240, %c0_1241, %c0_1242] : memref<12x1x64xf32, #tpu.memory_space<vmem>>, vector<1x1x64xf32>
    %1311 = vector.shape_cast %1310 : vector<1x1x64xf32> to vector<1x64xf32>
    %1312 = vector.broadcast %1311 : vector<1x64xf32> to vector<16x64xf32>
    %1313 = arith.addf %1309, %1312 : vector<16x64xf32>
    %c0_1243 = arith.constant 0 : index
    %c1_1244 = arith.constant 1 : index
    %c8_1245 = arith.constant 8 : index
    %1314 = vector.load %arg12[%c0_1243, %c1_1244, %c8_1245] : memref<2x10x80xf32, #tpu.memory_space<vmem>>, vector<2x8x64xf32>
    %1315 = vector.shape_cast %1314 : vector<2x8x64xf32> to vector<16x64xf32>
    %1316 = arith.addf %1313, %1315 : vector<16x64xf32>
    %1317 = vector.shape_cast %1316 : vector<16x64xf32> to vector<2x8x64xf32>
    %c0_1246 = arith.constant 0 : index
    %c1_1247 = arith.constant 1 : index
    %c8_1248 = arith.constant 8 : index
    %1318 = vector.load %arg12[%c0_1246, %c1_1247, %c8_1248] : memref<2x10x80xf32, #tpu.memory_space<vmem>>, vector<2x8x64xf32>
    tpu.vector_store %arg12[%c0_1246, %c1_1247, %c8_1248], %1317 {strides = array<i32>} : memref<2x10x80xf32, #tpu.memory_space<vmem>>, vector<2x8x64xf32>,
    %c0_1249 = arith.constant 0 : index
    %c0_1250 = arith.constant 0 : index
    %c0_1251 = arith.constant 0 : index
    %1319 = vector.load %arg12[%c0_1249, %c0_1250, %c0_1251] : memref<2x10x80xf32, #tpu.memory_space<vmem>>, vector<2x8x64xf32>
    %1320 = vector.shape_cast %1319 : vector<2x8x64xf32> to vector<16x64xf32>
    %1321 = arith.truncf %1320 : vector<16x64xf32> to vector<16x64xbf16>
    %c0_1252 = arith.constant 0 : index
    %c0_1253 = arith.constant 0 : index
    %c8_1254 = arith.constant 8 : index
    %1322 = vector.load %arg12[%c0_1252, %c0_1253, %c8_1254] : memref<2x10x80xf32, #tpu.memory_space<vmem>>, vector<2x8x64xf32>
    %1323 = vector.shape_cast %1322 : vector<2x8x64xf32> to vector<16x64xf32>
    %1324 = arith.truncf %1323 : vector<16x64xf32> to vector<16x64xbf16>
    %c0_1255 = arith.constant 0 : index
    %c0_1256 = arith.constant 0 : index
    %c16_1257 = arith.constant 16 : index
    %1325 = vector.load %arg12[%c0_1255, %c0_1256, %c16_1257] : memref<2x10x80xf32, #tpu.memory_space<vmem>>, vector<2x8x64xf32>
    %1326 = vector.shape_cast %1325 : vector<2x8x64xf32> to vector<16x64xf32>
    %1327 = arith.truncf %1326 : vector<16x64xf32> to vector<16x64xbf16>
    %c0_1258 = arith.constant 0 : index
    %c1_1259 = arith.constant 1 : index
    %c0_1260 = arith.constant 0 : index
    %1328 = vector.load %arg12[%c0_1258, %c1_1259, %c0_1260] : memref<2x10x80xf32, #tpu.memory_space<vmem>>, vector<2x8x64xf32>
    %1329 = vector.shape_cast %1328 : vector<2x8x64xf32> to vector<16x64xf32>
    %1330 = arith.truncf %1329 : vector<16x64xf32> to vector<16x64xbf16>
    %c0_1261 = arith.constant 0 : index
    %c1_1262 = arith.constant 1 : index
    %c8_1263 = arith.constant 8 : index
    %1331 = vector.load %arg12[%c0_1261, %c1_1262, %c8_1263] : memref<2x10x80xf32, #tpu.memory_space<vmem>>, vector<2x8x64xf32>
    %1332 = vector.shape_cast %1331 : vector<2x8x64xf32> to vector<16x64xf32>
    %1333 = arith.truncf %1332 : vector<16x64xf32> to vector<16x64xbf16>
    %c0_1264 = arith.constant 0 : index
    %c1_1265 = arith.constant 1 : index
    %c16_1266 = arith.constant 16 : index
    %1334 = vector.load %arg12[%c0_1264, %c1_1265, %c16_1266] : memref<2x10x80xf32, #tpu.memory_space<vmem>>, vector<2x8x64xf32>
    %1335 = vector.shape_cast %1334 : vector<2x8x64xf32> to vector<16x64xf32>
    %1336 = arith.truncf %1335 : vector<16x64xf32> to vector<16x64xbf16>
    %c0_1267 = arith.constant 0 : index
    %c2_1268 = arith.constant 2 : index
    %c0_1269 = arith.constant 0 : index
    %1337 = vector.load %arg12[%c0_1267, %c2_1268, %c0_1269] : memref<2x10x80xf32, #tpu.memory_space<vmem>>, vector<2x8x64xf32>
    %1338 = vector.shape_cast %1337 : vector<2x8x64xf32> to vector<16x64xf32>
    %1339 = arith.truncf %1338 : vector<16x64xf32> to vector<16x64xbf16>
    %c0_1270 = arith.constant 0 : index
    %c2_1271 = arith.constant 2 : index
    %c8_1272 = arith.constant 8 : index
    %1340 = vector.load %arg12[%c0_1270, %c2_1271, %c8_1272] : memref<2x10x80xf32, #tpu.memory_space<vmem>>, vector<2x8x64xf32>
    %1341 = vector.shape_cast %1340 : vector<2x8x64xf32> to vector<16x64xf32>
    %1342 = arith.truncf %1341 : vector<16x64xf32> to vector<16x64xbf16>
    %c0_1273 = arith.constant 0 : index
    %c2_1274 = arith.constant 2 : index
    %c16_1275 = arith.constant 16 : index
    %1343 = vector.load %arg12[%c0_1273, %c2_1274, %c16_1275] : memref<2x10x80xf32, #tpu.memory_space<vmem>>, vector<2x8x64xf32>
    %1344 = vector.shape_cast %1343 : vector<2x8x64xf32> to vector<16x64xf32>
    %1345 = arith.truncf %1344 : vector<16x64xf32> to vector<16x64xbf16>
    %cst_1276 = arith.constant 0.000000e+00 : f32
    %1346 = vector.broadcast %cst_1276 : f32 to vector<16x24xf32>
    %c0_1277 = arith.constant 0 : index
    %c0_1278 = arith.constant 0 : index
    %c0_1279 = arith.constant 0 : index
    %1347 = vector.load %arg8[%c0_1277, %c0_1278, %c0_1279] : memref<9x64x24xbf16, #tpu.memory_space<vmem>>, vector<1x64x24xbf16>
    %1348 = vector.shape_cast %1347 : vector<1x64x24xbf16> to vector<64x24xbf16>
    %cst_1280 = arith.constant dense<0.000000e+00> : vector<16x24xf32>
    %1349 = tpu.matmul %1321, %1348, %cst_1280 {dimension_numbers = #tpu.dot_dimension_numbers<[1], [0], [0], [1], [0, 0, 1, 1], [], []>} : vector<16x64xbf16>, vector<64x24xbf16>, vector<16x24xf32> -> vector<16x24xf32>
    %1350 = arith.addf %1346, %1349 : vector<16x24xf32>
    %c1_1281 = arith.constant 1 : index
    %c0_1282 = arith.constant 0 : index
    %c0_1283 = arith.constant 0 : index
    %1351 = vector.load %arg8[%c1_1281, %c0_1282, %c0_1283] : memref<9x64x24xbf16, #tpu.memory_space<vmem>>, vector<1x64x24xbf16>
    %1352 = vector.shape_cast %1351 : vector<1x64x24xbf16> to vector<64x24xbf16>
    %cst_1284 = arith.constant dense<0.000000e+00> : vector<16x24xf32>
    %1353 = tpu.matmul %1324, %1352, %cst_1284 {dimension_numbers = #tpu.dot_dimension_numbers<[1], [0], [0], [1], [0, 0, 1, 1], [], []>} : vector<16x64xbf16>, vector<64x24xbf16>, vector<16x24xf32> -> vector<16x24xf32>
    %1354 = arith.addf %1350, %1353 : vector<16x24xf32>
    %c2_1285 = arith.constant 2 : index
    %c0_1286 = arith.constant 0 : index
    %c0_1287 = arith.constant 0 : index
    %1355 = vector.load %arg8[%c2_1285, %c0_1286, %c0_1287] : memref<9x64x24xbf16, #tpu.memory_space<vmem>>, vector<1x64x24xbf16>
    %1356 = vector.shape_cast %1355 : vector<1x64x24xbf16> to vector<64x24xbf16>
    %cst_1288 = arith.constant dense<0.000000e+00> : vector<16x24xf32>
    %1357 = tpu.matmul %1327, %1356, %cst_1288 {dimension_numbers = #tpu.dot_dimension_numbers<[1], [0], [0], [1], [0, 0, 1, 1], [], []>} : vector<16x64xbf16>, vector<64x24xbf16>, vector<16x24xf32> -> vector<16x24xf32>
    %1358 = arith.addf %1354, %1357 : vector<16x24xf32>
    %c3_1289 = arith.constant 3 : index
    %c0_1290 = arith.constant 0 : index
    %c0_1291 = arith.constant 0 : index
    %1359 = vector.load %arg8[%c3_1289, %c0_1290, %c0_1291] : memref<9x64x24xbf16, #tpu.memory_space<vmem>>, vector<1x64x24xbf16>
    %1360 = vector.shape_cast %1359 : vector<1x64x24xbf16> to vector<64x24xbf16>
    %cst_1292 = arith.constant dense<0.000000e+00> : vector<16x24xf32>
    %1361 = tpu.matmul %1330, %1360, %cst_1292 {dimension_numbers = #tpu.dot_dimension_numbers<[1], [0], [0], [1], [0, 0, 1, 1], [], []>} : vector<16x64xbf16>, vector<64x24xbf16>, vector<16x24xf32> -> vector<16x24xf32>
    %1362 = arith.addf %1358, %1361 : vector<16x24xf32>
    %c4_1293 = arith.constant 4 : index
    %c0_1294 = arith.constant 0 : index
    %c0_1295 = arith.constant 0 : index
    %1363 = vector.load %arg8[%c4_1293, %c0_1294, %c0_1295] : memref<9x64x24xbf16, #tpu.memory_space<vmem>>, vector<1x64x24xbf16>
    %1364 = vector.shape_cast %1363 : vector<1x64x24xbf16> to vector<64x24xbf16>
    %cst_1296 = arith.constant dense<0.000000e+00> : vector<16x24xf32>
    %1365 = tpu.matmul %1333, %1364, %cst_1296 {dimension_numbers = #tpu.dot_dimension_numbers<[1], [0], [0], [1], [0, 0, 1, 1], [], []>} : vector<16x64xbf16>, vector<64x24xbf16>, vector<16x24xf32> -> vector<16x24xf32>
    %1366 = arith.addf %1362, %1365 : vector<16x24xf32>
    %c5_1297 = arith.constant 5 : index
    %c0_1298 = arith.constant 0 : index
    %c0_1299 = arith.constant 0 : index
    %1367 = vector.load %arg8[%c5_1297, %c0_1298, %c0_1299] : memref<9x64x24xbf16, #tpu.memory_space<vmem>>, vector<1x64x24xbf16>
    %1368 = vector.shape_cast %1367 : vector<1x64x24xbf16> to vector<64x24xbf16>
    %cst_1300 = arith.constant dense<0.000000e+00> : vector<16x24xf32>
    %1369 = tpu.matmul %1336, %1368, %cst_1300 {dimension_numbers = #tpu.dot_dimension_numbers<[1], [0], [0], [1], [0, 0, 1, 1], [], []>} : vector<16x64xbf16>, vector<64x24xbf16>, vector<16x24xf32> -> vector<16x24xf32>
    %1370 = arith.addf %1366, %1369 : vector<16x24xf32>
    %c6_1301 = arith.constant 6 : index
    %c0_1302 = arith.constant 0 : index
    %c0_1303 = arith.constant 0 : index
    %1371 = vector.load %arg8[%c6_1301, %c0_1302, %c0_1303] : memref<9x64x24xbf16, #tpu.memory_space<vmem>>, vector<1x64x24xbf16>
    %1372 = vector.shape_cast %1371 : vector<1x64x24xbf16> to vector<64x24xbf16>
    %cst_1304 = arith.constant dense<0.000000e+00> : vector<16x24xf32>
    %1373 = tpu.matmul %1339, %1372, %cst_1304 {dimension_numbers = #tpu.dot_dimension_numbers<[1], [0], [0], [1], [0, 0, 1, 1], [], []>} : vector<16x64xbf16>, vector<64x24xbf16>, vector<16x24xf32> -> vector<16x24xf32>
    %1374 = arith.addf %1370, %1373 : vector<16x24xf32>
    %c7_1305 = arith.constant 7 : index
    %c0_1306 = arith.constant 0 : index
    %c0_1307 = arith.constant 0 : index
    %1375 = vector.load %arg8[%c7_1305, %c0_1306, %c0_1307] : memref<9x64x24xbf16, #tpu.memory_space<vmem>>, vector<1x64x24xbf16>
    %1376 = vector.shape_cast %1375 : vector<1x64x24xbf16> to vector<64x24xbf16>
    %cst_1308 = arith.constant dense<0.000000e+00> : vector<16x24xf32>
    %1377 = tpu.matmul %1342, %1376, %cst_1308 {dimension_numbers = #tpu.dot_dimension_numbers<[1], [0], [0], [1], [0, 0, 1, 1], [], []>} : vector<16x64xbf16>, vector<64x24xbf16>, vector<16x24xf32> -> vector<16x24xf32>
    %1378 = arith.addf %1374, %1377 : vector<16x24xf32>
    %c8_1309 = arith.constant 8 : index
    %c0_1310 = arith.constant 0 : index
    %c0_1311 = arith.constant 0 : index
    %1379 = vector.load %arg8[%c8_1309, %c0_1310, %c0_1311] : memref<9x64x24xbf16, #tpu.memory_space<vmem>>, vector<1x64x24xbf16>
    %1380 = vector.shape_cast %1379 : vector<1x64x24xbf16> to vector<64x24xbf16>
    %cst_1312 = arith.constant dense<0.000000e+00> : vector<16x24xf32>
    %1381 = tpu.matmul %1345, %1380, %cst_1312 {dimension_numbers = #tpu.dot_dimension_numbers<[1], [0], [0], [1], [0, 0, 1, 1], [], []>} : vector<16x64xbf16>, vector<64x24xbf16>, vector<16x24xf32> -> vector<16x24xf32>
    %1382 = arith.addf %1378, %1381 : vector<16x24xf32>
    %c0_1313 = arith.constant 0 : index
    %c0_1314 = arith.constant 0 : index
    %1383 = vector.load %arg9[%c0_1313, %c0_1314] : memref<1x24xf32, #tpu.memory_space<vmem>>, vector<1x24xf32>
    %1384 = vector.broadcast %1383 : vector<1x24xf32> to vector<16x24xf32>
    %1385 = arith.addf %1382, %1384 : vector<16x24xf32>
    %1386 = arith.negf %1385 : vector<16x24xf32>
    %1387 = math.exp %1386 : vector<16x24xf32>
    %cst_1315 = arith.constant 1.000000e+00 : f32
    %1388 = vector.broadcast %cst_1315 : f32 to vector<16x24xf32>
    %1389 = arith.addf %1388, %1387 : vector<16x24xf32>
    %1390 = arith.divf %1388, %1389 : vector<16x24xf32>
    %1391 = vector.shape_cast %1390 : vector<16x24xf32> to vector<2x8x24xf32>
    %c0_1316 = arith.constant 0 : index
    %c0_1317 = arith.constant 0 : index
    %c0_1318 = arith.constant 0 : index
    %1392 = vector.load %arg10[%c0_1316, %c0_1317, %c0_1318] : memref<2x8x24xf32, #tpu.memory_space<vmem>>, vector<2x8x24xf32>
    tpu.vector_store %arg10[%c0_1316, %c0_1317, %c0_1318], %1391 {strides = array<i32>} : memref<2x8x24xf32, #tpu.memory_space<vmem>>, vector<2x8x24xf32>,
    return
  }
  func.func @transform_0(%arg0: i32) -> (i32, i32, i32) {
    %c0_i32 = arith.constant 0 : i32
    %c0_i32_0 = arith.constant 0 : i32
    %c0_i32_1 = arith.constant 0 : i32
    return %arg0, %c0_i32, %c0_i32_0 : i32, i32, i32
  }
  func.func @transform_1(%arg0: i32) -> (i32, i32, i32) {
    %c0_i32 = arith.constant 0 : i32
    %c0_i32_0 = arith.constant 0 : i32
    %c0_i32_1 = arith.constant 0 : i32
    return %arg0, %c0_i32, %c0_i32_0 : i32, i32, i32
  }
  func.func @transform_2(%arg0: i32) -> (i32, i32, i32) {
    %c0_i32 = arith.constant 0 : i32
    %c0_i32_0 = arith.constant 0 : i32
    %c0_i32_1 = arith.constant 0 : i32
    return %arg0, %c0_i32, %c0_i32_0 : i32, i32, i32
  }
  func.func @transform_3(%arg0: i32) -> (i32, i32, i32) {
    %c0_i32 = arith.constant 0 : i32
    %c0_i32_0 = arith.constant 0 : i32
    %c0_i32_1 = arith.constant 0 : i32
    %c0_i32_2 = arith.constant 0 : i32
    return %c0_i32, %c0_i32_0, %c0_i32_1 : i32, i32, i32
  }
  func.func @transform_4(%arg0: i32) -> (i32, i32, i32) {
    %c0_i32 = arith.constant 0 : i32
    %c0_i32_0 = arith.constant 0 : i32
    %c0_i32_1 = arith.constant 0 : i32
    %c0_i32_2 = arith.constant 0 : i32
    return %c0_i32, %c0_i32_0, %c0_i32_1 : i32, i32, i32
  }
  func.func @transform_5(%arg0: i32) -> (i32, i32, i32) {
    %c0_i32 = arith.constant 0 : i32
    %c0_i32_0 = arith.constant 0 : i32
    %c0_i32_1 = arith.constant 0 : i32
    %c0_i32_2 = arith.constant 0 : i32
    return %c0_i32, %c0_i32_0, %c0_i32_1 : i32, i32, i32
  }
  func.func @transform_6(%arg0: i32) -> (i32, i32, i32) {
    %c0_i32 = arith.constant 0 : i32
    %c0_i32_0 = arith.constant 0 : i32
    %c0_i32_1 = arith.constant 0 : i32
    %c0_i32_2 = arith.constant 0 : i32
    return %c0_i32, %c0_i32_0, %c0_i32_1 : i32, i32, i32
  }
  func.func @transform_7(%arg0: i32) -> (i32, i32, i32) {
    %c0_i32 = arith.constant 0 : i32
    %c0_i32_0 = arith.constant 0 : i32
    %c0_i32_1 = arith.constant 0 : i32
    %c0_i32_2 = arith.constant 0 : i32
    return %c0_i32, %c0_i32_0, %c0_i32_1 : i32, i32, i32
  }
  func.func @transform_8(%arg0: i32) -> (i32, i32) {
    %c0_i32 = arith.constant 0 : i32
    %c0_i32_0 = arith.constant 0 : i32
    %c0_i32_1 = arith.constant 0 : i32
    return %c0_i32, %c0_i32_0 : i32, i32
  }
  func.func @transform_9(%arg0: i32) -> (i32, i32, i32) {
    %c0_i32 = arith.constant 0 : i32
    %c0_i32_0 = arith.constant 0 : i32
    %c0_i32_1 = arith.constant 0 : i32
    return %arg0, %c0_i32, %c0_i32_0 : i32, i32, i32
  }
}

</mosaic_0001>

<bundles_post_ra>
// kernel: mergenet_forward.1
= control target key start
LH: loop header
LB: loop body
LE: loop exit
PB: predicated region body
PF: predicated region fallthrough
CT: control target
= control target key end

     0   :  { %vm33_vm0 = vcmask 647168   ;;  %s14795_s13 = smov 8   ;;  %v14796_v2 = vmov 0.0   ;;  %vm38_vm1 = vcmask 64512   ;;  %vm40_vm2 = vcmask 58368   ;;  %s14797_s11 = smov 112   ;;  %s17564_s1 = inlined_call_operand.vmem [shape: f32[2,8,64], index: 1, kind: input, shape index: {}]   ;;  %s17565_s0 = inlined_call_operand.vmem [shape: f32[2,8,64], index: 0, kind: input, shape index: {}]   ;;  %s17566_s3 = inlined_call_operand.vmem [shape: bf16[54,64,64], index: 3, kind: input, shape index: {}]   ;;  %s17567_s4 = inlined_call_operand.vmem [shape: f32[3,1,64], index: 4, kind: input, shape index: {}]   ;;  %s17568_s5 = inlined_call_operand.vmem [shape: bf16[108,64,64], index: 5, kind: input, shape index: {}]   ;;  %s17569_s6 = inlined_call_operand.vmem [shape: f32[12,1,64], index: 6, kind: input, shape index: {}]   ;;  %s17570_s2 = inlined_call_operand.vmem [shape: f32[2,8,64], index: 2, kind: input, shape index: {}]   ;;  %s17571_s7 = inlined_call_operand.vmem [shape: bf16[9,64,24], index: 7, kind: input, shape index: {}]   ;;  %s17572_s8 = inlined_call_operand.vmem [shape: f32[1,24], index: 8, kind: input, shape index: {}]   ;;  %s17573_s9 = inlined_call_operand.vmem [shape: f32[2,8,24], index: 9, kind: output, shape index: {}]  }
   0x1   :  { %v99_v0 = vld [vmem:[%s17564_s1] sm:$0xff]  ;;  %50 = vst.msk [vmem:[#allocation3] sm:$0x1] %vm33_vm0, %v14796_v2  ;;  %vm44_vm3 = vcmask 654912   ;;  %vm46_vm4 = vcmask 648768   ;;  %v100_v3 = vld [vmem:[%s17564_s1 + $0x8] sm:$0xff] }
   0x2   :  { %v86_v1 = vld [vmem:[%s17565_s0] sm:$0xff]  ;;  %103 = vrot.lane.b32.xlu1 %v99_v0, %s14795_s13  ;;  %52 = vst.msk [vmem:[#allocation3 + $0x9] sm:$0x1] %vm33_vm0, %v14796_v2  ;;  %v87_v4 = vld [vmem:[%s17565_s0 + $0x8] sm:$0xff]  ;;  %v14088_v5 = vld [vmem:[%s17566_s3 + $0x138] sm:$0xff]  ;;  %vm96_vm5 = vcmask 588864  }
   0x3   :  { %90 = vrot.lane.b32.xlu0 %v86_v1, %s14795_s13  ;;  %54 = vst.msk [vmem:[#allocation3] sm:$0xff] %vm38_vm1, %v14796_v2  ;;  %v14084_v6 = vld [vmem:[%s17566_s3 + $0x18] sm:$0xff]  ;;  %190 = vmatpush.bf16.msra.mxu0 %v14088_v5  ;;  %v14087_v7 = vld [vmem:[%s17566_s3 + $0x130] sm:$0xff]  ;;  %v14086_v9 = vld [vmem:[%s17566_s3 + $0x128] sm:$0xff]  ;;  %vm182_vm6 = vcmask 523264   ;;  %s14798_s12 = smov 120  }
   0x4   :  { %55 = vst.msk [vmem:[#allocation3 + $0x8] sm:$0x3] %vm40_vm2, %v14796_v2  ;;  %231 = vmatpush.bf16.msra.mxu1 %v14084_v6  ;;  %v14083_v8 = vld [vmem:[%s17566_s3 + $0x10] sm:$0xff]  ;;  %v14082_v10 = vld [vmem:[%s17566_s3 + $0x8] sm:$0xff]  ;;  %v14085_v11 = vld [vmem:[%s17566_s3 + $0x120] sm:$0xff]  ;;  %vm9808_vm10 = vcmask 195584  }
   0x5   :  { %58 = vst.msk [vmem:[#allocation3] sm:$0xff] %vm44_vm3, %v14796_v2  ;;  %v14081_v12 = vld [vmem:[%s17566_s3] sm:$0xff]  ;;  %v14092_v23 = vld [vmem:[%s17566_s3 + $0x38] sm:$0xff]  ;;  %v14091_v26 = vld [vmem:[%s17566_s3 + $0x30] sm:$0xff] }
   0x6   :  { %59 = vst.msk [vmem:[#allocation3 + $0x8] sm:$0x3] %vm46_vm4, %v14796_v2  ;;  %v14096_v24 = vld [vmem:[%s17566_s3 + $0x158] sm:$0xff]  ;;  %284 = vmatpush.bf16.msra.mxu2 %v14092_v23  ;;  %v14095_v28 = vld [vmem:[%s17566_s3 + $0x150] sm:$0xff]  ;;  %v14090_v33 = vld [vmem:[%s17566_s3 + $0x28] sm:$0xff] }
   0x7   :  { %34 = vst.msk [vmem:[#allocation2] sm:$0x1] %vm33_vm0, %v14796_v2  ;;  %191 = vmatpush.bf16.msra.mxu0 %v14087_v7  ;;  %339 = vmatpush.bf16.msra.mxu3 %v14096_v24  ;;  %v14089_v35 = vld [vmem:[%s17566_s3 + $0x20] sm:$0xff]  ;;  %v14094_v41 = vld [vmem:[%s17566_s3 + $0x148] sm:$0xff]  ;;  %v14108_v42 = vld [vmem:[%s17566_s3 + $0x78] sm:$0xff] }
   0x8   :  { %35 = vst.msk [vmem:[#allocation2 + $0x10] sm:$0x1] %vm33_vm0, %v14796_v2  ;;  %232 = vmatpush.bf16.msra.mxu1 %v14083_v8  ;;  %v14093_v43 = vld [vmem:[%s17566_s3 + $0x140] sm:$0xff]  ;;  %v14107_v44 = vld [vmem:[%s17566_s3 + $0x70] sm:$0xff]  ;;  %v14100_v45 = vld [vmem:[%s17566_s3 + $0x58] sm:$0xff] }
   0x9   :  { %36 = vst.msk [vmem:[#allocation2 + $0x9] sm:$0x1] %vm33_vm0, %v14796_v2  ;;  %v14104_v46 = vld [vmem:[%s17566_s3 + $0x178] sm:$0xff]  ;;  %v14106_v47 = vld [vmem:[%s17566_s3 + $0x68] sm:$0xff]  ;;  %v14099_v49 = vld [vmem:[%s17566_s3 + $0x50] sm:$0xff] }
   0xa   :  { %105 = vrot.lane.b32.xlu1 %v100_v3, %s14795_s13  ;;  %37 = vst.msk [vmem:[#allocation2 + $0x19] sm:$0x1] %vm33_vm0, %v14796_v2  ;;  %285 = vmatpush.bf16.msra.mxu2 %v14091_v26  ;;  %v14112_v48 = vld [vmem:[%s17566_s3 + $0x198] sm:$0xff]  ;;  %v14103_v50 = vld [vmem:[%s17566_s3 + $0x170] sm:$0xff]  ;;  %v14105_v51 = vld [vmem:[%s17566_s3 + $0x60] sm:$0xff] }
   0xb   :  { %92 = vrot.lane.b32.xlu0 %v87_v4, %s14795_s13  ;;  %51 = vst.msk [vmem:[#allocation3 + $0x10] sm:$0x1] %vm33_vm0, %v14796_v2  ;;  %192 = vmatpush.bf16.msra.mxu0 %v14086_v9  ;;  %v14111_v52 = vld [vmem:[%s17566_s3 + $0x190] sm:$0xff]  ;;  %v14098_v53 = vld [vmem:[%s17566_s3 + $0x48] sm:$0xff]  ;;  %v14097_v56 = vld [vmem:[%s17566_s3 + $0x40] sm:$0xff] }
   0xc   :  { %53 = vst.msk [vmem:[#allocation3 + $0x19] sm:$0x1] %vm33_vm0, %v14796_v2  ;;  %233 = vmatpush.bf16.msra.mxu1 %v14082_v10  ;;  %340 = vmatpush.bf16.msra.mxu3 %v14095_v28  ;;  %v14102_v54 = vld [vmem:[%s17566_s3 + $0x168] sm:$0xff]  ;;  %v14101_v57 = vld [vmem:[%s17566_s3 + $0x160] sm:$0xff]  ;;  %v14116_v59 = vld [vmem:[%s17566_s3 + $0x98] sm:$0xff] }
   0xd   :  { %62 = vst.msk [vmem:[#allocation4] sm:$0x1] %vm33_vm0, %v14796_v2  ;;  %v14110_v55 = vld [vmem:[%s17566_s3 + $0x188] sm:$0xff]  ;;  %v14109_v58 = vld [vmem:[%s17566_s3 + $0x180] sm:$0xff]  ;;  %v14120_v60 = vld [vmem:[%s17566_s3 + $0x1b8] sm:$0xff] }
   0xe   :  { %63 = vst.msk [vmem:[#allocation4 + $0x10] sm:$0x1] %vm33_vm0, %v14796_v2  ;;  %286 = vmatpush.bf16.msra.mxu2 %v14090_v33  ;;  %v14115_v61 = vld [vmem:[%s17566_s3 + $0x90] sm:$0xff]  ;;  %v14124_v63 = vld [vmem:[%s17566_s3 + $0xb8] sm:$0xff]  ;;  %v14114_v1 = vld [vmem:[%s17566_s3 + $0x88] sm:$0xff] }
   0xf   :  { %64 = vst.msk [vmem:[#allocation4 + $0x9] sm:$0x1] %vm33_vm0, %v14796_v2  ;;  %193 = vmatpush.bf16.msra.mxu0 %v14085_v11  ;;  %v14119_v62 = vld [vmem:[%s17566_s3 + $0x1b0] sm:$0xff]  ;;  %v14113_v4 = vld [vmem:[%s17566_s3 + $0x80] sm:$0xff]  ;;  %v14122_v6 = vld [vmem:[%s17566_s3 + $0xa8] sm:$0xff] }
  0x10   :  { %65 = vst.msk [vmem:[#allocation4 + $0x19] sm:$0x1] %vm33_vm0, %v14796_v2  ;;  %234 = vmatpush.bf16.msra.mxu1 %v14081_v12  ;;  %341 = vmatpush.bf16.msra.mxu3 %v14094_v41  ;;  %v14123_v3 = vld [vmem:[%s17566_s3 + $0xb0] sm:$0xff]  ;;  %v14117_v5 = vld [vmem:[%s17566_s3 + $0x1a0] sm:$0xff]  ;;  %v14128_v7 = vld [vmem:[%s17566_s3 + $0x1d8] sm:$0xff] }
  0x11   :  { %74 = vst.msk [vmem:[#allocation5] sm:$0x1] %vm33_vm0, %v14796_v2  ;;  %v14121_v9 = vld [vmem:[%s17566_s3 + $0xa0] sm:$0xff]  ;;  %v14127_v10 = vld [vmem:[%s17566_s3 + $0x1d0] sm:$0xff]  ;;  %v14126_v11 = vld [vmem:[%s17566_s3 + $0x1c8] sm:$0xff] }
  0x12   :  { %75 = vst.msk [vmem:[#allocation5 + $0x10] sm:$0x1] %vm33_vm0, %v14796_v2  ;;  %287 = vmatpush.bf16.msra.mxu2 %v14089_v35  ;;  %v14140_v12 = vld [vmem:[%s17566_s3 + $0xf8] sm:$0xff]  ;;  %v14137_v23 = vld [vmem:[%s17566_s3 + $0xe0] sm:$0xff]  ;;  %v14143_v24 = vld [vmem:[%s17566_s3 + $0x210] sm:$0xff] }
  0x13   :  { %76 = vst.msk [vmem:[#allocation5 + $0x9] sm:$0x1] %vm33_vm0, %v14796_v2  ;;  %393 = vmatpush.bf16.msrb.mxu0 %v14100_v45  ;;  %v14130_v26 = vld [vmem:[%s17566_s3 + $0xc8] sm:$0xff]  ;;  %v14152_v35 = vld [vmem:[%s17566_s3 + $0x238] sm:$0xff]  ;;  %v14149_v45 = vld [vmem:[%s17566_s3 + $0x220] sm:$0xff] }
  0x14   :  { %77 = vst.msk [vmem:[#allocation5 + $0x19] sm:$0x1] %vm33_vm0, %v14796_v2  ;;  %342 = vmatpush.bf16.msra.mxu3 %v14093_v43  ;;  %447 = vmatpush.bf16.msrb.mxu1 %v14104_v46  ;;  %v14146_v41 = vld [vmem:[%s17566_s3 + $0x108] sm:$0xff] }
  0x15   :  { %39 = vst.msk [vmem:[#allocation2] sm:$0xff] %vm38_vm1, %v14796_v2 }
  0x16   :  { %41 = vst.msk [vmem:[#allocation2 + $0x8] sm:$0x3] %vm40_vm2, %v14796_v2  ;;  %499 = vmatpush.bf16.msrb.mxu2 %v14108_v42  ;;  %v14150_v42 = vld [vmem:[%s17566_s3 + $0x228] sm:$0xff] }
  0x17   :  { %45 = vst.msk [vmem:[#allocation2] sm:$0xff] %vm44_vm3, %v14796_v2  ;;  %394 = vmatpush.bf16.msrb.mxu0 %v14099_v49 }
  0x18   :  { %47 = vst.msk [vmem:[#allocation2 + $0x8] sm:$0x3] %vm46_vm4, %v14796_v2  ;;  %551 = vmatpush.bf16.msrb.mxu3 %v14112_v48  ;;  %448 = vmatpush.bf16.msrb.mxu1 %v14103_v50 }
  0x19   :  { %42 = vst.msk [vmem:[#allocation2 + $0x10] sm:$0xff] %vm38_vm1, %v14796_v2 }
  0x1a   :  { %43 = vst.msk [vmem:[#allocation2 + $0x18] sm:$0x3] %vm40_vm2, %v14796_v2  ;;  %500 = vmatpush.bf16.msrb.mxu2 %v14107_v44  ;;  %v14145_v44 = vld [vmem:[%s17566_s3 + $0x100] sm:$0xff] }
  0x1b   :  { %56 = vst.msk [vmem:[#allocation3 + $0x10] sm:$0xff] %vm38_vm1, %v14796_v2  ;;  %395 = vmatpush.bf16.msrb.mxu0 %v14098_v53 }
  0x1c   :  { %57 = vst.msk [vmem:[#allocation3 + $0x18] sm:$0x3] %vm40_vm2, %v14796_v2  ;;  %552 = vmatpush.bf16.msrb.mxu3 %v14111_v52  ;;  %449 = vmatpush.bf16.msrb.mxu1 %v14102_v54 }
  0x1d   :  { %66 = vst.msk [vmem:[#allocation4] sm:$0xff] %vm38_vm1, %v14796_v2 }
  0x1e   :  { %67 = vst.msk [vmem:[#allocation4 + $0x8] sm:$0x3] %vm40_vm2, %v14796_v2  ;;  %501 = vmatpush.bf16.msrb.mxu2 %v14106_v47 }
  0x1f   :  { %68 = vst.msk [vmem:[#allocation4 + $0x10] sm:$0xff] %vm38_vm1, %v14796_v2  ;;  %396 = vmatpush.bf16.msrb.mxu0 %v14097_v56 }
  0x20   :  { %69 = vst.msk [vmem:[#allocation4 + $0x18] sm:$0x3] %vm40_vm2, %v14796_v2  ;;  %553 = vmatpush.bf16.msrb.mxu3 %v14110_v55  ;;  %450 = vmatpush.bf16.msrb.mxu1 %v14101_v57 }
  0x21   :  { %78 = vst.msk [vmem:[#allocation5] sm:$0xff] %vm38_vm1, %v14796_v2 }
  0x22   :  { %79 = vst.msk [vmem:[#allocation5 + $0x8] sm:$0x3] %vm40_vm2, %v14796_v2  ;;  %502 = vmatpush.bf16.msrb.mxu2 %v14105_v51 }
  0x23   :  { %80 = vst.msk [vmem:[#allocation5 + $0x10] sm:$0xff] %vm38_vm1, %v14796_v2 }
  0x24   :  { %81 = vst.msk [vmem:[#allocation5 + $0x18] sm:$0x3] %vm40_vm2, %v14796_v2  ;;  %554 = vmatpush.bf16.msrb.mxu3 %v14109_v58 }
  0x25   :  { %48 = vst.msk [vmem:[#allocation2 + $0x10] sm:$0xff] %vm44_vm3, %v14796_v2 }
  0x26   :  { %49 = vst.msk [vmem:[#allocation2 + $0x18] sm:$0x3] %vm46_vm4, %v14796_v2 }
  0x27   :  { %60 = vst.msk [vmem:[#allocation3 + $0x10] sm:$0xff] %vm44_vm3, %v14796_v2 }
  0x28   :  { %61 = vst.msk [vmem:[#allocation3 + $0x18] sm:$0x3] %vm46_vm4, %v14796_v2 }
  0x29   :  { %70 = vst.msk [vmem:[#allocation4] sm:$0xff] %vm44_vm3, %v14796_v2 }
  0x2a   :  { %71 = vst.msk [vmem:[#allocation4 + $0x8] sm:$0x3] %vm46_vm4, %v14796_v2 }
  0x2b   :  { %72 = vst.msk [vmem:[#allocation4 + $0x10] sm:$0xff] %vm44_vm3, %v14796_v2 }
  0x2c   :  { %73 = vst.msk [vmem:[#allocation4 + $0x18] sm:$0x3] %vm46_vm4, %v14796_v2 }
  0x2d   :  { %82 = vst.msk [vmem:[#allocation5] sm:$0xff] %vm44_vm3, %v14796_v2 }
  0x2e   :  { %83 = vst.msk [vmem:[#allocation5 + $0x8] sm:$0x3] %vm46_vm4, %v14796_v2 }
  0x2f   :  { %84 = vst.msk [vmem:[#allocation5 + $0x10] sm:$0xff] %vm44_vm3, %v14796_v2 }
  0x30   :  { %85 = vst.msk [vmem:[#allocation5 + $0x18] sm:$0x3] %vm46_vm4, %v14796_v2  ;;  %v14118_v2 = vld [vmem:[%s17566_s3 + $0x1a8] sm:$0xff] }
  0x74   :  { %v104_v13 = vpop.permute.xlu1 %103 }
  0x75   :  { %v91_v14 = vpop.permute.xlu0 %90  ;;  %109 = vst.msk [vmem:[#allocation3 + $0x1] sm:$0xff] %vm96_vm5, %v104_v13  ;;  %v14125_v13 = vld [vmem:[%s17566_s3 + $0x1c0] sm:$0xff] }
  0x76   :  { %97 = vst.msk [vmem:[#allocation2 + $0x1] sm:$0xff] %vm96_vm5, %v91_v14  ;;  %v14139_v14 = vld [vmem:[%s17566_s3 + $0xf0] sm:$0xff] }
  0x7c   :  { %v106_v15 = vpop.permute.xlu1 %105  ;;  %v132_v17 = vld [vmem:[#allocation3] sm:$0xff] }
  0x7d   :  { %v93_v16 = vpop.permute.xlu0 %92  ;;  %110 = vst.msk [vmem:[#allocation3 + $0x11] sm:$0xff] %vm96_vm5, %v106_v15  ;;  %v123_v20 = vld [vmem:[#allocation2] sm:$0xff]  ;;  %v14132_v15 = vld [vmem:[%s17566_s3 + $0xd8] sm:$0xff] }
  0x7e   :  { %98 = vst.msk [vmem:[#allocation2 + $0x11] sm:$0xff] %vm96_vm5, %v93_v16  ;;  %v126_v29 = vld [vmem:[#allocation2 + $0x1] sm:$0xff]  ;;  %v14136_v16 = vld [vmem:[%s17566_s3 + $0x1f8] sm:$0xff] }
  0x7f   :  { %v3169_v30 = vld [vmem:[#allocation3 + $0x1] sm:$0xff] }
  0x80   :  { %v138_v37 = vld [vmem:[#allocation3 + $0x2] sm:$0xff] }
  0x81   :  { %v129_v39 = vld [vmem:[#allocation2 + $0x2] sm:$0xff] }
  0x84   :  { %v133_v18 = vld [vmem:[#allocation3 + $0x10] sm:$0xff] }
  0x85   :  { %v134_v19 = vpack.c.bf16 %v133_v18, %v132_v17  ;;  %v124_v21 = vld [vmem:[#allocation2 + $0x10] sm:$0xff]  ;;  %v14138_v18 = vld [vmem:[%s17566_s3 + $0xe8] sm:$0xff] }
  0x86   :  { %v125_v22 = vpack.c.bf16 %v124_v21, %v123_v20  ;;  %v127_v25 = vld [vmem:[#allocation2 + $0x11] sm:$0xff] }
  0x87   :  { %414 = vrot.lane.b32.xlu1 %v134_v19, %s14797_s11  ;;  %9839 = vmatmul.msk.bf16.vlgmr.msra.gmra.mxu0 %vm182_vm6, %v134_v19  ;;  %v3170_v27 = vld [vmem:[#allocation3 + $0x11] sm:$0xff]  ;;  %v14958_v31 = vpack.c.bf16 %v127_v25, %v126_v29  ;;  %v14142_v29 = vld [vmem:[%s17566_s3 + $0x208] sm:$0xff] }
  0x88   :  { %360 = vrot.lane.b32.xlu0 %v125_v22, %s14797_s11  ;;  %251 = vrot.lane.b32.xlu2 %v125_v22, %s14798_s12  ;;  %v14960_v32 = vpack.c.bf16 %v3170_v27, %v3169_v30  ;;  %v139_v34 = vld [vmem:[#allocation3 + $0x12] sm:$0xff]  ;;  %v14134_v27 = vld [vmem:[%s17566_s3 + $0x1e8] sm:$0xff]  ;;  %v14129_v30 = vld [vmem:[%s17566_s3 + $0xc0] sm:$0xff] }
  0x89   :  { %9856 = vmatmul.msk.bf16.vlgmr.msra.gmra.mxu1 %vm182_vm6, %v125_v22  ;;  %v130_v36 = vld [vmem:[#allocation2 + $0x12] sm:$0xff]  ;;  %v14973_v38 = vpack.c.bf16 %v139_v34, %v138_v37  ;;  %606 = vmatpush.bf16.msra.mxu0 %v14116_v59 }
  0x8a   :  { %v14975_v40 = vpack.c.bf16 %v130_v36, %v129_v39  ;;  %661 = vmatpush.bf16.msra.mxu1 %v14120_v60  ;;  %v14131_v21 = vld [vmem:[%s17566_s3 + $0xd0] sm:$0xff]  ;;  %v14148_v34 = vld [vmem:[%s17566_s3 + $0x118] sm:$0xff] }
  0x8b   :  { %v14135_v22 = vld [vmem:[%s17566_s3 + $0x1f0] sm:$0xff] }
  0x8c   :  { %v14147_v37 = vld [vmem:[%s17566_s3 + $0x110] sm:$0xff] }
  0x8d   :  { %607 = vmatpush.bf16.msra.mxu0 %v14115_v61  ;;  %v14151_v39 = vld [vmem:[%s17566_s3 + $0x230] sm:$0xff] }
  0x8e   :  { %662 = vmatpush.bf16.msra.mxu1 %v14119_v62 }
  0x8f   :  { %682 = vrot.lane.b32.xlu1 %v14958_v31, %s14797_s11 }
  0x90   :  { %628 = vrot.lane.b32.xlu0 %v14960_v32, %s14798_s12  ;;  %306 = vrot.lane.b32.xlu2 %v134_v19, %s14798_s12  ;;  %v14144_v19 = vld [vmem:[%s17566_s3 + $0x218] sm:$0xff] }
  0x91   :  { %608 = vmatpush.bf16.msra.mxu0 %v14114_v1 }
  0x92   :  { %663 = vmatpush.bf16.msra.mxu1 %v14118_v2 }
  0x95   :  { %609 = vmatpush.bf16.msra.mxu0 %v14113_v4 }
  0x96   :  { %664 = vmatpush.bf16.msra.mxu1 %v14117_v5 }
  0x97   :  { %950 = vrot.lane.b32.xlu1 %v14973_v38, %s14798_s12 }
  0x98   :  { %895 = vrot.lane.b32.xlu0 %v14975_v40, %s14798_s12  ;;  %573 = vrot.lane.b32.xlu2 %v14958_v31, %s14798_s12 }
  0xa0   :  { %1058 = vrot.lane.b32.xlu0 %v14973_v38, %s14797_s11  ;;  %736 = vrot.lane.b32.xlu2 %v14960_v32, %s14797_s11 }
  0xa8   :  { %1004 = vrot.lane.b32.xlu2 %v14975_v40, %s14797_s11 }
  0xe2   :  { %v252_v0 = vpop.permute.xlu2 %251 }
  0xe3   :  { %9881 = vmatmul.msk.bf16.vlgmr.msra.gmra.mxu2 %vm182_vm6, %v252_v0 }
  0xe4   :  { %715 = vmatpush.bf16.msra.mxu2 %v14124_v63 }
  0xe8   :  { %716 = vmatpush.bf16.msra.mxu2 %v14123_v3 }
  0xea   :  { %v307_v8 = vpop.permute.xlu2 %306 }
  0xeb   :  { %9906 = vmatmul.msk.bf16.vlgmr.msra.gmra.mxu3 %vm182_vm6, %v307_v8 }
  0xec   :  { %717 = vmatpush.bf16.msra.mxu2 %v14122_v6  ;;  %769 = vmatpush.bf16.msra.mxu3 %v14128_v7 }
  0xf0   :  { %718 = vmatpush.bf16.msra.mxu2 %v14121_v9  ;;  %770 = vmatpush.bf16.msra.mxu3 %v14127_v10 }
  0xf2   :  { %v574_v25 = vpop.permute.xlu2 %573 }
  0xf3   :  { %9981 = vmatmul.msk.bf16.vlgmr.msrb.gmra.mxu2 %vm182_vm6, %v14958_v31  ;;  %v14133_v31 = vld [vmem:[%s17566_s3 + $0x1e0] sm:$0xff] }
  0xf4   :  { %771 = vmatpush.bf16.msra.mxu3 %v14126_v11  ;;  %928 = vmatpush.bf16.msrb.mxu2 %v14140_v12 }
  0xf8   :  { %772 = vmatpush.bf16.msra.mxu3 %v14125_v13  ;;  %929 = vmatpush.bf16.msrb.mxu2 %v14139_v14 }
  0xf9   :  { %v415_v17 = vpop.permute.xlu1 %414 }
  0xfa   :  { %v361_v20 = vpop.permute.xlu0 %360  ;;  %9956 = vmatmul.msk.bf16.vlgmr.msrb.gmra.mxu1 %vm182_vm6, %v415_v17  ;;  %v737_v36 = vpop.permute.xlu2 %736 }
  0xfb   :  { %9931 = vmatmul.msk.bf16.vlgmr.msrb.gmra.mxu0 %vm182_vm6, %v361_v20  ;;  %10006 = vmatmul.msk.bf16.vlgmr.msrb.gmra.mxu3 %vm182_vm6, %v14960_v32  ;;  %v14141_v32 = vld [vmem:[%s17566_s3 + $0x200] sm:$0xff] }
  0xfc   :  { %821 = vmatpush.bf16.msrb.mxu0 %v14132_v15  ;;  %873 = vmatpush.bf16.msrb.mxu1 %v14136_v16 }
  0xfd   :  { %930 = vmatpush.bf16.msrb.mxu2 %v14138_v18  ;;  %983 = vmatpush.bf16.msrb.mxu3 %v14144_v19 }
 0x100   :  { %822 = vmatpush.bf16.msrb.mxu0 %v14131_v21  ;;  %874 = vmatpush.bf16.msrb.mxu1 %v14135_v22 }
 0x101   :  { %v683_v28 = vpop.permute.xlu1 %682  ;;  %931 = vmatpush.bf16.msrb.mxu2 %v14137_v23  ;;  %984 = vmatpush.bf16.msrb.mxu3 %v14143_v24 }
 0x102   :  { %v629_v33 = vpop.permute.xlu0 %628  ;;  %v1005_v48 = vpop.permute.xlu2 %1004 }
 0x103   :  { %10081 = vmatmul.msk.bf16.vlgmr.msra.gmra.mxu2 %vm182_vm6, %v683_v28 }
 0x104   :  { %823 = vmatpush.bf16.msrb.mxu0 %v14130_v26  ;;  %875 = vmatpush.bf16.msrb.mxu1 %v14134_v27  ;;  %v195_v50 = vpop.f32.mrf.mxu0 }
 0x105   :  { %985 = vmatpush.bf16.msrb.mxu3 %v14142_v29 }
 0x106   :  { %v236_v49 = vpop.f32.mrf.mxu1 }
 0x108   :  { %824 = vmatpush.bf16.msrb.mxu0 %v14129_v30  ;;  %876 = vmatpush.bf16.msrb.mxu1 %v14133_v31 }
 0x109   :  { %986 = vmatpush.bf16.msrb.mxu3 %v14141_v32  ;;  %v951_v46 = vpop.permute.xlu1 %950 }
 0x10a   :  { %10056 = vmatmul.msk.bf16.vlgmr.msra.gmra.mxu1 %vm182_vm6, %v629_v33  ;;  %v896_v43 = vpop.permute.xlu0 %895 }
 0x10b   :  { %10031 = vmatmul.msk.bf16.vlgmr.msra.gmra.mxu0 %vm182_vm6, %v574_v25  ;;  %10106 = vmatmul.msk.bf16.vlgmr.msra.gmra.mxu3 %vm182_vm6, %v737_v36 }
 0x10c   :  { %1037 = vmatpush.bf16.msra.mxu0 %v14148_v34  ;;  %1091 = vmatpush.bf16.msra.mxu1 %v14152_v35  ;;  %v197_v55 = vpop.f32.mrf.mxu0 }
 0x10e   :  { %v238_v54 = vpop.f32.mrf.mxu1 }
 0x10f   :  { %v239_v1 = vadd.f32 %v238_v54, %v197_v55 }
 0x110   :  { %1038 = vmatpush.bf16.msra.mxu0 %v14147_v37  ;;  %1092 = vmatpush.bf16.msra.mxu1 %v14151_v39 }
 0x112   :  { %v1059_v47 = vpop.permute.xlu0 %1058 }
 0x113   :  { %10181 = vmatmul.msk.bf16.vlgmr.msrb.gmra.mxu2 %vm182_vm6, %v896_v43 }
 0x114   :  { %1039 = vmatpush.bf16.msra.mxu0 %v14146_v41  ;;  %1093 = vmatpush.bf16.msra.mxu1 %v14150_v42 }
 0x118   :  { %1040 = vmatpush.bf16.msra.mxu0 %v14145_v44  ;;  %1094 = vmatpush.bf16.msra.mxu1 %v14149_v45 }
 0x11a   :  { %10156 = vmatmul.msk.bf16.vlgmr.msrb.gmra.mxu1 %vm182_vm6, %v14973_v38 }
 0x11b   :  { %10131 = vmatmul.msk.bf16.vlgmr.msrb.gmra.mxu0 %vm182_vm6, %v14975_v40  ;;  %10206 = vmatmul.msk.bf16.vlgmr.msrb.gmra.mxu3 %vm182_vm6, %v951_v46  ;;  %v237_v40 = vadd.f32 %v236_v49, %v195_v50  ;;  %v14769_v46 = vld [vmem:[%s17567_s4] ss:$0 sm:$0xff] }
 0x12a   :  { %10256 = vmatmul.msk.bf16.vlgmr.msra.gmra.mxu1 %vm182_vm6, %v1059_v47 }
 0x12b   :  { %10231 = vmatmul.msk.bf16.vlgmr.msra.gmra.mxu0 %vm182_vm6, %v1005_v48 }
 0x166   :  { %v289_v51 = vpop.f32.mrf.mxu2 }
 0x167   :  { %v294_v59 = vadd.f32 %v289_v51, %v237_v40  ;;  %v14156_v40 = vld [vmem:[%s17568_s5 + $0x18] sm:$0xff] }
 0x168   :  { %1222 = vmatpush.bf16.msra.mxu3 %v14156_v40 }
 0x16e   :  { %v291_v52 = vpop.f32.mrf.mxu2  ;;  %v344_v53 = vpop.f32.mrf.mxu3 }
 0x16f   :  { %v349_v60 = vadd.f32 %v344_v53, %v294_v59  ;;  %v295_v3 = vadd.f32 %v291_v52, %v239_v1  ;;  %v14168_v59 = vld [vmem:[%s17568_s5 + $0x78] sm:$0xff]  ;;  %v14165_v1 = vld [vmem:[%s17568_s5 + $0x60] sm:$0xff] }
 0x170   :  { %1326 = vmatpush.bf16.msrb.mxu1 %v14168_v59 }
 0x176   :  { %v346_v56 = vpop.f32.mrf.mxu3  ;;  %v504_v57 = vpop.f32.mrf.mxu2 }
 0x177   :  { %v452_v38 = vpop.f32.mrf.mxu1  ;;  %v350_v5 = vadd.f32 %v346_v56, %v295_v3  ;;  %v14164_v3 = vld [vmem:[%s17568_s5 + $0x58] sm:$0xff] }
 0x178   :  { %v398_v58 = vpop.f32.mrf.mxu0  ;;  %1274 = vmatpush.bf16.msrb.mxu0 %v14164_v3 }
 0x179   :  { %v403_v62 = vadd.f32 %v398_v58, %v349_v60  ;;  %v14155_v60 = vld [vmem:[%s17568_s5 + $0x10] sm:$0xff] }
 0x17a   :  { %1223 = vmatpush.bf16.msra.mxu3 %v14155_v60 }
 0x17b   :  { %v457_v4 = vadd.f32 %v452_v38, %v403_v62  ;;  %v14154_v62 = vld [vmem:[%s17568_s5 + $0x8] sm:$0xff] }
 0x17d   :  { %v509_v7 = vadd.f32 %v504_v57, %v457_v4  ;;  %v14184_v4 = vld [vmem:[%s17568_s5 + $0xf8] sm:$0xff] }
 0x17e   :  { %v556_v61 = vpop.f32.mrf.mxu3  ;;  %v506_v2 = vpop.f32.mrf.mxu2  ;;  %1224 = vmatpush.bf16.msra.mxu3 %v14154_v62 }
 0x17f   :  { %v454_v63 = vpop.f32.mrf.mxu1  ;;  %v561_v11 = vadd.f32 %v556_v61, %v509_v7  ;;  %v14167_v61 = vld [vmem:[%s17568_s5 + $0x70] sm:$0xff]  ;;  %v14162_v7 = vld [vmem:[%s17568_s5 + $0x48] sm:$0xff] }
 0x180   :  { %v400_v0 = vpop.f32.mrf.mxu0  ;;  %1327 = vmatpush.bf16.msrb.mxu1 %v14167_v61 }
 0x181   :  { %v404_v8 = vadd.f32 %v400_v0, %v350_v5  ;;  %v14153_v0 = vld [vmem:[%s17568_s5] sm:$0xff]  ;;  %v14163_v5 = vld [vmem:[%s17568_s5 + $0x50] sm:$0xff] }
 0x182   :  { %1225 = vmatpush.bf16.msra.mxu3 %v14153_v0  ;;  %1275 = vmatpush.bf16.msrb.mxu0 %v14163_v5 }
 0x183   :  { %v458_v12 = vadd.f32 %v454_v63, %v404_v8  ;;  %v14166_v63 = vld [vmem:[%s17568_s5 + $0x68] sm:$0xff]  ;;  %v14161_v8 = vld [vmem:[%s17568_s5 + $0x40] sm:$0xff] }
 0x184   :  { %1328 = vmatpush.bf16.msrb.mxu1 %v14166_v63 }
 0x185   :  { %v510_v16 = vadd.f32 %v506_v2, %v458_v12 }
 0x186   :  { %v558_v6 = vpop.f32.mrf.mxu3  ;;  %v720_v13 = vpop.f32.mrf.mxu2  ;;  %1276 = vmatpush.bf16.msrb.mxu0 %v14162_v7 }
 0x187   :  { %v666_v9 = vpop.f32.mrf.mxu1  ;;  %v562_v20 = vadd.f32 %v558_v6, %v510_v16  ;;  %v14183_v6 = vld [vmem:[%s17568_s5 + $0xf0] sm:$0xff] }
 0x188   :  { %v611_v10 = vpop.f32.mrf.mxu0  ;;  %1329 = vmatpush.bf16.msrb.mxu1 %v14165_v1 }
 0x189   :  { %v616_v14 = vadd.f32 %v611_v10, %v561_v11 }
 0x18a   :  { %1277 = vmatpush.bf16.msrb.mxu0 %v14161_v8 }
 0x18b   :  { %v671_v19 = vadd.f32 %v666_v9, %v616_v14 }
 0x18c   :  { %1542 = vmatpush.bf16.msra.mxu1 %v14184_v4 }
 0x18d   :  { %v725_v21 = vadd.f32 %v720_v13, %v671_v19  ;;  %v14180_v19 = vld [vmem:[%s17568_s5 + $0xd8] sm:$0xff] }
 0x18e   :  { %v774_v15 = vpop.f32.mrf.mxu3  ;;  %v722_v23 = vpop.f32.mrf.mxu2  ;;  %1487 = vmatpush.bf16.msra.mxu0 %v14180_v19 }
 0x18f   :  { %v668_v17 = vpop.f32.mrf.mxu1  ;;  %v779_v27 = vadd.f32 %v774_v15, %v725_v21  ;;  %v14179_v21 = vld [vmem:[%s17568_s5 + $0xd0] sm:$0xff] }
 0x190   :  { %v613_v18 = vpop.f32.mrf.mxu0  ;;  %1543 = vmatpush.bf16.msra.mxu1 %v14183_v6 }
 0x191   :  { %v617_v22 = vadd.f32 %v613_v18, %v562_v20  ;;  %v14182_v20 = vld [vmem:[%s17568_s5 + $0xe8] sm:$0xff] }
 0x192   :  { %1488 = vmatpush.bf16.msra.mxu0 %v14179_v21 }
 0x193   :  { %v672_v28 = vadd.f32 %v668_v17, %v617_v22  ;;  %v14181_v22 = vld [vmem:[%s17568_s5 + $0xe0] sm:$0xff] }
 0x194   :  { %1544 = vmatpush.bf16.msra.mxu1 %v14182_v20 }
 0x195   :  { %v726_v30 = vadd.f32 %v722_v23, %v672_v28  ;;  %v14160_v23 = vld [vmem:[%s17568_s5 + $0x38] sm:$0xff] }
 0x196   :  { %v776_v25 = vpop.f32.mrf.mxu3  ;;  %v933_v33 = vpop.f32.mrf.mxu2  ;;  %1181 = vmatpush.bf16.msra.mxu2 %v14160_v23  ;;  %v14176_v28 = vld [vmem:[%s17568_s5 + $0xb8] sm:$0xff] }
 0x197   :  { %v878_v24 = vpop.f32.mrf.mxu1  ;;  %v780_v35 = vadd.f32 %v776_v25, %v726_v30  ;;  %v14159_v25 = vld [vmem:[%s17568_s5 + $0x30] sm:$0xff]  ;;  %1435 = vmatpush.bf16.msrb.mxu3 %v14176_v28  ;;  %v14190_v28 = vld [vmem:[%s17568_s5 + $0x128] sm:$0xff] }
 0x198   :  { %v826_v26 = vpop.f32.mrf.mxu0  ;;  %1545 = vmatpush.bf16.msra.mxu1 %v14181_v22  ;;  %v14175_v30 = vld [vmem:[%s17568_s5 + $0xb0] sm:$0xff] }
 0x199   :  { %v831_v29 = vadd.f32 %v826_v26, %v779_v27  ;;  %v14177_v26 = vld [vmem:[%s17568_s5 + $0xc0] sm:$0xff]  ;;  %v14158_v27 = vld [vmem:[%s17568_s5 + $0x28] sm:$0xff] }
 0x19a   :  { %1182 = vmatpush.bf16.msra.mxu2 %v14159_v25  ;;  %v14204_v25 = vld [vmem:[%s17568_s5 + $0x198] sm:$0xff] }
 0x19b   :  { %v883_v31 = vadd.f32 %v878_v24, %v831_v29  ;;  %v14178_v24 = vld [vmem:[%s17568_s5 + $0xc8] sm:$0xff]  ;;  %v14157_v29 = vld [vmem:[%s17568_s5 + $0x20] sm:$0xff]  ;;  %1436 = vmatpush.bf16.msrb.mxu3 %v14175_v30 }
 0x19c   :  { %1489 = vmatpush.bf16.msra.mxu0 %v14178_v24  ;;  %v14192_v24 = vld [vmem:[%s17568_s5 + $0x138] sm:$0xff]  ;;  %v14189_v30 = vld [vmem:[%s17568_s5 + $0x120] sm:$0xff] }
 0x19d   :  { %v938_v37 = vadd.f32 %v933_v33, %v883_v31  ;;  %v14172_v31 = vld [vmem:[%s17568_s5 + $0x98] sm:$0xff]  ;;  %v14171_v33 = vld [vmem:[%s17568_s5 + $0x90] sm:$0xff] }
 0x19e   :  { %v988_v36 = vpop.f32.mrf.mxu3  ;;  %v935_v47 = vpop.f32.mrf.mxu2  ;;  %1183 = vmatpush.bf16.msra.mxu2 %v14158_v27  ;;  %v14203_v27 = vld [vmem:[%s17568_s5 + $0x190] sm:$0xff] }
 0x19f   :  { %v880_v32 = vpop.f32.mrf.mxu1  ;;  %v993_v41 = vadd.f32 %v988_v36, %v938_v37  ;;  %v14170_v36 = vld [vmem:[%s17568_s5 + $0x88] sm:$0xff]  ;;  %v14169_v37 = vld [vmem:[%s17568_s5 + $0x80] sm:$0xff] }
 0x1a0   :  { %v828_v34 = vpop.f32.mrf.mxu0  ;;  %1490 = vmatpush.bf16.msra.mxu0 %v14177_v26  ;;  %v14191_v26 = vld [vmem:[%s17568_s5 + $0x130] sm:$0xff] }
 0x1a1   :  { %v832_v39 = vadd.f32 %v828_v34, %v780_v35  ;;  %v14173_v34 = vld [vmem:[%s17568_s5 + $0xa0] sm:$0xff] }
 0x1a2   :  { %1184 = vmatpush.bf16.msra.mxu2 %v14157_v29  ;;  %v14202_v29 = vld [vmem:[%s17568_s5 + $0x188] sm:$0xff] }
 0x1a3   :  { %v884_v42 = vadd.f32 %v880_v32, %v832_v39  ;;  %v14174_v32 = vld [vmem:[%s17568_s5 + $0xa8] sm:$0xff] }
 0x1a4   :  { %1437 = vmatpush.bf16.msrb.mxu3 %v14174_v32 }
 0x1a5   :  { %v939_v48 = vadd.f32 %v935_v47, %v884_v42 }
 0x1a6   :  { %v990_v50 = vpop.f32.mrf.mxu3  ;;  %1381 = vmatpush.bf16.msrb.mxu2 %v14172_v31  ;;  %v14201_v31 = vld [vmem:[%s17568_s5 + $0x180] sm:$0xff] }
 0x1a7   :  { %v1096_v44 = vpop.f32.mrf.mxu1  ;;  %v994_v52 = vadd.f32 %v990_v50, %v939_v48 }
 0x1a8   :  { %v1042_v43 = vpop.f32.mrf.mxu0  ;;  %1438 = vmatpush.bf16.msrb.mxu3 %v14173_v34  ;;  %v14220_v34 = vld [vmem:[%s17568_s5 + $0x218] sm:$0xff] }
 0x1a9   :  { %v1047_v45 = vadd.f32 %v1042_v43, %v993_v41  ;;  %v14188_v41 = vld [vmem:[%s17568_s5 + $0x118] sm:$0xff]  ;;  %v14187_v43 = vld [vmem:[%s17568_s5 + $0x110] sm:$0xff] }
 0x1aa   :  { %1382 = vmatpush.bf16.msrb.mxu2 %v14171_v33  ;;  %v14196_v33 = vld [vmem:[%s17568_s5 + $0x158] sm:$0xff] }
 0x1ab   :  { %v1101_v49 = vadd.f32 %v1096_v44, %v1047_v45  ;;  %v14186_v44 = vld [vmem:[%s17568_s5 + $0x108] sm:$0xff] }
 0x1ad   :  { %v1107_v51 = vadd.f32 %v14769_v46, %v1101_v49 }
 0x1ae   :  { %1383 = vmatpush.bf16.msrb.mxu2 %v14170_v36  ;;  %v14219_v36 = vld [vmem:[%s17568_s5 + $0x210] sm:$0xff] }
 0x1af   :  { %v1109_v53 = vmax.f32 %v1107_v51, 0.0  ;;  %v1098_v56 = vpop.f32.mrf.mxu1 }
 0x1b0   :  { %v1044_v54 = vpop.f32.mrf.mxu0 }
 0x1b1   :  { %v1048_v55 = vadd.f32 %v1044_v54, %v994_v52  ;;  %1113 = vrot.lane.b32.xlu1 %v1109_v53, %s14795_s13 }
 0x1b2   :  { %1384 = vmatpush.bf16.msrb.mxu2 %v14169_v37 }
 0x1b3   :  { %v1102_v38 = vadd.f32 %v1098_v56, %v1048_v55 }
 0x1b5   :  { %v1108_v57 = vadd.f32 %v14769_v46, %v1102_v38  ;;  %v14185_v46 = vld [vmem:[%s17568_s5 + $0x100] sm:$0xff] }
 0x1b7   :  { %v1110_v58 = vmax.f32 %v1108_v57, 0.0 }
 0x1b9   :  { %1115 = vrot.lane.b32.xlu2 %v1110_v58, %s14795_s13 }
 0x213   :  { %v1116_v2 = vpop.permute.xlu2 %1115 }
 0x214   :  { %1120 = vst.msk [vmem:[#allocation2 + $0x11] sm:$0xff] %vm96_vm5, %v1116_v2 }
 0x21b   :  { %v15232_v10 = vld [vmem:[#allocation2 + $0x11] sm:$0xff] }
 0x21c   :  { %v1122_v13 = vld [vmem:[#allocation2 + $0x10] sm:$0xff] }
 0x21d   :  { %v1128_v17 = vld [vmem:[#allocation2 + $0x12] sm:$0xff] }
 0x223   :  { %v1114_v9 = vpop.permute.xlu1 %1113 }
 0x224   :  { %1119 = vst.msk [vmem:[#allocation2 + $0x1] sm:$0xff] %vm96_vm5, %v1114_v9  ;;  %v14770_v9 = vld [vmem:[%s17569_s6] ss:$0 sm:$0xff] }
 0x22b   :  { %v15234_v11 = vld [vmem:[#allocation2 + $0x1] sm:$0xff] }
 0x22c   :  { %v1121_v12 = vld [vmem:[#allocation2] sm:$0xff]  ;;  %v1126_v14 = vpack.c.bf16 %v15232_v10, %v15234_v11 }
 0x22d   :  { %v1123_v15 = vpack.c.bf16 %v1122_v13, %v1121_v12  ;;  %v1127_v16 = vld [vmem:[#allocation2 + $0x2] sm:$0xff] }
 0x22e   :  { %1348 = vrot.lane.b32.xlu1 %v1126_v14, %s14798_s12  ;;  %10348 = vmatmul.msk.bf16.vlgmr.msrb.gmra.mxu1 %vm182_vm6, %v1126_v14  ;;  %v1129_v18 = vpack.c.bf16 %v1128_v17, %v1127_v16 }
 0x22f   :  { %1241 = vrot.lane.b32.xlu2 %v1123_v15, %s14797_s11  ;;  %1148 = vrot.lane.b32.xlu0 %v1123_v15, %s14798_s12 }
 0x230   :  { %10298 = vmatmul.msk.bf16.vlgmr.msra.gmra.mxu3 %vm182_vm6, %v1123_v15 }
 0x231   :  { %1687 = vmatpush.bf16.msra.mxu3 %v14196_v33 }
 0x236   :  { %1563 = vrot.lane.b32.xlu1 %v1129_v18, %s14797_s11 }
 0x237   :  { %1509 = vrot.lane.b32.xlu2 %v1129_v18, %s14798_s12  ;;  %1402 = vrot.lane.b32.xlu0 %v1126_v14, %s14797_s11 }
 0x289   :  { %v1242_v35 = vpop.permute.xlu2 %1241 }
 0x28a   :  { %10323 = vmatmul.msk.bf16.vlgmr.msrb.gmra.mxu0 %vm182_vm6, %v1242_v35  ;;  %v14195_v35 = vld [vmem:[%s17568_s5 + $0x150] sm:$0xff] }
 0x28b   :  { %1728 = vmatpush.bf16.msrb.mxu0 %v14192_v24  ;;  %1688 = vmatpush.bf16.msra.mxu3 %v14195_v35 }
 0x28f   :  { %1729 = vmatpush.bf16.msrb.mxu0 %v14191_v26 }
 0x291   :  { %v1510_v39 = vpop.permute.xlu2 %1509 }
 0x292   :  { %10448 = vmatmul.msk.bf16.vlgmr.msra.gmra.mxu1 %vm182_vm6, %v1510_v39  ;;  %v14194_v39 = vld [vmem:[%s17568_s5 + $0x148] sm:$0xff] }
 0x293   :  { %1730 = vmatpush.bf16.msrb.mxu0 %v14190_v28  ;;  %1689 = vmatpush.bf16.msra.mxu3 %v14194_v39  ;;  %v14771_v39 = vld [vmem:[%s17569_s6 + $0x1] ss:$0 sm:$0xff] }
 0x297   :  { %1731 = vmatpush.bf16.msrb.mxu0 %v14189_v30 }
 0x29a   :  { %10423 = vmatmul.msk.bf16.vlgmr.msra.gmra.mxu0 %vm182_vm6, %v1129_v18 }
 0x2a0   :  { %v1349_v47 = vpop.permute.xlu1 %1348 }
 0x2a1   :  { %v1149_v42 = vpop.permute.xlu0 %1148 }
 0x2a2   :  { %10281 = vmatmul.msk.bf16.vlgmr.msra.gmra.mxu2 %vm182_vm6, %v1149_v42 }
 0x2a3   :  { %1596 = vmatpush.bf16.msra.mxu2 %v14188_v41  ;;  %v14193_v41 = vld [vmem:[%s17568_s5 + $0x140] sm:$0xff] }
 0x2a4   :  { %1690 = vmatpush.bf16.msra.mxu3 %v14193_v41 }
 0x2a7   :  { %1597 = vmatpush.bf16.msra.mxu2 %v14187_v43 }
 0x2a8   :  { %v1564_v48 = vpop.permute.xlu1 %1563 }
 0x2a9   :  { %v1403_v45 = vpop.permute.xlu0 %1402 }
 0x2aa   :  { %10398 = vmatmul.msk.bf16.vlgmr.msrb.gmra.mxu3 %vm182_vm6, %v1403_v45 }
 0x2ab   :  { %1598 = vmatpush.bf16.msra.mxu2 %v14186_v44  ;;  %v1331_v54 = vpop.f32.mrf.mxu1 }
 0x2af   :  { %1599 = vmatpush.bf16.msra.mxu2 %v14185_v46 }
 0x2b2   :  { %10373 = vmatmul.msk.bf16.vlgmr.msrb.gmra.mxu2 %vm182_vm6, %v1349_v47 }
 0x2b3   :  { %v1227_v50 = vpop.f32.mrf.mxu3  ;;  %v1333_v60 = vpop.f32.mrf.mxu1  ;;  %1832 = vmatpush.bf16.msrb.mxu2 %v14204_v25 }
 0x2b7   :  { %1833 = vmatpush.bf16.msrb.mxu2 %v14203_v27 }
 0x2bb   :  { %v1229_v55 = vpop.f32.mrf.mxu3  ;;  %1834 = vmatpush.bf16.msrb.mxu2 %v14202_v29 }
 0x2bf   :  { %1835 = vmatpush.bf16.msrb.mxu2 %v14201_v31 }
 0x2c2   :  { %10473 = vmatmul.msk.bf16.vlgmr.msra.gmra.mxu2 %vm182_vm6, %v1564_v48 }
 0x2c3   :  { %2048 = vmatpush.bf16.msra.mxu2 %v14220_v34 }
 0x2c7   :  { %2049 = vmatpush.bf16.msra.mxu2 %v14219_v36 }
 0x307   :  { %v1279_v51 = vpop.f32.mrf.mxu0 }
 0x30f   :  { %v1281_v38 = vpop.f32.mrf.mxu0  ;;  %v1547_v5 = vpop.f32.mrf.mxu1 }
 0x317   :  { %v1492_v0 = vpop.f32.mrf.mxu0  ;;  %v1549_v18 = vpop.f32.mrf.mxu1 }
 0x31f   :  { %v1494_v14 = vpop.f32.mrf.mxu0 }
 0x325   :  { %v1186_v49 = vpop.f32.mrf.mxu2 }
 0x326   :  { %v1228_v53 = vadd.f32 %v1227_v50, %v1186_v49 }
 0x328   :  { %v1284_v56 = vadd.f32 %v1279_v51, %v1228_v53  ;;  %v14218_v51 = vld [vmem:[%s17568_s5 + $0x208] sm:$0xff]  ;;  %v14208_v53 = vld [vmem:[%s17568_s5 + $0x1b8] sm:$0xff] }
 0x329   :  { %2050 = vmatpush.bf16.msra.mxu2 %v14218_v51  ;;  %1887 = vmatpush.bf16.msrb.mxu3 %v14208_v53 }
 0x32a   :  { %v1336_v40 = vadd.f32 %v1331_v54, %v1284_v56  ;;  %v14199_v54 = vld [vmem:[%s17568_s5 + $0x170] sm:$0xff]  ;;  %v14198_v56 = vld [vmem:[%s17568_s5 + $0x168] sm:$0xff] }
 0x32d   :  { %v1188_v52 = vpop.f32.mrf.mxu2  ;;  %v1440_v61 = vpop.f32.mrf.mxu3 }
 0x32e   :  { %v1230_v58 = vadd.f32 %v1229_v55, %v1188_v52  ;;  %v14217_v52 = vld [vmem:[%s17568_s5 + $0x200] sm:$0xff]  ;;  %v14206_v55 = vld [vmem:[%s17568_s5 + $0x1a8] sm:$0xff] }
 0x32f   :  { %2051 = vmatpush.bf16.msra.mxu2 %v14217_v52 }
 0x330   :  { %v1285_v62 = vadd.f32 %v1281_v38, %v1230_v58  ;;  %v14212_v38 = vld [vmem:[%s17568_s5 + $0x1d8] sm:$0xff]  ;;  %v14211_v58 = vld [vmem:[%s17568_s5 + $0x1d0] sm:$0xff] }
 0x331   :  { %1941 = vmatpush.bf16.msra.mxu0 %v14212_v38  ;;  %v14239_v38 = vld [vmem:[%s17568_s5 + $0x2b0] sm:$0xff] }
 0x332   :  { %v1337_v2 = vadd.f32 %v1333_v60, %v1285_v62  ;;  %v14216_v60 = vld [vmem:[%s17568_s5 + $0x1f8] sm:$0xff]  ;;  %v14215_v62 = vld [vmem:[%s17568_s5 + $0x1f0] sm:$0xff] }
 0x335   :  { %v1386_v57 = vpop.f32.mrf.mxu2  ;;  %v1442_v6 = vpop.f32.mrf.mxu3  ;;  %1942 = vmatpush.bf16.msra.mxu0 %v14211_v58  ;;  %v14238_v58 = vld [vmem:[%s17568_s5 + $0x2a8] sm:$0xff] }
 0x336   :  { %v1391_v59 = vadd.f32 %v1386_v57, %v1336_v40  ;;  %v14205_v57 = vld [vmem:[%s17568_s5 + $0x1a0] sm:$0xff] }
 0x337   :  { %v14197_v40 = vld [vmem:[%s17568_s5 + $0x160] sm:$0xff] }
 0x338   :  { %v1445_v63 = vadd.f32 %v1440_v61, %v1391_v59  ;;  %v14210_v59 = vld [vmem:[%s17568_s5 + $0x1c8] sm:$0xff]  ;;  %v14209_v61 = vld [vmem:[%s17568_s5 + $0x1c0] sm:$0xff] }
 0x339   :  { %1943 = vmatpush.bf16.msra.mxu0 %v14210_v59  ;;  %v14237_v59 = vld [vmem:[%s17568_s5 + $0x2a0] sm:$0xff] }
 0x33a   :  { %v1497_v4 = vadd.f32 %v1492_v0, %v1445_v63  ;;  %v14224_v63 = vld [vmem:[%s17568_s5 + $0x238] sm:$0xff] }
 0x33c   :  { %v1552_v8 = vadd.f32 %v1547_v5, %v1497_v4  ;;  %v14222_v4 = vld [vmem:[%s17568_s5 + $0x228] sm:$0xff] }
 0x33d   :  { %v1388_v1 = vpop.f32.mrf.mxu2  ;;  %1944 = vmatpush.bf16.msra.mxu0 %v14209_v61 }
 0x33e   :  { %v1392_v3 = vadd.f32 %v1388_v1, %v1337_v2  ;;  %v14214_v1 = vld [vmem:[%s17568_s5 + $0x1e8] sm:$0xff]  ;;  %v14223_v2 = vld [vmem:[%s17568_s5 + $0x230] sm:$0xff] }
 0x340   :  { %v1446_v7 = vadd.f32 %v1442_v6, %v1392_v3  ;;  %v14213_v3 = vld [vmem:[%s17568_s5 + $0x1e0] sm:$0xff] }
 0x341   :  { %v14221_v6 = vld [vmem:[%s17568_s5 + $0x220] sm:$0xff] }
 0x342   :  { %v1498_v16 = vadd.f32 %v1494_v14, %v1446_v7 }
 0x344   :  { %v1553_v19 = vadd.f32 %v1549_v18, %v1498_v16 }
 0x345   :  { %v1601_v12 = vpop.f32.mrf.mxu2 }
 0x346   :  { %v1606_v13 = vadd.f32 %v1601_v12, %v1552_v8 }
 0x348   :  { %v1612_v15 = vadd.f32 %v14770_v9, %v1606_v13 }
 0x34a   :  { %v1614_v17 = vmax.f32 %v1612_v15, 0.0 }
 0x34c   :  { %1618 = vrot.lane.b32.xlu0 %v1614_v17, %s14795_s13 }
 0x34d   :  { %v1603_v20 = vpop.f32.mrf.mxu2 }
 0x34e   :  { %v1607_v21 = vadd.f32 %v1603_v20, %v1553_v19 }
 0x350   :  { %v1613_v22 = vadd.f32 %v14770_v9, %v1607_v21 }
 0x352   :  { %v1615_v23 = vmax.f32 %v1613_v22, 0.0 }
 0x354   :  { %1620 = vrot.lane.b32.xlu1 %v1615_v23, %s14795_s13 }
 0x3be   :  { %v1619_v32 = vpop.permute.xlu0 %1618 }
 0x3bf   :  { %1624 = vst.msk [vmem:[#allocation5 + $0x1] sm:$0xff] %vm96_vm5, %v1619_v32 }
 0x3c6   :  { %v1621_v37 = vpop.permute.xlu1 %1620  ;;  %v1629_v42 = vld [vmem:[#allocation5 + $0x1] sm:$0xff] }
 0x3c7   :  { %1625 = vst.msk [vmem:[#allocation5 + $0x11] sm:$0xff] %vm96_vm5, %v1621_v37  ;;  %v1626_v44 = vld [vmem:[#allocation5] sm:$0xff] }
 0x3c8   :  { %v1632_v49 = vld [vmem:[#allocation5 + $0x2] sm:$0xff] }
 0x3ce   :  { %v1630_v43 = vld [vmem:[#allocation5 + $0x11] sm:$0xff] }
 0x3cf   :  { %v1627_v45 = vld [vmem:[#allocation5 + $0x10] sm:$0xff]  ;;  %v1631_v46 = vpack.c.bf16 %v1630_v43, %v1629_v42 }
 0x3d0   :  { %v1628_v47 = vpack.c.bf16 %v1627_v45, %v1626_v44  ;;  %v1633_v48 = vld [vmem:[#allocation5 + $0x12] sm:$0xff] }
 0x3d1   :  { %1854 = vrot.lane.b32.xlu0 %v1631_v46, %s14798_s12  ;;  %10573 = vmatmul.msk.bf16.vlgmr.msrb.gmra.mxu2 %vm182_vm6, %v1631_v46  ;;  %v1634_v50 = vpack.c.bf16 %v1633_v48, %v1632_v49 }
 0x3d2   :  { %1747 = vrot.lane.b32.xlu1 %v1628_v47, %s14797_s11  ;;  %1654 = vrot.lane.b32.xlu2 %v1628_v47, %s14798_s12 }
 0x3d3   :  { %10523 = vmatmul.msk.bf16.vlgmr.msrb.gmra.mxu0 %vm182_vm6, %v1628_v47 }
 0x3d9   :  { %1908 = vrot.lane.b32.xlu0 %v1631_v46, %s14797_s11 }
 0x3da   :  { %2069 = vrot.lane.b32.xlu1 %v1634_v50, %s14797_s11  ;;  %2015 = vrot.lane.b32.xlu2 %v1634_v50, %s14798_s12 }
 0x3e1   :  { %2127 = vrot.lane.b32.xlu0 %v15232_v10, %s14798_s12  ;;  %v14200_v10 = vld [vmem:[%s17568_s5 + $0x178] sm:$0xff] }
 0x3e2   :  { %2125 = vrot.lane.b32.xlu2 %v15234_v11, %s14798_s12  ;;  %v14207_v11 = vld [vmem:[%s17568_s5 + $0x1b0] sm:$0xff]  ;;  %1780 = vmatpush.bf16.msrb.mxu1 %v14200_v10 }
 0x3e3   :  { %1888 = vmatpush.bf16.msrb.mxu3 %v14207_v11 }
 0x3e6   :  { %1781 = vmatpush.bf16.msrb.mxu1 %v14199_v54  ;;  %v14228_v54 = vld [vmem:[%s17568_s5 + $0x258] sm:$0xff] }
 0x3e7   :  { %1889 = vmatpush.bf16.msrb.mxu3 %v14206_v55  ;;  %v14240_v55 = vld [vmem:[%s17568_s5 + $0x2b8] sm:$0xff] }
 0x3ea   :  { %1782 = vmatpush.bf16.msrb.mxu1 %v14198_v56  ;;  %v14227_v56 = vld [vmem:[%s17568_s5 + $0x250] sm:$0xff] }
 0x3eb   :  { %1890 = vmatpush.bf16.msrb.mxu3 %v14205_v57  ;;  %v14226_v57 = vld [vmem:[%s17568_s5 + $0x248] sm:$0xff] }
 0x3ee   :  { %1783 = vmatpush.bf16.msrb.mxu1 %v14197_v40  ;;  %v14225_v40 = vld [vmem:[%s17568_s5 + $0x240] sm:$0xff] }
 0x3f2   :  { %1993 = vmatpush.bf16.msra.mxu1 %v14216_v60 }
 0x3f6   :  { %1994 = vmatpush.bf16.msra.mxu1 %v14215_v62 }
 0x3fa   :  { %1995 = vmatpush.bf16.msra.mxu1 %v14214_v1 }
 0x3fe   :  { %1996 = vmatpush.bf16.msra.mxu1 %v14213_v3 }
 0x42c   :  { %v1655_v0 = vpop.permute.xlu2 %1654 }
 0x42d   :  { %10506 = vmatmul.msk.bf16.vlgmr.msra.gmra.mxu3 %vm182_vm6, %v1655_v0 }
 0x42e   :  { %2102 = vmatpush.bf16.msra.mxu3 %v14224_v63 }
 0x432   :  { %2103 = vmatpush.bf16.msra.mxu3 %v14223_v2 }
 0x434   :  { %v2016_v5 = vpop.permute.xlu2 %2015 }
 0x435   :  { %10673 = vmatmul.msk.bf16.vlgmr.msra.gmra.mxu2 %vm182_vm6, %v2016_v5 }
 0x436   :  { %2104 = vmatpush.bf16.msra.mxu3 %v14222_v4 }
 0x43a   :  { %2105 = vmatpush.bf16.msra.mxu3 %v14221_v6 }
 0x43c   :  { %v2126_v46 = vpop.permute.xlu2 %2125 }
 0x443   :  { %v1855_v7 = vpop.permute.xlu0 %1854 }
 0x444   :  { %v1748_v8 = vpop.permute.xlu1 %1747  ;;  %10598 = vmatmul.msk.bf16.vlgmr.msrb.gmra.mxu3 %vm182_vm6, %v1855_v7  ;;  %v14232_v7 = vld [vmem:[%s17568_s5 + $0x278] sm:$0xff] }
 0x445   :  { %10548 = vmatmul.msk.bf16.vlgmr.msrb.gmra.mxu1 %vm182_vm6, %v1748_v8  ;;  %2349 = vmatpush.bf16.msrb.mxu3 %v14240_v55  ;;  %v14236_v8 = vld [vmem:[%s17568_s5 + $0x298] sm:$0xff] }
 0x446   :  { %2245 = vmatpush.bf16.msrb.mxu1 %v14228_v54  ;;  %2204 = vmatpush.bf16.msrb.mxu0 %v14232_v7 }
 0x447   :  { %2297 = vmatpush.bf16.msrb.mxu2 %v14236_v8 }
 0x449   :  { %2350 = vmatpush.bf16.msrb.mxu3 %v14239_v38 }
 0x44a   :  { %2246 = vmatpush.bf16.msrb.mxu1 %v14227_v56 }
 0x44b   :  { %v1909_v9 = vpop.permute.xlu0 %1908 }
 0x44c   :  { %10623 = vmatmul.msk.bf16.vlgmr.msra.gmra.mxu0 %vm182_vm6, %v1909_v9  ;;  %v2070_v12 = vpop.permute.xlu1 %2069  ;;  %v14231_v9 = vld [vmem:[%s17568_s5 + $0x270] sm:$0xff] }
 0x44d   :  { %2351 = vmatpush.bf16.msrb.mxu3 %v14238_v58  ;;  %2205 = vmatpush.bf16.msrb.mxu0 %v14231_v9 }
 0x44e   :  { %2247 = vmatpush.bf16.msrb.mxu1 %v14226_v57 }
 0x450   :  { %v1733_v14 = vpop.f32.mrf.mxu0 }
 0x451   :  { %2352 = vmatpush.bf16.msrb.mxu3 %v14237_v59 }
 0x452   :  { %2248 = vmatpush.bf16.msrb.mxu1 %v14225_v40 }
 0x453   :  { %v2128_v10 = vpop.permute.xlu0 %2127 }
 0x454   :  { %10698 = vmatmul.msk.bf16.vlgmr.msra.gmra.mxu3 %vm182_vm6, %v2070_v12  ;;  %v1837_v16 = vpop.f32.mrf.mxu2  ;;  %v14235_v12 = vld [vmem:[%s17568_s5 + $0x290] sm:$0xff] }
 0x455   :  { %10648 = vmatmul.msk.bf16.vlgmr.msra.gmra.mxu1 %vm182_vm6, %v1634_v50  ;;  %2298 = vmatpush.bf16.msrb.mxu2 %v14235_v12 }
 0x458   :  { %v1735_v18 = vpop.f32.mrf.mxu0 }
 0x45c   :  { %v1839_v23 = vpop.f32.mrf.mxu2 }
 0x4b0   :  { %v1692_v13 = vpop.f32.mrf.mxu3 }
 0x4b1   :  { %v1734_v19 = vadd.f32 %v1733_v14, %v1692_v13  ;;  %v14248_v13 = vld [vmem:[%s17568_s5 + $0x2f8] sm:$0xff] }
 0x4b2   :  { %v14256_v14 = vld [vmem:[%s17568_s5 + $0x338] sm:$0xff]  ;;  %2458 = vmatpush.bf16.msra.mxu1 %v14248_v13 }
 0x4b3   :  { %2565 = vmatpush.bf16.msra.mxu3 %v14256_v14 }
 0x4b8   :  { %v1694_v15 = vpop.f32.mrf.mxu3  ;;  %v2053_v32 = vpop.f32.mrf.mxu2 }
 0x4b9   :  { %v1736_v26 = vadd.f32 %v1735_v18, %v1694_v15  ;;  %v14247_v15 = vld [vmem:[%s17568_s5 + $0x2f0] sm:$0xff]  ;;  %v14234_v18 = vld [vmem:[%s17568_s5 + $0x288] sm:$0xff] }
 0x4ba   :  { %2459 = vmatpush.bf16.msra.mxu1 %v14247_v15  ;;  %2299 = vmatpush.bf16.msrb.mxu2 %v14234_v18  ;;  %v112_v18 = vld [vmem:[%s17570_s2 + $0x8] sm:$0xff] }
 0x4c0   :  { %v2055_v49 = vpop.f32.mrf.mxu2 }
 0x4c2   :  { %v1785_v17 = vpop.f32.mrf.mxu1 }
 0x4c3   :  { %v1790_v20 = vadd.f32 %v1785_v17, %v1734_v19  ;;  %v14230_v17 = vld [vmem:[%s17568_s5 + $0x268] sm:$0xff]  ;;  %v14229_v19 = vld [vmem:[%s17568_s5 + $0x260] sm:$0xff] }
 0x4c4   :  { %2206 = vmatpush.bf16.msrb.mxu0 %v14230_v17 }
 0x4c5   :  { %v1842_v24 = vadd.f32 %v1837_v16, %v1790_v20  ;;  %v14255_v16 = vld [vmem:[%s17568_s5 + $0x330] sm:$0xff]  ;;  %v14233_v20 = vld [vmem:[%s17568_s5 + $0x280] sm:$0xff] }
 0x4c6   :  { %2566 = vmatpush.bf16.msra.mxu3 %v14255_v16  ;;  %2300 = vmatpush.bf16.msrb.mxu2 %v14233_v20  ;;  %v14264_v20 = vld [vmem:[%s17568_s5 + $0x378] sm:$0xff] }
 0x4c7   :  { %v1892_v21 = vpop.f32.mrf.mxu3 }
 0x4c8   :  { %v1897_v27 = vadd.f32 %v1892_v21, %v1842_v24  ;;  %2207 = vmatpush.bf16.msrb.mxu0 %v14229_v19  ;;  %v14244_v21 = vld [vmem:[%s17568_s5 + $0x2d8] sm:$0xff]  ;;  %v14254_v24 = vld [vmem:[%s17568_s5 + $0x328] sm:$0xff] }
 0x4c9   :  { %v1946_v25 = vpop.f32.mrf.mxu0 }
 0x4ca   :  { %v1787_v22 = vpop.f32.mrf.mxu1  ;;  %v1951_v30 = vadd.f32 %v1946_v25, %v1897_v27  ;;  %v14243_v25 = vld [vmem:[%s17568_s5 + $0x2d0] sm:$0xff]  ;;  %2567 = vmatpush.bf16.msra.mxu3 %v14254_v24  ;;  %v14262_v24 = vld [vmem:[%s17568_s5 + $0x368] sm:$0xff] }
 0x4cb   :  { %v1791_v28 = vadd.f32 %v1787_v22, %v1736_v26  ;;  %v14246_v22 = vld [vmem:[%s17568_s5 + $0x2e8] sm:$0xff]  ;;  %v14245_v26 = vld [vmem:[%s17568_s5 + $0x2e0] sm:$0xff]  ;;  %v14251_v27 = vld [vmem:[%s17568_s5 + $0x310] sm:$0xff] }
 0x4cc   :  { %2404 = vmatpush.bf16.msra.mxu0 %v14244_v21  ;;  %2460 = vmatpush.bf16.msra.mxu1 %v14246_v22  ;;  %v14276_v21 = vld [vmem:[%s17568_s5 + $0x3d8] sm:$0xff]  ;;  %v14263_v22 = vld [vmem:[%s17568_s5 + $0x370] sm:$0xff] }
 0x4cd   :  { %v1843_v33 = vadd.f32 %v1839_v23, %v1791_v28  ;;  %v14252_v23 = vld [vmem:[%s17568_s5 + $0x318] sm:$0xff]  ;;  %v14253_v28 = vld [vmem:[%s17568_s5 + $0x320] sm:$0xff] }
 0x4ce   :  { %2510 = vmatpush.bf16.msra.mxu2 %v14252_v23  ;;  %2568 = vmatpush.bf16.msra.mxu3 %v14253_v28  ;;  %v14275_v23 = vld [vmem:[%s17568_s5 + $0x3d0] sm:$0xff] }
 0x4cf   :  { %v1894_v29 = vpop.f32.mrf.mxu3 }
 0x4d0   :  { %v1898_v35 = vadd.f32 %v1894_v29, %v1843_v33  ;;  %2405 = vmatpush.bf16.msra.mxu0 %v14243_v25  ;;  %2461 = vmatpush.bf16.msra.mxu1 %v14245_v26  ;;  %v14242_v29 = vld [vmem:[%s17568_s5 + $0x2c8] sm:$0xff]  ;;  %v14260_v33 = vld [vmem:[%s17568_s5 + $0x358] sm:$0xff]  ;;  %v14261_v26 = vld [vmem:[%s17568_s5 + $0x360] sm:$0xff] }
 0x4d1   :  { %v1948_v36 = vpop.f32.mrf.mxu0  ;;  %v14274_v25 = vld [vmem:[%s17568_s5 + $0x3c8] sm:$0xff] }
 0x4d2   :  { %v1998_v31 = vpop.f32.mrf.mxu1  ;;  %v1952_v43 = vadd.f32 %v1948_v36, %v1898_v35  ;;  %2511 = vmatpush.bf16.msra.mxu2 %v14251_v27  ;;  %v14259_v36 = vld [vmem:[%s17568_s5 + $0x350] sm:$0xff]  ;;  %v14273_v27 = vld [vmem:[%s17568_s5 + $0x3c0] sm:$0xff] }
 0x4d3   :  { %v2003_v34 = vadd.f32 %v1998_v31, %v1951_v30  ;;  %v14250_v30 = vld [vmem:[%s17568_s5 + $0x308] sm:$0xff]  ;;  %v14241_v31 = vld [vmem:[%s17568_s5 + $0x2c0] sm:$0xff] }
 0x4d4   :  { %2406 = vmatpush.bf16.msra.mxu0 %v14242_v29 }
 0x4d5   :  { %v2058_v37 = vadd.f32 %v2053_v32, %v2003_v34  ;;  %v14249_v32 = vld [vmem:[%s17568_s5 + $0x300] sm:$0xff] }
 0x4d6   :  { %2512 = vmatpush.bf16.msra.mxu2 %v14250_v30 }
 0x4d7   :  { %v2107_v41 = vpop.f32.mrf.mxu3 }
 0x4d8   :  { %v2112_v42 = vadd.f32 %v2107_v41, %v2058_v37  ;;  %2407 = vmatpush.bf16.msra.mxu0 %v14241_v31  ;;  %v14258_v37 = vld [vmem:[%s17568_s5 + $0x348] sm:$0xff] }
 0x4da   :  { %v2119_v44 = vadd.f32 %v14771_v39, %v2112_v42  ;;  %v2000_v45 = vpop.f32.mrf.mxu1  ;;  %2513 = vmatpush.bf16.msra.mxu2 %v14249_v32  ;;  %v14257_v42 = vld [vmem:[%s17568_s5 + $0x340] sm:$0xff] }
 0x4db   :  { %v2004_v47 = vadd.f32 %v2000_v45, %v1952_v43 }
 0x4dc   :  { %v2131_v48 = vadd.f32 %v2126_v46, %v2119_v44 }
 0x4dd   :  { %v2059_v50 = vadd.f32 %v2055_v49, %v2004_v47 }
 0x4de   :  { %2135 = vrot.lane.b32.xlu1 %v2131_v48, %s14795_s13 }
 0x4df   :  { %v2109_v51 = vpop.f32.mrf.mxu3 }
 0x4e0   :  { %v2113_v52 = vadd.f32 %v2109_v51, %v2059_v50 }
 0x4e2   :  { %v2120_v53 = vadd.f32 %v14771_v39, %v2113_v52 }
 0x4e4   :  { %v2132_v11 = vadd.f32 %v2128_v10, %v2120_v53  ;;  %v111_v10 = vld [vmem:[%s17570_s2] sm:$0xff] }
 0x4e6   :  { %2137 = vrot.lane.b32.xlu2 %v2132_v11, %s14795_s13 }
 0x540   :  { %v2138_v60 = vpop.permute.xlu2 %2137 }
 0x541   :  { %2142 = vst.msk [vmem:[#allocation2 + $0x11] sm:$0xff] %vm96_vm5, %v2138_v60 }
 0x548   :  { %v2147_v62 = vld [vmem:[#allocation2 + $0x11] sm:$0xff] }
 0x549   :  { %v2144_v1 = vld [vmem:[#allocation2 + $0x10] sm:$0xff] }
 0x54a   :  { %v2150_v5 = vld [vmem:[#allocation2 + $0x12] sm:$0xff] }
 0x550   :  { %v2136_v61 = vpop.permute.xlu1 %2135 }
 0x551   :  { %2141 = vst.msk [vmem:[#allocation2 + $0x1] sm:$0xff] %vm96_vm5, %v2136_v61 }
 0x558   :  { %v2146_v63 = vld [vmem:[#allocation2 + $0x1] sm:$0xff] }
 0x559   :  { %v2143_v0 = vld [vmem:[#allocation2] sm:$0xff]  ;;  %v2148_v2 = vpack.c.bf16 %v2147_v62, %v2146_v63 }
 0x55a   :  { %v2145_v3 = vpack.c.bf16 %v2144_v1, %v2143_v0  ;;  %v2149_v4 = vld [vmem:[#allocation2 + $0x2] sm:$0xff] }
 0x55b   :  { %2371 = vrot.lane.b32.xlu2 %v2148_v2, %s14798_s12  ;;  %10799 = vmatmul.msk.bf16.vlgmr.msrb.gmra.mxu3 %vm182_vm6, %v2148_v2  ;;  %v15489_v6 = vpack.c.bf16 %v2150_v5, %v2149_v4 }
 0x55c   :  { %2264 = vrot.lane.b32.xlu1 %v2145_v3, %s14797_s11  ;;  %2171 = vrot.lane.b32.xlu0 %v2145_v3, %s14798_s12 }
 0x55d   :  { %10749 = vmatmul.msk.bf16.vlgmr.msrb.gmra.mxu1 %vm182_vm6, %v2145_v3  ;;  %v14772_v3 = vld [vmem:[%s17569_s6 + $0x2] ss:$0 sm:$0xff] }
 0x563   :  { %2586 = vrot.lane.b32.xlu2 %v15489_v6, %s14797_s11 }
 0x564   :  { %2425 = vrot.lane.b32.xlu1 %v2148_v2, %s14797_s11  ;;  %2532 = vrot.lane.b32.xlu0 %v15489_v6, %s14798_s12 }
 0x56b   :  { %115 = vrot.lane.b32.xlu2 %v111_v10, %s14795_s13 }
 0x5b5   :  { %v2372_v43 = vpop.permute.xlu2 %2371 }
 0x5bd   :  { %v2587_v44 = vpop.permute.xlu2 %2586 }
 0x5c5   :  { %v116_v28 = vpop.permute.xlu2 %115 }
 0x5c6   :  { %121 = vst.msk [vmem:[#allocation4 + $0x1] sm:$0xff] %vm96_vm5, %v116_v28  ;;  %v14295_v28 = vld [vmem:[%s17568_s5 + $0x470] sm:$0xff] }
 0x5cd   :  { %v3178_v10 = vld [vmem:[#allocation4 + $0x1] sm:$0xff] }
 0x5ce   :  { %v2265_v34 = vpop.permute.xlu1 %2264  ;;  %v2172_v35 = vpop.permute.xlu0 %2171 }
 0x5cf   :  { %10732 = vmatmul.msk.bf16.vlgmr.msrb.gmra.mxu0 %vm182_vm6, %v2172_v35  ;;  %10774 = vmatmul.msk.bf16.vlgmr.msrb.gmra.mxu2 %vm182_vm6, %v2265_v34 }
 0x5d0   :  { %2619 = vmatpush.bf16.msrb.mxu0 %v14260_v33  ;;  %2752 = vmatpush.bf16.msrb.mxu2 %v14264_v20  ;;  %v14287_v20 = vld [vmem:[%s17568_s5 + $0x430] sm:$0xff] }
 0x5d4   :  { %2620 = vmatpush.bf16.msrb.mxu0 %v14259_v36  ;;  %2753 = vmatpush.bf16.msrb.mxu2 %v14263_v22  ;;  %v14303_v22 = vld [vmem:[%s17566_s3 + $0x370] sm:$0xff] }
 0x5d6   :  { %v2426_v39 = vpop.permute.xlu1 %2425  ;;  %v2533_v41 = vpop.permute.xlu0 %2532 }
 0x5d7   :  { %10849 = vmatmul.msk.bf16.vlgmr.msra.gmra.mxu1 %vm182_vm6, %v2426_v39  ;;  %10899 = vmatmul.msk.bf16.vlgmr.msra.gmra.mxu3 %vm182_vm6, %v2533_v41 }
 0x5d8   :  { %2621 = vmatpush.bf16.msrb.mxu0 %v14258_v37  ;;  %2754 = vmatpush.bf16.msrb.mxu2 %v14262_v24  ;;  %v14286_v24 = vld [vmem:[%s17568_s5 + $0x428] sm:$0xff] }
 0x5da   :  { %v2250_v46 = vpop.f32.mrf.mxu1 }
 0x5dc   :  { %2622 = vmatpush.bf16.msrb.mxu0 %v14257_v42  ;;  %2755 = vmatpush.bf16.msrb.mxu2 %v14261_v26  ;;  %v14302_v26 = vld [vmem:[%s17566_s3 + $0x368] sm:$0xff] }
 0x5de   :  { %v2354_v49 = vpop.f32.mrf.mxu3 }
 0x5df   :  { %10824 = vmatmul.msk.bf16.vlgmr.msra.gmra.mxu0 %vm182_vm6, %v2372_v43  ;;  %10874 = vmatmul.msk.bf16.vlgmr.msra.gmra.mxu2 %vm182_vm6, %v15489_v6  ;;  %v14268_v43 = vld [vmem:[%s17568_s5 + $0x398] sm:$0xff] }
 0x5e0   :  { %2856 = vmatpush.bf16.msra.mxu0 %v14276_v21  ;;  %2711 = vmatpush.bf16.msrb.mxu1 %v14268_v43  ;;  %v14277_v21 = vld [vmem:[%s17568_s5 + $0x3e0] sm:$0xff]  ;;  %v14340_v43 = vld [vmem:[%s17566_s3 + $0x2f8] sm:$0xff] }
 0x5e2   :  { %v2252_v50 = vpop.f32.mrf.mxu1 }
 0x5e4   :  { %2857 = vmatpush.bf16.msra.mxu0 %v14275_v23 }
 0x5e6   :  { %v2356_v55 = vpop.f32.mrf.mxu3 }
 0x5e8   :  { %2858 = vmatpush.bf16.msra.mxu0 %v14274_v25  ;;  %v14296_v25 = vld [vmem:[%s17568_s5 + $0x478] sm:$0xff] }
 0x5ec   :  { %2859 = vmatpush.bf16.msra.mxu0 %v14273_v27  ;;  %v14285_v27 = vld [vmem:[%s17568_s5 + $0x420] sm:$0xff] }
 0x5ef   :  { %10924 = vmatmul.msk.bf16.vlgmr.msrb.gmra.mxu0 %vm182_vm6, %v2587_v44  ;;  %v3175_v44 = vld [vmem:[#allocation4] sm:$0xff] }
 0x64c   :  { %v2209_v45 = vpop.f32.mrf.mxu0 }
 0x64d   :  { %v2251_v51 = vadd.f32 %v2250_v46, %v2209_v45  ;;  %v14292_v46 = vld [vmem:[%s17568_s5 + $0x458] sm:$0xff] }
 0x64e   :  { %3072 = vmatpush.bf16.msrb.mxu0 %v14292_v46  ;;  %v14299_v46 = vld [vmem:[%s17566_s3 + $0x250] sm:$0xff] }
 0x652   :  { %v2302_v47 = vpop.f32.mrf.mxu2 }
 0x653   :  { %v2307_v53 = vadd.f32 %v2302_v47, %v2251_v51  ;;  %v3185_v47 = vld [vmem:[#allocation3 + $0x10] sm:$0xff] }
 0x654   :  { %v2211_v48 = vpop.f32.mrf.mxu0  ;;  %v2463_v38 = vpop.f32.mrf.mxu1 }
 0x655   :  { %v2359_v54 = vadd.f32 %v2354_v49, %v2307_v53  ;;  %v2253_v56 = vadd.f32 %v2252_v50, %v2211_v48  ;;  %v14267_v48 = vld [vmem:[%s17568_s5 + $0x390] sm:$0xff]  ;;  %v3184_v50 = vld [vmem:[#allocation3] sm:$0xff]  ;;  %v14266_v53 = vld [vmem:[%s17568_s5 + $0x388] sm:$0xff] }
 0x656   :  { %v14291_v49 = vld [vmem:[%s17568_s5 + $0x450] sm:$0xff]  ;;  %2712 = vmatpush.bf16.msrb.mxu1 %v14267_v48 }
 0x657   :  { %3073 = vmatpush.bf16.msrb.mxu0 %v14291_v49  ;;  %v14339_v48 = vld [vmem:[%s17566_s3 + $0x2f0] sm:$0xff]  ;;  %v14298_v49 = vld [vmem:[%s17566_s3 + $0x248] sm:$0xff] }
 0x65a   :  { %v2304_v52 = vpop.f32.mrf.mxu2  ;;  %v2570_v63 = vpop.f32.mrf.mxu3  ;;  %2713 = vmatpush.bf16.msrb.mxu1 %v14266_v53  ;;  %v14314_v53 = vld [vmem:[%s17566_s3 + $0x288] sm:$0xff] }
 0x65b   :  { %v2308_v40 = vadd.f32 %v2304_v52, %v2253_v56  ;;  %v15655_v52 = vpack.c.bf16 %v3185_v47, %v3184_v50  ;;  %v3187_v56 = vld [vmem:[#allocation3 + $0x1] sm:$0xff]  ;;  %v14315_v47 = vld [vmem:[%s17566_s3 + $0x290] sm:$0xff]  ;;  %v14312_v50 = vld [vmem:[%s17566_s3 + $0x398] sm:$0xff] }
 0x65c   :  { %v2409_v11 = vpop.f32.mrf.mxu0  ;;  %v2465_v1 = vpop.f32.mrf.mxu1 }
 0x65d   :  { %v2414_v57 = vadd.f32 %v2409_v11, %v2359_v54  ;;  %v2360_v62 = vadd.f32 %v2356_v55, %v2308_v40  ;;  %v3188_v54 = vld [vmem:[#allocation3 + $0x11] sm:$0xff]  ;;  %v14265_v55 = vld [vmem:[%s17568_s5 + $0x380] sm:$0xff] }
 0x65e   :  { %2714 = vmatpush.bf16.msrb.mxu1 %v14265_v55  ;;  %v14311_v55 = vld [vmem:[%s17566_s3 + $0x390] sm:$0xff] }
 0x65f   :  { %v2468_v60 = vadd.f32 %v2463_v38, %v2414_v57  ;;  %v15671_v57 = vpack.c.bf16 %v3188_v54, %v3187_v56  ;;  %v14297_v54 = vld [vmem:[%s17566_s3 + $0x240] sm:$0xff] }
 0x660   :  { %v14313_v56 = vld [vmem:[%s17566_s3 + $0x280] sm:$0xff] }
 0x662   :  { %v2515_v58 = vpop.f32.mrf.mxu2  ;;  %v2572_v13 = vpop.f32.mrf.mxu3 }
 0x663   :  { %v2520_v61 = vadd.f32 %v2515_v58, %v2468_v60  ;;  %v3181_v58 = vld [vmem:[#allocation4 + $0x2] sm:$0xff]  ;;  %v3191_v60 = vld [vmem:[#allocation3 + $0x12] sm:$0xff] }
 0x664   :  { %v2411_v59 = vpop.f32.mrf.mxu0 }
 0x665   :  { %v2415_v0 = vadd.f32 %v2411_v59, %v2360_v62  ;;  %v2575_v2 = vadd.f32 %v2570_v63, %v2520_v61  ;;  %v3190_v61 = vld [vmem:[#allocation3 + $0x2] sm:$0xff] }
 0x666   :  { %v15687_v62 = vpack.c.bf16 %v3191_v60, %v3190_v61  ;;  %v14290_v63 = vld [vmem:[%s17568_s5 + $0x448] sm:$0xff]  ;;  %v14332_v61 = vld [vmem:[%s17566_s3 + $0x2d8] sm:$0xff] }
 0x667   :  { %v2469_v6 = vadd.f32 %v2465_v1, %v2415_v0  ;;  %3074 = vmatpush.bf16.msrb.mxu0 %v14290_v63  ;;  %v14289_v0 = vld [vmem:[%s17568_s5 + $0x440] sm:$0xff]  ;;  %v14272_v1 = vld [vmem:[%s17568_s5 + $0x3b8] sm:$0xff]  ;;  %v14310_v60 = vld [vmem:[%s17566_s3 + $0x388] sm:$0xff] }
 0x668   :  { %2804 = vmatpush.bf16.msrb.mxu3 %v14272_v1  ;;  %v14356_v63 = vld [vmem:[%s17566_s3 + $0x338] sm:$0xff]  ;;  %v14319_v1 = vld [vmem:[%s17566_s3 + $0x3b0] sm:$0xff] }
 0x66a   :  { %v2517_v4 = vpop.f32.mrf.mxu2 }
 0x66b   :  { %v2521_v8 = vadd.f32 %v2517_v4, %v2469_v6  ;;  %3075 = vmatpush.bf16.msrb.mxu0 %v14289_v0  ;;  %v14271_v4 = vld [vmem:[%s17568_s5 + $0x3b0] sm:$0xff] }
 0x66c   :  { %v2624_v5 = vpop.f32.mrf.mxu0  ;;  %v14307_v6 = vld [vmem:[%s17566_s3 + $0x270] sm:$0xff]  ;;  %2805 = vmatpush.bf16.msrb.mxu3 %v14271_v4  ;;  %v14354_v4 = vld [vmem:[%s17566_s3 + $0x328] sm:$0xff] }
 0x66d   :  { %v2629_v7 = vadd.f32 %v2624_v5, %v2575_v2  ;;  %v2576_v14 = vadd.f32 %v2572_v13, %v2521_v8  ;;  %v14284_v2 = vld [vmem:[%s17568_s5 + $0x418] sm:$0xff]  ;;  %v14283_v5 = vld [vmem:[%s17568_s5 + $0x410] sm:$0xff]  ;;  %v14269_v13 = vld [vmem:[%s17568_s5 + $0x3a0] sm:$0xff] }
 0x66e   :  { %2965 = vmatpush.bf16.msra.mxu2 %v14284_v2  ;;  %v14280_v8 = vld [vmem:[%s17568_s5 + $0x3f8] sm:$0xff]  ;;  %v14309_v2 = vld [vmem:[%s17566_s3 + $0x380] sm:$0xff] }
 0x66f   :  { %v2636_v9 = vadd.f32 %v14772_v3, %v2629_v7  ;;  %v14270_v7 = vld [vmem:[%s17568_s5 + $0x3a8] sm:$0xff]  ;;  %2911 = vmatpush.bf16.msra.mxu1 %v14280_v8  ;;  %v14317_v8 = vld [vmem:[%s17566_s3 + $0x3a0] sm:$0xff] }
 0x670   :  { %2806 = vmatpush.bf16.msrb.mxu3 %v14270_v7 }
 0x671   :  { %v2638_v12 = vmax.f32 %v2636_v9, 0.0  ;;  %v14282_v9 = vld [vmem:[%s17568_s5 + $0x408] sm:$0xff] }
 0x672   :  { %2966 = vmatpush.bf16.msra.mxu2 %v14283_v5  ;;  %v14330_v5 = vld [vmem:[%s17566_s3 + $0x2c8] sm:$0xff] }
 0x673   :  { %2642 = vrot.lane.b32.xlu0 %v2638_v12, %s14795_s13  ;;  %v14306_v12 = vld [vmem:[%s17566_s3 + $0x268] sm:$0xff] }
 0x674   :  { %v2626_v15 = vpop.f32.mrf.mxu0  ;;  %2807 = vmatpush.bf16.msrb.mxu3 %v14269_v13  ;;  %v14353_v13 = vld [vmem:[%s17566_s3 + $0x320] sm:$0xff] }
 0x675   :  { %v2630_v16 = vadd.f32 %v2626_v15, %v2576_v14  ;;  %v14279_v14 = vld [vmem:[%s17568_s5 + $0x3f0] sm:$0xff]  ;;  %v14281_v15 = vld [vmem:[%s17568_s5 + $0x400] sm:$0xff] }
 0x676   :  { %2967 = vmatpush.bf16.msra.mxu2 %v14282_v9  ;;  %2912 = vmatpush.bf16.msra.mxu1 %v14279_v14  ;;  %v14327_v9 = vld [vmem:[%s17566_s3 + $0x3d0] sm:$0xff]  ;;  %v14336_v14 = vld [vmem:[%s17566_s3 + $0x3f8] sm:$0xff] }
 0x677   :  { %v2637_v17 = vadd.f32 %v14772_v3, %v2630_v16  ;;  %v14308_v3 = vld [vmem:[%s17566_s3 + $0x278] sm:$0xff]  ;;  %v14305_v16 = vld [vmem:[%s17566_s3 + $0x260] sm:$0xff] }
 0x679   :  { %v2639_v19 = vmax.f32 %v2637_v17, 0.0  ;;  %v14288_v17 = vld [vmem:[%s17568_s5 + $0x438] sm:$0xff] }
 0x67a   :  { %2968 = vmatpush.bf16.msra.mxu2 %v14281_v15  ;;  %3017 = vmatpush.bf16.msra.mxu3 %v14288_v17  ;;  %v14326_v15 = vld [vmem:[%s17566_s3 + $0x3c8] sm:$0xff] }
 0x67b   :  { %2644 = vrot.lane.b32.xlu1 %v2639_v19, %s14795_s13  ;;  %117 = vrot.lane.b32.xlu0 %v112_v18, %s14795_s13  ;;  %v14278_v18 = vld [vmem:[%s17568_s5 + $0x3e8] sm:$0xff]  ;;  %v14304_v19 = vld [vmem:[%s17566_s3 + $0x378] sm:$0xff] }
 0x67c   :  { %2913 = vmatpush.bf16.msra.mxu1 %v14278_v18  ;;  %v14335_v18 = vld [vmem:[%s17566_s3 + $0x3f0] sm:$0xff] }
 0x67e   :  { %3018 = vmatpush.bf16.msra.mxu3 %v14287_v20  ;;  %v14347_v20 = vld [vmem:[%s17566_s3 + $0x310] sm:$0xff] }
 0x680   :  { %2914 = vmatpush.bf16.msra.mxu1 %v14277_v21  ;;  %v14344_v21 = vld [vmem:[%s17566_s3 + $0x418] sm:$0xff] }
 0x682   :  { %3019 = vmatpush.bf16.msra.mxu3 %v14286_v24  ;;  %v14343_v24 = vld [vmem:[%s17566_s3 + $0x410] sm:$0xff] }
 0x686   :  { %3020 = vmatpush.bf16.msra.mxu3 %v14285_v27  ;;  %v14342_v27 = vld [vmem:[%s17566_s3 + $0x408] sm:$0xff] }
 0x6e5   :  { %v2643_v29 = vpop.permute.xlu0 %2642 }
 0x6e6   :  { %2648 = vst.msk [vmem:[#allocation5 + $0x1] sm:$0xff] %vm96_vm5, %v2643_v29  ;;  %v14301_v29 = vld [vmem:[%s17566_s3 + $0x360] sm:$0xff] }
 0x6ed   :  { %v2645_v30 = vpop.permute.xlu1 %2644  ;;  %v118_v31 = vpop.permute.xlu0 %117  ;;  %v2653_v32 = vld [vmem:[#allocation5 + $0x1] sm:$0xff] }
 0x6ee   :  { %2649 = vst.msk [vmem:[#allocation5 + $0x11] sm:$0xff] %vm96_vm5, %v2645_v30  ;;  %v2650_v34 = vld [vmem:[#allocation5] sm:$0xff]  ;;  %v14324_v30 = vld [vmem:[%s17566_s3 + $0x2b8] sm:$0xff] }
 0x6ef   :  { %122 = vst.msk [vmem:[#allocation4 + $0x11] sm:$0xff] %vm96_vm5, %v118_v31  ;;  %v2656_v41 = vld [vmem:[#allocation5 + $0x2] sm:$0xff] }
 0x6f5   :  { %v2654_v33 = vld [vmem:[#allocation5 + $0x11] sm:$0xff] }
 0x6f6   :  { %v2651_v35 = vld [vmem:[#allocation5 + $0x10] sm:$0xff]  ;;  %v2655_v36 = vpack.c.bf16 %v2654_v33, %v2653_v32  ;;  %v14294_v32 = vld [vmem:[%s17568_s5 + $0x468] sm:$0xff] }
 0x6f7   :  { %v2652_v37 = vpack.c.bf16 %v2651_v35, %v2650_v34  ;;  %v2657_v39 = vld [vmem:[#allocation5 + $0x12] sm:$0xff]  ;;  %v14293_v34 = vld [vmem:[%s17568_s5 + $0x460] sm:$0xff]  ;;  %v14322_v35 = vld [vmem:[%s17566_s3 + $0x2a8] sm:$0xff] }
 0x6f8   :  { %2932 = vrot.lane.b32.xlu0 %v2655_v36, %s14797_s11  ;;  %11025 = vmatmul.msk.bf16.vlgmr.msra.gmra.mxu0 %vm182_vm6, %v2655_v36  ;;  %v15634_v42 = vpack.c.bf16 %v2657_v39, %v2656_v41  ;;  %v3176_v45 = vld [vmem:[#allocation4 + $0x10] sm:$0xff]  ;;  %v14316_v39 = vld [vmem:[%s17566_s3 + $0x298] sm:$0xff] }
 0x6f9   :  { %2678 = vrot.lane.b32.xlu2 %v2652_v37, %s14798_s12  ;;  %2771 = vrot.lane.b32.xlu1 %v2652_v37, %s14797_s11  ;;  %v15653_v51 = vpack.c.bf16 %v3176_v45, %v3175_v44  ;;  %v3179_v11 = vld [vmem:[#allocation4 + $0x11] sm:$0xff] }
 0x6fa   :  { %10975 = vmatmul.msk.bf16.vlgmr.msrb.gmra.mxu2 %vm182_vm6, %v2652_v37  ;;  %v15669_v38 = vpack.c.bf16 %v3179_v11, %v3178_v10  ;;  %v3182_v40 = vld [vmem:[#allocation4 + $0x12] sm:$0xff]  ;;  %3336 = vmatpush.bf16.msra.mxu0 %v14308_v3  ;;  %v14338_v10 = vld [vmem:[%s17566_s3 + $0x2e8] sm:$0xff] }
 0x6fb   :  { %v15679_v59 = vpack.c.bf16 %v3182_v40, %v3181_v58  ;;  %3242 = vmatpush.bf16.msrb.mxu2 %v14304_v19  ;;  %v14323_v33 = vld [vmem:[%s17566_s3 + $0x2b0] sm:$0xff]  ;;  %v14300_v37 = vld [vmem:[%s17566_s3 + $0x258] sm:$0xff]  ;;  %v14337_v58 = vld [vmem:[%s17566_s3 + $0x2e0] sm:$0xff] }
 0x6fc   :  { %v14320_v40 = vld [vmem:[%s17566_s3 + $0x3b8] sm:$0xff]  ;;  %v14325_v19 = vld [vmem:[%s17566_s3 + $0x3c0] sm:$0xff] }
 0x6fd   :  { %v14328_v3 = vld [vmem:[%s17566_s3 + $0x3d8] sm:$0xff] }
 0x6fe   :  { %3337 = vmatpush.bf16.msra.mxu0 %v14307_v6 }
 0x6ff   :  { %3243 = vmatpush.bf16.msrb.mxu2 %v14303_v22  ;;  %v14346_v22 = vld [vmem:[%s17566_s3 + $0x308] sm:$0xff] }
 0x700   :  { %3093 = vrot.lane.b32.xlu0 %v15634_v42, %s14797_s11 }
 0x701   :  { %3039 = vrot.lane.b32.xlu2 %v15634_v42, %s14798_s12  ;;  %2878 = vrot.lane.b32.xlu1 %v2655_v36, %s14798_s12  ;;  %v14321_v36 = vld [vmem:[%s17566_s3 + $0x2a0] sm:$0xff] }
 0x702   :  { %3338 = vmatpush.bf16.msra.mxu0 %v14306_v12  ;;  %v14329_v12 = vld [vmem:[%s17566_s3 + $0x2c0] sm:$0xff] }
 0x703   :  { %3244 = vmatpush.bf16.msrb.mxu2 %v14302_v26  ;;  %v14352_v26 = vld [vmem:[%s17566_s3 + $0x438] sm:$0xff] }
 0x706   :  { %3339 = vmatpush.bf16.msra.mxu0 %v14305_v16  ;;  %v14348_v16 = vld [vmem:[%s17566_s3 + $0x318] sm:$0xff] }
 0x707   :  { %3245 = vmatpush.bf16.msrb.mxu2 %v14301_v29  ;;  %v14364_v29 = vld [vmem:[%s17566_s3 + $0x358] sm:$0xff] }
 0x708   :  { %3466 = vrot.lane.b32.xlu0 %v15655_v52, %s14797_s11 }
 0x709   :  { %3303 = vrot.lane.b32.xlu2 %v15653_v51, %s14798_s12  ;;  %3412 = vrot.lane.b32.xlu1 %v15653_v51, %s14797_s11 }
 0x710   :  { %3680 = vrot.lane.b32.xlu0 %v15671_v57, %s14798_s12 }
 0x711   :  { %3625 = vrot.lane.b32.xlu2 %v15669_v38, %s14798_s12  ;;  %3358 = vrot.lane.b32.xlu1 %v15655_v52, %s14798_s12 }
 0x718   :  { %4056 = vrot.lane.b32.xlu0 %v15679_v59, %s14797_s11 }
 0x719   :  { %3788 = vrot.lane.b32.xlu2 %v15671_v57, %s14797_s11  ;;  %3734 = vrot.lane.b32.xlu1 %v15669_v38, %s14797_s11 }
 0x720   :  { %4002 = vrot.lane.b32.xlu0 %v15687_v62, %s14798_s12 }
 0x721   :  { %4110 = vrot.lane.b32.xlu2 %v15687_v62, %s14797_s11  ;;  %3947 = vrot.lane.b32.xlu1 %v15679_v59, %s14798_s12 }
 0x753   :  { %v2679_v23 = vpop.permute.xlu2 %2678 }
 0x754   :  { %10958 = vmatmul.msk.bf16.vlgmr.msrb.gmra.mxu1 %vm182_vm6, %v2679_v23  ;;  %v14333_v23 = vld [vmem:[%s17566_s3 + $0x3e0] sm:$0xff] }
 0x755   :  { %3126 = vmatpush.bf16.msrb.mxu1 %v14296_v25  ;;  %v14345_v25 = vld [vmem:[%s17566_s3 + $0x300] sm:$0xff] }
 0x759   :  { %3127 = vmatpush.bf16.msrb.mxu1 %v14295_v28 }
 0x75b   :  { %v3040_v31 = vpop.permute.xlu2 %3039 }
 0x75c   :  { %11125 = vmatmul.msk.bf16.vlgmr.msrb.gmra.mxu0 %vm182_vm6, %v3040_v31 }
 0x75d   :  { %3551 = vmatpush.bf16.msrb.mxu0 %v14324_v30  ;;  %3128 = vmatpush.bf16.msrb.mxu1 %v14294_v32  ;;  %v14351_v32 = vld [vmem:[%s17566_s3 + $0x430] sm:$0xff] }
 0x761   :  { %3552 = vmatpush.bf16.msrb.mxu0 %v14323_v33  ;;  %3129 = vmatpush.bf16.msrb.mxu1 %v14293_v34  ;;  %v14341_v33 = vld [vmem:[%s17566_s3 + $0x400] sm:$0xff]  ;;  %v14363_v34 = vld [vmem:[%s17566_s3 + $0x350] sm:$0xff] }
 0x763   :  { %v3304_v44 = vpop.permute.xlu2 %3303 }
 0x765   :  { %3553 = vmatpush.bf16.msrb.mxu0 %v14322_v35  ;;  %v14350_v35 = vld [vmem:[%s17566_s3 + $0x428] sm:$0xff] }
 0x769   :  { %3554 = vmatpush.bf16.msrb.mxu0 %v14321_v36  ;;  %v14360_v36 = vld [vmem:[%s17566_s3 + $0x458] sm:$0xff] }
 0x76a   :  { %v2933_v41 = vpop.permute.xlu0 %2932 }
 0x76b   :  { %v2772_v45 = vpop.permute.xlu1 %2771  ;;  %11075 = vmatmul.msk.bf16.vlgmr.msra.gmra.mxu2 %vm182_vm6, %v2933_v41  ;;  %v3626_v28 = vpop.permute.xlu2 %3625  ;;  %v14359_v41 = vld [vmem:[%s17566_s3 + $0x450] sm:$0xff] }
 0x76c   :  { %11000 = vmatmul.msk.bf16.vlgmr.msrb.gmra.mxu3 %vm182_vm6, %v2772_v45  ;;  %11226 = vmatmul.msk.bf16.vlgmr.msra.gmra.mxu0 %vm182_vm6, %v3304_v44  ;;  %v14358_v44 = vld [vmem:[%s17566_s3 + $0x448] sm:$0xff] }
 0x76d   :  { %3283 = vmatpush.bf16.msrb.mxu3 %v14300_v37  ;;  %3445 = vmatpush.bf16.msra.mxu2 %v14316_v39  ;;  %v14362_v37 = vld [vmem:[%s17566_s3 + $0x348] sm:$0xff]  ;;  %v14349_v39 = vld [vmem:[%s17566_s3 + $0x420] sm:$0xff] }
 0x76e   :  { %3767 = vmatpush.bf16.msra.mxu0 %v14340_v43  ;;  %v14361_v43 = vld [vmem:[%s17566_s3 + $0x340] sm:$0xff] }
 0x771   :  { %3284 = vmatpush.bf16.msrb.mxu3 %v14299_v46  ;;  %3446 = vmatpush.bf16.msra.mxu2 %v14315_v47  ;;  %v14367_v46 = vld [vmem:[%s17566_s3 + $0x470] sm:$0xff]  ;;  %v14357_v47 = vld [vmem:[%s17566_s3 + $0x440] sm:$0xff] }
 0x772   :  { %3768 = vmatpush.bf16.msra.mxu0 %v14339_v48  ;;  %v3094_v6 = vpop.permute.xlu0 %3093  ;;  %v14366_v48 = vld [vmem:[%s17566_s3 + $0x468] sm:$0xff] }
 0x773   :  { %v2879_v11 = vpop.permute.xlu1 %2878 }
 0x774   :  { %11050 = vmatmul.msk.bf16.vlgmr.msra.gmra.mxu1 %vm182_vm6, %v2879_v11 }
 0x775   :  { %3285 = vmatpush.bf16.msrb.mxu3 %v14298_v49  ;;  %3391 = vmatpush.bf16.msra.mxu1 %v14312_v50  ;;  %v3789_v49 = vpop.permute.xlu2 %3788 }
 0x776   :  { %3447 = vmatpush.bf16.msra.mxu2 %v14314_v53  ;;  %3769 = vmatpush.bf16.msra.mxu0 %v14338_v10 }
 0x779   :  { %3286 = vmatpush.bf16.msrb.mxu3 %v14297_v54  ;;  %3392 = vmatpush.bf16.msra.mxu1 %v14311_v55  ;;  %v2861_v55 = vpop.f32.mrf.mxu0 }
 0x77a   :  { %3448 = vmatpush.bf16.msra.mxu2 %v14313_v56  ;;  %3770 = vmatpush.bf16.msra.mxu0 %v14337_v58  ;;  %v3467_v30 = vpop.permute.xlu0 %3466 }
 0x77b   :  { %v3413_v0 = vpop.permute.xlu1 %3412  ;;  %11184 = vmatmul.msk.bf16.vlgmr.msrb.gmra.mxu2 %vm182_vm6, %v15655_v52  ;;  %v14331_v52 = vld [vmem:[%s17566_s3 + $0x2d0] sm:$0xff] }
 0x77c   :  { %11100 = vmatmul.msk.bf16.vlgmr.msra.gmra.mxu3 %vm182_vm6, %v15634_v42  ;;  %11326 = vmatmul.msk.bf16.vlgmr.msrb.gmra.mxu0 %vm182_vm6, %v15669_v38  ;;  %v14355_v42 = vld [vmem:[%s17566_s3 + $0x330] sm:$0xff]  ;;  %v14318_v38 = vld [vmem:[%s17566_s3 + $0x3a8] sm:$0xff] }
 0x77d   :  { %3499 = vmatpush.bf16.msra.mxu3 %v14320_v40  ;;  %3393 = vmatpush.bf16.msra.mxu1 %v14310_v60  ;;  %v4111_v10 = vpop.permute.xlu2 %4110  ;;  %v2757_v11 = vpop.f32.mrf.mxu2 }
 0x77e   :  { %3658 = vmatpush.bf16.msrb.mxu2 %v14332_v61  ;;  %3980 = vmatpush.bf16.msrb.mxu0 %v14356_v63 }
 0x781   :  { %3500 = vmatpush.bf16.msra.mxu3 %v14319_v1  ;;  %3394 = vmatpush.bf16.msra.mxu1 %v14309_v2  ;;  %v16013_v40 = vpop.f32.mrf.mxu0 }
 0x782   :  { %3659 = vmatpush.bf16.msrb.mxu2 %v14331_v52  ;;  %3981 = vmatpush.bf16.msrb.mxu0 %v14355_v42  ;;  %v3681_v45 = vpop.permute.xlu0 %3680 }
 0x783   :  { %v3359_v7 = vpop.permute.xlu1 %3358 }
 0x784   :  { %11150 = vmatmul.msk.bf16.vlgmr.msrb.gmra.mxu1 %vm182_vm6, %v3094_v6 }
 0x785   :  { %3501 = vmatpush.bf16.msra.mxu3 %v14318_v38  ;;  %3603 = vmatpush.bf16.msrb.mxu1 %v14328_v3  ;;  %v16009_v56 = vpop.f32.mrf.mxu2 }
 0x786   :  { %3982 = vmatpush.bf16.msrb.mxu0 %v14354_v4  ;;  %3660 = vmatpush.bf16.msrb.mxu2 %v14330_v5 }
 0x789   :  { %3502 = vmatpush.bf16.msra.mxu3 %v14317_v8  ;;  %3604 = vmatpush.bf16.msrb.mxu1 %v14327_v9 }
 0x78a   :  { %3661 = vmatpush.bf16.msrb.mxu2 %v14329_v12  ;;  %3983 = vmatpush.bf16.msrb.mxu0 %v14353_v13  ;;  %v4057_v50 = vpop.permute.xlu0 %4056 }
 0x78b   :  { %v3735_v17 = vpop.permute.xlu1 %3734  ;;  %11276 = vmatmul.msk.bf16.vlgmr.msra.gmra.mxu2 %vm182_vm6, %v3413_v0 }
 0x78c   :  { %11201 = vmatmul.msk.bf16.vlgmr.msrb.gmra.mxu3 %vm182_vm6, %v15653_v51  ;;  %11426 = vmatmul.msk.bf16.vlgmr.msra.gmra.mxu0 %vm182_vm6, %v3735_v17  ;;  %v14334_v51 = vld [vmem:[%s17566_s3 + $0x3e8] sm:$0xff] }
 0x78d   :  { %3713 = vmatpush.bf16.msrb.mxu3 %v14336_v14  ;;  %3605 = vmatpush.bf16.msrb.mxu1 %v14326_v15 }
 0x78e   :  { %3873 = vmatpush.bf16.msra.mxu2 %v14348_v16 }
 0x791   :  { %3714 = vmatpush.bf16.msrb.mxu3 %v14335_v18  ;;  %3606 = vmatpush.bf16.msrb.mxu1 %v14325_v19 }
 0x792   :  { %3874 = vmatpush.bf16.msra.mxu2 %v14347_v20  ;;  %v4003_v53 = vpop.permute.xlu0 %4002 }
 0x793   :  { %v3948_v31 = vpop.permute.xlu1 %3947 }
 0x794   :  { %11251 = vmatmul.msk.bf16.vlgmr.msra.gmra.mxu1 %vm182_vm6, %v3359_v7 }
 0x795   :  { %3715 = vmatpush.bf16.msrb.mxu3 %v14334_v51  ;;  %3821 = vmatpush.bf16.msra.mxu1 %v14344_v21 }
 0x796   :  { %3875 = vmatpush.bf16.msra.mxu2 %v14346_v22 }
 0x799   :  { %3716 = vmatpush.bf16.msrb.mxu3 %v14333_v23  ;;  %3822 = vmatpush.bf16.msra.mxu1 %v14343_v24 }
 0x79a   :  { %3876 = vmatpush.bf16.msra.mxu2 %v14345_v25 }
 0x79b   :  { %11376 = vmatmul.msk.bf16.vlgmr.msrb.gmra.mxu2 %vm182_vm6, %v3626_v28 }
 0x79c   :  { %11301 = vmatmul.msk.bf16.vlgmr.msra.gmra.mxu3 %vm182_vm6, %v3467_v30  ;;  %11526 = vmatmul.msk.bf16.vlgmr.msrb.gmra.mxu0 %vm182_vm6, %v3948_v31 }
 0x79d   :  { %3925 = vmatpush.bf16.msra.mxu3 %v14352_v26  ;;  %3823 = vmatpush.bf16.msra.mxu1 %v14342_v27 }
 0x79e   :  { %4089 = vmatpush.bf16.msrb.mxu2 %v14364_v29 }
 0x7a1   :  { %3926 = vmatpush.bf16.msra.mxu3 %v14351_v32  ;;  %3824 = vmatpush.bf16.msra.mxu1 %v14341_v33 }
 0x7a2   :  { %4090 = vmatpush.bf16.msrb.mxu2 %v14363_v34 }
 0x7a4   :  { %11351 = vmatmul.msk.bf16.vlgmr.msrb.gmra.mxu1 %vm182_vm6, %v15671_v57  ;;  %v14368_v57 = vld [vmem:[%s17566_s3 + $0x478] sm:$0xff] }
 0x7a5   :  { %3927 = vmatpush.bf16.msra.mxu3 %v14350_v35  ;;  %4035 = vmatpush.bf16.msrb.mxu1 %v14360_v36 }
 0x7a6   :  { %4091 = vmatpush.bf16.msrb.mxu2 %v14362_v37 }
 0x7a9   :  { %3928 = vmatpush.bf16.msra.mxu3 %v14349_v39  ;;  %4036 = vmatpush.bf16.msrb.mxu1 %v14359_v41 }
 0x7aa   :  { %4092 = vmatpush.bf16.msrb.mxu2 %v14361_v43 }
 0x7ab   :  { %11476 = vmatmul.msk.bf16.vlgmr.msra.gmra.mxu2 %vm182_vm6, %v15679_v59  ;;  %v14365_v59 = vld [vmem:[%s17566_s3 + $0x460] sm:$0xff] }
 0x7ac   :  { %11401 = vmatmul.msk.bf16.vlgmr.msrb.gmra.mxu3 %vm182_vm6, %v3681_v45 }
 0x7ad   :  { %4143 = vmatpush.bf16.msrb.mxu3 %v14368_v57  ;;  %4037 = vmatpush.bf16.msrb.mxu1 %v14358_v44 }
 0x7b1   :  { %4144 = vmatpush.bf16.msrb.mxu3 %v14367_v46  ;;  %4038 = vmatpush.bf16.msrb.mxu1 %v14357_v47 }
 0x7b4   :  { %11451 = vmatmul.msk.bf16.vlgmr.msra.gmra.mxu1 %vm182_vm6, %v3789_v49 }
 0x7b5   :  { %4145 = vmatpush.bf16.msrb.mxu3 %v14366_v48 }
 0x7b9   :  { %4146 = vmatpush.bf16.msrb.mxu3 %v14365_v59 }
 0x7bb   :  { %11576 = vmatmul.msk.bf16.vlgmr.msrb.gmra.mxu2 %vm182_vm6, %v4057_v50 }
 0x7bc   :  { %11501 = vmatmul.msk.bf16.vlgmr.msra.gmra.mxu3 %vm182_vm6, %v15687_v62 }
 0x7c4   :  { %11551 = vmatmul.msk.bf16.vlgmr.msrb.gmra.mxu1 %vm182_vm6, %v4003_v53 }
 0x7cc   :  { %11601 = vmatmul.msk.bf16.vlgmr.msrb.gmra.mxu3 %vm182_vm6, %v4111_v10 }
 0x7d1   :  { %v2716_v54 = vpop.f32.mrf.mxu1 }
 0x7d2   :  { %v2758_v60 = vadd.f32 %v2757_v11, %v2716_v54 }
 0x7d9   :  { %v16011_v58 = vpop.f32.mrf.mxu1  ;;  %v3077_v2 = vpop.f32.mrf.mxu0 }
 0x7e1   :  { %v16021_v5 = vpop.f32.mrf.mxu0 }
 0x7e9   :  { %v3341_v15 = vpop.f32.mrf.mxu0 }
 0x7ee   :  { %v2970_v61 = vpop.f32.mrf.mxu2 }
 0x7ef   :  { %v2809_v63 = vpop.f32.mrf.mxu3 }
 0x7f0   :  { %v2814_v0 = vadd.f32 %v2809_v63, %v2758_v60 }
 0x7f1   :  { %v2916_v62 = vpop.f32.mrf.mxu1  ;;  %v3343_v20 = vpop.f32.mrf.mxu0 }
 0x7f2   :  { %v2866_v1 = vadd.f32 %v2861_v55, %v2814_v0 }
 0x7f4   :  { %v2921_v52 = vadd.f32 %v2916_v62, %v2866_v1 }
 0x7f6   :  { %v16015_v42 = vpop.f32.mrf.mxu2  ;;  %v2975_v38 = vadd.f32 %v2970_v61, %v2921_v52 }
 0x7f7   :  { %v16017_v3 = vpop.f32.mrf.mxu3 }
 0x7f9   :  { %v16019_v4 = vpop.f32.mrf.mxu1  ;;  %v3556_v25 = vpop.f32.mrf.mxu0 }
 0x7fe   :  { %v3247_v6 = vpop.f32.mrf.mxu2 }
 0x7ff   :  { %v3022_v7 = vpop.f32.mrf.mxu3 }
 0x800   :  { %v3027_v8 = vadd.f32 %v3022_v7, %v2975_v38 }
 0x801   :  { %v3131_v9 = vpop.f32.mrf.mxu1  ;;  %v3558_v34 = vpop.f32.mrf.mxu0 }
 0x802   :  { %v3082_v12 = vadd.f32 %v3077_v2, %v3027_v8 }
 0x804   :  { %v16023_v13 = vadd.f32 %v3131_v9, %v3082_v12 }
 0x806   :  { %v3249_v14 = vpop.f32.mrf.mxu2 }
 0x807   :  { %v16025_v16 = vpop.f32.mrf.mxu3 }
 0x809   :  { %v16027_v17 = vpop.f32.mrf.mxu1  ;;  %v3772_v46 = vpop.f32.mrf.mxu0 }
 0x80e   :  { %v3450_v19 = vpop.f32.mrf.mxu2 }
 0x80f   :  { %v3288_v18 = vpop.f32.mrf.mxu3 }
 0x810   :  { %v3289_v22 = vadd.f32 %v3288_v18, %v3247_v6 }
 0x811   :  { %v3396_v51 = vpop.f32.mrf.mxu1  ;;  %v3774_v55 = vpop.f32.mrf.mxu0 }
 0x812   :  { %v3346_v26 = vadd.f32 %v3341_v15, %v3289_v22  ;;  %v14773_v22 = vld [vmem:[%s17567_s4 + $0x1] ss:$0 sm:$0xff] }
 0x814   :  { %v3401_v28 = vadd.f32 %v3396_v51, %v3346_v26 }
 0x816   :  { %v3452_v23 = vpop.f32.mrf.mxu2  ;;  %v3455_v33 = vadd.f32 %v3450_v19, %v3401_v28 }
 0x817   :  { %v3290_v21 = vpop.f32.mrf.mxu3 }
 0x818   :  { %v3291_v29 = vadd.f32 %v3290_v21, %v3249_v14 }
 0x819   :  { %v3398_v24 = vpop.f32.mrf.mxu1  ;;  %v3985_v6 = vpop.f32.mrf.mxu0 }
 0x81a   :  { %v3347_v32 = vadd.f32 %v3343_v20, %v3291_v29 }
 0x81c   :  { %v3402_v37 = vadd.f32 %v3398_v24, %v3347_v32 }
 0x81e   :  { %v3663_v31 = vpop.f32.mrf.mxu2  ;;  %v3456_v43 = vadd.f32 %v3452_v23, %v3402_v37  ;;  %v14371_v37 = vld [vmem:[%s17568_s5 + $0x490] sm:$0xff] }
 0x81f   :  { %v3504_v27 = vpop.f32.mrf.mxu3 }
 0x820   :  { %v3509_v35 = vadd.f32 %v3504_v27, %v3455_v33 }
 0x821   :  { %v3608_v30 = vpop.f32.mrf.mxu1  ;;  %v3987_v20 = vpop.f32.mrf.mxu0 }
 0x822   :  { %v3561_v41 = vadd.f32 %v3556_v25, %v3509_v35  ;;  %v14372_v35 = vld [vmem:[%s17568_s5 + $0x498] sm:$0xff] }
 0x823   :  { %4276 = vmatpush.bf16.msra.mxu1 %v14372_v35 }
 0x824   :  { %v3613_v44 = vadd.f32 %v3608_v30, %v3561_v41  ;;  %v14370_v41 = vld [vmem:[%s17568_s5 + $0x488] sm:$0xff] }
 0x826   :  { %v3665_v57 = vpop.f32.mrf.mxu2  ;;  %v3668_v49 = vadd.f32 %v3663_v31, %v3613_v44  ;;  %v14381_v44 = vld [vmem:[%s17568_s5 + $0x4e0] sm:$0xff] }
 0x827   :  { %v3506_v36 = vpop.f32.mrf.mxu3  ;;  %4277 = vmatpush.bf16.msra.mxu1 %v14371_v37 }
 0x828   :  { %v3510_v45 = vadd.f32 %v3506_v36, %v3456_v43  ;;  %v14384_v36 = vld [vmem:[%s17568_s5 + $0x4f8] sm:$0xff]  ;;  %v14382_v43 = vld [vmem:[%s17568_s5 + $0x4e8] sm:$0xff] }
 0x829   :  { %v3610_v39 = vpop.f32.mrf.mxu1  ;;  %4380 = vmatpush.bf16.msra.mxu3 %v14384_v36 }
 0x82a   :  { %v3562_v48 = vadd.f32 %v3558_v34, %v3510_v45 }
 0x82b   :  { %4278 = vmatpush.bf16.msra.mxu1 %v14370_v41 }
 0x82c   :  { %v3614_v53 = vadd.f32 %v3610_v39, %v3562_v48  ;;  %v14383_v39 = vld [vmem:[%s17568_s5 + $0x4f0] sm:$0xff] }
 0x82d   :  { %4381 = vmatpush.bf16.msra.mxu3 %v14383_v39 }
 0x82e   :  { %v3878_v10 = vpop.f32.mrf.mxu2  ;;  %v3669_v60 = vadd.f32 %v3665_v57, %v3614_v53  ;;  %v14369_v57 = vld [vmem:[%s17568_s5 + $0x480] sm:$0xff] }
 0x82f   :  { %v3718_v47 = vpop.f32.mrf.mxu3  ;;  %4279 = vmatpush.bf16.msra.mxu1 %v14369_v57 }
 0x830   :  { %v3723_v50 = vadd.f32 %v3718_v47, %v3668_v49 }
 0x831   :  { %v3826_v59 = vpop.f32.mrf.mxu1  ;;  %4382 = vmatpush.bf16.msra.mxu3 %v14382_v43 }
 0x832   :  { %v3777_v54 = vadd.f32 %v3772_v46, %v3723_v50 }
 0x834   :  { %v3831_v61 = vadd.f32 %v3826_v59, %v3777_v54 }
 0x835   :  { %4383 = vmatpush.bf16.msra.mxu3 %v14381_v44 }
 0x836   :  { %v3883_v2 = vadd.f32 %v3878_v10, %v3831_v61  ;;  %v3880_v52 = vpop.f32.mrf.mxu2  ;;  %v14375_v61 = vld [vmem:[%s17568_s5 + $0x4b0] sm:$0xff] }
 0x837   :  { %v3720_v11 = vpop.f32.mrf.mxu3 }
 0x838   :  { %v3724_v63 = vadd.f32 %v3720_v11, %v3669_v60  ;;  %v14380_v60 = vld [vmem:[%s17568_s5 + $0x4d8] sm:$0xff] }
 0x839   :  { %v3828_v0 = vpop.f32.mrf.mxu1  ;;  %4328 = vmatpush.bf16.msra.mxu2 %v14380_v60 }
 0x83a   :  { %v3778_v1 = vadd.f32 %v3774_v55, %v3724_v63  ;;  %v14376_v55 = vld [vmem:[%s17568_s5 + $0x4b8] sm:$0xff]  ;;  %v14379_v63 = vld [vmem:[%s17568_s5 + $0x4d0] sm:$0xff] }
 0x83b   :  { %4235 = vmatpush.bf16.msra.mxu0 %v14376_v55 }
 0x83c   :  { %v3832_v7 = vadd.f32 %v3828_v0, %v3778_v1  ;;  %v14392_v0 = vld [vmem:[%s17568_s5 + $0x538] sm:$0xff]  ;;  %v14391_v1 = vld [vmem:[%s17568_s5 + $0x530] sm:$0xff] }
 0x83d   :  { %4489 = vmatpush.bf16.msrb.mxu1 %v14392_v0  ;;  %4329 = vmatpush.bf16.msra.mxu2 %v14379_v63 }
 0x83e   :  { %v3884_v14 = vadd.f32 %v3880_v52, %v3832_v7  ;;  %v4094_v19 = vpop.f32.mrf.mxu2  ;;  %v14374_v52 = vld [vmem:[%s17568_s5 + $0x4a8] sm:$0xff]  ;;  %v14377_v7 = vld [vmem:[%s17568_s5 + $0x4c0] sm:$0xff] }
 0x83f   :  { %v3930_v62 = vpop.f32.mrf.mxu3  ;;  %4236 = vmatpush.bf16.msra.mxu0 %v14375_v61 }
 0x840   :  { %v3935_v38 = vadd.f32 %v3930_v62, %v3883_v2  ;;  %v14400_v62 = vld [vmem:[%s17568_s5 + $0x578] sm:$0xff]  ;;  %v14399_v2 = vld [vmem:[%s17568_s5 + $0x570] sm:$0xff] }
 0x841   :  { %v4040_v9 = vpop.f32.mrf.mxu1  ;;  %4596 = vmatpush.bf16.msrb.mxu3 %v14400_v62  ;;  %4490 = vmatpush.bf16.msrb.mxu1 %v14391_v1 }
 0x842   :  { %v3990_v8 = vadd.f32 %v3985_v6, %v3935_v38  ;;  %v14378_v38 = vld [vmem:[%s17568_s5 + $0x4c8] sm:$0xff]  ;;  %v14373_v6 = vld [vmem:[%s17568_s5 + $0x4a0] sm:$0xff] }
 0x843   :  { %4237 = vmatpush.bf16.msra.mxu0 %v14374_v52  ;;  %4330 = vmatpush.bf16.msra.mxu2 %v14378_v38 }
 0x844   :  { %v4045_v15 = vadd.f32 %v4040_v9, %v3990_v8  ;;  %v14388_v8 = vld [vmem:[%s17568_s5 + $0x518] sm:$0xff]  ;;  %v14390_v9 = vld [vmem:[%s17568_s5 + $0x528] sm:$0xff] }
 0x845   :  { %4597 = vmatpush.bf16.msrb.mxu3 %v14399_v2  ;;  %4491 = vmatpush.bf16.msrb.mxu1 %v14390_v9  ;;  %v14774_v2 = vld [vmem:[%s17569_s6 + $0x4] ss:$0 sm:$0xff] }
 0x846   :  { %v4099_v21 = vadd.f32 %v4094_v19, %v4045_v15  ;;  %v4096_v29 = vpop.f32.mrf.mxu2  ;;  %v14387_v15 = vld [vmem:[%s17568_s5 + $0x510] sm:$0xff] }
 0x847   :  { %v3932_v12 = vpop.f32.mrf.mxu3  ;;  %4238 = vmatpush.bf16.msra.mxu0 %v14373_v6  ;;  %4331 = vmatpush.bf16.msra.mxu2 %v14377_v7  ;;  %v14395_v19 = vld [vmem:[%s17568_s5 + $0x550] sm:$0xff] }
 0x848   :  { %v3936_v18 = vadd.f32 %v3932_v12, %v3884_v14  ;;  %v14396_v12 = vld [vmem:[%s17568_s5 + $0x558] sm:$0xff]  ;;  %v14398_v14 = vld [vmem:[%s17568_s5 + $0x568] sm:$0xff] }
 0x849   :  { %v4042_v25 = vpop.f32.mrf.mxu1  ;;  %4598 = vmatpush.bf16.msrb.mxu3 %v14398_v14 }
 0x84a   :  { %v3991_v51 = vadd.f32 %v3987_v20, %v3936_v18  ;;  %v14389_v18 = vld [vmem:[%s17568_s5 + $0x520] sm:$0xff] }
 0x84b   :  { %4435 = vmatpush.bf16.msrb.mxu0 %v14388_v8  ;;  %4541 = vmatpush.bf16.msrb.mxu2 %v14396_v12  ;;  %v14397_v20 = vld [vmem:[%s17568_s5 + $0x560] sm:$0xff] }
 0x84c   :  { %v4046_v26 = vadd.f32 %v4042_v25, %v3991_v51  ;;  %4492 = vmatpush.bf16.msrb.mxu1 %v14389_v18  ;;  %v14386_v51 = vld [vmem:[%s17568_s5 + $0x508] sm:$0xff] }
 0x84d   :  { %4599 = vmatpush.bf16.msrb.mxu3 %v14397_v20 }
 0x84e   :  { %v4100_v30 = vadd.f32 %v4096_v29, %v4046_v26 }
 0x84f   :  { %v4148_v23 = vpop.f32.mrf.mxu3  ;;  %4436 = vmatpush.bf16.msrb.mxu0 %v14387_v15  ;;  %4542 = vmatpush.bf16.msrb.mxu2 %v14395_v19 }
 0x850   :  { %v4153_v24 = vadd.f32 %v4148_v23, %v4099_v21  ;;  %v14394_v21 = vld [vmem:[%s17568_s5 + $0x548] sm:$0xff]  ;;  %v14393_v23 = vld [vmem:[%s17568_s5 + $0x540] sm:$0xff] }
 0x852   :  { %v4160_v27 = vadd.f32 %v14773_v22, %v4153_v24  ;;  %v14404_v24 = vld [vmem:[%s17568_s5 + $0x598] sm:$0xff] }
 0x853   :  { %4437 = vmatpush.bf16.msrb.mxu0 %v14386_v51  ;;  %4543 = vmatpush.bf16.msrb.mxu2 %v14394_v21  ;;  %v14408_v21 = vld [vmem:[%s17568_s5 + $0x5b8] sm:$0xff] }
 0x854   :  { %v4162_v28 = vmax.f32 %v4160_v27, 0.0  ;;  %v14403_v27 = vld [vmem:[%s17568_s5 + $0x590] sm:$0xff] }
 0x856   :  { %4166 = vrot.lane.b32.xlu1 %v4162_v28, %s14795_s13  ;;  %v14402_v28 = vld [vmem:[%s17568_s5 + $0x588] sm:$0xff] }
 0x857   :  { %v4150_v31 = vpop.f32.mrf.mxu3  ;;  %4544 = vmatpush.bf16.msrb.mxu2 %v14393_v23  ;;  %v14407_v23 = vld [vmem:[%s17568_s5 + $0x5b0] sm:$0xff] }
 0x858   :  { %v4154_v32 = vadd.f32 %v4150_v31, %v4100_v30  ;;  %v14401_v31 = vld [vmem:[%s17568_s5 + $0x580] sm:$0xff] }
 0x85a   :  { %v4161_v33 = vadd.f32 %v14773_v22, %v4154_v32  ;;  %v14385_v22 = vld [vmem:[%s17568_s5 + $0x500] sm:$0xff] }
 0x85b   :  { %4438 = vmatpush.bf16.msrb.mxu0 %v14385_v22  ;;  %v14420_v22 = vld [vmem:[%s17568_s5 + $0x618] sm:$0xff] }
 0x85c   :  { %v4163_v34 = vmax.f32 %v4161_v33, 0.0 }
 0x85e   :  { %4168 = vrot.lane.b32.xlu2 %v4163_v34, %s14795_s13 }
 0x8b8   :  { %v4169_v45 = vpop.permute.xlu2 %4168 }
 0x8b9   :  { %4173 = vst.msk [vmem:[#allocation4 + $0x11] sm:$0xff] %vm96_vm5, %v4169_v45 }
 0x8c0   :  { %v16060_v47 = vld [vmem:[#allocation4 + $0x11] sm:$0xff] }
 0x8c1   :  { %v4175_v59 = vld [vmem:[#allocation4 + $0x10] sm:$0xff] }
 0x8c2   :  { %v4181_v11 = vld [vmem:[#allocation4 + $0x12] sm:$0xff] }
 0x8c8   :  { %v4167_v46 = vpop.permute.xlu1 %4166 }
 0x8c9   :  { %4172 = vst.msk [vmem:[#allocation4 + $0x1] sm:$0xff] %vm96_vm5, %v4167_v46 }
 0x8d0   :  { %v16062_v48 = vld [vmem:[#allocation4 + $0x1] sm:$0xff] }
 0x8d1   :  { %v4174_v49 = vld [vmem:[#allocation4] sm:$0xff]  ;;  %v4179_v50 = vpack.c.bf16 %v16060_v47, %v16062_v48 }
 0x8d2   :  { %v4176_v53 = vpack.c.bf16 %v4175_v59, %v4174_v49  ;;  %v4180_v10 = vld [vmem:[#allocation4 + $0x2] sm:$0xff] }
 0x8d3   :  { %4402 = vrot.lane.b32.xlu2 %v4179_v50, %s14798_s12  ;;  %11702 = vmatmul.msk.bf16.vlgmr.msra.gmra.mxu3 %vm182_vm6, %v4179_v50  ;;  %v16071_v54 = vpack.c.bf16 %v4181_v11, %v4180_v10 }
 0x8d4   :  { %4295 = vrot.lane.b32.xlu1 %v4176_v53, %s14797_s11  ;;  %4202 = vrot.lane.b32.xlu0 %v4176_v53, %s14798_s12 }
 0x8d5   :  { %11652 = vmatmul.msk.bf16.vlgmr.msra.gmra.mxu1 %vm182_vm6, %v4176_v53 }
 0x8db   :  { %4617 = vrot.lane.b32.xlu2 %v16071_v54, %s14797_s11 }
 0x8dc   :  { %4456 = vrot.lane.b32.xlu1 %v4179_v50, %s14797_s11  ;;  %4563 = vrot.lane.b32.xlu0 %v16071_v54, %s14798_s12 }
 0x92d   :  { %v4403_v32 = vpop.permute.xlu2 %4402 }
 0x935   :  { %v4618_v33 = vpop.permute.xlu2 %4617 }
 0x946   :  { %v4296_v25 = vpop.permute.xlu1 %4295  ;;  %v4203_v26 = vpop.permute.xlu0 %4202 }
 0x947   :  { %11635 = vmatmul.msk.bf16.vlgmr.msra.gmra.mxu0 %vm182_vm6, %v4203_v26  ;;  %11677 = vmatmul.msk.bf16.vlgmr.msra.gmra.mxu2 %vm182_vm6, %v4296_v25  ;;  %v14406_v25 = vld [vmem:[%s17568_s5 + $0x5a8] sm:$0xff] }
 0x948   :  { %4650 = vmatpush.bf16.msra.mxu0 %v14404_v24  ;;  %4783 = vmatpush.bf16.msra.mxu2 %v14408_v21  ;;  %v14419_v24 = vld [vmem:[%s17568_s5 + $0x610] sm:$0xff]  ;;  %v14418_v26 = vld [vmem:[%s17568_s5 + $0x608] sm:$0xff] }
 0x94c   :  { %4651 = vmatpush.bf16.msra.mxu0 %v14403_v27  ;;  %4784 = vmatpush.bf16.msra.mxu2 %v14407_v23  ;;  %v14405_v27 = vld [vmem:[%s17568_s5 + $0x5a0] sm:$0xff] }
 0x94e   :  { %v4457_v29 = vpop.permute.xlu1 %4456  ;;  %v4564_v30 = vpop.permute.xlu0 %4563 }
 0x94f   :  { %11752 = vmatmul.msk.bf16.vlgmr.msrb.gmra.mxu1 %vm182_vm6, %v4457_v29  ;;  %11802 = vmatmul.msk.bf16.vlgmr.msrb.gmra.mxu3 %vm182_vm6, %v4564_v30  ;;  %v14412_v30 = vld [vmem:[%s17568_s5 + $0x5d8] sm:$0xff] }
 0x950   :  { %4652 = vmatpush.bf16.msra.mxu0 %v14402_v28  ;;  %4785 = vmatpush.bf16.msra.mxu2 %v14406_v25  ;;  %v14417_v28 = vld [vmem:[%s17568_s5 + $0x600] sm:$0xff] }
 0x951   :  { %4742 = vmatpush.bf16.msra.mxu1 %v14412_v30 }
 0x952   :  { %v4281_v35 = vpop.f32.mrf.mxu1 }
 0x954   :  { %4653 = vmatpush.bf16.msra.mxu0 %v14401_v31  ;;  %4786 = vmatpush.bf16.msra.mxu2 %v14405_v27  ;;  %v14428_v31 = vld [vmem:[%s17568_s5 + $0x658] sm:$0xff] }
 0x956   :  { %v4385_v39 = vpop.f32.mrf.mxu3 }
 0x957   :  { %11727 = vmatmul.msk.bf16.vlgmr.msrb.gmra.mxu0 %vm182_vm6, %v4403_v32  ;;  %11777 = vmatmul.msk.bf16.vlgmr.msrb.gmra.mxu2 %vm182_vm6, %v16071_v54  ;;  %v14411_v32 = vld [vmem:[%s17568_s5 + $0x5d0] sm:$0xff] }
 0x958   :  { %4887 = vmatpush.bf16.msrb.mxu0 %v14420_v22  ;;  %4996 = vmatpush.bf16.msrb.mxu2 %v14428_v31 }
 0x959   :  { %4743 = vmatpush.bf16.msra.mxu1 %v14411_v32 }
 0x95a   :  { %v4283_v41 = vpop.f32.mrf.mxu1 }
 0x95c   :  { %4888 = vmatpush.bf16.msrb.mxu0 %v14419_v24 }
 0x95e   :  { %v4387_v49 = vpop.f32.mrf.mxu3 }
 0x960   :  { %4889 = vmatpush.bf16.msrb.mxu0 %v14418_v26 }
 0x964   :  { %4890 = vmatpush.bf16.msrb.mxu0 %v14417_v28 }
 0x967   :  { %11827 = vmatmul.msk.bf16.vlgmr.msra.gmra.mxu0 %vm182_vm6, %v4618_v33  ;;  %v14427_v33 = vld [vmem:[%s17568_s5 + $0x650] sm:$0xff] }
 0x968   :  { %4997 = vmatpush.bf16.msrb.mxu2 %v14427_v33 }
 0x9c4   :  { %v4240_v34 = vpop.f32.mrf.mxu0 }
 0x9c5   :  { %v4282_v43 = vadd.f32 %v4281_v35, %v4240_v34  ;;  %v14410_v35 = vld [vmem:[%s17568_s5 + $0x5c8] sm:$0xff] }
 0x9c6   :  { %4744 = vmatpush.bf16.msra.mxu1 %v14410_v35 }
 0x9ca   :  { %v4333_v36 = vpop.f32.mrf.mxu2 }
 0x9cb   :  { %v4338_v44 = vadd.f32 %v4333_v36, %v4282_v43  ;;  %v14409_v36 = vld [vmem:[%s17568_s5 + $0x5c0] sm:$0xff] }
 0x9cc   :  { %v4242_v37 = vpop.f32.mrf.mxu0  ;;  %v4494_v50 = vpop.f32.mrf.mxu1  ;;  %4745 = vmatpush.bf16.msra.mxu1 %v14409_v36 }
 0x9cd   :  { %v4390_v46 = vadd.f32 %v4385_v39, %v4338_v44  ;;  %v4284_v59 = vadd.f32 %v4283_v41, %v4242_v37 }
 0x9d2   :  { %v4335_v57 = vpop.f32.mrf.mxu2  ;;  %v4601_v63 = vpop.f32.mrf.mxu3 }
 0x9d3   :  { %v4339_v11 = vadd.f32 %v4335_v57, %v4284_v59  ;;  %v14426_v59 = vld [vmem:[%s17568_s5 + $0x648] sm:$0xff] }
 0x9d4   :  { %v4440_v45 = vpop.f32.mrf.mxu0  ;;  %v4496_v62 = vpop.f32.mrf.mxu1  ;;  %4998 = vmatpush.bf16.msrb.mxu2 %v14426_v59 }
 0x9d5   :  { %v4445_v53 = vadd.f32 %v4440_v45, %v4390_v46  ;;  %v4391_v61 = vadd.f32 %v4387_v49, %v4339_v11  ;;  %v14414_v11 = vld [vmem:[%s17568_s5 + $0x5e8] sm:$0xff] }
 0x9d7   :  { %v4499_v55 = vadd.f32 %v4494_v50, %v4445_v53  ;;  %v14425_v50 = vld [vmem:[%s17568_s5 + $0x640] sm:$0xff]  ;;  %v14416_v53 = vld [vmem:[%s17568_s5 + $0x5f8] sm:$0xff] }
 0x9d8   :  { %4999 = vmatpush.bf16.msrb.mxu2 %v14425_v50  ;;  %4835 = vmatpush.bf16.msra.mxu3 %v14416_v53 }
 0x9da   :  { %v4546_v10 = vpop.f32.mrf.mxu2  ;;  %v4603_v14 = vpop.f32.mrf.mxu3 }
 0x9db   :  { %v4551_v60 = vadd.f32 %v4546_v10, %v4499_v55  ;;  %v14423_v10 = vld [vmem:[%s17568_s5 + $0x630] sm:$0xff]  ;;  %v14436_v55 = vld [vmem:[%s17568_s5 + $0x698] sm:$0xff] }
 0x9dc   :  { %v4442_v54 = vpop.f32.mrf.mxu0  ;;  %5103 = vmatpush.bf16.msra.mxu0 %v14436_v55 }
 0x9dd   :  { %v4446_v0 = vadd.f32 %v4442_v54, %v4391_v61  ;;  %v4606_v1 = vadd.f32 %v4601_v63, %v4551_v60  ;;  %v14422_v54 = vld [vmem:[%s17568_s5 + $0x628] sm:$0xff]  ;;  %v14413_v60 = vld [vmem:[%s17568_s5 + $0x5e0] sm:$0xff]  ;;  %v14435_v61 = vld [vmem:[%s17568_s5 + $0x690] sm:$0xff] }
 0x9de   :  { %v14421_v63 = vld [vmem:[%s17568_s5 + $0x620] sm:$0xff] }
 0x9df   :  { %v4500_v6 = vadd.f32 %v4496_v62, %v4446_v0  ;;  %v14432_v0 = vld [vmem:[%s17568_s5 + $0x678] sm:$0xff]  ;;  %v14434_v62 = vld [vmem:[%s17568_s5 + $0x688] sm:$0xff] }
 0x9e0   :  { %5104 = vmatpush.bf16.msra.mxu0 %v14435_v61 }
 0x9e2   :  { %v4548_v52 = vpop.f32.mrf.mxu2 }
 0x9e3   :  { %v4552_v8 = vadd.f32 %v4548_v52, %v4500_v6  ;;  %v14440_v52 = vld [vmem:[%s17568_s5 + $0x6b8] sm:$0xff]  ;;  %v14430_v6 = vld [vmem:[%s17568_s5 + $0x668] sm:$0xff] }
 0x9e4   :  { %v4655_v38 = vpop.f32.mrf.mxu0  ;;  %5105 = vmatpush.bf16.msra.mxu0 %v14434_v62 }
 0x9e5   :  { %v4660_v7 = vadd.f32 %v4655_v38, %v4606_v1  ;;  %v4607_v15 = vadd.f32 %v4603_v14, %v4552_v8  ;;  %v14431_v1 = vld [vmem:[%s17568_s5 + $0x670] sm:$0xff]  ;;  %v14429_v8 = vld [vmem:[%s17568_s5 + $0x660] sm:$0xff] }
 0x9e6   :  { %v14437_v14 = vld [vmem:[%s17568_s5 + $0x6a0] sm:$0xff] }
 0x9e7   :  { %v4667_v9 = vadd.f32 %v14774_v2, %v4660_v7  ;;  %v14439_v7 = vld [vmem:[%s17568_s5 + $0x6b0] sm:$0xff] }
 0x9e9   :  { %v4669_v12 = vmax.f32 %v4667_v9, 0.0  ;;  %v14438_v9 = vld [vmem:[%s17568_s5 + $0x6a8] sm:$0xff] }
 0x9eb   :  { %4673 = vrot.lane.b32.xlu0 %v4669_v12, %s14795_s13 }
 0x9ec   :  { %v4657_v18 = vpop.f32.mrf.mxu0 }
 0x9ed   :  { %v4661_v19 = vadd.f32 %v4657_v18, %v4607_v15 }
 0x9ef   :  { %v4668_v20 = vadd.f32 %v14774_v2, %v4661_v19  ;;  %v14433_v2 = vld [vmem:[%s17568_s5 + $0x680] sm:$0xff] }
 0x9f0   :  { %5106 = vmatpush.bf16.msra.mxu0 %v14433_v2  ;;  %v14444_v2 = vld [vmem:[%s17568_s5 + $0x6d8] sm:$0xff] }
 0x9f1   :  { %v4670_v51 = vmax.f32 %v4668_v20, 0.0 }
 0x9f3   :  { %4675 = vrot.lane.b32.xlu1 %v4670_v51, %s14795_s13 }
 0xa5d   :  { %v4674_v29 = vpop.permute.xlu0 %4673 }
 0xa5e   :  { %4679 = vst.msk [vmem:[#allocation5 + $0x1] sm:$0xff] %vm96_vm5, %v4674_v29 }
 0xa65   :  { %v4676_v34 = vpop.permute.xlu1 %4675  ;;  %v4684_v37 = vld [vmem:[#allocation5 + $0x1] sm:$0xff] }
 0xa66   :  { %4680 = vst.msk [vmem:[#allocation5 + $0x11] sm:$0xff] %vm96_vm5, %v4676_v34  ;;  %v4681_v41 = vld [vmem:[#allocation5] sm:$0xff] }
 0xa67   :  { %v4687_v46 = vld [vmem:[#allocation5 + $0x2] sm:$0xff] }
 0xa6d   :  { %v4685_v39 = vld [vmem:[#allocation5 + $0x11] sm:$0xff] }
 0xa6e   :  { %v4682_v43 = vld [vmem:[#allocation5 + $0x10] sm:$0xff]  ;;  %v4686_v57 = vpack.c.bf16 %v4685_v39, %v4684_v37 }
 0xa6f   :  { %v4683_v44 = vpack.c.bf16 %v4682_v43, %v4681_v41  ;;  %v4688_v45 = vld [vmem:[#allocation5 + $0x12] sm:$0xff] }
 0xa70   :  { %4909 = vrot.lane.b32.xlu1 %v4686_v57, %s14798_s12  ;;  %11928 = vmatmul.msk.bf16.vlgmr.msrb.gmra.mxu0 %vm182_vm6, %v4686_v57  ;;  %v4689_v49 = vpack.c.bf16 %v4688_v45, %v4687_v46 }
 0xa71   :  { %4802 = vrot.lane.b32.xlu0 %v4683_v44, %s14797_s11  ;;  %4709 = vrot.lane.b32.xlu2 %v4683_v44, %s14798_s12 }
 0xa72   :  { %11878 = vmatmul.msk.bf16.vlgmr.msra.gmra.mxu2 %vm182_vm6, %v4683_v44 }
 0xa78   :  { %5124 = vrot.lane.b32.xlu1 %v4689_v49, %s14797_s11 }
 0xa79   :  { %5070 = vrot.lane.b32.xlu0 %v4689_v49, %s14798_s12  ;;  %4963 = vrot.lane.b32.xlu2 %v4686_v57, %s14797_s11 }
 0xa81   :  { %5182 = vrot.lane.b32.xlu0 %v16060_v47, %s14798_s12  ;;  %5180 = vrot.lane.b32.xlu2 %v16062_v48, %s14798_s12  ;;  %v14424_v47 = vld [vmem:[%s17568_s5 + $0x638] sm:$0xff]  ;;  %v14415_v48 = vld [vmem:[%s17568_s5 + $0x5f0] sm:$0xff] }
 0xa82   :  { %4942 = vmatpush.bf16.msrb.mxu1 %v14424_v47  ;;  %4836 = vmatpush.bf16.msra.mxu3 %v14415_v48 }
 0xa86   :  { %4943 = vmatpush.bf16.msrb.mxu1 %v14423_v10  ;;  %4837 = vmatpush.bf16.msra.mxu3 %v14414_v11 }
 0xa8a   :  { %4944 = vmatpush.bf16.msrb.mxu1 %v14422_v54  ;;  %4838 = vmatpush.bf16.msra.mxu3 %v14413_v60 }
 0xa8e   :  { %4945 = vmatpush.bf16.msrb.mxu1 %v14421_v63  ;;  %5048 = vmatpush.bf16.msrb.mxu3 %v14432_v0 }
 0xa92   :  { %5049 = vmatpush.bf16.msrb.mxu3 %v14431_v1 }
 0xa96   :  { %5050 = vmatpush.bf16.msrb.mxu3 %v14430_v6  ;;  %v14455_v6 = vld [vmem:[%s17568_s5 + $0x730] sm:$0xff] }
 0xa9a   :  { %5051 = vmatpush.bf16.msrb.mxu3 %v14429_v8  ;;  %v14454_v8 = vld [vmem:[%s17568_s5 + $0x728] sm:$0xff] }
 0xacb   :  { %v4710_v38 = vpop.permute.xlu2 %4709 }
 0xacc   :  { %11861 = vmatmul.msk.bf16.vlgmr.msra.gmra.mxu1 %vm182_vm6, %v4710_v38  ;;  %v14443_v38 = vld [vmem:[%s17568_s5 + $0x6d0] sm:$0xff] }
 0xacd   :  { %5157 = vmatpush.bf16.msra.mxu1 %v14440_v52  ;;  %v14456_v52 = vld [vmem:[%s17568_s5 + $0x738] sm:$0xff] }
 0xad1   :  { %5158 = vmatpush.bf16.msra.mxu1 %v14439_v7  ;;  %v14442_v7 = vld [vmem:[%s17568_s5 + $0x6c8] sm:$0xff] }
 0xad3   :  { %v4964_v12 = vpop.permute.xlu2 %4963 }
 0xad4   :  { %11978 = vmatmul.msk.bf16.vlgmr.msrb.gmra.mxu2 %vm182_vm6, %v4964_v12  ;;  %v14453_v12 = vld [vmem:[%s17568_s5 + $0x720] sm:$0xff] }
 0xad5   :  { %5159 = vmatpush.bf16.msra.mxu1 %v14438_v9  ;;  %v14441_v9 = vld [vmem:[%s17568_s5 + $0x6c0] sm:$0xff] }
 0xad9   :  { %5160 = vmatpush.bf16.msra.mxu1 %v14437_v14 }
 0xadb   :  { %v5181_v48 = vpop.permute.xlu2 %5180 }
 0xae2   :  { %v4910_v15 = vpop.permute.xlu1 %4909 }
 0xae3   :  { %v4803_v18 = vpop.permute.xlu0 %4802  ;;  %11953 = vmatmul.msk.bf16.vlgmr.msrb.gmra.mxu1 %vm182_vm6, %v4910_v15  ;;  %v14452_v15 = vld [vmem:[%s17568_s5 + $0x718] sm:$0xff] }
 0xae4   :  { %11903 = vmatmul.msk.bf16.vlgmr.msra.gmra.mxu3 %vm182_vm6, %v4803_v18  ;;  %5404 = vmatpush.bf16.msrb.mxu1 %v14456_v52  ;;  %v14472_v18 = vld [vmem:[%s17568_s5 + $0x7b8] sm:$0xff] }
 0xae5   :  { %5300 = vmatpush.bf16.msra.mxu3 %v14444_v2  ;;  %5352 = vmatpush.bf16.msrb.mxu0 %v14452_v15 }
 0xae8   :  { %5405 = vmatpush.bf16.msrb.mxu1 %v14455_v6 }
 0xae9   :  { %5301 = vmatpush.bf16.msra.mxu3 %v14443_v38 }
 0xaea   :  { %v5125_v20 = vpop.permute.xlu1 %5124 }
 0xaeb   :  { %v5071_v19 = vpop.permute.xlu0 %5070 }
 0xaec   :  { %12028 = vmatmul.msk.bf16.vlgmr.msra.gmra.mxu0 %vm182_vm6, %v5071_v19  ;;  %5406 = vmatpush.bf16.msrb.mxu1 %v14454_v8  ;;  %v14451_v19 = vld [vmem:[%s17568_s5 + $0x710] sm:$0xff] }
 0xaed   :  { %v4892_v23 = vpop.f32.mrf.mxu0  ;;  %5302 = vmatpush.bf16.msra.mxu3 %v14442_v7  ;;  %5353 = vmatpush.bf16.msrb.mxu0 %v14451_v19 }
 0xaf0   :  { %5407 = vmatpush.bf16.msrb.mxu1 %v14453_v12 }
 0xaf1   :  { %5303 = vmatpush.bf16.msra.mxu3 %v14441_v9 }
 0xaf3   :  { %12053 = vmatmul.msk.bf16.vlgmr.msra.gmra.mxu1 %vm182_vm6, %v5125_v20  ;;  %v5183_v62 = vpop.permute.xlu0 %5182  ;;  %v14471_v20 = vld [vmem:[%s17568_s5 + $0x7b0] sm:$0xff] }
 0xaf4   :  { %12003 = vmatmul.msk.bf16.vlgmr.msrb.gmra.mxu3 %vm182_vm6, %v4689_v49  ;;  %v14775_v49 = vld [vmem:[%s17569_s6 + $0x5] ss:$0 sm:$0xff]  ;;  %5620 = vmatpush.bf16.msra.mxu1 %v14472_v18 }
 0xaf5   :  { %v4788_v22 = vpop.f32.mrf.mxu2  ;;  %v4894_v29 = vpop.f32.mrf.mxu0 }
 0xaf8   :  { %5621 = vmatpush.bf16.msra.mxu1 %v14471_v20 }
 0xafd   :  { %v4790_v28 = vpop.f32.mrf.mxu2 }
 0xb49   :  { %v4747_v51 = vpop.f32.mrf.mxu1 }
 0xb4a   :  { %v4789_v26 = vadd.f32 %v4788_v22, %v4747_v51  ;;  %v14450_v51 = vld [vmem:[%s17568_s5 + $0x708] sm:$0xff] }
 0xb4b   :  { %5354 = vmatpush.bf16.msrb.mxu0 %v14450_v51 }
 0xb51   :  { %v4749_v21 = vpop.f32.mrf.mxu1 }
 0xb52   :  { %v4791_v33 = vadd.f32 %v4790_v28, %v4749_v21  ;;  %v14449_v21 = vld [vmem:[%s17568_s5 + $0x700] sm:$0xff] }
 0xb53   :  { %5355 = vmatpush.bf16.msrb.mxu0 %v14449_v21 }
 0xb57   :  { %v5001_v36 = vpop.f32.mrf.mxu2 }
 0xb5f   :  { %v5003_v50 = vpop.f32.mrf.mxu2 }
 0xb60   :  { %v4947_v24 = vpop.f32.mrf.mxu1 }
 0xb67   :  { %v4840_v25 = vpop.f32.mrf.mxu3 }
 0xb68   :  { %v4845_v27 = vadd.f32 %v4840_v25, %v4789_v26  ;;  %v4949_v31 = vpop.f32.mrf.mxu1 }
 0xb69   :  { %v5108_v41 = vpop.f32.mrf.mxu0 }
 0xb6a   :  { %v4897_v30 = vadd.f32 %v4892_v23, %v4845_v27 }
 0xb6c   :  { %v4952_v35 = vadd.f32 %v4947_v24, %v4897_v30 }
 0xb6e   :  { %v5006_v39 = vadd.f32 %v5001_v36, %v4952_v35  ;;  %v14469_v35 = vld [vmem:[%s17568_s5 + $0x7a0] sm:$0xff]  ;;  %v14448_v36 = vld [vmem:[%s17568_s5 + $0x6f8] sm:$0xff] }
 0xb6f   :  { %v4842_v32 = vpop.f32.mrf.mxu3  ;;  %5259 = vmatpush.bf16.msra.mxu2 %v14448_v36 }
 0xb70   :  { %v4846_v34 = vadd.f32 %v4842_v32, %v4791_v33  ;;  %v5162_v44 = vpop.f32.mrf.mxu1  ;;  %v14468_v32 = vld [vmem:[%s17568_s5 + $0x798] sm:$0xff]  ;;  %v14470_v33 = vld [vmem:[%s17568_s5 + $0x7a8] sm:$0xff] }
 0xb71   :  { %v5110_v55 = vpop.f32.mrf.mxu0  ;;  %5565 = vmatpush.bf16.msra.mxu0 %v14468_v32  ;;  %5622 = vmatpush.bf16.msra.mxu1 %v14470_v33 }
 0xb72   :  { %v4898_v37 = vadd.f32 %v4894_v29, %v4846_v34  ;;  %v14467_v34 = vld [vmem:[%s17568_s5 + $0x790] sm:$0xff] }
 0xb74   :  { %v4953_v46 = vadd.f32 %v4949_v31, %v4898_v37  ;;  %v14466_v37 = vld [vmem:[%s17568_s5 + $0x788] sm:$0xff] }
 0xb75   :  { %5566 = vmatpush.bf16.msra.mxu0 %v14467_v34  ;;  %5623 = vmatpush.bf16.msra.mxu1 %v14469_v35  ;;  %v14776_v34 = vld [vmem:[%s17569_s6 + $0x6] ss:$0 sm:$0xff] }
 0xb76   :  { %v5007_v53 = vadd.f32 %v5003_v50, %v4953_v46  ;;  %v14460_v46 = vld [vmem:[%s17568_s5 + $0x758] sm:$0xff]  ;;  %v14461_v50 = vld [vmem:[%s17568_s5 + $0x760] sm:$0xff] }
 0xb77   :  { %v5053_v43 = vpop.f32.mrf.mxu3 }
 0xb78   :  { %v5058_v57 = vadd.f32 %v5053_v43, %v5006_v39  ;;  %v5164_v61 = vpop.f32.mrf.mxu1  ;;  %v14447_v39 = vld [vmem:[%s17568_s5 + $0x6f0] sm:$0xff]  ;;  %v14446_v43 = vld [vmem:[%s17568_s5 + $0x6e8] sm:$0xff] }
 0xb79   :  { %5567 = vmatpush.bf16.msra.mxu0 %v14466_v37  ;;  %5260 = vmatpush.bf16.msra.mxu2 %v14447_v39 }
 0xb7a   :  { %v5113_v45 = vadd.f32 %v5108_v41, %v5058_v57  ;;  %v14465_v41 = vld [vmem:[%s17568_s5 + $0x780] sm:$0xff]  ;;  %v14464_v57 = vld [vmem:[%s17568_s5 + $0x778] sm:$0xff] }
 0xb7b   :  { %5513 = vmatpush.bf16.msrb.mxu3 %v14464_v57 }
 0xb7c   :  { %v5167_v59 = vadd.f32 %v5162_v44, %v5113_v45  ;;  %v14445_v44 = vld [vmem:[%s17568_s5 + $0x6e0] sm:$0xff]  ;;  %v14463_v45 = vld [vmem:[%s17568_s5 + $0x770] sm:$0xff] }
 0xb7d   :  { %5568 = vmatpush.bf16.msra.mxu0 %v14465_v41  ;;  %5261 = vmatpush.bf16.msra.mxu2 %v14446_v43 }
 0xb7e   :  { %v5174_v47 = vadd.f32 %v14775_v49, %v5167_v59  ;;  %v14459_v59 = vld [vmem:[%s17568_s5 + $0x750] sm:$0xff] }
 0xb7f   :  { %v5055_v10 = vpop.f32.mrf.mxu3  ;;  %5514 = vmatpush.bf16.msrb.mxu3 %v14463_v45 }
 0xb80   :  { %v5059_v11 = vadd.f32 %v5055_v10, %v5007_v53  ;;  %v5186_v54 = vadd.f32 %v5181_v48, %v5174_v47  ;;  %v14458_v47 = vld [vmem:[%s17568_s5 + $0x748] sm:$0xff]  ;;  %v14457_v48 = vld [vmem:[%s17568_s5 + $0x740] sm:$0xff] }
 0xb81   :  { %5262 = vmatpush.bf16.msra.mxu2 %v14445_v44 }
 0xb82   :  { %v5114_v60 = vadd.f32 %v5110_v55, %v5059_v11  ;;  %5190 = vrot.lane.b32.xlu1 %v5186_v54, %s14795_s13  ;;  %v14476_v11 = vld [vmem:[%s17568_s5 + $0x7d8] sm:$0xff]  ;;  %v14475_v55 = vld [vmem:[%s17568_s5 + $0x7d0] sm:$0xff] }
 0xb84   :  { %v5168_v63 = vadd.f32 %v5164_v61, %v5114_v60  ;;  %v14474_v60 = vld [vmem:[%s17568_s5 + $0x7c8] sm:$0xff] }
 0xb85   :  { %5459 = vmatpush.bf16.msrb.mxu2 %v14460_v46 }
 0xb86   :  { %v5175_v0 = vadd.f32 %v14775_v49, %v5168_v63  ;;  %v14462_v49 = vld [vmem:[%s17568_s5 + $0x768] sm:$0xff]  ;;  %v14473_v63 = vld [vmem:[%s17568_s5 + $0x7c0] sm:$0xff] }
 0xb87   :  { %5515 = vmatpush.bf16.msrb.mxu3 %v14462_v49 }
 0xb88   :  { %v5187_v1 = vadd.f32 %v5183_v62, %v5175_v0 }
 0xb89   :  { %5460 = vmatpush.bf16.msrb.mxu2 %v14459_v59 }
 0xb8a   :  { %5192 = vrot.lane.b32.xlu2 %v5187_v1, %s14795_s13 }
 0xb8b   :  { %5516 = vmatpush.bf16.msrb.mxu3 %v14461_v50  ;;  %v14480_v50 = vld [vmem:[%s17568_s5 + $0x7f8] sm:$0xff] }
 0xb8d   :  { %5461 = vmatpush.bf16.msrb.mxu2 %v14458_v47  ;;  %v14479_v47 = vld [vmem:[%s17568_s5 + $0x7f0] sm:$0xff] }
 0xb91   :  { %5462 = vmatpush.bf16.msrb.mxu2 %v14457_v48  ;;  %v14491_v48 = vld [vmem:[%s17568_s5 + $0x850] sm:$0xff] }
 0xbe4   :  { %v5193_v14 = vpop.permute.xlu2 %5192 }
 0xbe5   :  { %5197 = vst.msk [vmem:[#allocation4 + $0x11] sm:$0xff] %vm96_vm5, %v5193_v14 }
 0xbec   :  { %v16353_v23 = vld [vmem:[#allocation4 + $0x11] sm:$0xff] }
 0xbed   :  { %v5199_v26 = vld [vmem:[#allocation4 + $0x10] sm:$0xff] }
 0xbee   :  { %v5205_v30 = vld [vmem:[#allocation4 + $0x12] sm:$0xff] }
 0xbf4   :  { %v5191_v22 = vpop.permute.xlu1 %5190 }
 0xbf5   :  { %5196 = vst.msk [vmem:[#allocation4 + $0x1] sm:$0xff] %vm96_vm5, %v5191_v22 }
 0xbfc   :  { %v16355_v24 = vld [vmem:[#allocation4 + $0x1] sm:$0xff] }
 0xbfd   :  { %v5198_v25 = vld [vmem:[#allocation4] sm:$0xff]  ;;  %v5203_v27 = vpack.c.bf16 %v16353_v23, %v16355_v24 }
 0xbfe   :  { %v5200_v28 = vpack.c.bf16 %v5199_v26, %v5198_v25  ;;  %v5204_v29 = vld [vmem:[#allocation4 + $0x2] sm:$0xff] }
 0xbff   :  { %5426 = vrot.lane.b32.xlu1 %v5203_v27, %s14798_s12  ;;  %12154 = vmatmul.msk.bf16.vlgmr.msrb.gmra.mxu1 %vm182_vm6, %v5203_v27  ;;  %v5206_v31 = vpack.c.bf16 %v5205_v30, %v5204_v29 }
 0xc00   :  { %5319 = vrot.lane.b32.xlu2 %v5200_v28, %s14797_s11  ;;  %5226 = vrot.lane.b32.xlu0 %v5200_v28, %s14798_s12 }
 0xc01   :  { %12104 = vmatmul.msk.bf16.vlgmr.msra.gmra.mxu3 %vm182_vm6, %v5200_v28 }
 0xc07   :  { %5641 = vrot.lane.b32.xlu1 %v5206_v31, %s14797_s11 }
 0xc08   :  { %5587 = vrot.lane.b32.xlu2 %v5206_v31, %s14798_s12  ;;  %5480 = vrot.lane.b32.xlu0 %v5203_v27, %s14797_s11 }
 0xc5a   :  { %v5320_v53 = vpop.permute.xlu2 %5319 }
 0xc5b   :  { %12129 = vmatmul.msk.bf16.vlgmr.msrb.gmra.mxu0 %vm182_vm6, %v5320_v53  ;;  %v14492_v53 = vld [vmem:[%s17568_s5 + $0x858] sm:$0xff] }
 0xc5c   :  { %5807 = vmatpush.bf16.msrb.mxu0 %v14480_v50 }
 0xc60   :  { %5808 = vmatpush.bf16.msrb.mxu0 %v14479_v47 }
 0xc62   :  { %v5588_v10 = vpop.permute.xlu2 %5587 }
 0xc63   :  { %12254 = vmatmul.msk.bf16.vlgmr.msra.gmra.mxu1 %vm182_vm6, %v5588_v10  ;;  %v14478_v10 = vld [vmem:[%s17568_s5 + $0x7e8] sm:$0xff] }
 0xc64   :  { %5809 = vmatpush.bf16.msrb.mxu0 %v14478_v10 }
 0xc6b   :  { %12229 = vmatmul.msk.bf16.vlgmr.msra.gmra.mxu0 %vm182_vm6, %v5206_v31 }
 0xc71   :  { %v5427_v0 = vpop.permute.xlu1 %5426 }
 0xc72   :  { %v5227_v54 = vpop.permute.xlu0 %5226 }
 0xc73   :  { %12087 = vmatmul.msk.bf16.vlgmr.msra.gmra.mxu2 %vm182_vm6, %v5227_v54  ;;  %v14477_v54 = vld [vmem:[%s17568_s5 + $0x7e0] sm:$0xff] }
 0xc74   :  { %5674 = vmatpush.bf16.msra.mxu2 %v14476_v11  ;;  %v14490_v11 = vld [vmem:[%s17568_s5 + $0x848] sm:$0xff]  ;;  %5810 = vmatpush.bf16.msrb.mxu0 %v14477_v54 }
 0xc78   :  { %5675 = vmatpush.bf16.msra.mxu2 %v14475_v55  ;;  %v14489_v55 = vld [vmem:[%s17568_s5 + $0x840] sm:$0xff] }
 0xc79   :  { %v5642_v62 = vpop.permute.xlu1 %5641 }
 0xc7a   :  { %v5481_v61 = vpop.permute.xlu0 %5480 }
 0xc7b   :  { %12204 = vmatmul.msk.bf16.vlgmr.msrb.gmra.mxu3 %vm182_vm6, %v5481_v61 }
 0xc7c   :  { %5676 = vmatpush.bf16.msra.mxu2 %v14474_v60  ;;  %v5409_v7 = vpop.f32.mrf.mxu1 }
 0xc80   :  { %5677 = vmatpush.bf16.msra.mxu2 %v14473_v63  ;;  %v14484_v63 = vld [vmem:[%s17568_s5 + $0x818] sm:$0xff] }
 0xc81   :  { %5766 = vmatpush.bf16.msra.mxu3 %v14484_v63 }
 0xc83   :  { %12179 = vmatmul.msk.bf16.vlgmr.msrb.gmra.mxu2 %vm182_vm6, %v5427_v0  ;;  %v14508_v0 = vld [vmem:[%s17568_s5 + $0x8d8] sm:$0xff] }
 0xc84   :  { %v5305_v2 = vpop.f32.mrf.mxu3  ;;  %v5411_v20 = vpop.f32.mrf.mxu1  ;;  %5911 = vmatpush.bf16.msrb.mxu2 %v14492_v53 }
 0xc88   :  { %5912 = vmatpush.bf16.msrb.mxu2 %v14491_v48 }
 0xc8c   :  { %v5307_v8 = vpop.f32.mrf.mxu3  ;;  %5913 = vmatpush.bf16.msrb.mxu2 %v14490_v11 }
 0xc90   :  { %5914 = vmatpush.bf16.msrb.mxu2 %v14489_v55 }
 0xc93   :  { %12279 = vmatmul.msk.bf16.vlgmr.msra.gmra.mxu2 %vm182_vm6, %v5642_v62  ;;  %v14483_v62 = vld [vmem:[%s17568_s5 + $0x810] sm:$0xff] }
 0xc94   :  { %6127 = vmatpush.bf16.msra.mxu2 %v14508_v0  ;;  %5767 = vmatpush.bf16.msra.mxu3 %v14483_v62 }
 0xcd8   :  { %v5357_v52 = vpop.f32.mrf.mxu0 }
 0xce0   :  { %v5359_v12 = vpop.f32.mrf.mxu0  ;;  %v5625_v30 = vpop.f32.mrf.mxu1 }
 0xce8   :  { %v5570_v25 = vpop.f32.mrf.mxu0  ;;  %v5627_v57 = vpop.f32.mrf.mxu1 }
 0xcf0   :  { %v5572_v37 = vpop.f32.mrf.mxu0 }
 0xcf6   :  { %v5264_v1 = vpop.f32.mrf.mxu2 }
 0xcf7   :  { %v5306_v6 = vadd.f32 %v5305_v2, %v5264_v1 }
 0xcf9   :  { %v5362_v9 = vadd.f32 %v5357_v52, %v5306_v6 }
 0xcfb   :  { %v5414_v18 = vadd.f32 %v5409_v7, %v5362_v9  ;;  %v14482_v9 = vld [vmem:[%s17568_s5 + $0x808] sm:$0xff] }
 0xcfc   :  { %5768 = vmatpush.bf16.msra.mxu3 %v14482_v9 }
 0xcfe   :  { %v5266_v38 = vpop.f32.mrf.mxu2  ;;  %v5518_v51 = vpop.f32.mrf.mxu3 }
 0xcff   :  { %v5308_v15 = vadd.f32 %v5307_v8, %v5266_v38  ;;  %v14507_v8 = vld [vmem:[%s17568_s5 + $0x8d0] sm:$0xff] }
 0xd00   :  { %6128 = vmatpush.bf16.msra.mxu2 %v14507_v8 }
 0xd01   :  { %v5363_v21 = vadd.f32 %v5359_v12, %v5308_v15  ;;  %v14481_v12 = vld [vmem:[%s17568_s5 + $0x800] sm:$0xff] }
 0xd02   :  { %5769 = vmatpush.bf16.msra.mxu3 %v14481_v12 }
 0xd03   :  { %v5415_v27 = vadd.f32 %v5411_v20, %v5363_v21  ;;  %v3145_v20 = vld [vmem:[#allocation2 + $0x1] sm:$0xff] }
 0xd04   :  { %v14505_v21 = vld [vmem:[%s17568_s5 + $0x8c0] sm:$0xff] }
 0xd06   :  { %v5464_v14 = vpop.f32.mrf.mxu2  ;;  %v5520_v31 = vpop.f32.mrf.mxu3 }
 0xd07   :  { %v5469_v19 = vadd.f32 %v5464_v14, %v5414_v18 }
 0xd09   :  { %v5523_v22 = vadd.f32 %v5518_v51, %v5469_v19  ;;  %v3146_v19 = vld [vmem:[#allocation2 + $0x11] sm:$0xff]  ;;  %v14506_v51 = vld [vmem:[%s17568_s5 + $0x8c8] sm:$0xff] }
 0xd0a   :  { %6129 = vmatpush.bf16.msra.mxu2 %v14506_v51 }
 0xd0b   :  { %v5575_v29 = vadd.f32 %v5570_v25, %v5523_v22  ;;  %v14496_v22 = vld [vmem:[%s17568_s5 + $0x878] sm:$0xff]  ;;  %v14487_v25 = vld [vmem:[%s17568_s5 + $0x830] sm:$0xff] }
 0xd0c   :  { %5966 = vmatpush.bf16.msrb.mxu3 %v14496_v22 }
 0xd0d   :  { %v5630_v33 = vadd.f32 %v5625_v30, %v5575_v29  ;;  %v14493_v29 = vld [vmem:[%s17568_s5 + $0x860] sm:$0xff] }
 0xd0e   :  { %v5466_v26 = vpop.f32.mrf.mxu2  ;;  %6130 = vmatpush.bf16.msra.mxu2 %v14505_v21  ;;  %v14485_v30 = vld [vmem:[%s17568_s5 + $0x820] sm:$0xff] }
 0xd0f   :  { %v5470_v28 = vadd.f32 %v5466_v26, %v5415_v27  ;;  %v14494_v26 = vld [vmem:[%s17568_s5 + $0x868] sm:$0xff] }
 0xd10   :  { %v14486_v27 = vld [vmem:[%s17568_s5 + $0x828] sm:$0xff] }
 0xd11   :  { %v5524_v32 = vadd.f32 %v5520_v31, %v5470_v28  ;;  %v14500_v28 = vld [vmem:[%s17568_s5 + $0x898] sm:$0xff]  ;;  %v14499_v31 = vld [vmem:[%s17568_s5 + $0x890] sm:$0xff] }
 0xd12   :  { %6020 = vmatpush.bf16.msra.mxu0 %v14500_v28 }
 0xd13   :  { %v5576_v41 = vadd.f32 %v5572_v37, %v5524_v32  ;;  %v14498_v32 = vld [vmem:[%s17568_s5 + $0x888] sm:$0xff] }
 0xd15   :  { %v5631_v44 = vadd.f32 %v5627_v57, %v5576_v41  ;;  %v14511_v41 = vld [vmem:[%s17568_s5 + $0x8f0] sm:$0xff]  ;;  %v14510_v57 = vld [vmem:[%s17568_s5 + $0x8e8] sm:$0xff] }
 0xd16   :  { %v5679_v35 = vpop.f32.mrf.mxu2  ;;  %6021 = vmatpush.bf16.msra.mxu0 %v14499_v31 }
 0xd17   :  { %v5684_v36 = vadd.f32 %v5679_v35, %v5630_v33  ;;  %v14504_v33 = vld [vmem:[%s17568_s5 + $0x8b8] sm:$0xff]  ;;  %v14497_v35 = vld [vmem:[%s17568_s5 + $0x880] sm:$0xff] }
 0xd19   :  { %v5691_v39 = vadd.f32 %v14776_v34, %v5684_v36  ;;  %v14512_v36 = vld [vmem:[%s17568_s5 + $0x8f8] sm:$0xff] }
 0xd1a   :  { %6022 = vmatpush.bf16.msra.mxu0 %v14498_v32 }
 0xd1b   :  { %v5693_v43 = vmax.f32 %v5691_v39, 0.0  ;;  %v14502_v39 = vld [vmem:[%s17568_s5 + $0x8a8] sm:$0xff] }
 0xd1d   :  { %5697 = vrot.lane.b32.xlu0 %v5693_v43, %s14795_s13  ;;  %v14501_v43 = vld [vmem:[%s17568_s5 + $0x8a0] sm:$0xff] }
 0xd1e   :  { %v5681_v45 = vpop.f32.mrf.mxu2  ;;  %6023 = vmatpush.bf16.msra.mxu0 %v14497_v35 }
 0xd1f   :  { %v5685_v46 = vadd.f32 %v5681_v45, %v5631_v44  ;;  %v2760_v45 = vadd.f32 %v16009_v56, %v16011_v58 }
 0xd21   :  { %v5692_v49 = vadd.f32 %v14776_v34, %v5685_v46  ;;  %v14503_v34 = vld [vmem:[%s17568_s5 + $0x8b0] sm:$0xff]  ;;  %v14509_v46 = vld [vmem:[%s17568_s5 + $0x8e0] sm:$0xff] }
 0xd23   :  { %v5694_v59 = vmax.f32 %v5692_v49, 0.0  ;;  %v14777_v49 = vld [vmem:[%s17569_s6 + $0x3] ss:$0 sm:$0xff] }
 0xd24   :  { %v3143_v50 = vadd.f32 %v14777_v49, %v16023_v13 }
 0xd25   :  { %5699 = vrot.lane.b32.xlu1 %v5694_v59, %s14795_s13  ;;  %v2815_v59 = vadd.f32 %v16017_v3, %v2760_v45 }
 0xd27   :  { %v2867_v53 = vadd.f32 %v16013_v40, %v2815_v59 }
 0xd29   :  { %v2922_v56 = vadd.f32 %v16019_v4, %v2867_v53 }
 0xd2b   :  { %v2976_v10 = vadd.f32 %v16015_v42, %v2922_v56  ;;  %v14516_v42 = vld [vmem:[%s17566_s3 + $0x498] sm:$0xff] }
 0xd2d   :  { %v3028_v3 = vadd.f32 %v16025_v16, %v2976_v10  ;;  %v14515_v16 = vld [vmem:[%s17566_s3 + $0x490] sm:$0xff] }
 0xd2f   :  { %v3083_v13 = vadd.f32 %v16021_v5, %v3028_v3  ;;  %v14524_v3 = vld [vmem:[%s17566_s3 + $0x4b8] sm:$0xff] }
 0xd31   :  { %v3137_v40 = vadd.f32 %v16027_v17, %v3083_v13  ;;  %v14514_v17 = vld [vmem:[%s17566_s3 + $0x488] sm:$0xff]  ;;  %v14523_v13 = vld [vmem:[%s17566_s3 + $0x4b0] sm:$0xff] }
 0xd33   :  { %v3144_v55 = vadd.f32 %v14777_v49, %v3137_v40  ;;  %v14521_v40 = vld [vmem:[%s17566_s3 + $0x4a0] sm:$0xff] }
 0xd8f   :  { %v5698_v60 = vpop.permute.xlu0 %5697 }
 0xd90   :  { %5703 = vst.msk [vmem:[#allocation5 + $0x1] sm:$0xff] %vm96_vm5, %v5698_v60 }
 0xd97   :  { %v5700_v61 = vpop.permute.xlu1 %5699  ;;  %v5708_v1 = vld [vmem:[#allocation5 + $0x1] sm:$0xff] }
 0xd98   :  { %5704 = vst.msk [vmem:[#allocation5 + $0x11] sm:$0xff] %vm96_vm5, %v5700_v61  ;;  %v5705_v52 = vld [vmem:[#allocation5] sm:$0xff] }
 0xd99   :  { %v5711_v15 = vld [vmem:[#allocation5 + $0x2] sm:$0xff] }
 0xd9f   :  { %v5709_v2 = vld [vmem:[#allocation5 + $0x11] sm:$0xff] }
 0xda0   :  { %v5706_v38 = vld [vmem:[#allocation5 + $0x10] sm:$0xff]  ;;  %v5710_v6 = vpack.c.bf16 %v5709_v2, %v5708_v1  ;;  %v16606_v1 = vld [vmem:[#allocation3 + $0x1] sm:$0xff] }
 0xda1   :  { %v5707_v7 = vpack.c.bf16 %v5706_v38, %v5705_v52  ;;  %v5712_v14 = vld [vmem:[#allocation5 + $0x12] sm:$0xff]  ;;  %v14513_v52 = vld [vmem:[%s17566_s3 + $0x480] sm:$0xff] }
 0xda2   :  { %5933 = vrot.lane.b32.xlu0 %v5710_v6, %s14798_s12  ;;  %12380 = vmatmul.msk.bf16.vlgmr.msrb.gmra.mxu2 %vm182_vm6, %v5710_v6  ;;  %v16494_v18 = vpack.c.bf16 %v5712_v14, %v5711_v15 }
 0xda3   :  { %5826 = vrot.lane.b32.xlu1 %v5707_v7, %s14797_s11  ;;  %5733 = vrot.lane.b32.xlu2 %v5707_v7, %s14798_s12 }
 0xda4   :  { %12330 = vmatmul.msk.bf16.vlgmr.msrb.gmra.mxu0 %vm182_vm6, %v5707_v7  ;;  %6391 = vmatpush.bf16.msrb.mxu2 %v14524_v3  ;;  %v14553_v3 = vld [vmem:[%s17566_s3 + $0x520] sm:$0xff] }
 0xda8   :  { %6392 = vmatpush.bf16.msrb.mxu2 %v14523_v13  ;;  %v14560_v13 = vld [vmem:[%s17566_s3 + $0x658] sm:$0xff] }
 0xdaa   :  { %5987 = vrot.lane.b32.xlu0 %v5710_v6, %s14797_s11 }
 0xdab   :  { %6148 = vrot.lane.b32.xlu1 %v16494_v18, %s14797_s11  ;;  %6094 = vrot.lane.b32.xlu2 %v16494_v18, %s14798_s12 }
 0xdb2   :  { %3151 = vrot.lane.b32.xlu0 %v3146_v19, %s14798_s12 }
 0xdb3   :  { %6204 = vrot.lane.b32.xlu1 %v16355_v24, %s14798_s12  ;;  %3149 = vrot.lane.b32.xlu2 %v3145_v20, %s14798_s12  ;;  %v14488_v24 = vld [vmem:[%s17568_s5 + $0x838] sm:$0xff] }
 0xdb4   :  { %5859 = vmatpush.bf16.msrb.mxu1 %v14488_v24 }
 0xdb8   :  { %5860 = vmatpush.bf16.msrb.mxu1 %v14487_v25 }
 0xdbb   :  { %6206 = vrot.lane.b32.xlu2 %v16353_v23, %s14798_s12  ;;  %v14495_v23 = vld [vmem:[%s17568_s5 + $0x870] sm:$0xff] }
 0xdbc   :  { %5967 = vmatpush.bf16.msrb.mxu3 %v14495_v23  ;;  %5861 = vmatpush.bf16.msrb.mxu1 %v14486_v27  ;;  %v16614_v27 = vld [vmem:[#allocation3 + $0x11] sm:$0xff] }
 0xdc0   :  { %5968 = vmatpush.bf16.msrb.mxu3 %v14494_v26  ;;  %5862 = vmatpush.bf16.msrb.mxu1 %v14485_v30 }
 0xdc4   :  { %5969 = vmatpush.bf16.msrb.mxu3 %v14493_v29  ;;  %6072 = vmatpush.bf16.msra.mxu1 %v14504_v33 }
 0xdc8   :  { %6073 = vmatpush.bf16.msra.mxu1 %v14503_v34 }
 0xdcc   :  { %6074 = vmatpush.bf16.msra.mxu1 %v14502_v39 }
 0xdd0   :  { %6075 = vmatpush.bf16.msra.mxu1 %v14501_v43 }
 0xdfd   :  { %v5734_v37 = vpop.permute.xlu2 %5733 }
 0xdfe   :  { %12313 = vmatmul.msk.bf16.vlgmr.msra.gmra.mxu3 %vm182_vm6, %v5734_v37  ;;  %v14778_v37 = vld [vmem:[%s17569_s6 + $0x7] ss:$0 sm:$0xff] }
 0xdff   :  { %6181 = vmatpush.bf16.msra.mxu3 %v14512_v36 }
 0xe03   :  { %6182 = vmatpush.bf16.msra.mxu3 %v14511_v41 }
 0xe05   :  { %v6095_v44 = vpop.permute.xlu2 %6094 }
 0xe06   :  { %12480 = vmatmul.msk.bf16.vlgmr.msra.gmra.mxu2 %vm182_vm6, %v6095_v44 }
 0xe07   :  { %6183 = vmatpush.bf16.msra.mxu3 %v14510_v57 }
 0xe0b   :  { %6184 = vmatpush.bf16.msra.mxu3 %v14509_v46 }
 0xe0d   :  { %v3150_v47 = vpop.permute.xlu2 %3149 }
 0xe0e   :  { %v3155_v48 = vadd.f32 %v3150_v47, %v3143_v50 }
 0xe10   :  { %3159 = vrot.lane.b32.xlu0 %v3155_v48, %s14795_s13 }
 0xe14   :  { %v5934_v58 = vpop.permute.xlu0 %5933 }
 0xe15   :  { %v5827_v11 = vpop.permute.xlu1 %5826  ;;  %12405 = vmatmul.msk.bf16.vlgmr.msrb.gmra.mxu3 %vm182_vm6, %v5934_v58  ;;  %v6207_v10 = vpop.permute.xlu2 %6206 }
 0xe16   :  { %12355 = vmatmul.msk.bf16.vlgmr.msrb.gmra.mxu1 %vm182_vm6, %v5827_v11 }
 0xe17   :  { %6338 = vmatpush.bf16.msrb.mxu1 %v14516_v42  ;;  %v14537_v42 = vld [vmem:[%s17566_s3 + $0x4e0] sm:$0xff] }
 0xe1b   :  { %6339 = vmatpush.bf16.msrb.mxu1 %v14515_v16 }
 0xe1c   :  { %v5988_v54 = vpop.permute.xlu0 %5987 }
 0xe1d   :  { %12430 = vmatmul.msk.bf16.vlgmr.msra.gmra.mxu0 %vm182_vm6, %v5988_v54  ;;  %v6149_v60 = vpop.permute.xlu1 %6148  ;;  %v14522_v54 = vld [vmem:[%s17566_s3 + $0x4a8] sm:$0xff] }
 0xe1e   :  { %6393 = vmatpush.bf16.msrb.mxu2 %v14522_v54  ;;  %v14550_v54 = vld [vmem:[%s17566_s3 + $0x628] sm:$0xff] }
 0xe1f   :  { %6340 = vmatpush.bf16.msrb.mxu1 %v14514_v17 }
 0xe21   :  { %v5812_v62 = vpop.f32.mrf.mxu0 }
 0xe22   :  { %6394 = vmatpush.bf16.msrb.mxu2 %v14521_v40 }
 0xe23   :  { %6341 = vmatpush.bf16.msrb.mxu1 %v14513_v52  ;;  %v14531_v52 = vld [vmem:[%s17566_s3 + $0x4d0] sm:$0xff] }
 0xe24   :  { %v3152_v4 = vpop.permute.xlu0 %3151 }
 0xe25   :  { %v3156_v61 = vadd.f32 %v3152_v4, %v3144_v55  ;;  %12505 = vmatmul.msk.bf16.vlgmr.msra.gmra.mxu3 %vm182_vm6, %v6149_v60  ;;  %v6205_v6 = vpop.permute.xlu1 %6204  ;;  %v5916_v7 = vpop.f32.mrf.mxu2  ;;  %v14540_v55 = vld [vmem:[%s17566_s3 + $0x4f8] sm:$0xff]  ;;  %v14539_v60 = vld [vmem:[%s17566_s3 + $0x4f0] sm:$0xff] }
 0xe26   :  { %12455 = vmatmul.msk.bf16.vlgmr.msra.gmra.mxu1 %vm182_vm6, %v16494_v18  ;;  %6606 = vmatpush.bf16.msra.mxu2 %v14540_v55  ;;  %v14572_v55 = vld [vmem:[%s17566_s3 + $0x578] sm:$0xff] }
 0xe27   :  { %3161 = vrot.lane.b32.xlu1 %v3156_v61, %s14795_s13  ;;  %v14538_v61 = vld [vmem:[%s17566_s3 + $0x4e8] sm:$0xff] }
 0xe29   :  { %v5814_v9 = vpop.f32.mrf.mxu0 }
 0xe2a   :  { %6607 = vmatpush.bf16.msra.mxu2 %v14539_v60  ;;  %v14559_v60 = vld [vmem:[%s17566_s3 + $0x650] sm:$0xff] }
 0xe2d   :  { %v5918_v20 = vpop.f32.mrf.mxu2 }
 0xe2e   :  { %6608 = vmatpush.bf16.msra.mxu2 %v14538_v61  ;;  %v14571_v61 = vld [vmem:[%s17566_s3 + $0x570] sm:$0xff] }
 0xe32   :  { %6609 = vmatpush.bf16.msra.mxu2 %v14537_v42  ;;  %v14558_v42 = vld [vmem:[%s17566_s3 + $0x648] sm:$0xff] }
 0xe81   :  { %v5771_v63 = vpop.f32.mrf.mxu3 }
 0xe82   :  { %v3160_v5 = vpop.permute.xlu0 %3159  ;;  %v5813_v12 = vadd.f32 %v5812_v62, %v5771_v63  ;;  %v14519_v63 = vld [vmem:[%s17566_s3 + $0x5b0] sm:$0xff]  ;;  %v14517_v62 = vld [vmem:[%s17566_s3 + $0x5a0] sm:$0xff] }
 0xe83   :  { %3165 = vst.msk [vmem:[#allocation2 + $0x1] sm:$0xff] %vm96_vm5, %v3160_v5  ;;  %v14520_v5 = vld [vmem:[%s17566_s3 + $0x5b8] sm:$0xff] }
 0xe84   :  { %6297 = vmatpush.bf16.msrb.mxu0 %v14520_v5  ;;  %v14580_v5 = vld [vmem:[%s17566_s3 + $0x598] sm:$0xff] }
 0xe88   :  { %6298 = vmatpush.bf16.msrb.mxu0 %v14519_v63  ;;  %v14557_v63 = vld [vmem:[%s17566_s3 + $0x640] sm:$0xff] }
 0xe89   :  { %v5773_v38 = vpop.f32.mrf.mxu3  ;;  %v6132_v31 = vpop.f32.mrf.mxu2 }
 0xe8a   :  { %v3167_v0 = vld [vmem:[#allocation2 + $0x1] sm:$0xff]  ;;  %v5815_v22 = vadd.f32 %v5814_v9, %v5773_v38 }
 0xe8b   :  { %v3171_v2 = vadd.f32 %v16606_v1, %v3167_v0  ;;  %v14518_v0 = vld [vmem:[%s17566_s3 + $0x5a8] sm:$0xff] }
 0xe8c   :  { %6299 = vmatpush.bf16.msrb.mxu0 %v14518_v0  ;;  %v14530_v38 = vld [vmem:[%s17566_s3 + $0x4c8] sm:$0xff]  ;;  %v14579_v0 = vld [vmem:[%s17566_s3 + $0x590] sm:$0xff] }
 0xe8d   :  { %3173 = vst.msk [vmem:[#allocation2 + $0x1] sm:$0xff] %vm96_vm5, %v3171_v2 }
 0xe90   :  { %6300 = vmatpush.bf16.msrb.mxu0 %v14517_v62  ;;  %v14569_v62 = vld [vmem:[%s17566_s3 + $0x560] sm:$0xff] }
 0xe91   :  { %v6134_v53 = vpop.f32.mrf.mxu2 }
 0xe93   :  { %v5864_v8 = vpop.f32.mrf.mxu1 }
 0xe94   :  { %v5869_v14 = vadd.f32 %v5864_v8, %v5813_v12  ;;  %v6230_v45 = vld [vmem:[#allocation2] sm:$0xff] }
 0xe95   :  { %v6233_v9 = vld [vmem:[#allocation2 + $0x1] sm:$0xff] }
 0xe96   :  { %v5921_v51 = vadd.f32 %v5916_v7, %v5869_v14  ;;  %v14529_v7 = vld [vmem:[%s17566_s3 + $0x4c0] sm:$0xff] }
 0xe98   :  { %v5971_v15 = vpop.f32.mrf.mxu3 }
 0xe99   :  { %v3162_v18 = vpop.permute.xlu1 %3161  ;;  %v5976_v24 = vadd.f32 %v5971_v15, %v5921_v51 }
 0xe9a   :  { %3166 = vst.msk [vmem:[#allocation2 + $0x11] sm:$0xff] %vm96_vm5, %v3162_v18  ;;  %v6025_v21 = vpop.f32.mrf.mxu0  ;;  %v14528_v18 = vld [vmem:[%s17566_s3 + $0x5d8] sm:$0xff] }
 0xe9b   :  { %v5866_v19 = vpop.f32.mrf.mxu1  ;;  %v6030_v29 = vadd.f32 %v6025_v21, %v5976_v24  ;;  %6446 = vmatpush.bf16.msrb.mxu3 %v14528_v18 }
 0xe9c   :  { %v5870_v23 = vadd.f32 %v5866_v19, %v5815_v22  ;;  %v14527_v19 = vld [vmem:[%s17566_s3 + $0x5d0] sm:$0xff] }
 0xe9e   :  { %v5922_v32 = vadd.f32 %v5918_v20, %v5870_v23 }
 0xe9f   :  { %6447 = vmatpush.bf16.msrb.mxu3 %v14527_v19  ;;  %v14565_v19 = vld [vmem:[%s17566_s3 + $0x660] sm:$0xff] }
 0xea0   :  { %v5973_v25 = vpop.f32.mrf.mxu3 }
 0xea1   :  { %v3168_v26 = vld [vmem:[#allocation2 + $0x11] sm:$0xff]  ;;  %v5977_v34 = vadd.f32 %v5973_v25, %v5922_v32 }
 0xea2   :  { %v3172_v28 = vadd.f32 %v16614_v27, %v3168_v26  ;;  %v6027_v35 = vpop.f32.mrf.mxu0  ;;  %v14548_v25 = vld [vmem:[%s17566_s3 + $0x518] sm:$0xff]  ;;  %v14526_v26 = vld [vmem:[%s17566_s3 + $0x5c8] sm:$0xff] }
 0xea3   :  { %v6077_v30 = vpop.f32.mrf.mxu1  ;;  %v6031_v43 = vadd.f32 %v6027_v35, %v5977_v34  ;;  %6448 = vmatpush.bf16.msrb.mxu3 %v14526_v26  ;;  %v14581_v26 = vld [vmem:[%s17566_s3 + $0x6a0] sm:$0xff] }
 0xea4   :  { %3174 = vst.msk [vmem:[#allocation2 + $0x11] sm:$0xff] %vm96_vm5, %v3172_v28  ;;  %v6082_v33 = vadd.f32 %v6077_v30, %v6030_v29  ;;  %v14525_v29 = vld [vmem:[%s17566_s3 + $0x5c0] sm:$0xff] }
 0xea5   :  { %v6236_v30 = vld [vmem:[#allocation2 + $0x2] sm:$0xff] }
 0xea6   :  { %v6137_v36 = vadd.f32 %v6132_v31, %v6082_v33 }
 0xea7   :  { %6449 = vmatpush.bf16.msrb.mxu3 %v14525_v29 }
 0xea8   :  { %v6186_v39 = vpop.f32.mrf.mxu3 }
 0xea9   :  { %v6191_v41 = vadd.f32 %v6186_v39, %v6137_v36  ;;  %v14544_v36 = vld [vmem:[%s17566_s3 + $0x618] sm:$0xff]  ;;  %v14543_v39 = vld [vmem:[%s17566_s3 + $0x610] sm:$0xff] }
 0xeab   :  { %v6198_v57 = vadd.f32 %v14778_v37, %v6191_v41  ;;  %v6079_v44 = vpop.f32.mrf.mxu1  ;;  %v6231_v46 = vld [vmem:[#allocation2 + $0x10] sm:$0xff]  ;;  %6658 = vmatpush.bf16.msra.mxu3 %v14544_v36  ;;  %v14545_v41 = vld [vmem:[%s17566_s3 + $0x500] sm:$0xff] }
 0xeac   :  { %v6083_v49 = vadd.f32 %v6079_v44, %v6031_v43  ;;  %v6232_v59 = vpack.c.bf16 %v6231_v46, %v6230_v45  ;;  %v6234_v8 = vld [vmem:[#allocation2 + $0x11] sm:$0xff]  ;;  %v14541_v46 = vld [vmem:[%s17566_s3 + $0x600] sm:$0xff] }
 0xead   :  { %v6210_v50 = vadd.f32 %v6205_v6, %v6198_v57  ;;  %v6235_v12 = vpack.c.bf16 %v6234_v8, %v6233_v9  ;;  %v6237_v28 = vld [vmem:[#allocation2 + $0x12] sm:$0xff]  ;;  %v14542_v57 = vld [vmem:[%s17566_s3 + $0x608] sm:$0xff] }
 0xeae   :  { %6358 = vrot.lane.b32.xlu1 %v6232_v59, %s14798_s12  ;;  %12556 = vmatmul.msk.bf16.vlgmr.msrb.gmra.mxu1 %vm182_vm6, %v6232_v59  ;;  %v6138_v47 = vadd.f32 %v6134_v53, %v6083_v49  ;;  %v16707_v31 = vpack.c.bf16 %v6237_v28, %v6236_v30  ;;  %v14536_v43 = vld [vmem:[%s17566_s3 + $0x5f8] sm:$0xff]  ;;  %v14535_v45 = vld [vmem:[%s17566_s3 + $0x5f0] sm:$0xff]  ;;  %v14562_v53 = vld [vmem:[%s17566_s3 + $0x548] sm:$0xff] }
 0xeaf   :  { %6214 = vrot.lane.b32.xlu2 %v6210_v50, %s14795_s13  ;;  %6659 = vmatpush.bf16.msra.mxu3 %v14543_v39  ;;  %v14564_v44 = vld [vmem:[%s17566_s3 + $0x558] sm:$0xff]  ;;  %v14563_v49 = vld [vmem:[%s17566_s3 + $0x550] sm:$0xff] }
 0xeb0   :  { %v6188_v48 = vpop.f32.mrf.mxu3  ;;  %6554 = vmatpush.bf16.msra.mxu1 %v14536_v43  ;;  %v14556_v50 = vld [vmem:[%s17566_s3 + $0x538] sm:$0xff]  ;;  %v14567_v9 = vld [vmem:[%s17566_s3 + $0x670] sm:$0xff] }
 0xeb1   :  { %v6192_v56 = vadd.f32 %v6188_v48, %v6138_v47  ;;  %v14533_v47 = vld [vmem:[%s17566_s3 + $0x5e0] sm:$0xff]  ;;  %v14555_v48 = vld [vmem:[%s17566_s3 + $0x530] sm:$0xff] }
 0xeb3   :  { %v6199_v58 = vadd.f32 %v14778_v37, %v6192_v56  ;;  %v14546_v37 = vld [vmem:[%s17566_s3 + $0x508] sm:$0xff]  ;;  %6660 = vmatpush.bf16.msra.mxu3 %v14542_v57  ;;  %v14561_v56 = vld [vmem:[%s17566_s3 + $0x540] sm:$0xff] }
 0xeb4   :  { %6555 = vmatpush.bf16.msra.mxu1 %v14535_v45 }
 0xeb5   :  { %v6211_v11 = vadd.f32 %v6207_v10, %v6199_v58  ;;  %v14552_v58 = vld [vmem:[%s17566_s3 + $0x638] sm:$0xff]  ;;  %v14554_v10 = vld [vmem:[%s17566_s3 + $0x528] sm:$0xff] }
 0xeb7   :  { %6216 = vrot.lane.b32.xlu0 %v6211_v11, %s14795_s13  ;;  %6661 = vmatpush.bf16.msra.mxu3 %v14541_v46  ;;  %v14551_v11 = vld [vmem:[%s17566_s3 + $0x630] sm:$0xff] }
 0xebf   :  { %6467 = vrot.lane.b32.xlu0 %v6232_v59, %s14797_s11  ;;  %v14534_v59 = vld [vmem:[%s17566_s3 + $0x5e8] sm:$0xff] }
 0xec0   :  { %6556 = vmatpush.bf16.msra.mxu1 %v14534_v59 }
 0xec4   :  { %6557 = vmatpush.bf16.msra.mxu1 %v14533_v47 }
 0xec8   :  { %6768 = vmatpush.bf16.msrb.mxu1 %v14552_v58 }
 0xecc   :  { %6769 = vmatpush.bf16.msrb.mxu1 %v14551_v11 }
 0xed0   :  { %6770 = vmatpush.bf16.msrb.mxu1 %v14550_v54 }
 0xf09   :  { %v6215_v4 = vpop.permute.xlu2 %6214 }
 0xf0a   :  { %6220 = vst.msk [vmem:[#allocation4 + $0x1] sm:$0xff] %vm96_vm5, %v6215_v4  ;;  %v14549_v4 = vld [vmem:[%s17566_s3 + $0x620] sm:$0xff] }
 0xf0b   :  { %6771 = vmatpush.bf16.msrb.mxu1 %v14549_v4 }
 0xf11   :  { %v6222_v16 = vld [vmem:[#allocation4 + $0x1] sm:$0xff] }
 0xf12   :  { %v6226_v17 = vadd.f32 %v16606_v1, %v6222_v16  ;;  %v14532_v1 = vld [vmem:[%s17566_s3 + $0x4d8] sm:$0xff] }
 0xf13   :  { %6500 = vmatpush.bf16.msra.mxu0 %v14532_v1  ;;  %v14576_v1 = vld [vmem:[%s17566_s3 + $0x698] sm:$0xff] }
 0xf14   :  { %6228 = vst.msk [vmem:[#allocation4 + $0x1] sm:$0xff] %vm96_vm5, %v6226_v17  ;;  %v14570_v17 = vld [vmem:[%s17566_s3 + $0x568] sm:$0xff] }
 0xf17   :  { %6501 = vmatpush.bf16.msra.mxu0 %v14531_v52  ;;  %v14575_v52 = vld [vmem:[%s17566_s3 + $0x690] sm:$0xff] }
 0xf1b   :  { %6502 = vmatpush.bf16.msra.mxu0 %v14530_v38  ;;  %v6242_v20 = vld [vmem:[#allocation4 + $0x1] sm:$0xff] }
 0xf1c   :  { %v6239_v21 = vld [vmem:[#allocation4] sm:$0xff] }
 0xf1d   :  { %v6245_v33 = vld [vmem:[#allocation4 + $0x2] sm:$0xff] }
 0xf1e   :  { %v14577_v38 = vld [vmem:[%s17566_s3 + $0x580] sm:$0xff] }
 0xf1f   :  { %6503 = vmatpush.bf16.msra.mxu0 %v14529_v7  ;;  %v14574_v7 = vld [vmem:[%s17566_s3 + $0x688] sm:$0xff] }
 0xf20   :  { %v6359_v2 = vpop.permute.xlu1 %6358 }
 0xf21   :  { %12581 = vmatmul.msk.bf16.vlgmr.msrb.gmra.mxu2 %vm182_vm6, %v6359_v2  ;;  %v14578_v2 = vld [vmem:[%s17566_s3 + $0x588] sm:$0xff] }
 0xf22   :  { %6822 = vmatpush.bf16.msrb.mxu2 %v14556_v50 }
 0xf26   :  { %6823 = vmatpush.bf16.msrb.mxu2 %v14555_v48 }
 0xf29   :  { %v6217_v6 = vpop.permute.xlu0 %6216 }
 0xf2a   :  { %6221 = vst.msk [vmem:[#allocation4 + $0x11] sm:$0xff] %vm96_vm5, %v6217_v6  ;;  %6824 = vmatpush.bf16.msrb.mxu2 %v14554_v10  ;;  %v14568_v6 = vld [vmem:[%s17566_s3 + $0x678] sm:$0xff] }
 0xf2e   :  { %6825 = vmatpush.bf16.msrb.mxu2 %v14553_v3 }
 0xf31   :  { %v6223_v14 = vld [vmem:[#allocation4 + $0x11] sm:$0xff]  ;;  %12681 = vmatmul.msk.bf16.vlgmr.msra.gmra.mxu2 %vm182_vm6, %v6235_v12  ;;  %v6468_v35 = vpop.permute.xlu0 %6467 }
 0xf32   :  { %v6227_v15 = vadd.f32 %v16614_v27, %v6223_v14  ;;  %v14547_v27 = vld [vmem:[%s17566_s3 + $0x510] sm:$0xff]  ;;  %7035 = vmatpush.bf16.msra.mxu2 %v14572_v55  ;;  %v14566_v14 = vld [vmem:[%s17566_s3 + $0x668] sm:$0xff] }
 0xf34   :  { %6229 = vst.msk [vmem:[#allocation4 + $0x11] sm:$0xff] %vm96_vm5, %v6227_v15 }
 0xf36   :  { %7036 = vmatpush.bf16.msra.mxu2 %v14571_v61 }
 0xf3a   :  { %7037 = vmatpush.bf16.msra.mxu2 %v14570_v17 }
 0xf3b   :  { %v6243_v51 = vld [vmem:[#allocation4 + $0x11] sm:$0xff] }
 0xf3c   :  { %v6240_v22 = vld [vmem:[#allocation4 + $0x10] sm:$0xff]  ;;  %v16688_v24 = vpack.c.bf16 %v6243_v51, %v6242_v20  ;;  %v14584_v51 = vld [vmem:[%s17566_s3 + $0x6b8] sm:$0xff] }
 0xf3d   :  { %v6241_v23 = vpack.c.bf16 %v6240_v22, %v6239_v21  ;;  %v6246_v32 = vld [vmem:[#allocation4 + $0x12] sm:$0xff] }
 0xf3e   :  { %6735 = vrot.lane.b32.xlu0 %v16688_v24, %s14798_s12  ;;  %v16713_v34 = vpack.c.bf16 %v6246_v32, %v6245_v33  ;;  %7038 = vmatpush.bf16.msra.mxu2 %v14569_v62  ;;  %v14583_v22 = vld [vmem:[%s17566_s3 + $0x6b0] sm:$0xff] }
 0xf3f   :  { %6521 = vrot.lane.b32.xlu1 %v6241_v23, %s14797_s11  ;;  %6413 = vrot.lane.b32.xlu2 %v6241_v23, %s14798_s12 }
 0xf40   :  { %12539 = vmatmul.msk.bf16.vlgmr.msrb.gmra.mxu0 %vm182_vm6, %v6241_v23 }
 0xf41   :  { %6713 = vmatpush.bf16.msrb.mxu0 %v14548_v25 }
 0xf45   :  { %6714 = vmatpush.bf16.msrb.mxu0 %v14547_v27 }
 0xf46   :  { %7002 = vrot.lane.b32.xlu0 %v16707_v31, %s14798_s12 }
 0xf47   :  { %6789 = vrot.lane.b32.xlu1 %v6235_v12, %s14797_s11  ;;  %6680 = vrot.lane.b32.xlu2 %v6235_v12, %s14798_s12  ;;  %v14573_v12 = vld [vmem:[%s17566_s3 + $0x680] sm:$0xff] }
 0xf49   :  { %6715 = vmatpush.bf16.msrb.mxu0 %v14546_v37 }
 0xf4d   :  { %6716 = vmatpush.bf16.msrb.mxu0 %v14545_v41 }
 0xf4e   :  { %7165 = vrot.lane.b32.xlu0 %v16713_v34, %s14797_s11 }
 0xf4f   :  { %7057 = vrot.lane.b32.xlu1 %v16713_v34, %s14798_s12  ;;  %6843 = vrot.lane.b32.xlu2 %v16688_v24, %s14797_s11 }
 0xf50   :  { %12631 = vmatmul.msk.bf16.vlgmr.msra.gmra.mxu0 %vm182_vm6, %v6468_v35 }
 0xf51   :  { %6928 = vmatpush.bf16.msra.mxu0 %v14564_v44 }
 0xf55   :  { %6929 = vmatpush.bf16.msra.mxu0 %v14563_v49 }
 0xf57   :  { %7111 = vrot.lane.b32.xlu2 %v16707_v31, %s14797_s11 }
 0xf59   :  { %6930 = vmatpush.bf16.msra.mxu0 %v14562_v53 }
 0xf5d   :  { %6931 = vmatpush.bf16.msra.mxu0 %v14561_v56 }
 0xf99   :  { %v6414_v40 = vpop.permute.xlu2 %6413 }
 0xf9a   :  { %12606 = vmatmul.msk.bf16.vlgmr.msrb.gmra.mxu3 %vm182_vm6, %v6414_v40 }
 0xf9b   :  { %6876 = vmatpush.bf16.msrb.mxu3 %v14560_v13 }
 0xf9f   :  { %6877 = vmatpush.bf16.msrb.mxu3 %v14559_v60 }
 0xfa1   :  { %v6681_v16 = vpop.permute.xlu2 %6680 }
 0xfa2   :  { %12731 = vmatmul.msk.bf16.vlgmr.msrb.gmra.mxu0 %vm182_vm6, %v6681_v16 }
 0xfa3   :  { %6878 = vmatpush.bf16.msrb.mxu3 %v14558_v42  ;;  %7144 = vmatpush.bf16.msrb.mxu0 %v14580_v5 }
 0xfa4   :  { %v6396_v30 = vpop.f32.mrf.mxu2 }
 0xfa7   :  { %6879 = vmatpush.bf16.msrb.mxu3 %v14557_v63  ;;  %7145 = vmatpush.bf16.msrb.mxu0 %v14579_v0 }
 0xfa9   :  { %v6844_v15 = vpop.permute.xlu2 %6843 }
 0xfaa   :  { %12706 = vmatmul.msk.bf16.vlgmr.msra.gmra.mxu3 %vm182_vm6, %v16688_v24  ;;  %v14582_v24 = vld [vmem:[%s17566_s3 + $0x6a8] sm:$0xff] }
 0xfab   :  { %7090 = vmatpush.bf16.msra.mxu3 %v14576_v1  ;;  %7146 = vmatpush.bf16.msrb.mxu0 %v14578_v2 }
 0xfac   :  { %v6398_v35 = vpop.f32.mrf.mxu2 }
 0xfaf   :  { %7091 = vmatpush.bf16.msra.mxu3 %v14575_v52  ;;  %7147 = vmatpush.bf16.msrb.mxu0 %v14577_v38 }
 0xfb0   :  { %v6736_v20 = vpop.permute.xlu0 %6735 }
 0xfb1   :  { %v6522_v8 = vpop.permute.xlu1 %6521  ;;  %v7112_v21 = vpop.permute.xlu2 %7111 }
 0xfb2   :  { %12656 = vmatmul.msk.bf16.vlgmr.msra.gmra.mxu1 %vm182_vm6, %v6522_v8  ;;  %12831 = vmatmul.msk.bf16.vlgmr.msra.gmra.mxu0 %vm182_vm6, %v16707_v31  ;;  %v6343_v31 = vpop.f32.mrf.mxu1 }
 0xfb3   :  { %6980 = vmatpush.bf16.msra.mxu1 %v14568_v6  ;;  %7092 = vmatpush.bf16.msra.mxu3 %v14574_v7 }
 0xfb4   :  { %v6611_v43 = vpop.f32.mrf.mxu2 }
 0xfb7   :  { %6981 = vmatpush.bf16.msra.mxu1 %v14567_v9  ;;  %7093 = vmatpush.bf16.msra.mxu3 %v14573_v12 }
 0xfb8   :  { %v7003_v23 = vpop.permute.xlu0 %7002 }
 0xfb9   :  { %v6790_v18 = vpop.permute.xlu1 %6789 }
 0xfba   :  { %12781 = vmatmul.msk.bf16.vlgmr.msrb.gmra.mxu2 %vm182_vm6, %v6790_v18  ;;  %12806 = vmatmul.msk.bf16.vlgmr.msrb.gmra.mxu3 %vm182_vm6, %v6844_v15  ;;  %v6345_v37 = vpop.f32.mrf.mxu1 }
 0xfbb   :  { %6982 = vmatpush.bf16.msra.mxu1 %v14566_v14 }
 0xfbc   :  { %v6613_v47 = vpop.f32.mrf.mxu2 }
 0xfbd   :  { %v6302_v28 = vpop.f32.mrf.mxu0 }
 0xfbe   :  { %v6344_v39 = vadd.f32 %v6343_v31, %v6302_v28 }
 0xfbf   :  { %6983 = vmatpush.bf16.msra.mxu1 %v14565_v19 }
 0xfc0   :  { %v7166_v27 = vpop.permute.xlu0 %7165  ;;  %v6401_v57 = vadd.f32 %v6396_v30, %v6344_v39 }
 0xfc1   :  { %v7058_v25 = vpop.permute.xlu1 %7057 }
 0xfc2   :  { %12756 = vmatmul.msk.bf16.vlgmr.msrb.gmra.mxu1 %vm182_vm6, %v6736_v20  ;;  %12931 = vmatmul.msk.bf16.vlgmr.msrb.gmra.mxu0 %vm182_vm6, %v7112_v21 }
 0xfc3   :  { %7198 = vmatpush.bf16.msrb.mxu1 %v14584_v51 }
 0xfc5   :  { %v6304_v29 = vpop.f32.mrf.mxu0 }
 0xfc7   :  { %7199 = vmatpush.bf16.msrb.mxu1 %v14583_v22 }
 0xfca   :  { %12881 = vmatmul.msk.bf16.vlgmr.msra.gmra.mxu2 %vm182_vm6, %v7003_v23  ;;  %12906 = vmatmul.msk.bf16.vlgmr.msra.gmra.mxu3 %vm182_vm6, %v7058_v25 }
 0xfcb   :  { %7200 = vmatpush.bf16.msrb.mxu1 %v14582_v24 }
 0xfcd   :  { %v6505_v33 = vpop.f32.mrf.mxu0 }
 0xfcf   :  { %7201 = vmatpush.bf16.msrb.mxu1 %v14581_v26  ;;  %v14779_v26 = vld [vmem:[%s17567_s4 + $0x2] ss:$0 sm:$0xff] }
 0xfd2   :  { %12856 = vmatmul.msk.bf16.vlgmr.msra.gmra.mxu1 %vm182_vm6, %v16713_v34  ;;  %v6346_v34 = vadd.f32 %v6345_v37, %v6304_v29 }
 0xfd4   :  { %v6402_v50 = vadd.f32 %v6398_v35, %v6346_v34  ;;  %v14598_v34 = vld [vmem:[%s17568_s5 + $0x968] sm:$0xff] }
 0xfd5   :  { %v6507_v41 = vpop.f32.mrf.mxu0 }
 0xfe2   :  { %12956 = vmatmul.msk.bf16.vlgmr.msrb.gmra.mxu1 %vm182_vm6, %v7166_v27 }
0x101d   :  { %v6451_v32 = vpop.f32.mrf.mxu3 }
0x101e   :  { %v6456_v46 = vadd.f32 %v6451_v32, %v6401_v57  ;;  %v14600_v57 = vld [vmem:[%s17568_s5 + $0x978] sm:$0xff] }
0x101f   :  { %v6718_v49 = vpop.f32.mrf.mxu0  ;;  %7435 = vmatpush.bf16.msra.mxu1 %v14600_v57 }
0x1020   :  { %v6510_v59 = vadd.f32 %v6505_v33, %v6456_v46  ;;  %v14586_v46 = vld [vmem:[%s17568_s5 + $0x908] sm:$0xff] }
0x1025   :  { %v6453_v36 = vpop.f32.mrf.mxu3 }
0x1026   :  { %v6457_v56 = vadd.f32 %v6453_v36, %v6402_v50 }
0x1027   :  { %v6720_v3 = vpop.f32.mrf.mxu0 }
0x1028   :  { %v6511_v11 = vadd.f32 %v6507_v41, %v6457_v56  ;;  %v14615_v56 = vld [vmem:[%s17568_s5 + $0x9f0] sm:$0xff] }
0x102d   :  { %v6663_v44 = vpop.f32.mrf.mxu3 }
0x102f   :  { %v6559_v45 = vpop.f32.mrf.mxu1  ;;  %v6933_v16 = vpop.f32.mrf.mxu0 }
0x1030   :  { %v6564_v53 = vadd.f32 %v6559_v45, %v6510_v59  ;;  %v14599_v45 = vld [vmem:[%s17568_s5 + $0x970] sm:$0xff]  ;;  %v14597_v59 = vld [vmem:[%s17568_s5 + $0x960] sm:$0xff] }
0x1031   :  { %7436 = vmatpush.bf16.msra.mxu1 %v14599_v45 }
0x1032   :  { %v6616_v10 = vadd.f32 %v6611_v43, %v6564_v53  ;;  %v14588_v43 = vld [vmem:[%s17568_s5 + $0x918] sm:$0xff] }
0x1033   :  { %7331 = vmatpush.bf16.msrb.mxu3 %v14588_v43  ;;  %v14596_v53 = vld [vmem:[%s17568_s5 + $0x958] sm:$0xff] }
0x1034   :  { %v6668_v54 = vadd.f32 %v6663_v44, %v6616_v10  ;;  %v14587_v44 = vld [vmem:[%s17568_s5 + $0x910] sm:$0xff]  ;;  %7383 = vmatpush.bf16.msra.mxu0 %v14596_v53  ;;  %v14593_v10 = vld [vmem:[%s17568_s5 + $0x940] sm:$0xff] }
0x1035   :  { %v6665_v58 = vpop.f32.mrf.mxu3  ;;  %7437 = vmatpush.bf16.msra.mxu1 %v14598_v34 }
0x1036   :  { %v6723_v4 = vadd.f32 %v6718_v49, %v6668_v54  ;;  %v14585_v49 = vld [vmem:[%s17568_s5 + $0x900] sm:$0xff] }
0x1037   :  { %v6561_v48 = vpop.f32.mrf.mxu1  ;;  %v6935_v8 = vpop.f32.mrf.mxu0  ;;  %7332 = vmatpush.bf16.msrb.mxu3 %v14587_v44 }
0x1038   :  { %v6565_v13 = vadd.f32 %v6561_v48, %v6511_v11  ;;  %v14595_v48 = vld [vmem:[%s17568_s5 + $0x950] sm:$0xff] }
0x1039   :  { %7438 = vmatpush.bf16.msra.mxu1 %v14597_v59  ;;  %7384 = vmatpush.bf16.msra.mxu0 %v14595_v48 }
0x103a   :  { %v6617_v60 = vadd.f32 %v6613_v47, %v6565_v13  ;;  %v14616_v47 = vld [vmem:[%s17568_s5 + $0x9f8] sm:$0xff] }
0x103b   :  { %7333 = vmatpush.bf16.msrb.mxu3 %v14586_v46 }
0x103c   :  { %v6669_v5 = vadd.f32 %v6665_v58, %v6617_v60  ;;  %v14594_v58 = vld [vmem:[%s17568_s5 + $0x948] sm:$0xff] }
0x103d   :  { %v6827_v40 = vpop.f32.mrf.mxu2  ;;  %v6881_v61 = vpop.f32.mrf.mxu3  ;;  %7651 = vmatpush.bf16.msrb.mxu1 %v14616_v47  ;;  %7385 = vmatpush.bf16.msra.mxu0 %v14594_v58 }
0x103e   :  { %v6724_v62 = vadd.f32 %v6720_v3, %v6669_v5  ;;  %v14612_v5 = vld [vmem:[%s17568_s5 + $0x9d8] sm:$0xff] }
0x103f   :  { %v6773_v55 = vpop.f32.mrf.mxu1  ;;  %v7149_v22 = vpop.f32.mrf.mxu0  ;;  %7334 = vmatpush.bf16.msrb.mxu3 %v14585_v49 }
0x1040   :  { %v6778_v42 = vadd.f32 %v6773_v55, %v6723_v4 }
0x1041   :  { %7652 = vmatpush.bf16.msrb.mxu1 %v14615_v56  ;;  %7386 = vmatpush.bf16.msra.mxu0 %v14593_v10 }
0x1042   :  { %v6832_v63 = vadd.f32 %v6827_v40, %v6778_v42 }
0x1044   :  { %v6886_v2 = vadd.f32 %v6881_v61, %v6832_v63  ;;  %v14613_v63 = vld [vmem:[%s17568_s5 + $0x9e0] sm:$0xff] }
0x1045   :  { %v6829_v0 = vpop.f32.mrf.mxu2  ;;  %v6883_v52 = vpop.f32.mrf.mxu3  ;;  %7596 = vmatpush.bf16.msrb.mxu0 %v14612_v5 }
0x1046   :  { %v6938_v7 = vadd.f32 %v6933_v16, %v6886_v2  ;;  %v14614_v16 = vld [vmem:[%s17568_s5 + $0x9e8] sm:$0xff]  ;;  %v14609_v2 = vld [vmem:[%s17568_s5 + $0x9c0] sm:$0xff] }
0x1047   :  { %v6775_v17 = vpop.f32.mrf.mxu1  ;;  %v7151_v33 = vpop.f32.mrf.mxu0  ;;  %7653 = vmatpush.bf16.msrb.mxu1 %v14614_v16 }
0x1048   :  { %v6779_v1 = vadd.f32 %v6775_v17, %v6724_v62  ;;  %v14611_v17 = vld [vmem:[%s17568_s5 + $0x9d0] sm:$0xff]  ;;  %v14610_v62 = vld [vmem:[%s17568_s5 + $0x9c8] sm:$0xff] }
0x1049   :  { %7597 = vmatpush.bf16.msrb.mxu0 %v14611_v17 }
0x104a   :  { %v6833_v6 = vadd.f32 %v6829_v0, %v6779_v1  ;;  %v14592_v0 = vld [vmem:[%s17568_s5 + $0x938] sm:$0xff]  ;;  %v14591_v1 = vld [vmem:[%s17568_s5 + $0x930] sm:$0xff] }
0x104b   :  { %7654 = vmatpush.bf16.msrb.mxu1 %v14613_v63  ;;  %7290 = vmatpush.bf16.msrb.mxu2 %v14592_v0 }
0x104c   :  { %v6887_v14 = vadd.f32 %v6883_v52, %v6833_v6  ;;  %v14590_v52 = vld [vmem:[%s17568_s5 + $0x928] sm:$0xff]  ;;  %v14589_v6 = vld [vmem:[%s17568_s5 + $0x920] sm:$0xff] }
0x104d   :  { %v7040_v12 = vpop.f32.mrf.mxu2  ;;  %v7095_v18 = vpop.f32.mrf.mxu3  ;;  %7598 = vmatpush.bf16.msrb.mxu0 %v14610_v62  ;;  %v14624_v62 = vld [vmem:[%s17568_s5 + $0xa38] sm:$0xff] }
0x104e   :  { %v6939_v20 = vadd.f32 %v6935_v8, %v6887_v14  ;;  %v14604_v8 = vld [vmem:[%s17568_s5 + $0x998] sm:$0xff]  ;;  %v14605_v14 = vld [vmem:[%s17568_s5 + $0x9a0] sm:$0xff] }
0x104f   :  { %v6985_v38 = vpop.f32.mrf.mxu1  ;;  %7291 = vmatpush.bf16.msrb.mxu2 %v14591_v1  ;;  %v14636_v1 = vld [vmem:[%s17568_s5 + $0xa98] sm:$0xff] }
0x1050   :  { %v6990_v9 = vadd.f32 %v6985_v38, %v6938_v7  ;;  %v14608_v38 = vld [vmem:[%s17568_s5 + $0x9b8] sm:$0xff]  ;;  %v14607_v7 = vld [vmem:[%s17568_s5 + $0x9b0] sm:$0xff] }
0x1051   :  { %7599 = vmatpush.bf16.msrb.mxu0 %v14609_v2  ;;  %7544 = vmatpush.bf16.msra.mxu3 %v14608_v38  ;;  %v14623_v2 = vld [vmem:[%s17568_s5 + $0xa30] sm:$0xff]  ;;  %v14622_v38 = vld [vmem:[%s17568_s5 + $0xa28] sm:$0xff] }
0x1052   :  { %v7045_v15 = vadd.f32 %v7040_v12, %v6990_v9  ;;  %v14606_v9 = vld [vmem:[%s17568_s5 + $0x9a8] sm:$0xff]  ;;  %v14603_v12 = vld [vmem:[%s17568_s5 + $0x990] sm:$0xff] }
0x1053   :  { %7292 = vmatpush.bf16.msrb.mxu2 %v14590_v52  ;;  %v14635_v52 = vld [vmem:[%s17568_s5 + $0xa90] sm:$0xff] }
0x1054   :  { %v7100_v21 = vadd.f32 %v7095_v18, %v7045_v15  ;;  %v14602_v18 = vld [vmem:[%s17568_s5 + $0x988] sm:$0xff] }
0x1055   :  { %v7042_v24 = vpop.f32.mrf.mxu2  ;;  %v7097_v29 = vpop.f32.mrf.mxu3  ;;  %7545 = vmatpush.bf16.msra.mxu3 %v14607_v7  ;;  %v14621_v7 = vld [vmem:[%s17568_s5 + $0xa20] sm:$0xff] }
0x1056   :  { %v7154_v25 = vadd.f32 %v7149_v22, %v7100_v21  ;;  %v14619_v22 = vld [vmem:[%s17568_s5 + $0xa10] sm:$0xff] }
0x1057   :  { %v6987_v19 = vpop.f32.mrf.mxu1  ;;  %7293 = vmatpush.bf16.msrb.mxu2 %v14589_v6  ;;  %v14634_v6 = vld [vmem:[%s17568_s5 + $0xa88] sm:$0xff] }
0x1058   :  { %v6991_v51 = vadd.f32 %v6987_v19, %v6939_v20  ;;  %v14601_v19 = vld [vmem:[%s17568_s5 + $0x980] sm:$0xff] }
0x1059   :  { %7546 = vmatpush.bf16.msra.mxu3 %v14606_v9 }
0x105a   :  { %v7046_v23 = vadd.f32 %v7042_v24, %v6991_v51  ;;  %v14620_v51 = vld [vmem:[%s17568_s5 + $0xa18] sm:$0xff]  ;;  %v14618_v24 = vld [vmem:[%s17568_s5 + $0xa08] sm:$0xff] }
0x105b   :  { %7490 = vmatpush.bf16.msra.mxu2 %v14604_v8  ;;  %v14633_v8 = vld [vmem:[%s17568_s5 + $0xa80] sm:$0xff] }
0x105c   :  { %v7101_v31 = vadd.f32 %v7097_v29, %v7046_v23 }
0x105d   :  { %7547 = vmatpush.bf16.msra.mxu3 %v14605_v14  ;;  %v14652_v14 = vld [vmem:[%s17568_s5 + $0xb18] sm:$0xff] }
0x105e   :  { %v7155_v35 = vadd.f32 %v7151_v33, %v7101_v31 }
0x105f   :  { %v7203_v27 = vpop.f32.mrf.mxu1  ;;  %7491 = vmatpush.bf16.msra.mxu2 %v14603_v12  ;;  %v14628_v12 = vld [vmem:[%s17568_s5 + $0xa58] sm:$0xff] }
0x1060   :  { %v7208_v28 = vadd.f32 %v7203_v27, %v7154_v25  ;;  %v14617_v25 = vld [vmem:[%s17568_s5 + $0xa00] sm:$0xff] }
0x1062   :  { %v7215_v30 = vadd.f32 %v14779_v26, %v7208_v28 }
0x1063   :  { %7492 = vmatpush.bf16.msra.mxu2 %v14602_v18  ;;  %v14651_v18 = vld [vmem:[%s17568_s5 + $0xb10] sm:$0xff] }
0x1064   :  { %v7217_v32 = vmax.f32 %v7215_v30, 0.0 }
0x1066   :  { %7221 = vrot.lane.b32.xlu1 %v7217_v32, %s14795_s13 }
0x1067   :  { %v7205_v36 = vpop.f32.mrf.mxu1  ;;  %7493 = vmatpush.bf16.msra.mxu2 %v14601_v19 }
0x1068   :  { %v7209_v37 = vadd.f32 %v7205_v36, %v7155_v35 }
0x106a   :  { %v7216_v39 = vadd.f32 %v14779_v26, %v7209_v37 }
0x106c   :  { %v7218_v41 = vmax.f32 %v7216_v39, 0.0 }
0x106e   :  { %7223 = vrot.lane.b32.xlu2 %v7218_v41, %s14795_s13 }
0x10c8   :  { %v7224_v50 = vpop.permute.xlu2 %7223 }
0x10c9   :  { %7228 = vst.msk [vmem:[#allocation3 + $0x11] sm:$0xff] %vm96_vm5, %v7224_v50 }
0x10d0   :  { %v16927_v3 = vld [vmem:[#allocation3 + $0x11] sm:$0xff] }
0x10d1   :  { %v7230_v40 = vld [vmem:[#allocation3 + $0x10] sm:$0xff] }
0x10d2   :  { %v7236_v61 = vld [vmem:[#allocation3 + $0x12] sm:$0xff] }
0x10d8   :  { %v7222_v11 = vpop.permute.xlu1 %7221 }
0x10d9   :  { %7227 = vst.msk [vmem:[#allocation3 + $0x1] sm:$0xff] %vm96_vm5, %v7222_v11  ;;  %v14780_v11 = vld [vmem:[%s17569_s6 + $0x8] ss:$0 sm:$0xff] }
0x10e0   :  { %v16929_v13 = vld [vmem:[#allocation3 + $0x1] sm:$0xff] }
0x10e1   :  { %v7229_v54 = vld [vmem:[#allocation3] sm:$0xff]  ;;  %v7234_v55 = vpack.c.bf16 %v16927_v3, %v16929_v13 }
0x10e2   :  { %v7231_v60 = vpack.c.bf16 %v7230_v40, %v7229_v54  ;;  %v7235_v4 = vld [vmem:[#allocation3 + $0x2] sm:$0xff] }
0x10e3   :  { %7457 = vrot.lane.b32.xlu1 %v7234_v55, %s14798_s12  ;;  %13057 = vmatmul.msk.bf16.vlgmr.msra.gmra.mxu1 %vm182_vm6, %v7234_v55  ;;  %v7237_v42 = vpack.c.bf16 %v7236_v61, %v7235_v4 }
0x10e4   :  { %7350 = vrot.lane.b32.xlu2 %v7231_v60, %s14797_s11  ;;  %7257 = vrot.lane.b32.xlu0 %v7231_v60, %s14798_s12 }
0x10e5   :  { %13007 = vmatmul.msk.bf16.vlgmr.msrb.gmra.mxu3 %vm182_vm6, %v7231_v60 }
0x10e6   :  { %7797 = vmatpush.bf16.msrb.mxu3 %v14628_v12 }
0x10eb   :  { %7672 = vrot.lane.b32.xlu1 %v7237_v42, %s14797_s11 }
0x10ec   :  { %7618 = vrot.lane.b32.xlu2 %v7237_v42, %s14798_s12  ;;  %7511 = vrot.lane.b32.xlu0 %v7234_v55, %s14797_s11 }
0x113e   :  { %v7351_v15 = vpop.permute.xlu2 %7350 }
0x113f   :  { %13032 = vmatmul.msk.bf16.vlgmr.msra.gmra.mxu0 %vm182_vm6, %v7351_v15  ;;  %v14627_v15 = vld [vmem:[%s17568_s5 + $0xa50] sm:$0xff] }
0x1140   :  { %7838 = vmatpush.bf16.msra.mxu0 %v14624_v62  ;;  %7798 = vmatpush.bf16.msrb.mxu3 %v14627_v15 }
0x1144   :  { %7839 = vmatpush.bf16.msra.mxu0 %v14623_v2 }
0x1146   :  { %v7619_v20 = vpop.permute.xlu2 %7618 }
0x1147   :  { %13157 = vmatmul.msk.bf16.vlgmr.msrb.gmra.mxu1 %vm182_vm6, %v7619_v20  ;;  %v14626_v20 = vld [vmem:[%s17568_s5 + $0xa48] sm:$0xff] }
0x1148   :  { %7840 = vmatpush.bf16.msra.mxu0 %v14622_v38  ;;  %7799 = vmatpush.bf16.msrb.mxu3 %v14626_v20  ;;  %v14781_v20 = vld [vmem:[%s17569_s6 + $0x9] ss:$0 sm:$0xff] }
0x114c   :  { %7841 = vmatpush.bf16.msra.mxu0 %v14621_v7 }
0x114f   :  { %13132 = vmatmul.msk.bf16.vlgmr.msrb.gmra.mxu0 %vm182_vm6, %v7237_v42 }
0x1155   :  { %v7458_v26 = vpop.permute.xlu1 %7457 }
0x1156   :  { %v7258_v21 = vpop.permute.xlu0 %7257 }
0x1157   :  { %12990 = vmatmul.msk.bf16.vlgmr.msrb.gmra.mxu2 %vm182_vm6, %v7258_v21 }
0x1158   :  { %7705 = vmatpush.bf16.msrb.mxu2 %v14620_v51  ;;  %v14625_v51 = vld [vmem:[%s17568_s5 + $0xa40] sm:$0xff] }
0x1159   :  { %7800 = vmatpush.bf16.msrb.mxu3 %v14625_v51 }
0x115c   :  { %7706 = vmatpush.bf16.msrb.mxu2 %v14619_v22 }
0x115d   :  { %v7673_v27 = vpop.permute.xlu1 %7672 }
0x115e   :  { %v7512_v23 = vpop.permute.xlu0 %7511 }
0x115f   :  { %13107 = vmatmul.msk.bf16.vlgmr.msra.gmra.mxu3 %vm182_vm6, %v7512_v23 }
0x1160   :  { %7707 = vmatpush.bf16.msrb.mxu2 %v14618_v24  ;;  %v7440_v33 = vpop.f32.mrf.mxu1 }
0x1164   :  { %7708 = vmatpush.bf16.msrb.mxu2 %v14617_v25 }
0x1167   :  { %13082 = vmatmul.msk.bf16.vlgmr.msra.gmra.mxu2 %vm182_vm6, %v7458_v26 }
0x1168   :  { %v7336_v29 = vpop.f32.mrf.mxu3  ;;  %v7442_v44 = vpop.f32.mrf.mxu1  ;;  %7942 = vmatpush.bf16.msra.mxu2 %v14636_v1 }
0x116c   :  { %7943 = vmatpush.bf16.msra.mxu2 %v14635_v52 }
0x1170   :  { %v7338_v35 = vpop.f32.mrf.mxu3  ;;  %7944 = vmatpush.bf16.msra.mxu2 %v14634_v6 }
0x1174   :  { %7945 = vmatpush.bf16.msra.mxu2 %v14633_v8 }
0x1177   :  { %13182 = vmatmul.msk.bf16.vlgmr.msrb.gmra.mxu2 %vm182_vm6, %v7673_v27 }
0x1178   :  { %8158 = vmatpush.bf16.msrb.mxu2 %v14652_v14 }
0x117c   :  { %8159 = vmatpush.bf16.msrb.mxu2 %v14651_v18 }
0x11bc   :  { %v7388_v30 = vpop.f32.mrf.mxu0 }
0x11c4   :  { %v7390_v37 = vpop.f32.mrf.mxu0  ;;  %v7656_v48 = vpop.f32.mrf.mxu1 }
0x11cc   :  { %v7601_v49 = vpop.f32.mrf.mxu0  ;;  %v7658_v42 = vpop.f32.mrf.mxu1 }
0x11d4   :  { %v7603_v55 = vpop.f32.mrf.mxu0 }
0x11da   :  { %v7295_v28 = vpop.f32.mrf.mxu2 }
0x11db   :  { %v7337_v32 = vadd.f32 %v7336_v29, %v7295_v28 }
0x11dd   :  { %v7393_v36 = vadd.f32 %v7388_v30, %v7337_v32  ;;  %v14650_v30 = vld [vmem:[%s17568_s5 + $0xb08] sm:$0xff]  ;;  %v14640_v32 = vld [vmem:[%s17568_s5 + $0xab8] sm:$0xff] }
0x11de   :  { %8160 = vmatpush.bf16.msrb.mxu2 %v14650_v30  ;;  %7997 = vmatpush.bf16.msra.mxu3 %v14640_v32 }
0x11df   :  { %v7445_v43 = vadd.f32 %v7440_v33, %v7393_v36  ;;  %v14631_v33 = vld [vmem:[%s17568_s5 + $0xa70] sm:$0xff]  ;;  %v14630_v36 = vld [vmem:[%s17568_s5 + $0xa68] sm:$0xff] }
0x11e2   :  { %v7297_v31 = vpop.f32.mrf.mxu2  ;;  %v7549_v45 = vpop.f32.mrf.mxu3 }
0x11e3   :  { %v7339_v41 = vadd.f32 %v7338_v35, %v7297_v31  ;;  %v14649_v31 = vld [vmem:[%s17568_s5 + $0xb00] sm:$0xff]  ;;  %v14638_v35 = vld [vmem:[%s17568_s5 + $0xaa8] sm:$0xff] }
0x11e4   :  { %8161 = vmatpush.bf16.msrb.mxu2 %v14649_v31 }
0x11e5   :  { %v7394_v46 = vadd.f32 %v7390_v37, %v7339_v41  ;;  %v14644_v37 = vld [vmem:[%s17568_s5 + $0xad8] sm:$0xff]  ;;  %v14643_v41 = vld [vmem:[%s17568_s5 + $0xad0] sm:$0xff] }
0x11e6   :  { %8051 = vmatpush.bf16.msrb.mxu0 %v14644_v37  ;;  %v14671_v37 = vld [vmem:[%s17568_s5 + $0xbb0] sm:$0xff] }
0x11e7   :  { %v7446_v50 = vadd.f32 %v7442_v44, %v7394_v46  ;;  %v14648_v44 = vld [vmem:[%s17568_s5 + $0xaf8] sm:$0xff]  ;;  %v14647_v46 = vld [vmem:[%s17568_s5 + $0xaf0] sm:$0xff] }
0x11ea   :  { %v7495_v39 = vpop.f32.mrf.mxu2  ;;  %v7551_v56 = vpop.f32.mrf.mxu3  ;;  %8052 = vmatpush.bf16.msrb.mxu0 %v14643_v41  ;;  %v14670_v41 = vld [vmem:[%s17568_s5 + $0xba8] sm:$0xff] }
0x11eb   :  { %v7500_v57 = vadd.f32 %v7495_v39, %v7445_v43  ;;  %v14637_v39 = vld [vmem:[%s17568_s5 + $0xaa0] sm:$0xff] }
0x11ec   :  { %v14629_v43 = vld [vmem:[%s17568_s5 + $0xa60] sm:$0xff] }
0x11ed   :  { %v7554_v34 = vadd.f32 %v7549_v45, %v7500_v57  ;;  %v14642_v57 = vld [vmem:[%s17568_s5 + $0xac8] sm:$0xff]  ;;  %v14641_v45 = vld [vmem:[%s17568_s5 + $0xac0] sm:$0xff] }
0x11ee   :  { %8053 = vmatpush.bf16.msrb.mxu0 %v14642_v57  ;;  %v14669_v57 = vld [vmem:[%s17568_s5 + $0xba0] sm:$0xff] }
0x11ef   :  { %v7606_v47 = vadd.f32 %v7601_v49, %v7554_v34  ;;  %v14656_v34 = vld [vmem:[%s17568_s5 + $0xb38] sm:$0xff] }
0x11f1   :  { %v7661_v10 = vadd.f32 %v7656_v48, %v7606_v47  ;;  %v14654_v47 = vld [vmem:[%s17568_s5 + $0xb28] sm:$0xff] }
0x11f2   :  { %v7497_v59 = vpop.f32.mrf.mxu2  ;;  %8054 = vmatpush.bf16.msrb.mxu0 %v14641_v45 }
0x11f3   :  { %v7501_v53 = vadd.f32 %v7497_v59, %v7446_v50  ;;  %v14646_v59 = vld [vmem:[%s17568_s5 + $0xae8] sm:$0xff]  ;;  %v14655_v50 = vld [vmem:[%s17568_s5 + $0xb30] sm:$0xff] }
0x11f5   :  { %v7555_v58 = vadd.f32 %v7551_v56, %v7501_v53  ;;  %v14645_v53 = vld [vmem:[%s17568_s5 + $0xae0] sm:$0xff] }
0x11f6   :  { %v14653_v56 = vld [vmem:[%s17568_s5 + $0xb20] sm:$0xff] }
0x11f7   :  { %v7607_v4 = vadd.f32 %v7603_v55, %v7555_v58 }
0x11f9   :  { %v7662_v5 = vadd.f32 %v7658_v42, %v7607_v4 }
0x11fa   :  { %v7710_v54 = vpop.f32.mrf.mxu2 }
0x11fb   :  { %v7715_v40 = vadd.f32 %v7710_v54, %v7661_v10 }
0x11fd   :  { %v7722_v60 = vadd.f32 %v14780_v11, %v7715_v40 }
0x11ff   :  { %v7724_v61 = vmax.f32 %v7722_v60, 0.0 }
0x1201   :  { %7728 = vrot.lane.b32.xlu0 %v7724_v61, %s14795_s13 }
0x1202   :  { %v7712_v16 = vpop.f32.mrf.mxu2 }
0x1203   :  { %v7716_v17 = vadd.f32 %v7712_v16, %v7662_v5 }
0x1205   :  { %v7723_v63 = vadd.f32 %v14780_v11, %v7716_v17 }
0x1207   :  { %v7725_v0 = vmax.f32 %v7723_v63, 0.0 }
0x1209   :  { %7730 = vrot.lane.b32.xlu1 %v7725_v0, %s14795_s13 }
0x1273   :  { %v7729_v9 = vpop.permute.xlu0 %7728 }
0x1274   :  { %7734 = vst.msk [vmem:[#allocation5 + $0x1] sm:$0xff] %vm96_vm5, %v7729_v9 }
0x127b   :  { %v7731_v19 = vpop.permute.xlu1 %7730  ;;  %v7739_v21 = vld [vmem:[#allocation5 + $0x1] sm:$0xff] }
0x127c   :  { %7735 = vst.msk [vmem:[#allocation5 + $0x11] sm:$0xff] %vm96_vm5, %v7731_v19  ;;  %v7736_v24 = vld [vmem:[#allocation5] sm:$0xff] }
0x127d   :  { %v7742_v28 = vld [vmem:[#allocation5 + $0x2] sm:$0xff] }
0x1283   :  { %v7740_v22 = vld [vmem:[#allocation5 + $0x11] sm:$0xff] }
0x1284   :  { %v7737_v23 = vld [vmem:[#allocation5 + $0x10] sm:$0xff]  ;;  %v7741_v25 = vpack.c.bf16 %v7740_v22, %v7739_v21 }
0x1285   :  { %v7738_v26 = vpack.c.bf16 %v7737_v23, %v7736_v24  ;;  %v7743_v27 = vld [vmem:[#allocation5 + $0x12] sm:$0xff] }
0x1286   :  { %7964 = vrot.lane.b32.xlu0 %v7741_v25, %s14798_s12  ;;  %13283 = vmatmul.msk.bf16.vlgmr.msra.gmra.mxu2 %vm182_vm6, %v7741_v25  ;;  %v7744_v29 = vpack.c.bf16 %v7743_v27, %v7742_v28 }
0x1287   :  { %7857 = vrot.lane.b32.xlu1 %v7738_v26, %s14797_s11  ;;  %7764 = vrot.lane.b32.xlu2 %v7738_v26, %s14798_s12 }
0x1288   :  { %13233 = vmatmul.msk.bf16.vlgmr.msra.gmra.mxu0 %vm182_vm6, %v7738_v26 }
0x128e   :  { %8018 = vrot.lane.b32.xlu0 %v7741_v25, %s14797_s11 }
0x128f   :  { %8179 = vrot.lane.b32.xlu1 %v7744_v29, %s14797_s11  ;;  %8125 = vrot.lane.b32.xlu2 %v7744_v29, %s14798_s12 }
0x1296   :  { %8237 = vrot.lane.b32.xlu0 %v16927_v3, %s14798_s12  ;;  %v14632_v3 = vld [vmem:[%s17568_s5 + $0xa78] sm:$0xff] }
0x1297   :  { %8235 = vrot.lane.b32.xlu2 %v16929_v13, %s14798_s12  ;;  %v14639_v13 = vld [vmem:[%s17568_s5 + $0xab0] sm:$0xff]  ;;  %7890 = vmatpush.bf16.msra.mxu1 %v14632_v3 }
0x1298   :  { %7998 = vmatpush.bf16.msra.mxu3 %v14639_v13 }
0x129b   :  { %7891 = vmatpush.bf16.msra.mxu1 %v14631_v33  ;;  %v14660_v33 = vld [vmem:[%s17568_s5 + $0xb58] sm:$0xff] }
0x129c   :  { %7999 = vmatpush.bf16.msra.mxu3 %v14638_v35  ;;  %v14672_v35 = vld [vmem:[%s17568_s5 + $0xbb8] sm:$0xff] }
0x129f   :  { %7892 = vmatpush.bf16.msra.mxu1 %v14630_v36  ;;  %v14659_v36 = vld [vmem:[%s17568_s5 + $0xb50] sm:$0xff] }
0x12a0   :  { %8000 = vmatpush.bf16.msra.mxu3 %v14637_v39  ;;  %v14658_v39 = vld [vmem:[%s17568_s5 + $0xb48] sm:$0xff] }
0x12a3   :  { %7893 = vmatpush.bf16.msra.mxu1 %v14629_v43  ;;  %v14657_v43 = vld [vmem:[%s17568_s5 + $0xb40] sm:$0xff] }
0x12a7   :  { %8103 = vmatpush.bf16.msrb.mxu1 %v14648_v44 }
0x12ab   :  { %8104 = vmatpush.bf16.msrb.mxu1 %v14647_v46 }
0x12af   :  { %8105 = vmatpush.bf16.msrb.mxu1 %v14646_v59 }
0x12b3   :  { %8106 = vmatpush.bf16.msrb.mxu1 %v14645_v53 }
0x12e1   :  { %v7765_v49 = vpop.permute.xlu2 %7764 }
0x12e2   :  { %13216 = vmatmul.msk.bf16.vlgmr.msrb.gmra.mxu3 %vm182_vm6, %v7765_v49 }
0x12e3   :  { %8212 = vmatpush.bf16.msrb.mxu3 %v14656_v34 }
0x12e7   :  { %8213 = vmatpush.bf16.msrb.mxu3 %v14655_v50 }
0x12e9   :  { %v8126_v48 = vpop.permute.xlu2 %8125 }
0x12ea   :  { %13383 = vmatmul.msk.bf16.vlgmr.msrb.gmra.mxu2 %vm182_vm6, %v8126_v48 }
0x12eb   :  { %8214 = vmatpush.bf16.msrb.mxu3 %v14654_v47 }
0x12ef   :  { %8215 = vmatpush.bf16.msrb.mxu3 %v14653_v56 }
0x12f1   :  { %v8236_v25 = vpop.permute.xlu2 %8235 }
0x12f8   :  { %v7965_v58 = vpop.permute.xlu0 %7964 }
0x12f9   :  { %v7858_v10 = vpop.permute.xlu1 %7857  ;;  %13308 = vmatmul.msk.bf16.vlgmr.msra.gmra.mxu3 %vm182_vm6, %v7965_v58  ;;  %v14664_v58 = vld [vmem:[%s17568_s5 + $0xb78] sm:$0xff] }
0x12fa   :  { %13258 = vmatmul.msk.bf16.vlgmr.msra.gmra.mxu1 %vm182_vm6, %v7858_v10  ;;  %8459 = vmatpush.bf16.msra.mxu3 %v14672_v35  ;;  %v14668_v10 = vld [vmem:[%s17568_s5 + $0xb98] sm:$0xff] }
0x12fb   :  { %8355 = vmatpush.bf16.msra.mxu1 %v14660_v33  ;;  %8314 = vmatpush.bf16.msra.mxu0 %v14664_v58 }
0x12fc   :  { %8407 = vmatpush.bf16.msra.mxu2 %v14668_v10 }
0x12fe   :  { %8460 = vmatpush.bf16.msra.mxu3 %v14671_v37 }
0x12ff   :  { %8356 = vmatpush.bf16.msra.mxu1 %v14659_v36 }
0x1300   :  { %v8019_v11 = vpop.permute.xlu0 %8018 }
0x1301   :  { %13333 = vmatmul.msk.bf16.vlgmr.msrb.gmra.mxu0 %vm182_vm6, %v8019_v11  ;;  %v8180_v54 = vpop.permute.xlu1 %8179  ;;  %v14663_v11 = vld [vmem:[%s17568_s5 + $0xb70] sm:$0xff] }
0x1302   :  { %8461 = vmatpush.bf16.msra.mxu3 %v14670_v41  ;;  %8315 = vmatpush.bf16.msra.mxu0 %v14663_v11 }
0x1303   :  { %8357 = vmatpush.bf16.msra.mxu1 %v14658_v39 }
0x1305   :  { %v7843_v55 = vpop.f32.mrf.mxu0 }
0x1306   :  { %8462 = vmatpush.bf16.msra.mxu3 %v14669_v57 }
0x1307   :  { %8358 = vmatpush.bf16.msra.mxu1 %v14657_v43 }
0x1308   :  { %v8238_v3 = vpop.permute.xlu0 %8237 }
0x1309   :  { %13408 = vmatmul.msk.bf16.vlgmr.msrb.gmra.mxu3 %vm182_vm6, %v8180_v54  ;;  %v7947_v4 = vpop.f32.mrf.mxu2  ;;  %v14667_v54 = vld [vmem:[%s17568_s5 + $0xb90] sm:$0xff] }
0x130a   :  { %13358 = vmatmul.msk.bf16.vlgmr.msrb.gmra.mxu1 %vm182_vm6, %v7744_v29  ;;  %8408 = vmatpush.bf16.msra.mxu2 %v14667_v54 }
0x130d   :  { %v7845_v42 = vpop.f32.mrf.mxu0 }
0x1311   :  { %v7949_v0 = vpop.f32.mrf.mxu2 }
0x1365   :  { %v7802_v40 = vpop.f32.mrf.mxu3 }
0x1366   :  { %v7844_v5 = vadd.f32 %v7843_v55, %v7802_v40  ;;  %v14680_v40 = vld [vmem:[%s17568_s5 + $0xbf8] sm:$0xff] }
0x1367   :  { %v14688_v55 = vld [vmem:[%s17568_s5 + $0xc38] sm:$0xff]  ;;  %8568 = vmatpush.bf16.msrb.mxu1 %v14680_v40 }
0x1368   :  { %8675 = vmatpush.bf16.msrb.mxu3 %v14688_v55 }
0x136d   :  { %v7804_v60 = vpop.f32.mrf.mxu3  ;;  %v8163_v9 = vpop.f32.mrf.mxu2 }
0x136e   :  { %v7846_v2 = vadd.f32 %v7845_v42, %v7804_v60  ;;  %v14679_v60 = vld [vmem:[%s17568_s5 + $0xbf0] sm:$0xff]  ;;  %v14666_v42 = vld [vmem:[%s17568_s5 + $0xb88] sm:$0xff] }
0x136f   :  { %8569 = vmatpush.bf16.msrb.mxu1 %v14679_v60  ;;  %8409 = vmatpush.bf16.msra.mxu2 %v14666_v42 }
0x1375   :  { %v8165_v28 = vpop.f32.mrf.mxu2 }
0x1377   :  { %v7895_v61 = vpop.f32.mrf.mxu1 }
0x1378   :  { %v7900_v16 = vadd.f32 %v7895_v61, %v7844_v5  ;;  %v14662_v61 = vld [vmem:[%s17568_s5 + $0xb68] sm:$0xff]  ;;  %v14661_v5 = vld [vmem:[%s17568_s5 + $0xb60] sm:$0xff] }
0x1379   :  { %8316 = vmatpush.bf16.msra.mxu0 %v14662_v61 }
0x137a   :  { %v7952_v62 = vadd.f32 %v7947_v4, %v7900_v16  ;;  %v14687_v4 = vld [vmem:[%s17568_s5 + $0xc30] sm:$0xff]  ;;  %v14665_v16 = vld [vmem:[%s17568_s5 + $0xb80] sm:$0xff] }
0x137b   :  { %8676 = vmatpush.bf16.msrb.mxu3 %v14687_v4  ;;  %8410 = vmatpush.bf16.msra.mxu2 %v14665_v16  ;;  %v14696_v16 = vld [vmem:[%s17568_s5 + $0xc78] sm:$0xff] }
0x137c   :  { %v8002_v17 = vpop.f32.mrf.mxu3 }
0x137d   :  { %v8007_v52 = vadd.f32 %v8002_v17, %v7952_v62  ;;  %8317 = vmatpush.bf16.msra.mxu0 %v14661_v5  ;;  %v14676_v17 = vld [vmem:[%s17568_s5 + $0xbd8] sm:$0xff]  ;;  %v14686_v62 = vld [vmem:[%s17568_s5 + $0xc28] sm:$0xff] }
0x137e   :  { %v8056_v1 = vpop.f32.mrf.mxu0 }
0x137f   :  { %v7897_v63 = vpop.f32.mrf.mxu1  ;;  %v8061_v7 = vadd.f32 %v8056_v1, %v8007_v52  ;;  %v14675_v1 = vld [vmem:[%s17568_s5 + $0xbd0] sm:$0xff]  ;;  %8677 = vmatpush.bf16.msrb.mxu3 %v14686_v62  ;;  %v14694_v62 = vld [vmem:[%s17568_s5 + $0xc68] sm:$0xff] }
0x1380   :  { %v7901_v38 = vadd.f32 %v7897_v63, %v7846_v2  ;;  %v14678_v63 = vld [vmem:[%s17568_s5 + $0xbe8] sm:$0xff]  ;;  %v14677_v2 = vld [vmem:[%s17568_s5 + $0xbe0] sm:$0xff]  ;;  %v14683_v52 = vld [vmem:[%s17568_s5 + $0xc10] sm:$0xff] }
0x1381   :  { %8514 = vmatpush.bf16.msrb.mxu0 %v14676_v17  ;;  %8570 = vmatpush.bf16.msrb.mxu1 %v14678_v63  ;;  %v14708_v17 = vld [vmem:[%s17568_s5 + $0xcd8] sm:$0xff]  ;;  %v14695_v63 = vld [vmem:[%s17568_s5 + $0xc70] sm:$0xff] }
0x1382   :  { %v7953_v12 = vadd.f32 %v7949_v0, %v7901_v38  ;;  %v14684_v0 = vld [vmem:[%s17568_s5 + $0xc18] sm:$0xff]  ;;  %v14685_v38 = vld [vmem:[%s17568_s5 + $0xc20] sm:$0xff] }
0x1383   :  { %8620 = vmatpush.bf16.msrb.mxu2 %v14684_v0  ;;  %8678 = vmatpush.bf16.msrb.mxu3 %v14685_v38  ;;  %v14707_v0 = vld [vmem:[%s17568_s5 + $0xcd0] sm:$0xff] }
0x1384   :  { %v8004_v6 = vpop.f32.mrf.mxu3 }
0x1385   :  { %v8008_v15 = vadd.f32 %v8004_v6, %v7953_v12  ;;  %8515 = vmatpush.bf16.msrb.mxu0 %v14675_v1  ;;  %8571 = vmatpush.bf16.msrb.mxu1 %v14677_v2  ;;  %v14674_v6 = vld [vmem:[%s17568_s5 + $0xbc8] sm:$0xff]  ;;  %v14692_v12 = vld [vmem:[%s17568_s5 + $0xc58] sm:$0xff]  ;;  %v14693_v2 = vld [vmem:[%s17568_s5 + $0xc60] sm:$0xff] }
0x1386   :  { %v8058_v18 = vpop.f32.mrf.mxu0  ;;  %v14706_v1 = vld [vmem:[%s17568_s5 + $0xcc8] sm:$0xff] }
0x1387   :  { %v8108_v8 = vpop.f32.mrf.mxu1  ;;  %v8062_v22 = vadd.f32 %v8058_v18, %v8008_v15  ;;  %8621 = vmatpush.bf16.msrb.mxu2 %v14683_v52  ;;  %v14691_v18 = vld [vmem:[%s17568_s5 + $0xc50] sm:$0xff]  ;;  %v14705_v52 = vld [vmem:[%s17568_s5 + $0xcc0] sm:$0xff] }
0x1388   :  { %v8113_v14 = vadd.f32 %v8108_v8, %v8061_v7  ;;  %v14682_v7 = vld [vmem:[%s17568_s5 + $0xc08] sm:$0xff]  ;;  %v14673_v8 = vld [vmem:[%s17568_s5 + $0xbc0] sm:$0xff] }
0x1389   :  { %8516 = vmatpush.bf16.msrb.mxu0 %v14674_v6  ;;  %v14700_v6 = vld [vmem:[%s17568_s5 + $0xc98] sm:$0xff] }
0x138a   :  { %v8168_v19 = vadd.f32 %v8163_v9, %v8113_v14  ;;  %v14681_v9 = vld [vmem:[%s17568_s5 + $0xc00] sm:$0xff] }
0x138b   :  { %8622 = vmatpush.bf16.msrb.mxu2 %v14682_v7  ;;  %v14716_v7 = vld [vmem:[%s17568_s5 + $0xd18] sm:$0xff] }
0x138c   :  { %v8217_v51 = vpop.f32.mrf.mxu3 }
0x138d   :  { %v8222_v21 = vadd.f32 %v8217_v51, %v8168_v19  ;;  %8517 = vmatpush.bf16.msrb.mxu0 %v14673_v8  ;;  %v14690_v19 = vld [vmem:[%s17568_s5 + $0xc48] sm:$0xff]  ;;  %v14699_v8 = vld [vmem:[%s17568_s5 + $0xc90] sm:$0xff] }
0x138f   :  { %v8229_v24 = vadd.f32 %v14781_v20, %v8222_v21  ;;  %v8110_v23 = vpop.f32.mrf.mxu1  ;;  %8623 = vmatpush.bf16.msrb.mxu2 %v14681_v9  ;;  %v14689_v21 = vld [vmem:[%s17568_s5 + $0xc40] sm:$0xff]  ;;  %v14715_v9 = vld [vmem:[%s17568_s5 + $0xd10] sm:$0xff] }
0x1390   :  { %v8114_v26 = vadd.f32 %v8110_v23, %v8062_v22 }
0x1391   :  { %v8241_v27 = vadd.f32 %v8236_v25, %v8229_v24 }
0x1392   :  { %v8169_v29 = vadd.f32 %v8165_v28, %v8114_v26 }
0x1393   :  { %8245 = vrot.lane.b32.xlu1 %v8241_v27, %s14795_s13 }
0x1394   :  { %v8219_v30 = vpop.f32.mrf.mxu3 }
0x1395   :  { %v8223_v31 = vadd.f32 %v8219_v30, %v8169_v29 }
0x1397   :  { %v8230_v32 = vadd.f32 %v14781_v20, %v8223_v31 }
0x1399   :  { %v8242_v13 = vadd.f32 %v8238_v3, %v8230_v32 }
0x139b   :  { %8247 = vrot.lane.b32.xlu2 %v8242_v13, %s14795_s13 }
0x13f5   :  { %v8248_v44 = vpop.permute.xlu2 %8247 }
0x13f6   :  { %8252 = vst.msk [vmem:[#allocation3 + $0x11] sm:$0xff] %vm96_vm5, %v8248_v44 }
0x13fd   :  { %v17179_v46 = vld [vmem:[#allocation3 + $0x11] sm:$0xff] }
0x13fe   :  { %v8254_v59 = vld [vmem:[#allocation3 + $0x10] sm:$0xff] }
0x13ff   :  { %v8260_v48 = vld [vmem:[#allocation3 + $0x12] sm:$0xff] }
0x1405   :  { %v8246_v45 = vpop.permute.xlu1 %8245 }
0x1406   :  { %8251 = vst.msk [vmem:[#allocation3 + $0x1] sm:$0xff] %vm96_vm5, %v8246_v45 }
0x140d   :  { %v17181_v34 = vld [vmem:[#allocation3 + $0x1] sm:$0xff] }
0x140e   :  { %v8253_v49 = vld [vmem:[#allocation3] sm:$0xff]  ;;  %v8258_v50 = vpack.c.bf16 %v17179_v46, %v17181_v34 }
0x140f   :  { %v8255_v53 = vpack.c.bf16 %v8254_v59, %v8253_v49  ;;  %v8259_v47 = vld [vmem:[#allocation3 + $0x2] sm:$0xff] }
0x1410   :  { %8481 = vrot.lane.b32.xlu2 %v8258_v50, %s14798_s12  ;;  %13509 = vmatmul.msk.bf16.vlgmr.msra.gmra.mxu3 %vm182_vm6, %v8258_v50  ;;  %v17190_v56 = vpack.c.bf16 %v8260_v48, %v8259_v47  ;;  %v14782_v47 = vld [vmem:[%s17569_s6 + $0xa] ss:$0 sm:$0xff] }
0x1411   :  { %8374 = vrot.lane.b32.xlu1 %v8255_v53, %s14797_s11  ;;  %8281 = vrot.lane.b32.xlu0 %v8255_v53, %s14798_s12 }
0x1412   :  { %13459 = vmatmul.msk.bf16.vlgmr.msra.gmra.mxu1 %vm182_vm6, %v8255_v53 }
0x1413   :  { %8821 = vmatpush.bf16.msra.mxu1 %v14700_v6 }
0x1417   :  { %8822 = vmatpush.bf16.msra.mxu1 %v14699_v8 }
0x1418   :  { %8696 = vrot.lane.b32.xlu2 %v17190_v56, %s14797_s11 }
0x1419   :  { %8535 = vrot.lane.b32.xlu1 %v8258_v50, %s14797_s11  ;;  %8642 = vrot.lane.b32.xlu0 %v17190_v56, %s14798_s12 }
0x146a   :  { %v8482_v22 = vpop.permute.xlu2 %8481 }
0x1472   :  { %v8697_v24 = vpop.permute.xlu2 %8696 }
0x1483   :  { %v8375_v14 = vpop.permute.xlu1 %8374  ;;  %v8282_v15 = vpop.permute.xlu0 %8281 }
0x1484   :  { %13442 = vmatmul.msk.bf16.vlgmr.msra.gmra.mxu0 %vm182_vm6, %v8282_v15  ;;  %13484 = vmatmul.msk.bf16.vlgmr.msra.gmra.mxu2 %vm182_vm6, %v8375_v14  ;;  %v14698_v14 = vld [vmem:[%s17568_s5 + $0xc88] sm:$0xff]  ;;  %v14697_v15 = vld [vmem:[%s17568_s5 + $0xc80] sm:$0xff] }
0x1485   :  { %8729 = vmatpush.bf16.msra.mxu0 %v14692_v12  ;;  %8862 = vmatpush.bf16.msra.mxu2 %v14696_v16 }
0x1486   :  { %8823 = vmatpush.bf16.msra.mxu1 %v14698_v14 }
0x1489   :  { %8730 = vmatpush.bf16.msra.mxu0 %v14691_v18  ;;  %8863 = vmatpush.bf16.msra.mxu2 %v14695_v63 }
0x148a   :  { %8824 = vmatpush.bf16.msra.mxu1 %v14697_v15 }
0x148b   :  { %v8536_v20 = vpop.permute.xlu1 %8535  ;;  %v8643_v51 = vpop.permute.xlu0 %8642 }
0x148c   :  { %13559 = vmatmul.msk.bf16.vlgmr.msrb.gmra.mxu1 %vm182_vm6, %v8536_v20  ;;  %13609 = vmatmul.msk.bf16.vlgmr.msrb.gmra.mxu3 %vm182_vm6, %v8643_v51 }
0x148d   :  { %8731 = vmatpush.bf16.msra.mxu0 %v14690_v19  ;;  %8864 = vmatpush.bf16.msra.mxu2 %v14694_v62 }
0x148f   :  { %v8360_v25 = vpop.f32.mrf.mxu1 }
0x1491   :  { %8732 = vmatpush.bf16.msra.mxu0 %v14689_v21  ;;  %8865 = vmatpush.bf16.msra.mxu2 %v14693_v2 }
0x1493   :  { %v8464_v28 = vpop.f32.mrf.mxu3 }
0x1494   :  { %13534 = vmatmul.msk.bf16.vlgmr.msrb.gmra.mxu0 %vm182_vm6, %v8482_v22  ;;  %13584 = vmatmul.msk.bf16.vlgmr.msrb.gmra.mxu2 %vm182_vm6, %v17190_v56 }
0x1495   :  { %8966 = vmatpush.bf16.msrb.mxu0 %v14708_v17  ;;  %9075 = vmatpush.bf16.msrb.mxu2 %v14716_v7 }
0x1497   :  { %v8362_v29 = vpop.f32.mrf.mxu1 }
0x1499   :  { %8967 = vmatpush.bf16.msrb.mxu0 %v14707_v0  ;;  %9076 = vmatpush.bf16.msrb.mxu2 %v14715_v9 }
0x149b   :  { %v8466_v33 = vpop.f32.mrf.mxu3 }
0x149d   :  { %8968 = vmatpush.bf16.msrb.mxu0 %v14706_v1 }
0x14a1   :  { %8969 = vmatpush.bf16.msrb.mxu0 %v14705_v52 }
0x14a4   :  { %13634 = vmatmul.msk.bf16.vlgmr.msra.gmra.mxu0 %vm182_vm6, %v8697_v24 }
0x1501   :  { %v8319_v23 = vpop.f32.mrf.mxu0 }
0x1502   :  { %v8361_v30 = vadd.f32 %v8360_v25, %v8319_v23 }
0x1507   :  { %v8412_v26 = vpop.f32.mrf.mxu2 }
0x1508   :  { %v8417_v32 = vadd.f32 %v8412_v26, %v8361_v30  ;;  %v14714_v26 = vld [vmem:[%s17568_s5 + $0xd08] sm:$0xff] }
0x1509   :  { %v8321_v27 = vpop.f32.mrf.mxu0  ;;  %v8573_v36 = vpop.f32.mrf.mxu1  ;;  %9077 = vmatpush.bf16.msrb.mxu2 %v14714_v26  ;;  %v14702_v30 = vld [vmem:[%s17568_s5 + $0xca8] sm:$0xff] }
0x150a   :  { %v8469_v13 = vadd.f32 %v8464_v28, %v8417_v32  ;;  %v8363_v35 = vadd.f32 %v8362_v29, %v8321_v27  ;;  %v14713_v27 = vld [vmem:[%s17568_s5 + $0xd00] sm:$0xff]  ;;  %v14704_v28 = vld [vmem:[%s17568_s5 + $0xcb8] sm:$0xff]  ;;  %v14711_v29 = vld [vmem:[%s17568_s5 + $0xcf0] sm:$0xff] }
0x150b   :  { %8914 = vmatpush.bf16.msra.mxu3 %v14704_v28  ;;  %v14724_v32 = vld [vmem:[%s17568_s5 + $0xd58] sm:$0xff] }
0x150c   :  { %9182 = vmatpush.bf16.msra.mxu0 %v14724_v32  ;;  %v14743_v32 = vld [vmem:[%s17571_s7 + $0x70] sm:$0xff] }
0x150d   :  { %9078 = vmatpush.bf16.msrb.mxu2 %v14713_v27 }
0x150f   :  { %v8414_v31 = vpop.f32.mrf.mxu2  ;;  %v8680_v49 = vpop.f32.mrf.mxu3 }
0x1510   :  { %v8418_v41 = vadd.f32 %v8414_v31, %v8363_v35  ;;  %v14710_v31 = vld [vmem:[%s17568_s5 + $0xce8] sm:$0xff]  ;;  %v14720_v35 = vld [vmem:[%s17568_s5 + $0xd38] sm:$0xff] }
0x1511   :  { %v8519_v3 = vpop.f32.mrf.mxu0  ;;  %v8575_v50 = vpop.f32.mrf.mxu1 }
0x1512   :  { %v8524_v37 = vadd.f32 %v8519_v3, %v8469_v13  ;;  %v8470_v45 = vadd.f32 %v8466_v33, %v8418_v41  ;;  %v14701_v3 = vld [vmem:[%s17568_s5 + $0xca0] sm:$0xff]  ;;  %v14723_v13 = vld [vmem:[%s17568_s5 + $0xd50] sm:$0xff]  ;;  %v14728_v41 = vld [vmem:[%s17568_s5 + $0xd78] sm:$0xff] }
0x1513   :  { %v14709_v33 = vld [vmem:[%s17568_s5 + $0xce0] sm:$0xff]  ;;  %9183 = vmatpush.bf16.msra.mxu0 %v14723_v13  ;;  %v14742_v13 = vld [vmem:[%s17571_s7 + $0x68] sm:$0xff] }
0x1514   :  { %v8578_v57 = vadd.f32 %v8573_v36, %v8524_v37  ;;  %v14722_v36 = vld [vmem:[%s17568_s5 + $0xd48] sm:$0xff]  ;;  %v14719_v37 = vld [vmem:[%s17568_s5 + $0xd30] sm:$0xff] }
0x1517   :  { %v8625_v39 = vpop.f32.mrf.mxu2  ;;  %v8682_v55 = vpop.f32.mrf.mxu3  ;;  %9184 = vmatpush.bf16.msra.mxu0 %v14722_v36 }
0x1518   :  { %v8630_v44 = vadd.f32 %v8625_v39, %v8578_v57  ;;  %v14721_v39 = vld [vmem:[%s17568_s5 + $0xd40] sm:$0xff]  ;;  %v14718_v57 = vld [vmem:[%s17568_s5 + $0xd28] sm:$0xff] }
0x1519   :  { %v8521_v43 = vpop.f32.mrf.mxu0 }
0x151a   :  { %v8525_v59 = vadd.f32 %v8521_v43, %v8470_v45  ;;  %v8685_v53 = vadd.f32 %v8680_v49, %v8630_v44  ;;  %v14727_v44 = vld [vmem:[%s17568_s5 + $0xd70] sm:$0xff]  ;;  %v14717_v45 = vld [vmem:[%s17568_s5 + $0xd20] sm:$0xff]  ;;  %v14726_v49 = vld [vmem:[%s17568_s5 + $0xd68] sm:$0xff] }
0x151b   :  { %9185 = vmatpush.bf16.msra.mxu0 %v14721_v39  ;;  %v14760_v39 = vld [vmem:[%s17571_s7 + $0xf8] sm:$0xff] }
0x151c   :  { %v8579_v58 = vadd.f32 %v8575_v50, %v8525_v59  ;;  %v14725_v50 = vld [vmem:[%s17568_s5 + $0xd60] sm:$0xff] }
0x151f   :  { %v8627_v48 = vpop.f32.mrf.mxu2 }
0x1520   :  { %v8631_v11 = vadd.f32 %v8627_v48, %v8579_v58 }
0x1521   :  { %v8734_v56 = vpop.f32.mrf.mxu0 }
0x1522   :  { %v8739_v10 = vadd.f32 %v8734_v56, %v8685_v53  ;;  %v8686_v60 = vadd.f32 %v8682_v55, %v8631_v11 }
0x1524   :  { %v8746_v54 = vadd.f32 %v14782_v47, %v8739_v10 }
0x1526   :  { %v8748_v40 = vmax.f32 %v8746_v54, 0.0 }
0x1528   :  { %8752 = vrot.lane.b32.xlu0 %v8748_v40, %s14795_s13 }
0x1529   :  { %v8736_v4 = vpop.f32.mrf.mxu0 }
0x152a   :  { %v8740_v61 = vadd.f32 %v8736_v4, %v8686_v60 }
0x152c   :  { %v8747_v42 = vadd.f32 %v14782_v47, %v8740_v61 }
0x152e   :  { %v8749_v5 = vmax.f32 %v8747_v42, 0.0 }
0x1530   :  { %8754 = vrot.lane.b32.xlu1 %v8749_v5, %s14795_s13 }
0x159a   :  { %v8753_v38 = vpop.permute.xlu0 %8752 }
0x159b   :  { %8758 = vst.msk [vmem:[#allocation5 + $0x1] sm:$0xff] %vm96_vm5, %v8753_v38 }
0x15a2   :  { %v8755_v12 = vpop.permute.xlu1 %8754  ;;  %v8763_v18 = vld [vmem:[#allocation5 + $0x1] sm:$0xff] }
0x15a3   :  { %8759 = vst.msk [vmem:[#allocation5 + $0x11] sm:$0xff] %vm96_vm5, %v8755_v12  ;;  %v8760_v20 = vld [vmem:[#allocation5] sm:$0xff]  ;;  %v14783_v12 = vld [vmem:[%s17569_s6 + $0xb] ss:$0 sm:$0xff] }
0x15a4   :  { %v8766_v23 = vld [vmem:[#allocation5 + $0x2] sm:$0xff] }
0x15aa   :  { %v8764_v19 = vld [vmem:[#allocation5 + $0x11] sm:$0xff] }
0x15ab   :  { %v8761_v51 = vld [vmem:[#allocation5 + $0x10] sm:$0xff]  ;;  %v8765_v21 = vpack.c.bf16 %v8764_v19, %v8763_v18 }
0x15ac   :  { %v8762_v22 = vpack.c.bf16 %v8761_v51, %v8760_v20  ;;  %v8767_v24 = vld [vmem:[#allocation5 + $0x12] sm:$0xff] }
0x15ad   :  { %8988 = vrot.lane.b32.xlu1 %v8765_v21, %s14798_s12  ;;  %13735 = vmatmul.msk.bf16.vlgmr.msrb.gmra.mxu0 %vm182_vm6, %v8765_v21  ;;  %v8768_v25 = vpack.c.bf16 %v8767_v24, %v8766_v23 }
0x15ae   :  { %8881 = vrot.lane.b32.xlu0 %v8762_v22, %s14797_s11  ;;  %8788 = vrot.lane.b32.xlu2 %v8762_v22, %s14798_s12 }
0x15af   :  { %13685 = vmatmul.msk.bf16.vlgmr.msra.gmra.mxu2 %vm182_vm6, %v8762_v22 }
0x15b5   :  { %9203 = vrot.lane.b32.xlu1 %v8768_v25, %s14797_s11 }
0x15b6   :  { %9149 = vrot.lane.b32.xlu0 %v8768_v25, %s14798_s12  ;;  %9042 = vrot.lane.b32.xlu2 %v8765_v21, %s14797_s11 }
0x15be   :  { %9261 = vrot.lane.b32.xlu0 %v17179_v46, %s14798_s12  ;;  %9259 = vrot.lane.b32.xlu2 %v17181_v34, %s14798_s12  ;;  %v14712_v46 = vld [vmem:[%s17568_s5 + $0xcf8] sm:$0xff]  ;;  %v14703_v34 = vld [vmem:[%s17568_s5 + $0xcb0] sm:$0xff] }
0x15bf   :  { %9021 = vmatpush.bf16.msrb.mxu1 %v14712_v46  ;;  %8915 = vmatpush.bf16.msra.mxu3 %v14703_v34 }
0x15c3   :  { %9022 = vmatpush.bf16.msrb.mxu1 %v14711_v29  ;;  %8916 = vmatpush.bf16.msra.mxu3 %v14702_v30  ;;  %v14732_v29 = vld [vmem:[%s17571_s7 + $0x18] sm:$0xff] }
0x15c4   :  { %v14744_v30 = vld [vmem:[%s17571_s7 + $0x78] sm:$0xff] }
0x15c7   :  { %9023 = vmatpush.bf16.msrb.mxu1 %v14710_v31  ;;  %8917 = vmatpush.bf16.msra.mxu3 %v14701_v3  ;;  %v14731_v31 = vld [vmem:[%s17571_s7 + $0x10] sm:$0xff]  ;;  %v14730_v3 = vld [vmem:[%s17571_s7 + $0x8] sm:$0xff] }
0x15cb   :  { %9024 = vmatpush.bf16.msrb.mxu1 %v14709_v33  ;;  %9127 = vmatpush.bf16.msrb.mxu3 %v14720_v35  ;;  %v14729_v33 = vld [vmem:[%s17571_s7] sm:$0xff] }
0x15cc   :  { %v14741_v35 = vld [vmem:[%s17571_s7 + $0x60] sm:$0xff] }
0x15cf   :  { %9128 = vmatpush.bf16.msrb.mxu3 %v14719_v37  ;;  %v14740_v37 = vld [vmem:[%s17571_s7 + $0x58] sm:$0xff] }
0x15d0   :  { %9430 = vmatpush.bf16.msrb.mxu0 %v14740_v37 }
0x15d3   :  { %9129 = vmatpush.bf16.msrb.mxu3 %v14718_v57  ;;  %v14738_v57 = vld [vmem:[%s17571_s7 + $0x48] sm:$0xff] }
0x15d7   :  { %9130 = vmatpush.bf16.msrb.mxu3 %v14717_v45 }
0x1608   :  { %v8789_v43 = vpop.permute.xlu2 %8788 }
0x1609   :  { %13668 = vmatmul.msk.bf16.vlgmr.msra.gmra.mxu1 %vm182_vm6, %v8789_v43  ;;  %v14759_v43 = vld [vmem:[%s17571_s7 + $0xf0] sm:$0xff] }
0x160a   :  { %9236 = vmatpush.bf16.msra.mxu1 %v14728_v41  ;;  %v14739_v41 = vld [vmem:[%s17571_s7 + $0x50] sm:$0xff] }
0x160b   :  { %9431 = vmatpush.bf16.msrb.mxu0 %v14739_v41 }
0x160e   :  { %9237 = vmatpush.bf16.msra.mxu1 %v14727_v44  ;;  %v14737_v44 = vld [vmem:[%s17571_s7 + $0x40] sm:$0xff] }
0x160f   :  { %9432 = vmatpush.bf16.msrb.mxu0 %v14738_v57 }
0x1610   :  { %v9043_v59 = vpop.permute.xlu2 %9042 }
0x1611   :  { %13785 = vmatmul.msk.bf16.vlgmr.msrb.gmra.mxu2 %vm182_vm6, %v9043_v59 }
0x1612   :  { %9238 = vmatpush.bf16.msra.mxu1 %v14726_v49 }
0x1613   :  { %9433 = vmatpush.bf16.msrb.mxu0 %v14737_v44 }
0x1616   :  { %9239 = vmatpush.bf16.msra.mxu1 %v14725_v50 }
0x1618   :  { %v9260_v51 = vpop.permute.xlu2 %9259 }
0x161f   :  { %v8989_v53 = vpop.permute.xlu1 %8988 }
0x1620   :  { %v8882_v47 = vpop.permute.xlu0 %8881  ;;  %13760 = vmatmul.msk.bf16.vlgmr.msrb.gmra.mxu1 %vm182_vm6, %v8989_v53 }
0x1621   :  { %13710 = vmatmul.msk.bf16.vlgmr.msra.gmra.mxu3 %vm182_vm6, %v8882_v47  ;;  %9482 = vmatpush.bf16.msrb.mxu1 %v14744_v30 }
0x1622   :  { %9378 = vmatpush.bf16.msra.mxu3 %v14732_v29 }
0x1625   :  { %9483 = vmatpush.bf16.msrb.mxu1 %v14743_v32 }
0x1626   :  { %9379 = vmatpush.bf16.msra.mxu3 %v14731_v31 }
0x1627   :  { %v9204_v56 = vpop.permute.xlu1 %9203 }
0x1628   :  { %v9150_v48 = vpop.permute.xlu0 %9149 }
0x1629   :  { %13835 = vmatmul.msk.bf16.vlgmr.msra.gmra.mxu0 %vm182_vm6, %v9150_v48  ;;  %9484 = vmatpush.bf16.msrb.mxu1 %v14742_v13 }
0x162a   :  { %v8971_v54 = vpop.f32.mrf.mxu0  ;;  %9380 = vmatpush.bf16.msra.mxu3 %v14730_v3 }
0x162d   :  { %9485 = vmatpush.bf16.msrb.mxu1 %v14741_v35 }
0x162e   :  { %9381 = vmatpush.bf16.msra.mxu3 %v14729_v33 }
0x1630   :  { %13860 = vmatmul.msk.bf16.vlgmr.msra.gmra.mxu1 %vm182_vm6, %v9204_v56  ;;  %v9262_v46 = vpop.permute.xlu0 %9261 }
0x1631   :  { %13810 = vmatmul.msk.bf16.vlgmr.msrb.gmra.mxu3 %vm182_vm6, %v8768_v25  ;;  %9698 = vmatpush.bf16.msra.mxu1 %v14760_v39 }
0x1632   :  { %v8867_v11 = vpop.f32.mrf.mxu2  ;;  %v8973_v42 = vpop.f32.mrf.mxu0 }
0x1635   :  { %9699 = vmatpush.bf16.msra.mxu1 %v14759_v43 }
0x163a   :  { %v8869_v61 = vpop.f32.mrf.mxu2 }
0x1686   :  { %v8826_v58 = vpop.f32.mrf.mxu1 }
0x1687   :  { %v8868_v60 = vadd.f32 %v8867_v11, %v8826_v58  ;;  %v14756_v11 = vld [vmem:[%s17571_s7 + $0xd8] sm:$0xff] }
0x1688   :  { %9643 = vmatpush.bf16.msra.mxu0 %v14756_v11 }
0x168e   :  { %v8828_v10 = vpop.f32.mrf.mxu1 }
0x168f   :  { %v8870_v63 = vadd.f32 %v8869_v61, %v8828_v10  ;;  %v14735_v61 = vld [vmem:[%s17571_s7 + $0x30] sm:$0xff] }
0x1694   :  { %v9080_v1 = vpop.f32.mrf.mxu2 }
0x169c   :  { %v9082_v18 = vpop.f32.mrf.mxu2 }
0x169d   :  { %v9026_v40 = vpop.f32.mrf.mxu1 }
0x16a4   :  { %v8919_v55 = vpop.f32.mrf.mxu3 }
0x16a5   :  { %v8924_v4 = vadd.f32 %v8919_v55, %v8868_v60  ;;  %v9028_v16 = vpop.f32.mrf.mxu1  ;;  %v14757_v55 = vld [vmem:[%s17571_s7 + $0xe0] sm:$0xff]  ;;  %v14736_v60 = vld [vmem:[%s17571_s7 + $0x38] sm:$0xff] }
0x16a6   :  { %v9187_v38 = vpop.f32.mrf.mxu0  ;;  %9337 = vmatpush.bf16.msra.mxu2 %v14736_v60 }
0x16a7   :  { %v8976_v5 = vadd.f32 %v8971_v54, %v8924_v4  ;;  %v14758_v54 = vld [vmem:[%s17571_s7 + $0xe8] sm:$0xff] }
0x16a8   :  { %9700 = vmatpush.bf16.msra.mxu1 %v14758_v54  ;;  %v14754_v4 = vld [vmem:[%s17571_s7 + $0xc8] sm:$0xff] }
0x16a9   :  { %v9031_v62 = vadd.f32 %v9026_v40, %v8976_v5  ;;  %v14755_v40 = vld [vmem:[%s17571_s7 + $0xd0] sm:$0xff]  ;;  %v14734_v5 = vld [vmem:[%s17571_s7 + $0x28] sm:$0xff] }
0x16aa   :  { %9644 = vmatpush.bf16.msra.mxu0 %v14755_v40  ;;  %9338 = vmatpush.bf16.msra.mxu2 %v14735_v61 }
0x16ab   :  { %v9085_v52 = vadd.f32 %v9080_v1, %v9031_v62  ;;  %v14750_v62 = vld [vmem:[%s17571_s7 + $0xa8] sm:$0xff]  ;;  %v14747_v1 = vld [vmem:[%s17571_s7 + $0x90] sm:$0xff] }
0x16ac   :  { %v8921_v17 = vpop.f32.mrf.mxu3  ;;  %9701 = vmatpush.bf16.msra.mxu1 %v14757_v55 }
0x16ad   :  { %v8925_v0 = vadd.f32 %v8921_v17, %v8870_v63  ;;  %v9241_v8 = vpop.f32.mrf.mxu1  ;;  %v14733_v17 = vld [vmem:[%s17571_s7 + $0x20] sm:$0xff]  ;;  %v14751_v63 = vld [vmem:[%s17571_s7 + $0xb0] sm:$0xff] }
0x16ae   :  { %v9189_v23 = vpop.f32.mrf.mxu0  ;;  %9645 = vmatpush.bf16.msra.mxu0 %v14754_v4  ;;  %9339 = vmatpush.bf16.msra.mxu2 %v14734_v5 }
0x16af   :  { %v8977_v2 = vadd.f32 %v8973_v42, %v8925_v0  ;;  %v14753_v42 = vld [vmem:[%s17571_s7 + $0xc0] sm:$0xff]  ;;  %v14748_v0 = vld [vmem:[%s17571_s7 + $0x98] sm:$0xff] }
0x16b1   :  { %v9032_v14 = vadd.f32 %v9028_v16, %v8977_v2  ;;  %v14752_v16 = vld [vmem:[%s17571_s7 + $0xb8] sm:$0xff]  ;;  %v14749_v2 = vld [vmem:[%s17571_s7 + $0xa0] sm:$0xff] }
0x16b2   :  { %9646 = vmatpush.bf16.msra.mxu0 %v14753_v42  ;;  %9591 = vmatpush.bf16.msrb.mxu3 %v14752_v16 }
0x16b3   :  { %v9086_v20 = vadd.f32 %v9082_v18, %v9032_v14  ;;  %9340 = vmatpush.bf16.msra.mxu2 %v14733_v17  ;;  %v14762_v14 = vld [vmem:[%s17571_s7 + $0x108] sm:$0xff]  ;;  %v14761_v18 = vld [vmem:[%s17571_s7 + $0x100] sm:$0xff] }
0x16b4   :  { %v9132_v6 = vpop.f32.mrf.mxu3 }
0x16b5   :  { %v9137_v7 = vadd.f32 %v9132_v6, %v9085_v52  ;;  %v9243_v26 = vpop.f32.mrf.mxu1  ;;  %v14745_v6 = vld [vmem:[%s17571_s7 + $0x80] sm:$0xff] }
0x16b6   :  { %9592 = vmatpush.bf16.msrb.mxu3 %v14751_v63 }
0x16b7   :  { %v9192_v9 = vadd.f32 %v9187_v38, %v9137_v7  ;;  %9537 = vmatpush.bf16.msrb.mxu2 %v14748_v0  ;;  %v14746_v38 = vld [vmem:[%s17571_s7 + $0x88] sm:$0xff] }
0x16b9   :  { %v9246_v15 = vadd.f32 %v9241_v8, %v9192_v9  ;;  %v14764_v8 = vld [vmem:[%s17571_s7 + $0x118] sm:$0xff] }
0x16ba   :  { %9593 = vmatpush.bf16.msrb.mxu3 %v14750_v62 }
0x16bb   :  { %v9253_v19 = vadd.f32 %v14783_v12, %v9246_v15  ;;  %9538 = vmatpush.bf16.msrb.mxu2 %v14747_v1 }
0x16bc   :  { %v9134_v21 = vpop.f32.mrf.mxu3 }
0x16bd   :  { %v9138_v22 = vadd.f32 %v9134_v21, %v9086_v20  ;;  %v9265_v24 = vadd.f32 %v9260_v51, %v9253_v19 }
0x16be   :  { %9594 = vmatpush.bf16.msrb.mxu3 %v14749_v2 }
0x16bf   :  { %v9193_v25 = vadd.f32 %v9189_v23, %v9138_v22  ;;  %9269 = vrot.lane.b32.xlu1 %v9265_v24, %s14795_s13  ;;  %9539 = vmatpush.bf16.msrb.mxu2 %v14746_v38 }
0x16c1   :  { %v9247_v27 = vadd.f32 %v9243_v26, %v9193_v25 }
0x16c3   :  { %v9254_v28 = vadd.f32 %v14783_v12, %v9247_v27  ;;  %9540 = vmatpush.bf16.msrb.mxu2 %v14745_v6  ;;  %v14763_v12 = vld [vmem:[%s17571_s7 + $0x110] sm:$0xff] }
0x16c5   :  { %v9266_v34 = vadd.f32 %v9262_v46, %v9254_v28 }
0x16c7   :  { %9271 = vrot.lane.b32.xlu2 %v9266_v34, %s14795_s13 }
0x1721   :  { %v9272_v36 = vpop.permute.xlu2 %9271 }
0x1722   :  { %9276 = vst.msk [vmem:[#allocation3 + $0x11] sm:$0xff] %vm96_vm5, %v9272_v36 }
0x1729   :  { %v9281_v49 = vld [vmem:[#allocation3 + $0x11] sm:$0xff] }
0x172a   :  { %v9278_v53 = vld [vmem:[#allocation3 + $0x10] sm:$0xff] }
0x172b   :  { %v9284_v58 = vld [vmem:[#allocation3 + $0x12] sm:$0xff] }
0x1731   :  { %v9270_v45 = vpop.permute.xlu1 %9269 }
0x1732   :  { %9275 = vst.msk [vmem:[#allocation3 + $0x1] sm:$0xff] %vm96_vm5, %v9270_v45  ;;  %v14784_v45 = vld [vmem:[%s17572_s8] ss:$0 sm:$0xff] }
0x1739   :  { %v9280_v59 = vld [vmem:[#allocation3 + $0x1] sm:$0xff] }
0x173a   :  { %v9277_v50 = vld [vmem:[#allocation3] sm:$0xff]  ;;  %v9282_v47 = vpack.c.bf16 %v9281_v49, %v9280_v59 }
0x173b   :  { %v9279_v48 = vpack.c.bf16 %v9278_v53, %v9277_v50  ;;  %v9283_v56 = vld [vmem:[#allocation3 + $0x2] sm:$0xff] }
0x173c   :  { %9504 = vrot.lane.b32.xlu1 %v9282_v47, %s14798_s12  ;;  %13953 = vmatmul.msk.bf16.vlgmr.msrb.gmra.mxu1 %vm182_vm6, %v9282_v47  ;;  %v9285_v10 = vpack.c.bf16 %v9284_v58, %v9283_v56 }
0x173d   :  { %9397 = vrot.lane.b32.xlu2 %v9279_v48, %s14797_s11  ;;  %9304 = vrot.lane.b32.xlu0 %v9279_v48, %s14798_s12 }
0x173e   :  { %13903 = vmatmul.msk.bf16.vlgmr.msra.gmra.mxu3 %vm182_vm6, %v9279_v48 }
0x1744   :  { %9719 = vrot.lane.b32.xlu1 %v9285_v10, %s14797_s11 }
0x1745   :  { %9665 = vrot.lane.b32.xlu2 %v9285_v10, %s14798_s12  ;;  %9558 = vrot.lane.b32.xlu0 %v9282_v47, %s14797_s11 }
0x1797   :  { %v9398_v52 = vpop.permute.xlu2 %9397 }
0x1798   :  { %13928 = vmatmul.msk.bf16.vlgmr.msrb.gmra.mxu0 %vm182_vm6, %v9398_v52 }
0x179f   :  { %v9666_v7 = vpop.permute.xlu2 %9665 }
0x17a0   :  { %14053 = vmatmul.msk.bf16.vlgmr.msra.gmra.mxu1 %vm182_vm6, %v9666_v7 }
0x17a8   :  { %14028 = vmatmul.msk.bf16.vlgmr.msra.gmra.mxu0 %vm182_vm6, %v9285_v10 }
0x17ae   :  { %v9505_v19 = vpop.permute.xlu1 %9504 }
0x17af   :  { %v9305_v9 = vpop.permute.xlu0 %9304 }
0x17b0   :  { %13886 = vmatmul.msk.bf16.vlgmr.msra.gmra.mxu2 %vm182_vm6, %v9305_v9 }
0x17b1   :  { %9752 = vmatpush.bf16.msra.mxu2 %v14764_v8 }
0x17b5   :  { %9753 = vmatpush.bf16.msra.mxu2 %v14763_v12 }
0x17b6   :  { %v9720_v20 = vpop.permute.xlu1 %9719 }
0x17b7   :  { %v9559_v15 = vpop.permute.xlu0 %9558 }
0x17b8   :  { %14003 = vmatmul.msk.bf16.vlgmr.msrb.gmra.mxu3 %vm182_vm6, %v9559_v15 }
0x17b9   :  { %9754 = vmatpush.bf16.msra.mxu2 %v14762_v14  ;;  %v9487_v25 = vpop.f32.mrf.mxu1 }
0x17bd   :  { %9755 = vmatpush.bf16.msra.mxu2 %v14761_v18 }
0x17c0   :  { %13978 = vmatmul.msk.bf16.vlgmr.msrb.gmra.mxu2 %vm182_vm6, %v9505_v19 }
0x17c1   :  { %v9383_v21 = vpop.f32.mrf.mxu3  ;;  %v9489_v31 = vpop.f32.mrf.mxu1 }
0x17c9   :  { %v9385_v26 = vpop.f32.mrf.mxu3 }
0x17d0   :  { %14078 = vmatmul.msk.bf16.vlgmr.msra.gmra.mxu2 %vm182_vm6, %v9720_v20 }
0x1815   :  { %v9435_v22 = vpop.f32.mrf.mxu0 }
0x181d   :  { %v9437_v28 = vpop.f32.mrf.mxu0  ;;  %v9703_v41 = vpop.f32.mrf.mxu1 }
0x1825   :  { %v9648_v33 = vpop.f32.mrf.mxu0  ;;  %v9705_v56 = vpop.f32.mrf.mxu1 }
0x182d   :  { %v9650_v50 = vpop.f32.mrf.mxu0 }
0x1833   :  { %v9342_v51 = vpop.f32.mrf.mxu2 }
0x1834   :  { %v9384_v23 = vadd.f32 %v9383_v21, %v9342_v51 }
0x1836   :  { %v9440_v27 = vadd.f32 %v9435_v22, %v9384_v23 }
0x1838   :  { %v9492_v29 = vadd.f32 %v9487_v25, %v9440_v27 }
0x183b   :  { %v9344_v24 = vpop.f32.mrf.mxu2  ;;  %v9596_v32 = vpop.f32.mrf.mxu3 }
0x183c   :  { %v9386_v34 = vadd.f32 %v9385_v26, %v9344_v24 }
0x183e   :  { %v9441_v3 = vadd.f32 %v9437_v28, %v9386_v34 }
0x1840   :  { %v9493_v36 = vadd.f32 %v9489_v31, %v9441_v3 }
0x1843   :  { %v9542_v46 = vpop.f32.mrf.mxu2  ;;  %v9598_v43 = vpop.f32.mrf.mxu3 }
0x1844   :  { %v9547_v30 = vadd.f32 %v9542_v46, %v9492_v29 }
0x1846   :  { %v9601_v13 = vadd.f32 %v9596_v32, %v9547_v30 }
0x1848   :  { %v9653_v39 = vadd.f32 %v9648_v33, %v9601_v13 }
0x184a   :  { %v9708_v44 = vadd.f32 %v9703_v41, %v9653_v39 }
0x184b   :  { %v9544_v35 = vpop.f32.mrf.mxu2 }
0x184c   :  { %v9548_v37 = vadd.f32 %v9544_v35, %v9493_v36 }
0x184e   :  { %v9602_v57 = vadd.f32 %v9598_v43, %v9548_v37 }
0x1850   :  { %v9654_v47 = vadd.f32 %v9650_v50, %v9602_v57 }
0x1852   :  { %v9709_v58 = vadd.f32 %v9705_v56, %v9654_v47 }
0x1853   :  { %v9757_v49 = vpop.f32.mrf.mxu2 }
0x1854   :  { %v9762_v59 = vadd.f32 %v9757_v49, %v9708_v44 }
0x1856   :  { %v9768_v53 = vadd.f32 %v14784_v45, %v9762_v59 }
0x1858   :  { %v14079_v48 = vmul.f32 -1.442695, %v9768_v53 }
0x185a   :  { %14785 = vpow2.f32 %v14079_v48 }
0x185b   :  { %v9759_v10 = vpop.f32.mrf.mxu2 }
0x185c   :  { %v9763_v11 = vadd.f32 %v9759_v10, %v9709_v58 }
0x185e   :  { %v9769_v54 = vadd.f32 %v14784_v45, %v9763_v11 }
0x1860   :  { %v14786_v40 = vpop.eup %14785  ;;  %v14080_v55 = vmul.f32 -1.442695, %v9769_v54 }
0x1861   :  { %v9776_v60 = vadd.f32 1.0, %v14786_v40 }
0x1862   :  { %14787 = vpow2.f32 %v14080_v55 }
0x1863   :  { %14789 = vrcp.f32 %v9776_v60  ;;  %v9789_v17 = vand.u32 2147483648, %v9776_v60  ;;  %v9787_v0 = vand.u32 2147483647, %v9776_v60  ;;  %vm9783_vm8 = vweird.f32 %v9776_v60 }
0x1865   :  { %v9790_v2 = vor.u32 1.1754944e-38, %v9789_v17  ;;  %vm9788_vm11 = vcmp.eq.f32.partialorder %v9787_v0, 8.507059e+37 }
0x1868   :  { %v14788_v4 = vpop.eup %14787 }
0x1869   :  { %v14790_v61 = vpop.eup %14789  ;;  %v9777_v42 = vadd.f32 1.0, %v14788_v4 }
0x186a   :  { %v9779_v5 = vmul.f32 %v14790_v61, %v9776_v60  ;;  %vm9784_vm7 = vweird.f32 %v14790_v61 }
0x186b   :  { %14791 = vrcp.f32 %v9777_v42  ;;  %vm9785_vm9 = vmor %vm9783_vm8, %vm9784_vm7  ;;  %v9804_v8 = vand.u32 2147483648, %v9777_v42  ;;  %v9802_v12 = vand.u32 2147483647, %v9777_v42  ;;  %vm9798_vm13 = vweird.f32 %v9777_v42 }
0x186c   :  { %v9780_v16 = vsub.f32 1.0, %v9779_v5 }
0x186d   :  { %v9805_v15 = vor.u32 1.1754944e-38, %v9804_v8  ;;  %vm9803_vm15 = vcmp.eq.f32.partialorder %v9802_v12, 8.507059e+37 }
0x186e   :  { %v9781_v63 = vmul.f32 %v14790_v61, %v9780_v16 }
0x1870   :  { %v9782_v62 = vadd.f32 %v14790_v61, %v9781_v63 }
0x1871   :  { %v14792_v1 = vpop.eup %14791 }
0x1872   :  { %v9786_v52 = vsel %vm9785_vm9, %v14790_v61, %v9782_v62  ;;  %v9794_v38 = vmul.f32 %v14792_v1, %v9777_v42  ;;  %vm9799_vm12 = vweird.f32 %v14792_v1 }
0x1873   :  { %v9791_v6 = vsel %vm9788_vm11, %v9790_v2, %v9786_v52  ;;  %vm9800_vm14 = vmor %vm9798_vm13, %vm9799_vm12 }
0x1874   :  { %9809 = vst.msk [vmem:[%s17573_s9] sm:$0xff] %vm9808_vm10, %v9791_v6  ;;  %v9795_v7 = vsub.f32 1.0, %v9794_v38 }
0x1876   :  { %v9796_v9 = vmul.f32 %v14792_v1, %v9795_v7 }
0x1878   :  { %v9797_v14 = vadd.f32 %v14792_v1, %v9796_v9 }
0x187a   :  { %v9801_v18 = vsel %vm9800_vm14, %v14792_v1, %v9797_v14 }
0x187b   :  { %v9806_v19 = vsel %vm9803_vm15, %v9805_v15, %v9801_v18 }
0x187c   :  { %9810 = vst.msk [vmem:[%s17573_s9 + $0x8] sm:$0xff] %vm9808_vm10, %v9806_v19 }

</bundles_post_ra>
